<compile_context>
chip_gen: v7x
topology: tpu7x:2x2x1
jax: 0.10.0
libtpu: 0.0.40
codegen_flags: <defaults>
</compile_context>

<pallas_src>
import functools
import numpy as np
import jax
import jax.numpy as jnp
from jax.experimental import pallas as pl
from jax.experimental.pallas import tpu as pltpu

_COMPUTE_DTYPE = jnp.bfloat16          # MXU operands / inter-layer activations
_VMEM_LIMIT = 32 * 1024 * 1024         # explicit scoped-VMEM limit (safe on v5e/v6e/v7x)


# --------------------------------------------------------------------------
# Pallas kernels
# --------------------------------------------------------------------------

def _conv1d_kernel(x_ref, w_ref, b_ref, s_ref, t_ref, o_ref, *, K, d, TL, relu):
    """One output tile of a 'same' Conv1d (+ReLU + folded BN) for one batch item.

    x_ref: (1, 1, Cin, TL + (K-1)*d)   haloed input window (bf16)
    w_ref: (Cout, K*Cin)               im2col-ordered weight (bf16)
    b_ref, s_ref, t_ref: (Cout, 1)     bias / BN scale / BN shift (f32)
    o_ref: (1, Cout, TL)               lane-dense output tile
    """
    win = x_ref[0, 0]                                      # (Cin, WIN)
    if K > 1:
        # im2col: K shifted views stacked on the contraction axis -> one MXU matmul
        cols = jnp.concatenate(
            [win[:, k * d:k * d + TL] for k in range(K)], axis=0)   # (K*Cin, TL)
    else:
        cols = win
    acc = jnp.dot(w_ref[...], cols, preferred_element_type=jnp.float32)  # (Cout, TL) f32
    y = acc + b_ref[...]
    if relu:
        y = jnp.maximum(y, 0.0)
    y = y * s_ref[...] + t_ref[...]                        # folded BN (identity for heads)
    o_ref[0] = y.astype(o_ref.dtype)


def _pick_l_tile(L):
    """Largest L-tile (multiple of 128, <= 512) dividing L; whole L for short sequences."""
    if L <= 512:
        return L
    for tl in (512, 384, 256, 128):
        if L % tl == 0:
            return tl
    return L


def conv1d_block(x, w, b, scale, shift, *, dilation=1, relu=True):
    """x: (N, Cin, L), w: (K, Cin, Cout) -> (N, Cout, L).  Conv -> (+b) -> ReLU -> BN."""
    N, Cin, L = x.shape
    K, _, Cout = w.shape
    d = dilation
    pad = (K - 1) * d // 2                                 # 'same' padding (odd kernels)
    TL = _pick_l_tile(L)
    T = L // TL
    WIN = TL + (K - 1) * d

    xp = x.astype(_COMPUTE_DTYPE)
    if pad > 0:
        # TODO(synk): handle the halo inside the kernel (masked edge taps) to avoid
        #             this extra padded-copy HBM round trip per conv layer.
        xp = jnp.pad(xp, ((0, 0), (0, 0), (pad, pad)))
    if T == 1:
        xw = xp[:, None]                                   # (N, 1, Cin, WIN)
    else:
        # Pre-windowed overlapping tiles (halo duplication is only (K-1)*d per tile).
        xw = jnp.stack([xp[:, :, t * TL:t * TL + WIN] for t in range(T)], axis=1)

    # im2col weight: W2[co, k*Cin + ci] = w[k, ci, co]
    w2 = w.reshape(K * Cin, Cout).T.astype(_COMPUTE_DTYPE)
    b2 = b.reshape(Cout, 1).astype(jnp.float32)
    s2 = scale.reshape(Cout, 1).astype(jnp.float32)
    t2 = shift.reshape(Cout, 1).astype(jnp.float32)

    kern = functools.partial(_conv1d_kernel, K=K, d=d, TL=TL, relu=relu)
    cost = pl.CostEstimate(
        flops=2 * N * L * K * Cin * Cout,
        transcendentals=0,
        bytes_accessed=int(xw.size * xw.dtype.itemsize
                           + w2.size * w2.dtype.itemsize
                           + 3 * Cout * 4
                           + N * Cout * L * 2))

    return pl.pallas_call(
        kern,
        out_shape=jax.ShapeDtypeStruct((N, Cout, L), _COMPUTE_DTYPE),
        grid=(N, T),
        in_specs=[
            pl.BlockSpec((1, 1, Cin, WIN), lambda n, t: (n, t, 0, 0)),
            pl.BlockSpec((Cout, K * Cin), lambda n, t: (0, 0)),
            pl.BlockSpec((Cout, 1), lambda n, t: (0, 0)),
            pl.BlockSpec((Cout, 1), lambda n, t: (0, 0)),
            pl.BlockSpec((Cout, 1), lambda n, t: (0, 0)),
        ],
        out_specs=pl.BlockSpec((1, Cout, TL), lambda n, t: (n, 0, t)),
        compiler_params=pltpu.CompilerParams(
            dimension_semantics=("parallel", "parallel"),
            vmem_limit_bytes=_VMEM_LIMIT),
        cost_estimate=cost,
    )(xw, w2, b2, s2, t2)


def _pool_kernel(x_ref, o_ref, *, p, mode):
    if mode == "max":
        y = x_ref[0, 0]                                    # (C, Lout)
        for k in range(1, p):
            y = jnp.maximum(y, x_ref[k, 0])
        o_ref[0] = y.astype(o_ref.dtype)
    else:                                                  # avg (accumulate in f32)
        y = x_ref[0, 0].astype(jnp.float32)
        for k in range(1, p):
            y = y + x_ref[k, 0].astype(jnp.float32)
        o_ref[0] = (y * (1.0 / p)).astype(o_ref.dtype)


def pool1d(x, p, mode):
    """max/avg pool with kernel_size = stride = p along L.  x: (N, C, L)."""
    if p == 1:
        return x
    N, C, L = x.shape
    assert L % p == 0, f"pool1d: L={L} not divisible by p={p}"
    Lout = L // p
    # TODO(synk): reduce the p phases in-kernel directly from a (C, L) block to
    #             avoid this wrapper re-stack (one extra HBM round trip).
    xs = jnp.stack([x[:, :, k::p] for k in range(p)], axis=0)   # (p, N, C, Lout)
    kern = functools.partial(_pool_kernel, p=p, mode=mode)
    return pl.pallas_call(
        kern,
        out_shape=jax.ShapeDtypeStruct((N, C, Lout), x.dtype),
        grid=(N,),
        in_specs=[pl.BlockSpec((p, 1, C, Lout), lambda n: (0, n, 0, 0))],
        out_specs=pl.BlockSpec((1, C, Lout), lambda n: (n, 0, 0)),
        compiler_params=pltpu.CompilerParams(
            dimension_semantics=("parallel",),
            vmem_limit_bytes=_VMEM_LIMIT),
    )(xs)


def _interp_matrix(L_in, s):
    """F.interpolate(mode='linear', align_corners=False) as an (L_in, L_in*s) matrix M^T."""
    L_out = L_in * s
    M = np.zeros((L_in, L_out), np.float32)
    for j in range(L_out):
        src = (j + 0.5) / s - 0.5
        src = max(src, 0.0)
        i0 = int(np.floor(src))
        lam = src - i0
        i1 = min(i0 + 1, L_in - 1)
        M[i0, j] += 1.0 - lam
        M[i1, j] += lam
    return M


def _interp_kernel(x_ref, m_ref, o_ref):
    o_ref[0] = jnp.dot(x_ref[0], m_ref[...],
                       preferred_element_type=jnp.float32).astype(o_ref.dtype)


def upsample_linear(x, s):
    """x: (N, C, L) -> (N, C, L*s), linear interpolation, align_corners=False."""
    N, C, L = x.shape
    Lout = L * s
    # TODO(synk): replace the dense (L, L*s) matrix with a 2-tap in-kernel stencil
    #             for large L (this matmul is O(L^2 * C) and the matrix dominates HBM).
    Mt = jnp.asarray(_interp_matrix(L, s), dtype=x.dtype)
    return pl.pallas_call(
        _interp_kernel,
        out_shape=jax.ShapeDtypeStruct((N, C, Lout), x.dtype),
        grid=(N,),
        in_specs=[pl.BlockSpec((1, C, L), lambda n: (n, 0, 0)),
                  pl.BlockSpec((L, Lout), lambda n: (0, 0))],
        out_specs=pl.BlockSpec((1, C, Lout), lambda n: (n, 0, 0)),
        compiler_params=pltpu.CompilerParams(
            dimension_semantics=("parallel",),
            vmem_limit_bytes=_VMEM_LIMIT),
    )(x, Mt)


# --------------------------------------------------------------------------
# Parameter initialization (deterministic, synthetic)
# --------------------------------------------------------------------------

def _init_conv(key, K, cin, cout):
    kw, kb = jax.random.split(key)
    w = (jax.random.normal(kw, (K, cin, cout), jnp.float32) / np.sqrt(K * cin))
    b = 0.1 * jax.random.normal(kb, (cout,), jnp.float32)
    return w.astype(jnp.float32), b.astype(jnp.float32)


def _init_bn(key, c, eps=1e-5):
    k1, k2, k3, k4 = jax.random.split(key, 4)
    gamma = 1.0 + 0.1 * jax.random.normal(k1, (c,), jnp.float32)
    beta = 0.1 * jax.random.normal(k2, (c,), jnp.float32)
    mean = 0.1 * jax.random.normal(k3, (c,), jnp.float32)
    var = 1.0 + 0.1 * jnp.abs(jax.random.normal(k4, (c,), jnp.float32))
    scale = gamma / jnp.sqrt(var + eps)
    shift = beta - mean * scale
    return scale.astype(jnp.float32), shift.astype(jnp.float32)


def init_utime_params(key, *, n_classes, in_dims, depth, kernel_size,
                      init_filters, complexity_factor, change_size):
    cf = np.sqrt(complexity_factor)
    keys = iter(jax.random.split(key, 256))
    params = {"enc": [], "dec": []}

    # ---- encoder ----
    res_channels = []
    filters = init_filters
    cin = in_dims
    for i in range(depth):
        if i > 0:
            filters *= 2
        f = int(filters * cf)
        w0, b0 = _init_conv(next(keys), kernel_size, cin, f)
        s0, t0 = _init_bn(next(keys), f)
        w1, b1 = _init_conv(next(keys), kernel_size, f, f)
        s1, t1 = _init_bn(next(keys), f)
        params["enc"].append({"conv0": (w0, b0, s0, t0),
                              "conv1": (w1, b1, s1, t1)})
        res_channels.append(f)
        cin = f

    # ---- decoder ----
    filters_d = filters                                    # == init_filters * 2**(depth-1)
    for i in range(depth):
        filters_d = int(filters_d / 2)
        f = int(filters_d * cf)
        rc = res_channels[-(i + 1)]
        w0, b0 = _init_conv(next(keys), kernel_size, rc, f)
        s0, t0 = _init_bn(next(keys), f)
        w1, b1 = _init_conv(next(keys), kernel_size, rc + f, f)
        s1, t1 = _init_bn(next(keys), f)
        w2, b2 = _init_conv(next(keys), kernel_size, f, f)
        s2, t2 = _init_bn(next(keys), f)
        params["dec"].append({"d0": (w0, b0, s0, t0),
                              "d1c0": (w1, b1, s1, t1),
                              "d1c1": (w2, b2, s2, t2)})
    dec_f = int(filters_d * cf)

    # ---- heads (no ReLU / BN: identity scale/shift) ----
    wpr, bpr = _init_conv(next(keys), 1, dec_f, n_classes)
    params["proj"] = (wpr, bpr,
                      jnp.ones((n_classes,), jnp.float32),
                      jnp.zeros((n_classes,), jnp.float32))
    wp2, bp2 = _init_conv(next(keys), change_size, n_classes, n_classes)
    params["proj2"] = (wp2, bp2,
                       jnp.ones((n_classes,), jnp.float32),
                       jnp.zeros((n_classes,), jnp.float32))
    return params


# --------------------------------------------------------------------------
# Forward pass (mirrors UTime.forward; layout is NCL throughout)
# --------------------------------------------------------------------------

def utime_forward(params, x_ncl, *, depth, pools, dilation, segment_size):
    N, C, L = x_ncl.shape
    assert L % int(np.prod(pools)) == 0, "L must be divisible by prod(pools)"
    assert L % segment_size == 0, "L must be divisible by segment_size"

    h = x_ncl.astype(_COMPUTE_DTYPE)                       # (N, Cin, L)

    # ---- encoder ----
    # TODO(synk): fuse conv0+conv1 of each block (and the preceding max-pool)
    #             into a single pallas_call to halve activation HBM traffic.
    outs = []
    for i in range(depth):
        if i > 0:
            h = pool1d(h, pools[i - 1], "max")
        p = params["enc"][i]
        h = conv1d_block(h, *p["conv0"], dilation=dilation, relu=True)
        h = conv1d_block(h, *p["conv1"], dilation=dilation, relu=True)
        outs.append(h)
    h = pool1d(outs[-1], pools[-1], "max")

    # ---- decoder ----
    for i in range(depth):
        h = upsample_linear(h, pools[-(i + 1)])
        p = params["dec"][i]
        h = conv1d_block(h, *p["d0"], dilation=1, relu=True)
        h = jnp.concatenate([outs[-(i + 1)], h], axis=1)   # cat on channel axis
        h = conv1d_block(h, *p["d1c0"], dilation=1, relu=True)
        h = conv1d_block(h, *p["d1c1"], dilation=1, relu=True)

    # ---- heads ----
    h = conv1d_block(h, *params["proj"], dilation=1, relu=False)    # 1x1 conv
    h = pool1d(h, segment_size, "avg")                              # avg_pool1d
    h = conv1d_block(h, *params["proj2"], dilation=1, relu=False)
    h = jnp.repeat(h, segment_size, axis=2)                         # repeat_interleave (time)

    return h.astype(jnp.float32)                                    # (N, n_classes, L)


# --------------------------------------------------------------------------

if __name__ == "__main__":
    # Small config consistent with UTime defaults (kernel_size=5, dilation=2,
    # complexity_factor=2, 'same' padding); depth/pools shrunk for fast testing.
    cfg = dict(n_classes=3, in_dims=4, depth=3, dilation=2, kernel_size=5,
               init_filters=8, complexity_factor=2, pools=(2, 2, 2),
               segment_size=2, change_size=3)
    N, L = 2, 32   # L must be divisible by prod(pools) and by segment_size

    key = jax.random.PRNGKey(0)
    kx, kp = jax.random.split(key)
    x = jax.random.normal(kx, (N, cfg["in_dims"], L), jnp.float32)   # PyTorch NCL input

    params = init_utime_params(
        kp, n_classes=cfg["n_classes"], in_dims=cfg["in_dims"], depth=cfg["depth"],
        kernel_size=cfg["kernel_size"], init_filters=cfg["init_filters"],
        complexity_factor=cfg["complexity_factor"], change_size=cfg["change_size"])

    fwd = jax.jit(functools.partial(
        utime_forward, depth=cfg["depth"], pools=cfg["pools"],
        dilation=cfg["dilation"], segment_size=cfg["segment_size"]))

    out = fwd(params, x)
    jax.block_until_ready(out)

    assert out.shape == (N, cfg["n_classes"], L), out.shape
    assert bool(jnp.all(jnp.isfinite(out)))
    print("KERNEL_OK")
</pallas_src>

<mosaic_0001>
module attributes {stable_mosaic.version = 11 : i64} {
  func.func @_conv1d_kernel(%arg0: i32, %arg1: i32, %arg2: memref<1x1x11x40xbf16, #tpu.memory_space<vmem>>, %arg3: memref<11x55xbf16, #tpu.memory_space<vmem>>, %arg4: memref<11x1xf32, #tpu.memory_space<vmem>>, %arg5: memref<11x1xf32, #tpu.memory_space<vmem>>, %arg6: memref<11x1xf32, #tpu.memory_space<vmem>>, %arg7: memref<1x11x32xbf16, #tpu.memory_space<vmem>>) attributes {dimension_semantics = [#tpu.dimension_semantics<parallel>, #tpu.dimension_semantics<parallel>], iteration_bounds = array<i64: 2, 1>, scalar_prefetch = 0 : i64, scratch_operands = 0 : i64, tpu.core_type = #tpu.core_type<tc>, window_params = [{transform_indices = @transform_0, window_bounds = array<i64: 1, 1, 11, 40>}, {pipeline_mode = #tpu.pipeline_mode<synchronous>, transform_indices = @transform_1, window_bounds = array<i64: 11, 55>}, {pipeline_mode = #tpu.pipeline_mode<synchronous>, transform_indices = @transform_2, window_bounds = array<i64: 11, 1>}, {pipeline_mode = #tpu.pipeline_mode<synchronous>, transform_indices = @transform_3, window_bounds = array<i64: 11, 1>}, {pipeline_mode = #tpu.pipeline_mode<synchronous>, transform_indices = @transform_4, window_bounds = array<i64: 11, 1>}, {transform_indices = @transform_5, window_bounds = array<i64: 1, 11, 32>}]} {
    %c0 = arith.constant 0 : index
    %c0_0 = arith.constant 0 : index
    %c0_1 = arith.constant 0 : index
    %c0_2 = arith.constant 0 : index
    %0 = vector.load %arg2[%c0, %c0_0, %c0_1, %c0_2] : memref<1x1x11x40xbf16, #tpu.memory_space<vmem>>, vector<1x1x11x40xbf16>
    %1 = vector.shape_cast %0 : vector<1x1x11x40xbf16> to vector<11x40xbf16>
    %2 = vector.extract_strided_slice %1 {offsets = [0, 0], sizes = [11, 32], strides = [1, 1]} : vector<11x40xbf16> to vector<11x32xbf16>
    %3 = vector.extract_strided_slice %1 {offsets = [0, 2], sizes = [11, 32], strides = [1, 1]} : vector<11x40xbf16> to vector<11x32xbf16>
    %4 = vector.extract_strided_slice %1 {offsets = [0, 4], sizes = [11, 32], strides = [1, 1]} : vector<11x40xbf16> to vector<11x32xbf16>
    %5 = vector.extract_strided_slice %1 {offsets = [0, 6], sizes = [11, 32], strides = [1, 1]} : vector<11x40xbf16> to vector<11x32xbf16>
    %6 = vector.extract_strided_slice %1 {offsets = [0, 8], sizes = [11, 32], strides = [1, 1]} : vector<11x40xbf16> to vector<11x32xbf16>
    %7 = tpu.concatenate %2, %3, %4, %5, %6 in 0 : vector<11x32xbf16>, vector<11x32xbf16>, vector<11x32xbf16>, vector<11x32xbf16>, vector<11x32xbf16> -> vector<55x32xbf16>
    %c0_3 = arith.constant 0 : index
    %c0_4 = arith.constant 0 : index
    %8 = vector.load %arg3[%c0_3, %c0_4] : memref<11x55xbf16, #tpu.memory_space<vmem>>, vector<11x55xbf16>
    %cst = arith.constant dense<0.000000e+00> : vector<11x32xf32>
    %9 = tpu.matmul %8, %7, %cst {dimension_numbers = #tpu.dot_dimension_numbers<[1], [0], [0], [1], [0, 0, 1, 1], [], []>} : vector<11x55xbf16>, vector<55x32xbf16>, vector<11x32xf32> -> vector<11x32xf32>
    %c0_5 = arith.constant 0 : index
    %c0_6 = arith.constant 0 : index
    %10 = vector.load %arg4[%c0_5, %c0_6] : memref<11x1xf32, #tpu.memory_space<vmem>>, vector<11x1xf32>
    %11 = vector.broadcast %10 : vector<11x1xf32> to vector<11x32xf32>
    %12 = arith.addf %9, %11 : vector<11x32xf32>
    %cst_7 = arith.constant 0.000000e+00 : f32
    %13 = vector.broadcast %cst_7 : f32 to vector<11x32xf32>
    %14 = arith.maximumf %12, %13 : vector<11x32xf32>
    %c0_8 = arith.constant 0 : index
    %c0_9 = arith.constant 0 : index
    %15 = vector.load %arg5[%c0_8, %c0_9] : memref<11x1xf32, #tpu.memory_space<vmem>>, vector<11x1xf32>
    %16 = vector.broadcast %15 : vector<11x1xf32> to vector<11x32xf32>
    %17 = arith.mulf %14, %16 : vector<11x32xf32>
    %c0_10 = arith.constant 0 : index
    %c0_11 = arith.constant 0 : index
    %18 = vector.load %arg6[%c0_10, %c0_11] : memref<11x1xf32, #tpu.memory_space<vmem>>, vector<11x1xf32>
    %19 = vector.broadcast %18 : vector<11x1xf32> to vector<11x32xf32>
    %20 = arith.addf %17, %19 : vector<11x32xf32>
    %21 = arith.truncf %20 : vector<11x32xf32> to vector<11x32xbf16>
    %c0_12 = arith.constant 0 : index
    %c0_13 = arith.constant 0 : index
    %c0_14 = arith.constant 0 : index
    %22 = vector.load %arg7[%c0_12, %c0_13, %c0_14] : memref<1x11x32xbf16, #tpu.memory_space<vmem>>, vector<1x11x32xbf16>
    %23 = vector.shape_cast %22 : vector<1x11x32xbf16> to vector<11x32xbf16>
    %24 = vector.shape_cast %21 : vector<11x32xbf16> to vector<1x11x32xbf16>
    tpu.vector_store %arg7[%c0_12, %c0_13, %c0_14], %24 {strides = array<i32>} : memref<1x11x32xbf16, #tpu.memory_space<vmem>>, vector<1x11x32xbf16>,
    return
  }
  func.func @transform_0(%arg0: i32, %arg1: i32) -> (i32, i32, i32, i32) {
    %c0_i32 = arith.constant 0 : i32
    %c0_i32_0 = arith.constant 0 : i32
    %c0_i32_1 = arith.constant 0 : i32
    return %arg0, %arg1, %c0_i32, %c0_i32_0 : i32, i32, i32, i32
  }
  func.func @transform_1(%arg0: i32, %arg1: i32) -> (i32, i32) {
    %c0_i32 = arith.constant 0 : i32
    %c0_i32_0 = arith.constant 0 : i32
    %c0_i32_1 = arith.constant 0 : i32
    return %c0_i32, %c0_i32_0 : i32, i32
  }
  func.func @transform_2(%arg0: i32, %arg1: i32) -> (i32, i32) {
    %c0_i32 = arith.constant 0 : i32
    %c0_i32_0 = arith.constant 0 : i32
    %c0_i32_1 = arith.constant 0 : i32
    return %c0_i32, %c0_i32_0 : i32, i32
  }
  func.func @transform_3(%arg0: i32, %arg1: i32) -> (i32, i32) {
    %c0_i32 = arith.constant 0 : i32
    %c0_i32_0 = arith.constant 0 : i32
    %c0_i32_1 = arith.constant 0 : i32
    return %c0_i32, %c0_i32_0 : i32, i32
  }
  func.func @transform_4(%arg0: i32, %arg1: i32) -> (i32, i32) {
    %c0_i32 = arith.constant 0 : i32
    %c0_i32_0 = arith.constant 0 : i32
    %c0_i32_1 = arith.constant 0 : i32
    return %c0_i32, %c0_i32_0 : i32, i32
  }
  func.func @transform_5(%arg0: i32, %arg1: i32) -> (i32, i32, i32) {
    %c0_i32 = arith.constant 0 : i32
    %c0_i32_0 = arith.constant 0 : i32
    return %arg0, %c0_i32, %arg1 : i32, i32, i32
  }
}

module attributes {stable_mosaic.version = 11 : i64} {
  func.func @_conv1d_kernel(%arg0: i32, %arg1: i32, %arg2: memref<1x1x4x40xbf16, #tpu.memory_space<vmem>>, %arg3: memref<11x20xbf16, #tpu.memory_space<vmem>>, %arg4: memref<11x1xf32, #tpu.memory_space<vmem>>, %arg5: memref<11x1xf32, #tpu.memory_space<vmem>>, %arg6: memref<11x1xf32, #tpu.memory_space<vmem>>, %arg7: memref<1x11x32xbf16, #tpu.memory_space<vmem>>) attributes {dimension_semantics = [#tpu.dimension_semantics<parallel>, #tpu.dimension_semantics<parallel>], iteration_bounds = array<i64: 2, 1>, scalar_prefetch = 0 : i64, scratch_operands = 0 : i64, tpu.core_type = #tpu.core_type<tc>, window_params = [{transform_indices = @transform_0, window_bounds = array<i64: 1, 1, 4, 40>}, {pipeline_mode = #tpu.pipeline_mode<synchronous>, transform_indices = @transform_1, window_bounds = array<i64: 11, 20>}, {pipeline_mode = #tpu.pipeline_mode<synchronous>, transform_indices = @transform_2, window_bounds = array<i64: 11, 1>}, {pipeline_mode = #tpu.pipeline_mode<synchronous>, transform_indices = @transform_3, window_bounds = array<i64: 11, 1>}, {pipeline_mode = #tpu.pipeline_mode<synchronous>, transform_indices = @transform_4, window_bounds = array<i64: 11, 1>}, {transform_indices = @transform_5, window_bounds = array<i64: 1, 11, 32>}]} {
    %c0 = arith.constant 0 : index
    %c0_0 = arith.constant 0 : index
    %c0_1 = arith.constant 0 : index
    %c0_2 = arith.constant 0 : index
    %0 = vector.load %arg2[%c0, %c0_0, %c0_1, %c0_2] : memref<1x1x4x40xbf16, #tpu.memory_space<vmem>>, vector<1x1x4x40xbf16>
    %1 = vector.shape_cast %0 : vector<1x1x4x40xbf16> to vector<4x40xbf16>
    %2 = vector.extract_strided_slice %1 {offsets = [0, 0], sizes = [4, 32], strides = [1, 1]} : vector<4x40xbf16> to vector<4x32xbf16>
    %3 = vector.extract_strided_slice %1 {offsets = [0, 2], sizes = [4, 32], strides = [1, 1]} : vector<4x40xbf16> to vector<4x32xbf16>
    %4 = vector.extract_strided_slice %1 {offsets = [0, 4], sizes = [4, 32], strides = [1, 1]} : vector<4x40xbf16> to vector<4x32xbf16>
    %5 = vector.extract_strided_slice %1 {offsets = [0, 6], sizes = [4, 32], strides = [1, 1]} : vector<4x40xbf16> to vector<4x32xbf16>
    %6 = vector.extract_strided_slice %1 {offsets = [0, 8], sizes = [4, 32], strides = [1, 1]} : vector<4x40xbf16> to vector<4x32xbf16>
    %7 = tpu.concatenate %2, %3, %4, %5, %6 in 0 : vector<4x32xbf16>, vector<4x32xbf16>, vector<4x32xbf16>, vector<4x32xbf16>, vector<4x32xbf16> -> vector<20x32xbf16>
    %c0_3 = arith.constant 0 : index
    %c0_4 = arith.constant 0 : index
    %8 = vector.load %arg3[%c0_3, %c0_4] : memref<11x20xbf16, #tpu.memory_space<vmem>>, vector<11x20xbf16>
    %cst = arith.constant dense<0.000000e+00> : vector<11x32xf32>
    %9 = tpu.matmul %8, %7, %cst {dimension_numbers = #tpu.dot_dimension_numbers<[1], [0], [0], [1], [0, 0, 1, 1], [], []>} : vector<11x20xbf16>, vector<20x32xbf16>, vector<11x32xf32> -> vector<11x32xf32>
    %c0_5 = arith.constant 0 : index
    %c0_6 = arith.constant 0 : index
    %10 = vector.load %arg4[%c0_5, %c0_6] : memref<11x1xf32, #tpu.memory_space<vmem>>, vector<11x1xf32>
    %11 = vector.broadcast %10 : vector<11x1xf32> to vector<11x32xf32>
    %12 = arith.addf %9, %11 : vector<11x32xf32>
    %cst_7 = arith.constant 0.000000e+00 : f32
    %13 = vector.broadcast %cst_7 : f32 to vector<11x32xf32>
    %14 = arith.maximumf %12, %13 : vector<11x32xf32>
    %c0_8 = arith.constant 0 : index
    %c0_9 = arith.constant 0 : index
    %15 = vector.load %arg5[%c0_8, %c0_9] : memref<11x1xf32, #tpu.memory_space<vmem>>, vector<11x1xf32>
    %16 = vector.broadcast %15 : vector<11x1xf32> to vector<11x32xf32>
    %17 = arith.mulf %14, %16 : vector<11x32xf32>
    %c0_10 = arith.constant 0 : index
    %c0_11 = arith.constant 0 : index
    %18 = vector.load %arg6[%c0_10, %c0_11] : memref<11x1xf32, #tpu.memory_space<vmem>>, vector<11x1xf32>
    %19 = vector.broadcast %18 : vector<11x1xf32> to vector<11x32xf32>
    %20 = arith.addf %17, %19 : vector<11x32xf32>
    %21 = arith.truncf %20 : vector<11x32xf32> to vector<11x32xbf16>
    %c0_12 = arith.constant 0 : index
    %c0_13 = arith.constant 0 : index
    %c0_14 = arith.constant 0 : index
    %22 = vector.load %arg7[%c0_12, %c0_13, %c0_14] : memref<1x11x32xbf16, #tpu.memory_space<vmem>>, vector<1x11x32xbf16>
    %23 = vector.shape_cast %22 : vector<1x11x32xbf16> to vector<11x32xbf16>
    %24 = vector.shape_cast %21 : vector<11x32xbf16> to vector<1x11x32xbf16>
    tpu.vector_store %arg7[%c0_12, %c0_13, %c0_14], %24 {strides = array<i32>} : memref<1x11x32xbf16, #tpu.memory_space<vmem>>, vector<1x11x32xbf16>,
    return
  }
  func.func @transform_0(%arg0: i32, %arg1: i32) -> (i32, i32, i32, i32) {
    %c0_i32 = arith.constant 0 : i32
    %c0_i32_0 = arith.constant 0 : i32
    %c0_i32_1 = arith.constant 0 : i32
    return %arg0, %arg1, %c0_i32, %c0_i32_0 : i32, i32, i32, i32
  }
  func.func @transform_1(%arg0: i32, %arg1: i32) -> (i32, i32) {
    %c0_i32 = arith.constant 0 : i32
    %c0_i32_0 = arith.constant 0 : i32
    %c0_i32_1 = arith.constant 0 : i32
    return %c0_i32, %c0_i32_0 : i32, i32
  }
  func.func @transform_2(%arg0: i32, %arg1: i32) -> (i32, i32) {
    %c0_i32 = arith.constant 0 : i32
    %c0_i32_0 = arith.constant 0 : i32
    %c0_i32_1 = arith.constant 0 : i32
    return %c0_i32, %c0_i32_0 : i32, i32
  }
  func.func @transform_3(%arg0: i32, %arg1: i32) -> (i32, i32) {
    %c0_i32 = arith.constant 0 : i32
    %c0_i32_0 = arith.constant 0 : i32
    %c0_i32_1 = arith.constant 0 : i32
    return %c0_i32, %c0_i32_0 : i32, i32
  }
  func.func @transform_4(%arg0: i32, %arg1: i32) -> (i32, i32) {
    %c0_i32 = arith.constant 0 : i32
    %c0_i32_0 = arith.constant 0 : i32
    %c0_i32_1 = arith.constant 0 : i32
    return %c0_i32, %c0_i32_0 : i32, i32
  }
  func.func @transform_5(%arg0: i32, %arg1: i32) -> (i32, i32, i32) {
    %c0_i32 = arith.constant 0 : i32
    %c0_i32_0 = arith.constant 0 : i32
    return %arg0, %c0_i32, %arg1 : i32, i32, i32
  }
}

module attributes {stable_mosaic.version = 11 : i64} {
  func.func @_pool_kernel(%arg0: i32, %arg1: memref<2x1x11x16xbf16, #tpu.memory_space<vmem>>, %arg2: memref<1x11x16xbf16, #tpu.memory_space<vmem>>) attributes {dimension_semantics = [#tpu.dimension_semantics<parallel>], iteration_bounds = array<i64: 2>, scalar_prefetch = 0 : i64, scratch_operands = 0 : i64, tpu.core_type = #tpu.core_type<tc>, window_params = [{transform_indices = @transform_0, window_bounds = array<i64: 2, 1, 11, 16>}, {transform_indices = @transform_1, window_bounds = array<i64: 1, 11, 16>}]} {
    %c0 = arith.constant 0 : index
    %c0_0 = arith.constant 0 : index
    %c0_1 = arith.constant 0 : index
    %c0_2 = arith.constant 0 : index
    %0 = vector.load %arg1[%c0, %c0_0, %c0_1, %c0_2] : memref<2x1x11x16xbf16, #tpu.memory_space<vmem>>, vector<1x1x11x16xbf16>
    %1 = vector.shape_cast %0 : vector<1x1x11x16xbf16> to vector<11x16xbf16>
    %c1 = arith.constant 1 : index
    %c0_3 = arith.constant 0 : index
    %c0_4 = arith.constant 0 : index
    %c0_5 = arith.constant 0 : index
    %2 = vector.load %arg1[%c1, %c0_3, %c0_4, %c0_5] : memref<2x1x11x16xbf16, #tpu.memory_space<vmem>>, vector<1x1x11x16xbf16>
    %3 = vector.shape_cast %2 : vector<1x1x11x16xbf16> to vector<11x16xbf16>
    %4 = arith.maximumf %1, %3 : vector<11x16xbf16>
    %c0_6 = arith.constant 0 : index
    %c0_7 = arith.constant 0 : index
    %c0_8 = arith.constant 0 : index
    %5 = vector.load %arg2[%c0_6, %c0_7, %c0_8] : memref<1x11x16xbf16, #tpu.memory_space<vmem>>, vector<1x11x16xbf16>
    %6 = vector.shape_cast %5 : vector<1x11x16xbf16> to vector<11x16xbf16>
    %7 = vector.shape_cast %4 : vector<11x16xbf16> to vector<1x11x16xbf16>
    tpu.vector_store %arg2[%c0_6, %c0_7, %c0_8], %7 {strides = array<i32>} : memref<1x11x16xbf16, #tpu.memory_space<vmem>>, vector<1x11x16xbf16>,
    return
  }
  func.func @transform_0(%arg0: i32) -> (i32, i32, i32, i32) {
    %c0_i32 = arith.constant 0 : i32
    %c0_i32_0 = arith.constant 0 : i32
    %c0_i32_1 = arith.constant 0 : i32
    %c0_i32_2 = arith.constant 0 : i32
    return %c0_i32, %arg0, %c0_i32_0, %c0_i32_1 : i32, i32, i32, i32
  }
  func.func @transform_1(%arg0: i32) -> (i32, i32, i32) {
    %c0_i32 = arith.constant 0 : i32
    %c0_i32_0 = arith.constant 0 : i32
    %c0_i32_1 = arith.constant 0 : i32
    return %arg0, %c0_i32, %c0_i32_0 : i32, i32, i32
  }
}

module attributes {stable_mosaic.version = 11 : i64} {
  func.func @_conv1d_kernel(%arg0: i32, %arg1: i32, %arg2: memref<1x1x11x24xbf16, #tpu.memory_space<vmem>>, %arg3: memref<22x55xbf16, #tpu.memory_space<vmem>>, %arg4: memref<22x1xf32, #tpu.memory_space<vmem>>, %arg5: memref<22x1xf32, #tpu.memory_space<vmem>>, %arg6: memref<22x1xf32, #tpu.memory_space<vmem>>, %arg7: memref<1x22x16xbf16, #tpu.memory_space<vmem>>) attributes {dimension_semantics = [#tpu.dimension_semantics<parallel>, #tpu.dimension_semantics<parallel>], iteration_bounds = array<i64: 2, 1>, scalar_prefetch = 0 : i64, scratch_operands = 0 : i64, tpu.core_type = #tpu.core_type<tc>, window_params = [{transform_indices = @transform_0, window_bounds = array<i64: 1, 1, 11, 24>}, {pipeline_mode = #tpu.pipeline_mode<synchronous>, transform_indices = @transform_1, window_bounds = array<i64: 22, 55>}, {pipeline_mode = #tpu.pipeline_mode<synchronous>, transform_indices = @transform_2, window_bounds = array<i64: 22, 1>}, {pipeline_mode = #tpu.pipeline_mode<synchronous>, transform_indices = @transform_3, window_bounds = array<i64: 22, 1>}, {pipeline_mode = #tpu.pipeline_mode<synchronous>, transform_indices = @transform_4, window_bounds = array<i64: 22, 1>}, {transform_indices = @transform_5, window_bounds = array<i64: 1, 22, 16>}]} {
    %c0 = arith.constant 0 : index
    %c0_0 = arith.constant 0 : index
    %c0_1 = arith.constant 0 : index
    %c0_2 = arith.constant 0 : index
    %0 = vector.load %arg2[%c0, %c0_0, %c0_1, %c0_2] : memref<1x1x11x24xbf16, #tpu.memory_space<vmem>>, vector<1x1x11x24xbf16>
    %1 = vector.shape_cast %0 : vector<1x1x11x24xbf16> to vector<11x24xbf16>
    %2 = vector.extract_strided_slice %1 {offsets = [0, 0], sizes = [11, 16], strides = [1, 1]} : vector<11x24xbf16> to vector<11x16xbf16>
    %3 = vector.extract_strided_slice %1 {offsets = [0, 2], sizes = [11, 16], strides = [1, 1]} : vector<11x24xbf16> to vector<11x16xbf16>
    %4 = vector.extract_strided_slice %1 {offsets = [0, 4], sizes = [11, 16], strides = [1, 1]} : vector<11x24xbf16> to vector<11x16xbf16>
    %5 = vector.extract_strided_slice %1 {offsets = [0, 6], sizes = [11, 16], strides = [1, 1]} : vector<11x24xbf16> to vector<11x16xbf16>
    %6 = vector.extract_strided_slice %1 {offsets = [0, 8], sizes = [11, 16], strides = [1, 1]} : vector<11x24xbf16> to vector<11x16xbf16>
    %7 = tpu.concatenate %2, %3, %4, %5, %6 in 0 : vector<11x16xbf16>, vector<11x16xbf16>, vector<11x16xbf16>, vector<11x16xbf16>, vector<11x16xbf16> -> vector<55x16xbf16>
    %c0_3 = arith.constant 0 : index
    %c0_4 = arith.constant 0 : index
    %8 = vector.load %arg3[%c0_3, %c0_4] : memref<22x55xbf16, #tpu.memory_space<vmem>>, vector<22x55xbf16>
    %cst = arith.constant dense<0.000000e+00> : vector<22x16xf32>
    %9 = tpu.matmul %8, %7, %cst {dimension_numbers = #tpu.dot_dimension_numbers<[1], [0], [0], [1], [0, 0, 1, 1], [], []>} : vector<22x55xbf16>, vector<55x16xbf16>, vector<22x16xf32> -> vector<22x16xf32>
    %c0_5 = arith.constant 0 : index
    %c0_6 = arith.constant 0 : index
    %10 = vector.load %arg4[%c0_5, %c0_6] : memref<22x1xf32, #tpu.memory_space<vmem>>, vector<22x1xf32>
    %11 = vector.broadcast %10 : vector<22x1xf32> to vector<22x16xf32>
    %12 = arith.addf %9, %11 : vector<22x16xf32>
    %cst_7 = arith.constant 0.000000e+00 : f32
    %13 = vector.broadcast %cst_7 : f32 to vector<22x16xf32>
    %14 = arith.maximumf %12, %13 : vector<22x16xf32>
    %c0_8 = arith.constant 0 : index
    %c0_9 = arith.constant 0 : index
    %15 = vector.load %arg5[%c0_8, %c0_9] : memref<22x1xf32, #tpu.memory_space<vmem>>, vector<22x1xf32>
    %16 = vector.broadcast %15 : vector<22x1xf32> to vector<22x16xf32>
    %17 = arith.mulf %14, %16 : vector<22x16xf32>
    %c0_10 = arith.constant 0 : index
    %c0_11 = arith.constant 0 : index
    %18 = vector.load %arg6[%c0_10, %c0_11] : memref<22x1xf32, #tpu.memory_space<vmem>>, vector<22x1xf32>
    %19 = vector.broadcast %18 : vector<22x1xf32> to vector<22x16xf32>
    %20 = arith.addf %17, %19 : vector<22x16xf32>
    %21 = arith.truncf %20 : vector<22x16xf32> to vector<22x16xbf16>
    %c0_12 = arith.constant 0 : index
    %c0_13 = arith.constant 0 : index
    %c0_14 = arith.constant 0 : index
    %22 = vector.load %arg7[%c0_12, %c0_13, %c0_14] : memref<1x22x16xbf16, #tpu.memory_space<vmem>>, vector<1x22x16xbf16>
    %23 = vector.shape_cast %22 : vector<1x22x16xbf16> to vector<22x16xbf16>
    %24 = vector.shape_cast %21 : vector<22x16xbf16> to vector<1x22x16xbf16>
    tpu.vector_store %arg7[%c0_12, %c0_13, %c0_14], %24 {strides = array<i32>} : memref<1x22x16xbf16, #tpu.memory_space<vmem>>, vector<1x22x16xbf16>,
    return
  }
  func.func @transform_0(%arg0: i32, %arg1: i32) -> (i32, i32, i32, i32) {
    %c0_i32 = arith.constant 0 : i32
    %c0_i32_0 = arith.constant 0 : i32
    %c0_i32_1 = arith.constant 0 : i32
    return %arg0, %arg1, %c0_i32, %c0_i32_0 : i32, i32, i32, i32
  }
  func.func @transform_1(%arg0: i32, %arg1: i32) -> (i32, i32) {
    %c0_i32 = arith.constant 0 : i32
    %c0_i32_0 = arith.constant 0 : i32
    %c0_i32_1 = arith.constant 0 : i32
    return %c0_i32, %c0_i32_0 : i32, i32
  }
  func.func @transform_2(%arg0: i32, %arg1: i32) -> (i32, i32) {
    %c0_i32 = arith.constant 0 : i32
    %c0_i32_0 = arith.constant 0 : i32
    %c0_i32_1 = arith.constant 0 : i32
    return %c0_i32, %c0_i32_0 : i32, i32
  }
  func.func @transform_3(%arg0: i32, %arg1: i32) -> (i32, i32) {
    %c0_i32 = arith.constant 0 : i32
    %c0_i32_0 = arith.constant 0 : i32
    %c0_i32_1 = arith.constant 0 : i32
    return %c0_i32, %c0_i32_0 : i32, i32
  }
  func.func @transform_4(%arg0: i32, %arg1: i32) -> (i32, i32) {
    %c0_i32 = arith.constant 0 : i32
    %c0_i32_0 = arith.constant 0 : i32
    %c0_i32_1 = arith.constant 0 : i32
    return %c0_i32, %c0_i32_0 : i32, i32
  }
  func.func @transform_5(%arg0: i32, %arg1: i32) -> (i32, i32, i32) {
    %c0_i32 = arith.constant 0 : i32
    %c0_i32_0 = arith.constant 0 : i32
    return %arg0, %c0_i32, %arg1 : i32, i32, i32
  }
}

module attributes {stable_mosaic.version = 11 : i64} {
  func.func @_conv1d_kernel(%arg0: i32, %arg1: i32, %arg2: memref<1x1x22x24xbf16, #tpu.memory_space<vmem>>, %arg3: memref<22x110xbf16, #tpu.memory_space<vmem>>, %arg4: memref<22x1xf32, #tpu.memory_space<vmem>>, %arg5: memref<22x1xf32, #tpu.memory_space<vmem>>, %arg6: memref<22x1xf32, #tpu.memory_space<vmem>>, %arg7: memref<1x22x16xbf16, #tpu.memory_space<vmem>>) attributes {dimension_semantics = [#tpu.dimension_semantics<parallel>, #tpu.dimension_semantics<parallel>], iteration_bounds = array<i64: 2, 1>, scalar_prefetch = 0 : i64, scratch_operands = 0 : i64, tpu.core_type = #tpu.core_type<tc>, window_params = [{transform_indices = @transform_0, window_bounds = array<i64: 1, 1, 22, 24>}, {pipeline_mode = #tpu.pipeline_mode<synchronous>, transform_indices = @transform_1, window_bounds = array<i64: 22, 110>}, {pipeline_mode = #tpu.pipeline_mode<synchronous>, transform_indices = @transform_2, window_bounds = array<i64: 22, 1>}, {pipeline_mode = #tpu.pipeline_mode<synchronous>, transform_indices = @transform_3, window_bounds = array<i64: 22, 1>}, {pipeline_mode = #tpu.pipeline_mode<synchronous>, transform_indices = @transform_4, window_bounds = array<i64: 22, 1>}, {transform_indices = @transform_5, window_bounds = array<i64: 1, 22, 16>}]} {
    %c0 = arith.constant 0 : index
    %c0_0 = arith.constant 0 : index
    %c0_1 = arith.constant 0 : index
    %c0_2 = arith.constant 0 : index
    %0 = vector.load %arg2[%c0, %c0_0, %c0_1, %c0_2] : memref<1x1x22x24xbf16, #tpu.memory_space<vmem>>, vector<1x1x22x24xbf16>
    %1 = vector.shape_cast %0 : vector<1x1x22x24xbf16> to vector<22x24xbf16>
    %2 = vector.extract_strided_slice %1 {offsets = [0, 0], sizes = [22, 16], strides = [1, 1]} : vector<22x24xbf16> to vector<22x16xbf16>
    %3 = vector.extract_strided_slice %1 {offsets = [0, 2], sizes = [22, 16], strides = [1, 1]} : vector<22x24xbf16> to vector<22x16xbf16>
    %4 = vector.extract_strided_slice %1 {offsets = [0, 4], sizes = [22, 16], strides = [1, 1]} : vector<22x24xbf16> to vector<22x16xbf16>
    %5 = vector.extract_strided_slice %1 {offsets = [0, 6], sizes = [22, 16], strides = [1, 1]} : vector<22x24xbf16> to vector<22x16xbf16>
    %6 = vector.extract_strided_slice %1 {offsets = [0, 8], sizes = [22, 16], strides = [1, 1]} : vector<22x24xbf16> to vector<22x16xbf16>
    %7 = tpu.concatenate %2, %3, %4, %5, %6 in 0 : vector<22x16xbf16>, vector<22x16xbf16>, vector<22x16xbf16>, vector<22x16xbf16>, vector<22x16xbf16> -> vector<110x16xbf16>
    %c0_3 = arith.constant 0 : index
    %c0_4 = arith.constant 0 : index
    %8 = vector.load %arg3[%c0_3, %c0_4] : memref<22x110xbf16, #tpu.memory_space<vmem>>, vector<22x110xbf16>
    %cst = arith.constant dense<0.000000e+00> : vector<22x16xf32>
    %9 = tpu.matmul %8, %7, %cst {dimension_numbers = #tpu.dot_dimension_numbers<[1], [0], [0], [1], [0, 0, 1, 1], [], []>} : vector<22x110xbf16>, vector<110x16xbf16>, vector<22x16xf32> -> vector<22x16xf32>
    %c0_5 = arith.constant 0 : index
    %c0_6 = arith.constant 0 : index
    %10 = vector.load %arg4[%c0_5, %c0_6] : memref<22x1xf32, #tpu.memory_space<vmem>>, vector<22x1xf32>
    %11 = vector.broadcast %10 : vector<22x1xf32> to vector<22x16xf32>
    %12 = arith.addf %9, %11 : vector<22x16xf32>
    %cst_7 = arith.constant 0.000000e+00 : f32
    %13 = vector.broadcast %cst_7 : f32 to vector<22x16xf32>
    %14 = arith.maximumf %12, %13 : vector<22x16xf32>
    %c0_8 = arith.constant 0 : index
    %c0_9 = arith.constant 0 : index
    %15 = vector.load %arg5[%c0_8, %c0_9] : memref<22x1xf32, #tpu.memory_space<vmem>>, vector<22x1xf32>
    %16 = vector.broadcast %15 : vector<22x1xf32> to vector<22x16xf32>
    %17 = arith.mulf %14, %16 : vector<22x16xf32>
    %c0_10 = arith.constant 0 : index
    %c0_11 = arith.constant 0 : index
    %18 = vector.load %arg6[%c0_10, %c0_11] : memref<22x1xf32, #tpu.memory_space<vmem>>, vector<22x1xf32>
    %19 = vector.broadcast %18 : vector<22x1xf32> to vector<22x16xf32>
    %20 = arith.addf %17, %19 : vector<22x16xf32>
    %21 = arith.truncf %20 : vector<22x16xf32> to vector<22x16xbf16>
    %c0_12 = arith.constant 0 : index
    %c0_13 = arith.constant 0 : index
    %c0_14 = arith.constant 0 : index
    %22 = vector.load %arg7[%c0_12, %c0_13, %c0_14] : memref<1x22x16xbf16, #tpu.memory_space<vmem>>, vector<1x22x16xbf16>
    %23 = vector.shape_cast %22 : vector<1x22x16xbf16> to vector<22x16xbf16>
    %24 = vector.shape_cast %21 : vector<22x16xbf16> to vector<1x22x16xbf16>
    tpu.vector_store %arg7[%c0_12, %c0_13, %c0_14], %24 {strides = array<i32>} : memref<1x22x16xbf16, #tpu.memory_space<vmem>>, vector<1x22x16xbf16>,
    return
  }
  func.func @transform_0(%arg0: i32, %arg1: i32) -> (i32, i32, i32, i32) {
    %c0_i32 = arith.constant 0 : i32
    %c0_i32_0 = arith.constant 0 : i32
    %c0_i32_1 = arith.constant 0 : i32
    return %arg0, %arg1, %c0_i32, %c0_i32_0 : i32, i32, i32, i32
  }
  func.func @transform_1(%arg0: i32, %arg1: i32) -> (i32, i32) {
    %c0_i32 = arith.constant 0 : i32
    %c0_i32_0 = arith.constant 0 : i32
    %c0_i32_1 = arith.constant 0 : i32
    return %c0_i32, %c0_i32_0 : i32, i32
  }
  func.func @transform_2(%arg0: i32, %arg1: i32) -> (i32, i32) {
    %c0_i32 = arith.constant 0 : i32
    %c0_i32_0 = arith.constant 0 : i32
    %c0_i32_1 = arith.constant 0 : i32
    return %c0_i32, %c0_i32_0 : i32, i32
  }
  func.func @transform_3(%arg0: i32, %arg1: i32) -> (i32, i32) {
    %c0_i32 = arith.constant 0 : i32
    %c0_i32_0 = arith.constant 0 : i32
    %c0_i32_1 = arith.constant 0 : i32
    return %c0_i32, %c0_i32_0 : i32, i32
  }
  func.func @transform_4(%arg0: i32, %arg1: i32) -> (i32, i32) {
    %c0_i32 = arith.constant 0 : i32
    %c0_i32_0 = arith.constant 0 : i32
    %c0_i32_1 = arith.constant 0 : i32
    return %c0_i32, %c0_i32_0 : i32, i32
  }
  func.func @transform_5(%arg0: i32, %arg1: i32) -> (i32, i32, i32) {
    %c0_i32 = arith.constant 0 : i32
    %c0_i32_0 = arith.constant 0 : i32
    return %arg0, %c0_i32, %arg1 : i32, i32, i32
  }
}

module attributes {stable_mosaic.version = 11 : i64} {
  func.func @_pool_kernel(%arg0: i32, %arg1: memref<2x1x22x8xbf16, #tpu.memory_space<vmem>>, %arg2: memref<1x22x8xbf16, #tpu.memory_space<vmem>>) attributes {dimension_semantics = [#tpu.dimension_semantics<parallel>], iteration_bounds = array<i64: 2>, scalar_prefetch = 0 : i64, scratch_operands = 0 : i64, tpu.core_type = #tpu.core_type<tc>, window_params = [{transform_indices = @transform_0, window_bounds = array<i64: 2, 1, 22, 8>}, {transform_indices = @transform_1, window_bounds = array<i64: 1, 22, 8>}]} {
    %c0 = arith.constant 0 : index
    %c0_0 = arith.constant 0 : index
    %c0_1 = arith.constant 0 : index
    %c0_2 = arith.constant 0 : index
    %0 = vector.load %arg1[%c0, %c0_0, %c0_1, %c0_2] : memref<2x1x22x8xbf16, #tpu.memory_space<vmem>>, vector<1x1x22x8xbf16>
    %1 = vector.shape_cast %0 : vector<1x1x22x8xbf16> to vector<22x8xbf16>
    %c1 = arith.constant 1 : index
    %c0_3 = arith.constant 0 : index
    %c0_4 = arith.constant 0 : index
    %c0_5 = arith.constant 0 : index
    %2 = vector.load %arg1[%c1, %c0_3, %c0_4, %c0_5] : memref<2x1x22x8xbf16, #tpu.memory_space<vmem>>, vector<1x1x22x8xbf16>
    %3 = vector.shape_cast %2 : vector<1x1x22x8xbf16> to vector<22x8xbf16>
    %4 = arith.maximumf %1, %3 : vector<22x8xbf16>
    %c0_6 = arith.constant 0 : index
    %c0_7 = arith.constant 0 : index
    %c0_8 = arith.constant 0 : index
    %5 = vector.load %arg2[%c0_6, %c0_7, %c0_8] : memref<1x22x8xbf16, #tpu.memory_space<vmem>>, vector<1x22x8xbf16>
    %6 = vector.shape_cast %5 : vector<1x22x8xbf16> to vector<22x8xbf16>
    %7 = vector.shape_cast %4 : vector<22x8xbf16> to vector<1x22x8xbf16>
    tpu.vector_store %arg2[%c0_6, %c0_7, %c0_8], %7 {strides = array<i32>} : memref<1x22x8xbf16, #tpu.memory_space<vmem>>, vector<1x22x8xbf16>,
    return
  }
  func.func @transform_0(%arg0: i32) -> (i32, i32, i32, i32) {
    %c0_i32 = arith.constant 0 : i32
    %c0_i32_0 = arith.constant 0 : i32
    %c0_i32_1 = arith.constant 0 : i32
    %c0_i32_2 = arith.constant 0 : i32
    return %c0_i32, %arg0, %c0_i32_0, %c0_i32_1 : i32, i32, i32, i32
  }
  func.func @transform_1(%arg0: i32) -> (i32, i32, i32) {
    %c0_i32 = arith.constant 0 : i32
    %c0_i32_0 = arith.constant 0 : i32
    %c0_i32_1 = arith.constant 0 : i32
    return %arg0, %c0_i32, %c0_i32_0 : i32, i32, i32
  }
}

module attributes {stable_mosaic.version = 11 : i64} {
  func.func @_conv1d_kernel(%arg0: i32, %arg1: i32, %arg2: memref<1x1x22x16xbf16, #tpu.memory_space<vmem>>, %arg3: memref<45x110xbf16, #tpu.memory_space<vmem>>, %arg4: memref<45x1xf32, #tpu.memory_space<vmem>>, %arg5: memref<45x1xf32, #tpu.memory_space<vmem>>, %arg6: memref<45x1xf32, #tpu.memory_space<vmem>>, %arg7: memref<1x45x8xbf16, #tpu.memory_space<vmem>>) attributes {dimension_semantics = [#tpu.dimension_semantics<parallel>, #tpu.dimension_semantics<parallel>], iteration_bounds = array<i64: 2, 1>, scalar_prefetch = 0 : i64, scratch_operands = 0 : i64, tpu.core_type = #tpu.core_type<tc>, window_params = [{transform_indices = @transform_0, window_bounds = array<i64: 1, 1, 22, 16>}, {pipeline_mode = #tpu.pipeline_mode<synchronous>, transform_indices = @transform_1, window_bounds = array<i64: 45, 110>}, {pipeline_mode = #tpu.pipeline_mode<synchronous>, transform_indices = @transform_2, window_bounds = array<i64: 45, 1>}, {pipeline_mode = #tpu.pipeline_mode<synchronous>, transform_indices = @transform_3, window_bounds = array<i64: 45, 1>}, {pipeline_mode = #tpu.pipeline_mode<synchronous>, transform_indices = @transform_4, window_bounds = array<i64: 45, 1>}, {transform_indices = @transform_5, window_bounds = array<i64: 1, 45, 8>}]} {
    %c0 = arith.constant 0 : index
    %c0_0 = arith.constant 0 : index
    %c0_1 = arith.constant 0 : index
    %c0_2 = arith.constant 0 : index
    %0 = vector.load %arg2[%c0, %c0_0, %c0_1, %c0_2] : memref<1x1x22x16xbf16, #tpu.memory_space<vmem>>, vector<1x1x22x16xbf16>
    %1 = vector.shape_cast %0 : vector<1x1x22x16xbf16> to vector<22x16xbf16>
    %2 = vector.extract_strided_slice %1 {offsets = [0, 0], sizes = [22, 8], strides = [1, 1]} : vector<22x16xbf16> to vector<22x8xbf16>
    %3 = vector.extract_strided_slice %1 {offsets = [0, 2], sizes = [22, 8], strides = [1, 1]} : vector<22x16xbf16> to vector<22x8xbf16>
    %4 = vector.extract_strided_slice %1 {offsets = [0, 4], sizes = [22, 8], strides = [1, 1]} : vector<22x16xbf16> to vector<22x8xbf16>
    %5 = vector.extract_strided_slice %1 {offsets = [0, 6], sizes = [22, 8], strides = [1, 1]} : vector<22x16xbf16> to vector<22x8xbf16>
    %6 = vector.extract_strided_slice %1 {offsets = [0, 8], sizes = [22, 8], strides = [1, 1]} : vector<22x16xbf16> to vector<22x8xbf16>
    %7 = tpu.concatenate %2, %3, %4, %5, %6 in 0 : vector<22x8xbf16>, vector<22x8xbf16>, vector<22x8xbf16>, vector<22x8xbf16>, vector<22x8xbf16> -> vector<110x8xbf16>
    %c0_3 = arith.constant 0 : index
    %c0_4 = arith.constant 0 : index
    %8 = vector.load %arg3[%c0_3, %c0_4] : memref<45x110xbf16, #tpu.memory_space<vmem>>, vector<45x110xbf16>
    %cst = arith.constant dense<0.000000e+00> : vector<45x8xf32>
    %9 = tpu.matmul %8, %7, %cst {dimension_numbers = #tpu.dot_dimension_numbers<[1], [0], [0], [1], [0, 0, 1, 1], [], []>} : vector<45x110xbf16>, vector<110x8xbf16>, vector<45x8xf32> -> vector<45x8xf32>
    %c0_5 = arith.constant 0 : index
    %c0_6 = arith.constant 0 : index
    %10 = vector.load %arg4[%c0_5, %c0_6] : memref<45x1xf32, #tpu.memory_space<vmem>>, vector<45x1xf32>
    %11 = vector.broadcast %10 : vector<45x1xf32> to vector<45x8xf32>
    %12 = arith.addf %9, %11 : vector<45x8xf32>
    %cst_7 = arith.constant 0.000000e+00 : f32
    %13 = vector.broadcast %cst_7 : f32 to vector<45x8xf32>
    %14 = arith.maximumf %12, %13 : vector<45x8xf32>
    %c0_8 = arith.constant 0 : index
    %c0_9 = arith.constant 0 : index
    %15 = vector.load %arg5[%c0_8, %c0_9] : memref<45x1xf32, #tpu.memory_space<vmem>>, vector<45x1xf32>
    %16 = vector.broadcast %15 : vector<45x1xf32> to vector<45x8xf32>
    %17 = arith.mulf %14, %16 : vector<45x8xf32>
    %c0_10 = arith.constant 0 : index
    %c0_11 = arith.constant 0 : index
    %18 = vector.load %arg6[%c0_10, %c0_11] : memref<45x1xf32, #tpu.memory_space<vmem>>, vector<45x1xf32>
    %19 = vector.broadcast %18 : vector<45x1xf32> to vector<45x8xf32>
    %20 = arith.addf %17, %19 : vector<45x8xf32>
    %21 = arith.truncf %20 : vector<45x8xf32> to vector<45x8xbf16>
    %c0_12 = arith.constant 0 : index
    %c0_13 = arith.constant 0 : index
    %c0_14 = arith.constant 0 : index
    %22 = vector.load %arg7[%c0_12, %c0_13, %c0_14] : memref<1x45x8xbf16, #tpu.memory_space<vmem>>, vector<1x45x8xbf16>
    %23 = vector.shape_cast %22 : vector<1x45x8xbf16> to vector<45x8xbf16>
    %24 = vector.shape_cast %21 : vector<45x8xbf16> to vector<1x45x8xbf16>
    tpu.vector_store %arg7[%c0_12, %c0_13, %c0_14], %24 {strides = array<i32>} : memref<1x45x8xbf16, #tpu.memory_space<vmem>>, vector<1x45x8xbf16>,
    return
  }
  func.func @transform_0(%arg0: i32, %arg1: i32) -> (i32, i32, i32, i32) {
    %c0_i32 = arith.constant 0 : i32
    %c0_i32_0 = arith.constant 0 : i32
    %c0_i32_1 = arith.constant 0 : i32
    return %arg0, %arg1, %c0_i32, %c0_i32_0 : i32, i32, i32, i32
  }
  func.func @transform_1(%arg0: i32, %arg1: i32) -> (i32, i32) {
    %c0_i32 = arith.constant 0 : i32
    %c0_i32_0 = arith.constant 0 : i32
    %c0_i32_1 = arith.constant 0 : i32
    return %c0_i32, %c0_i32_0 : i32, i32
  }
  func.func @transform_2(%arg0: i32, %arg1: i32) -> (i32, i32) {
    %c0_i32 = arith.constant 0 : i32
    %c0_i32_0 = arith.constant 0 : i32
    %c0_i32_1 = arith.constant 0 : i32
    return %c0_i32, %c0_i32_0 : i32, i32
  }
  func.func @transform_3(%arg0: i32, %arg1: i32) -> (i32, i32) {
    %c0_i32 = arith.constant 0 : i32
    %c0_i32_0 = arith.constant 0 : i32
    %c0_i32_1 = arith.constant 0 : i32
    return %c0_i32, %c0_i32_0 : i32, i32
  }
  func.func @transform_4(%arg0: i32, %arg1: i32) -> (i32, i32) {
    %c0_i32 = arith.constant 0 : i32
    %c0_i32_0 = arith.constant 0 : i32
    %c0_i32_1 = arith.constant 0 : i32
    return %c0_i32, %c0_i32_0 : i32, i32
  }
  func.func @transform_5(%arg0: i32, %arg1: i32) -> (i32, i32, i32) {
    %c0_i32 = arith.constant 0 : i32
    %c0_i32_0 = arith.constant 0 : i32
    return %arg0, %c0_i32, %arg1 : i32, i32, i32
  }
}

module attributes {stable_mosaic.version = 11 : i64} {
  func.func @_conv1d_kernel(%arg0: i32, %arg1: i32, %arg2: memref<1x1x45x16xbf16, #tpu.memory_space<vmem>>, %arg3: memref<45x225xbf16, #tpu.memory_space<vmem>>, %arg4: memref<45x1xf32, #tpu.memory_space<vmem>>, %arg5: memref<45x1xf32, #tpu.memory_space<vmem>>, %arg6: memref<45x1xf32, #tpu.memory_space<vmem>>, %arg7: memref<1x45x8xbf16, #tpu.memory_space<vmem>>) attributes {dimension_semantics = [#tpu.dimension_semantics<parallel>, #tpu.dimension_semantics<parallel>], iteration_bounds = array<i64: 2, 1>, scalar_prefetch = 0 : i64, scratch_operands = 0 : i64, tpu.core_type = #tpu.core_type<tc>, window_params = [{transform_indices = @transform_0, window_bounds = array<i64: 1, 1, 45, 16>}, {pipeline_mode = #tpu.pipeline_mode<synchronous>, transform_indices = @transform_1, window_bounds = array<i64: 45, 225>}, {pipeline_mode = #tpu.pipeline_mode<synchronous>, transform_indices = @transform_2, window_bounds = array<i64: 45, 1>}, {pipeline_mode = #tpu.pipeline_mode<synchronous>, transform_indices = @transform_3, window_bounds = array<i64: 45, 1>}, {pipeline_mode = #tpu.pipeline_mode<synchronous>, transform_indices = @transform_4, window_bounds = array<i64: 45, 1>}, {transform_indices = @transform_5, window_bounds = array<i64: 1, 45, 8>}]} {
    %c0 = arith.constant 0 : index
    %c0_0 = arith.constant 0 : index
    %c0_1 = arith.constant 0 : index
    %c0_2 = arith.constant 0 : index
    %0 = vector.load %arg2[%c0, %c0_0, %c0_1, %c0_2] : memref<1x1x45x16xbf16, #tpu.memory_space<vmem>>, vector<1x1x45x16xbf16>
    %1 = vector.shape_cast %0 : vector<1x1x45x16xbf16> to vector<45x16xbf16>
    %2 = vector.extract_strided_slice %1 {offsets = [0, 0], sizes = [45, 8], strides = [1, 1]} : vector<45x16xbf16> to vector<45x8xbf16>
    %3 = vector.extract_strided_slice %1 {offsets = [0, 2], sizes = [45, 8], strides = [1, 1]} : vector<45x16xbf16> to vector<45x8xbf16>
    %4 = vector.extract_strided_slice %1 {offsets = [0, 4], sizes = [45, 8], strides = [1, 1]} : vector<45x16xbf16> to vector<45x8xbf16>
    %5 = vector.extract_strided_slice %1 {offsets = [0, 6], sizes = [45, 8], strides = [1, 1]} : vector<45x16xbf16> to vector<45x8xbf16>
    %6 = vector.extract_strided_slice %1 {offsets = [0, 8], sizes = [45, 8], strides = [1, 1]} : vector<45x16xbf16> to vector<45x8xbf16>
    %7 = tpu.concatenate %2, %3, %4, %5, %6 in 0 : vector<45x8xbf16>, vector<45x8xbf16>, vector<45x8xbf16>, vector<45x8xbf16>, vector<45x8xbf16> -> vector<225x8xbf16>
    %c0_3 = arith.constant 0 : index
    %c0_4 = arith.constant 0 : index
    %8 = vector.load %arg3[%c0_3, %c0_4] : memref<45x225xbf16, #tpu.memory_space<vmem>>, vector<45x225xbf16>
    %cst = arith.constant dense<0.000000e+00> : vector<45x8xf32>
    %9 = tpu.matmul %8, %7, %cst {dimension_numbers = #tpu.dot_dimension_numbers<[1], [0], [0], [1], [0, 0, 1, 1], [], []>} : vector<45x225xbf16>, vector<225x8xbf16>, vector<45x8xf32> -> vector<45x8xf32>
    %c0_5 = arith.constant 0 : index
    %c0_6 = arith.constant 0 : index
    %10 = vector.load %arg4[%c0_5, %c0_6] : memref<45x1xf32, #tpu.memory_space<vmem>>, vector<45x1xf32>
    %11 = vector.broadcast %10 : vector<45x1xf32> to vector<45x8xf32>
    %12 = arith.addf %9, %11 : vector<45x8xf32>
    %cst_7 = arith.constant 0.000000e+00 : f32
    %13 = vector.broadcast %cst_7 : f32 to vector<45x8xf32>
    %14 = arith.maximumf %12, %13 : vector<45x8xf32>
    %c0_8 = arith.constant 0 : index
    %c0_9 = arith.constant 0 : index
    %15 = vector.load %arg5[%c0_8, %c0_9] : memref<45x1xf32, #tpu.memory_space<vmem>>, vector<45x1xf32>
    %16 = vector.broadcast %15 : vector<45x1xf32> to vector<45x8xf32>
    %17 = arith.mulf %14, %16 : vector<45x8xf32>
    %c0_10 = arith.constant 0 : index
    %c0_11 = arith.constant 0 : index
    %18 = vector.load %arg6[%c0_10, %c0_11] : memref<45x1xf32, #tpu.memory_space<vmem>>, vector<45x1xf32>
    %19 = vector.broadcast %18 : vector<45x1xf32> to vector<45x8xf32>
    %20 = arith.addf %17, %19 : vector<45x8xf32>
    %21 = arith.truncf %20 : vector<45x8xf32> to vector<45x8xbf16>
    %c0_12 = arith.constant 0 : index
    %c0_13 = arith.constant 0 : index
    %c0_14 = arith.constant 0 : index
    %22 = vector.load %arg7[%c0_12, %c0_13, %c0_14] : memref<1x45x8xbf16, #tpu.memory_space<vmem>>, vector<1x45x8xbf16>
    %23 = vector.shape_cast %22 : vector<1x45x8xbf16> to vector<45x8xbf16>
    %24 = vector.shape_cast %21 : vector<45x8xbf16> to vector<1x45x8xbf16>
    tpu.vector_store %arg7[%c0_12, %c0_13, %c0_14], %24 {strides = array<i32>} : memref<1x45x8xbf16, #tpu.memory_space<vmem>>, vector<1x45x8xbf16>,
    return
  }
  func.func @transform_0(%arg0: i32, %arg1: i32) -> (i32, i32, i32, i32) {
    %c0_i32 = arith.constant 0 : i32
    %c0_i32_0 = arith.constant 0 : i32
    %c0_i32_1 = arith.constant 0 : i32
    return %arg0, %arg1, %c0_i32, %c0_i32_0 : i32, i32, i32, i32
  }
  func.func @transform_1(%arg0: i32, %arg1: i32) -> (i32, i32) {
    %c0_i32 = arith.constant 0 : i32
    %c0_i32_0 = arith.constant 0 : i32
    %c0_i32_1 = arith.constant 0 : i32
    return %c0_i32, %c0_i32_0 : i32, i32
  }
  func.func @transform_2(%arg0: i32, %arg1: i32) -> (i32, i32) {
    %c0_i32 = arith.constant 0 : i32
    %c0_i32_0 = arith.constant 0 : i32
    %c0_i32_1 = arith.constant 0 : i32
    return %c0_i32, %c0_i32_0 : i32, i32
  }
  func.func @transform_3(%arg0: i32, %arg1: i32) -> (i32, i32) {
    %c0_i32 = arith.constant 0 : i32
    %c0_i32_0 = arith.constant 0 : i32
    %c0_i32_1 = arith.constant 0 : i32
    return %c0_i32, %c0_i32_0 : i32, i32
  }
  func.func @transform_4(%arg0: i32, %arg1: i32) -> (i32, i32) {
    %c0_i32 = arith.constant 0 : i32
    %c0_i32_0 = arith.constant 0 : i32
    %c0_i32_1 = arith.constant 0 : i32
    return %c0_i32, %c0_i32_0 : i32, i32
  }
  func.func @transform_5(%arg0: i32, %arg1: i32) -> (i32, i32, i32) {
    %c0_i32 = arith.constant 0 : i32
    %c0_i32_0 = arith.constant 0 : i32
    return %arg0, %c0_i32, %arg1 : i32, i32, i32
  }
}

module attributes {stable_mosaic.version = 11 : i64} {
  func.func @_pool_kernel(%arg0: i32, %arg1: memref<2x1x45x4xbf16, #tpu.memory_space<vmem>>, %arg2: memref<1x45x4xbf16, #tpu.memory_space<vmem>>) attributes {dimension_semantics = [#tpu.dimension_semantics<parallel>], iteration_bounds = array<i64: 2>, scalar_prefetch = 0 : i64, scratch_operands = 0 : i64, tpu.core_type = #tpu.core_type<tc>, window_params = [{transform_indices = @transform_0, window_bounds = array<i64: 2, 1, 45, 4>}, {transform_indices = @transform_1, window_bounds = array<i64: 1, 45, 4>}]} {
    %c0 = arith.constant 0 : index
    %c0_0 = arith.constant 0 : index
    %c0_1 = arith.constant 0 : index
    %c0_2 = arith.constant 0 : index
    %0 = vector.load %arg1[%c0, %c0_0, %c0_1, %c0_2] : memref<2x1x45x4xbf16, #tpu.memory_space<vmem>>, vector<1x1x45x4xbf16>
    %1 = vector.shape_cast %0 : vector<1x1x45x4xbf16> to vector<45x4xbf16>
    %c1 = arith.constant 1 : index
    %c0_3 = arith.constant 0 : index
    %c0_4 = arith.constant 0 : index
    %c0_5 = arith.constant 0 : index
    %2 = vector.load %arg1[%c1, %c0_3, %c0_4, %c0_5] : memref<2x1x45x4xbf16, #tpu.memory_space<vmem>>, vector<1x1x45x4xbf16>
    %3 = vector.shape_cast %2 : vector<1x1x45x4xbf16> to vector<45x4xbf16>
    %4 = arith.maximumf %1, %3 : vector<45x4xbf16>
    %c0_6 = arith.constant 0 : index
    %c0_7 = arith.constant 0 : index
    %c0_8 = arith.constant 0 : index
    %5 = vector.load %arg2[%c0_6, %c0_7, %c0_8] : memref<1x45x4xbf16, #tpu.memory_space<vmem>>, vector<1x45x4xbf16>
    %6 = vector.shape_cast %5 : vector<1x45x4xbf16> to vector<45x4xbf16>
    %7 = vector.shape_cast %4 : vector<45x4xbf16> to vector<1x45x4xbf16>
    tpu.vector_store %arg2[%c0_6, %c0_7, %c0_8], %7 {strides = array<i32>} : memref<1x45x4xbf16, #tpu.memory_space<vmem>>, vector<1x45x4xbf16>,
    return
  }
  func.func @transform_0(%arg0: i32) -> (i32, i32, i32, i32) {
    %c0_i32 = arith.constant 0 : i32
    %c0_i32_0 = arith.constant 0 : i32
    %c0_i32_1 = arith.constant 0 : i32
    %c0_i32_2 = arith.constant 0 : i32
    return %c0_i32, %arg0, %c0_i32_0, %c0_i32_1 : i32, i32, i32, i32
  }
  func.func @transform_1(%arg0: i32) -> (i32, i32, i32) {
    %c0_i32 = arith.constant 0 : i32
    %c0_i32_0 = arith.constant 0 : i32
    %c0_i32_1 = arith.constant 0 : i32
    return %arg0, %c0_i32, %c0_i32_0 : i32, i32, i32
  }
}

module attributes {stable_mosaic.version = 11 : i64} {
  func.func @_interp_kernel(%arg0: i32, %arg1: memref<1x45x4xbf16, #tpu.memory_space<vmem>>, %arg2: memref<4x8xbf16, #tpu.memory_space<vmem>>, %arg3: memref<1x45x8xbf16, #tpu.memory_space<vmem>>) attributes {dimension_semantics = [#tpu.dimension_semantics<parallel>], iteration_bounds = array<i64: 2>, scalar_prefetch = 0 : i64, scratch_operands = 0 : i64, tpu.core_type = #tpu.core_type<tc>, window_params = [{transform_indices = @transform_0, window_bounds = array<i64: 1, 45, 4>}, {pipeline_mode = #tpu.pipeline_mode<synchronous>, transform_indices = @transform_1, window_bounds = array<i64: 4, 8>}, {transform_indices = @transform_2, window_bounds = array<i64: 1, 45, 8>}]} {
    %c0 = arith.constant 0 : index
    %c0_0 = arith.constant 0 : index
    %c0_1 = arith.constant 0 : index
    %0 = vector.load %arg1[%c0, %c0_0, %c0_1] : memref<1x45x4xbf16, #tpu.memory_space<vmem>>, vector<1x45x4xbf16>
    %1 = vector.shape_cast %0 : vector<1x45x4xbf16> to vector<45x4xbf16>
    %c0_2 = arith.constant 0 : index
    %c0_3 = arith.constant 0 : index
    %2 = vector.load %arg2[%c0_2, %c0_3] : memref<4x8xbf16, #tpu.memory_space<vmem>>, vector<4x8xbf16>
    %cst = arith.constant dense<0.000000e+00> : vector<45x8xf32>
    %3 = tpu.matmul %1, %2, %cst {dimension_numbers = #tpu.dot_dimension_numbers<[1], [0], [0], [1], [0, 0, 1, 1], [], []>} : vector<45x4xbf16>, vector<4x8xbf16>, vector<45x8xf32> -> vector<45x8xf32>
    %4 = arith.truncf %3 : vector<45x8xf32> to vector<45x8xbf16>
    %c0_4 = arith.constant 0 : index
    %c0_5 = arith.constant 0 : index
    %c0_6 = arith.constant 0 : index
    %5 = vector.load %arg3[%c0_4, %c0_5, %c0_6] : memref<1x45x8xbf16, #tpu.memory_space<vmem>>, vector<1x45x8xbf16>
    %6 = vector.shape_cast %5 : vector<1x45x8xbf16> to vector<45x8xbf16>
    %7 = vector.shape_cast %4 : vector<45x8xbf16> to vector<1x45x8xbf16>
    tpu.vector_store %arg3[%c0_4, %c0_5, %c0_6], %7 {strides = array<i32>} : memref<1x45x8xbf16, #tpu.memory_space<vmem>>, vector<1x45x8xbf16>,
    return
  }
  func.func @transform_0(%arg0: i32) -> (i32, i32, i32) {
    %c0_i32 = arith.constant 0 : i32
    %c0_i32_0 = arith.constant 0 : i32
    %c0_i32_1 = arith.constant 0 : i32
    return %arg0, %c0_i32, %c0_i32_0 : i32, i32, i32
  }
  func.func @transform_1(%arg0: i32) -> (i32, i32) {
    %c0_i32 = arith.constant 0 : i32
    %c0_i32_0 = arith.constant 0 : i32
    %c0_i32_1 = arith.constant 0 : i32
    return %c0_i32, %c0_i32_0 : i32, i32
  }
  func.func @transform_2(%arg0: i32) -> (i32, i32, i32) {
    %c0_i32 = arith.constant 0 : i32
    %c0_i32_0 = arith.constant 0 : i32
    %c0_i32_1 = arith.constant 0 : i32
    return %arg0, %c0_i32, %c0_i32_0 : i32, i32, i32
  }
}

module attributes {stable_mosaic.version = 11 : i64} {
  func.func @_conv1d_kernel(%arg0: i32, %arg1: i32, %arg2: memref<1x1x45x12xbf16, #tpu.memory_space<vmem>>, %arg3: memref<22x225xbf16, #tpu.memory_space<vmem>>, %arg4: memref<22x1xf32, #tpu.memory_space<vmem>>, %arg5: memref<22x1xf32, #tpu.memory_space<vmem>>, %arg6: memref<22x1xf32, #tpu.memory_space<vmem>>, %arg7: memref<1x22x8xbf16, #tpu.memory_space<vmem>>) attributes {dimension_semantics = [#tpu.dimension_semantics<parallel>, #tpu.dimension_semantics<parallel>], iteration_bounds = array<i64: 2, 1>, scalar_prefetch = 0 : i64, scratch_operands = 0 : i64, tpu.core_type = #tpu.core_type<tc>, window_params = [{transform_indices = @transform_0, window_bounds = array<i64: 1, 1, 45, 12>}, {pipeline_mode = #tpu.pipeline_mode<synchronous>, transform_indices = @transform_1, window_bounds = array<i64: 22, 225>}, {pipeline_mode = #tpu.pipeline_mode<synchronous>, transform_indices = @transform_2, window_bounds = array<i64: 22, 1>}, {pipeline_mode = #tpu.pipeline_mode<synchronous>, transform_indices = @transform_3, window_bounds = array<i64: 22, 1>}, {pipeline_mode = #tpu.pipeline_mode<synchronous>, transform_indices = @transform_4, window_bounds = array<i64: 22, 1>}, {transform_indices = @transform_5, window_bounds = array<i64: 1, 22, 8>}]} {
    %c0 = arith.constant 0 : index
    %c0_0 = arith.constant 0 : index
    %c0_1 = arith.constant 0 : index
    %c0_2 = arith.constant 0 : index
    %0 = vector.load %arg2[%c0, %c0_0, %c0_1, %c0_2] : memref<1x1x45x12xbf16, #tpu.memory_space<vmem>>, vector<1x1x45x12xbf16>
    %1 = vector.shape_cast %0 : vector<1x1x45x12xbf16> to vector<45x12xbf16>
    %2 = vector.extract_strided_slice %1 {offsets = [0, 0], sizes = [45, 8], strides = [1, 1]} : vector<45x12xbf16> to vector<45x8xbf16>
    %3 = vector.extract_strided_slice %1 {offsets = [0, 1], sizes = [45, 8], strides = [1, 1]} : vector<45x12xbf16> to vector<45x8xbf16>
    %4 = vector.extract_strided_slice %1 {offsets = [0, 2], sizes = [45, 8], strides = [1, 1]} : vector<45x12xbf16> to vector<45x8xbf16>
    %5 = vector.extract_strided_slice %1 {offsets = [0, 3], sizes = [45, 8], strides = [1, 1]} : vector<45x12xbf16> to vector<45x8xbf16>
    %6 = vector.extract_strided_slice %1 {offsets = [0, 4], sizes = [45, 8], strides = [1, 1]} : vector<45x12xbf16> to vector<45x8xbf16>
    %7 = tpu.concatenate %2, %3, %4, %5, %6 in 0 : vector<45x8xbf16>, vector<45x8xbf16>, vector<45x8xbf16>, vector<45x8xbf16>, vector<45x8xbf16> -> vector<225x8xbf16>
    %c0_3 = arith.constant 0 : index
    %c0_4 = arith.constant 0 : index
    %8 = vector.load %arg3[%c0_3, %c0_4] : memref<22x225xbf16, #tpu.memory_space<vmem>>, vector<22x225xbf16>
    %cst = arith.constant dense<0.000000e+00> : vector<22x8xf32>
    %9 = tpu.matmul %8, %7, %cst {dimension_numbers = #tpu.dot_dimension_numbers<[1], [0], [0], [1], [0, 0, 1, 1], [], []>} : vector<22x225xbf16>, vector<225x8xbf16>, vector<22x8xf32> -> vector<22x8xf32>
    %c0_5 = arith.constant 0 : index
    %c0_6 = arith.constant 0 : index
    %10 = vector.load %arg4[%c0_5, %c0_6] : memref<22x1xf32, #tpu.memory_space<vmem>>, vector<22x1xf32>
    %11 = vector.broadcast %10 : vector<22x1xf32> to vector<22x8xf32>
    %12 = arith.addf %9, %11 : vector<22x8xf32>
    %cst_7 = arith.constant 0.000000e+00 : f32
    %13 = vector.broadcast %cst_7 : f32 to vector<22x8xf32>
    %14 = arith.maximumf %12, %13 : vector<22x8xf32>
    %c0_8 = arith.constant 0 : index
    %c0_9 = arith.constant 0 : index
    %15 = vector.load %arg5[%c0_8, %c0_9] : memref<22x1xf32, #tpu.memory_space<vmem>>, vector<22x1xf32>
    %16 = vector.broadcast %15 : vector<22x1xf32> to vector<22x8xf32>
    %17 = arith.mulf %14, %16 : vector<22x8xf32>
    %c0_10 = arith.constant 0 : index
    %c0_11 = arith.constant 0 : index
    %18 = vector.load %arg6[%c0_10, %c0_11] : memref<22x1xf32, #tpu.memory_space<vmem>>, vector<22x1xf32>
    %19 = vector.broadcast %18 : vector<22x1xf32> to vector<22x8xf32>
    %20 = arith.addf %17, %19 : vector<22x8xf32>
    %21 = arith.truncf %20 : vector<22x8xf32> to vector<22x8xbf16>
    %c0_12 = arith.constant 0 : index
    %c0_13 = arith.constant 0 : index
    %c0_14 = arith.constant 0 : index
    %22 = vector.load %arg7[%c0_12, %c0_13, %c0_14] : memref<1x22x8xbf16, #tpu.memory_space<vmem>>, vector<1x22x8xbf16>
    %23 = vector.shape_cast %22 : vector<1x22x8xbf16> to vector<22x8xbf16>
    %24 = vector.shape_cast %21 : vector<22x8xbf16> to vector<1x22x8xbf16>
    tpu.vector_store %arg7[%c0_12, %c0_13, %c0_14], %24 {strides = array<i32>} : memref<1x22x8xbf16, #tpu.memory_space<vmem>>, vector<1x22x8xbf16>,
    return
  }
  func.func @transform_0(%arg0: i32, %arg1: i32) -> (i32, i32, i32, i32) {
    %c0_i32 = arith.constant 0 : i32
    %c0_i32_0 = arith.constant 0 : i32
    %c0_i32_1 = arith.constant 0 : i32
    return %arg0, %arg1, %c0_i32, %c0_i32_0 : i32, i32, i32, i32
  }
  func.func @transform_1(%arg0: i32, %arg1: i32) -> (i32, i32) {
    %c0_i32 = arith.constant 0 : i32
    %c0_i32_0 = arith.constant 0 : i32
    %c0_i32_1 = arith.constant 0 : i32
    return %c0_i32, %c0_i32_0 : i32, i32
  }
  func.func @transform_2(%arg0: i32, %arg1: i32) -> (i32, i32) {
    %c0_i32 = arith.constant 0 : i32
    %c0_i32_0 = arith.constant 0 : i32
    %c0_i32_1 = arith.constant 0 : i32
    return %c0_i32, %c0_i32_0 : i32, i32
  }
  func.func @transform_3(%arg0: i32, %arg1: i32) -> (i32, i32) {
    %c0_i32 = arith.constant 0 : i32
    %c0_i32_0 = arith.constant 0 : i32
    %c0_i32_1 = arith.constant 0 : i32
    return %c0_i32, %c0_i32_0 : i32, i32
  }
  func.func @transform_4(%arg0: i32, %arg1: i32) -> (i32, i32) {
    %c0_i32 = arith.constant 0 : i32
    %c0_i32_0 = arith.constant 0 : i32
    %c0_i32_1 = arith.constant 0 : i32
    return %c0_i32, %c0_i32_0 : i32, i32
  }
  func.func @transform_5(%arg0: i32, %arg1: i32) -> (i32, i32, i32) {
    %c0_i32 = arith.constant 0 : i32
    %c0_i32_0 = arith.constant 0 : i32
    return %arg0, %c0_i32, %arg1 : i32, i32, i32
  }
}

module attributes {stable_mosaic.version = 11 : i64} {
  func.func @_conv1d_kernel(%arg0: i32, %arg1: i32, %arg2: memref<1x1x67x12xbf16, #tpu.memory_space<vmem>>, %arg3: memref<22x335xbf16, #tpu.memory_space<vmem>>, %arg4: memref<22x1xf32, #tpu.memory_space<vmem>>, %arg5: memref<22x1xf32, #tpu.memory_space<vmem>>, %arg6: memref<22x1xf32, #tpu.memory_space<vmem>>, %arg7: memref<1x22x8xbf16, #tpu.memory_space<vmem>>) attributes {dimension_semantics = [#tpu.dimension_semantics<parallel>, #tpu.dimension_semantics<parallel>], iteration_bounds = array<i64: 2, 1>, scalar_prefetch = 0 : i64, scratch_operands = 0 : i64, tpu.core_type = #tpu.core_type<tc>, window_params = [{transform_indices = @transform_0, window_bounds = array<i64: 1, 1, 67, 12>}, {pipeline_mode = #tpu.pipeline_mode<synchronous>, transform_indices = @transform_1, window_bounds = array<i64: 22, 335>}, {pipeline_mode = #tpu.pipeline_mode<synchronous>, transform_indices = @transform_2, window_bounds = array<i64: 22, 1>}, {pipeline_mode = #tpu.pipeline_mode<synchronous>, transform_indices = @transform_3, window_bounds = array<i64: 22, 1>}, {pipeline_mode = #tpu.pipeline_mode<synchronous>, transform_indices = @transform_4, window_bounds = array<i64: 22, 1>}, {transform_indices = @transform_5, window_bounds = array<i64: 1, 22, 8>}]} {
    %c0 = arith.constant 0 : index
    %c0_0 = arith.constant 0 : index
    %c0_1 = arith.constant 0 : index
    %c0_2 = arith.constant 0 : index
    %0 = vector.load %arg2[%c0, %c0_0, %c0_1, %c0_2] : memref<1x1x67x12xbf16, #tpu.memory_space<vmem>>, vector<1x1x67x12xbf16>
    %1 = vector.shape_cast %0 : vector<1x1x67x12xbf16> to vector<67x12xbf16>
    %2 = vector.extract_strided_slice %1 {offsets = [0, 0], sizes = [67, 8], strides = [1, 1]} : vector<67x12xbf16> to vector<67x8xbf16>
    %3 = vector.extract_strided_slice %1 {offsets = [0, 1], sizes = [67, 8], strides = [1, 1]} : vector<67x12xbf16> to vector<67x8xbf16>
    %4 = vector.extract_strided_slice %1 {offsets = [0, 2], sizes = [67, 8], strides = [1, 1]} : vector<67x12xbf16> to vector<67x8xbf16>
    %5 = vector.extract_strided_slice %1 {offsets = [0, 3], sizes = [67, 8], strides = [1, 1]} : vector<67x12xbf16> to vector<67x8xbf16>
    %6 = vector.extract_strided_slice %1 {offsets = [0, 4], sizes = [67, 8], strides = [1, 1]} : vector<67x12xbf16> to vector<67x8xbf16>
    %7 = tpu.concatenate %2, %3, %4, %5, %6 in 0 : vector<67x8xbf16>, vector<67x8xbf16>, vector<67x8xbf16>, vector<67x8xbf16>, vector<67x8xbf16> -> vector<335x8xbf16>
    %c0_3 = arith.constant 0 : index
    %c0_4 = arith.constant 0 : index
    %8 = vector.load %arg3[%c0_3, %c0_4] : memref<22x335xbf16, #tpu.memory_space<vmem>>, vector<22x335xbf16>
    %cst = arith.constant dense<0.000000e+00> : vector<22x8xf32>
    %9 = tpu.matmul %8, %7, %cst {dimension_numbers = #tpu.dot_dimension_numbers<[1], [0], [0], [1], [0, 0, 1, 1], [], []>} : vector<22x335xbf16>, vector<335x8xbf16>, vector<22x8xf32> -> vector<22x8xf32>
    %c0_5 = arith.constant 0 : index
    %c0_6 = arith.constant 0 : index
    %10 = vector.load %arg4[%c0_5, %c0_6] : memref<22x1xf32, #tpu.memory_space<vmem>>, vector<22x1xf32>
    %11 = vector.broadcast %10 : vector<22x1xf32> to vector<22x8xf32>
    %12 = arith.addf %9, %11 : vector<22x8xf32>
    %cst_7 = arith.constant 0.000000e+00 : f32
    %13 = vector.broadcast %cst_7 : f32 to vector<22x8xf32>
    %14 = arith.maximumf %12, %13 : vector<22x8xf32>
    %c0_8 = arith.constant 0 : index
    %c0_9 = arith.constant 0 : index
    %15 = vector.load %arg5[%c0_8, %c0_9] : memref<22x1xf32, #tpu.memory_space<vmem>>, vector<22x1xf32>
    %16 = vector.broadcast %15 : vector<22x1xf32> to vector<22x8xf32>
    %17 = arith.mulf %14, %16 : vector<22x8xf32>
    %c0_10 = arith.constant 0 : index
    %c0_11 = arith.constant 0 : index
    %18 = vector.load %arg6[%c0_10, %c0_11] : memref<22x1xf32, #tpu.memory_space<vmem>>, vector<22x1xf32>
    %19 = vector.broadcast %18 : vector<22x1xf32> to vector<22x8xf32>
    %20 = arith.addf %17, %19 : vector<22x8xf32>
    %21 = arith.truncf %20 : vector<22x8xf32> to vector<22x8xbf16>
    %c0_12 = arith.constant 0 : index
    %c0_13 = arith.constant 0 : index
    %c0_14 = arith.constant 0 : index
    %22 = vector.load %arg7[%c0_12, %c0_13, %c0_14] : memref<1x22x8xbf16, #tpu.memory_space<vmem>>, vector<1x22x8xbf16>
    %23 = vector.shape_cast %22 : vector<1x22x8xbf16> to vector<22x8xbf16>
    %24 = vector.shape_cast %21 : vector<22x8xbf16> to vector<1x22x8xbf16>
    tpu.vector_store %arg7[%c0_12, %c0_13, %c0_14], %24 {strides = array<i32>} : memref<1x22x8xbf16, #tpu.memory_space<vmem>>, vector<1x22x8xbf16>,
    return
  }
  func.func @transform_0(%arg0: i32, %arg1: i32) -> (i32, i32, i32, i32) {
    %c0_i32 = arith.constant 0 : i32
    %c0_i32_0 = arith.constant 0 : i32
    %c0_i32_1 = arith.constant 0 : i32
    return %arg0, %arg1, %c0_i32, %c0_i32_0 : i32, i32, i32, i32
  }
  func.func @transform_1(%arg0: i32, %arg1: i32) -> (i32, i32) {
    %c0_i32 = arith.constant 0 : i32
    %c0_i32_0 = arith.constant 0 : i32
    %c0_i32_1 = arith.constant 0 : i32
    return %c0_i32, %c0_i32_0 : i32, i32
  }
  func.func @transform_2(%arg0: i32, %arg1: i32) -> (i32, i32) {
    %c0_i32 = arith.constant 0 : i32
    %c0_i32_0 = arith.constant 0 : i32
    %c0_i32_1 = arith.constant 0 : i32
    return %c0_i32, %c0_i32_0 : i32, i32
  }
  func.func @transform_3(%arg0: i32, %arg1: i32) -> (i32, i32) {
    %c0_i32 = arith.constant 0 : i32
    %c0_i32_0 = arith.constant 0 : i32
    %c0_i32_1 = arith.constant 0 : i32
    return %c0_i32, %c0_i32_0 : i32, i32
  }
  func.func @transform_4(%arg0: i32, %arg1: i32) -> (i32, i32) {
    %c0_i32 = arith.constant 0 : i32
    %c0_i32_0 = arith.constant 0 : i32
    %c0_i32_1 = arith.constant 0 : i32
    return %c0_i32, %c0_i32_0 : i32, i32
  }
  func.func @transform_5(%arg0: i32, %arg1: i32) -> (i32, i32, i32) {
    %c0_i32 = arith.constant 0 : i32
    %c0_i32_0 = arith.constant 0 : i32
    return %arg0, %c0_i32, %arg1 : i32, i32, i32
  }
}

module attributes {stable_mosaic.version = 11 : i64} {
  func.func @_interp_kernel(%arg0: i32, %arg1: memref<1x22x8xbf16, #tpu.memory_space<vmem>>, %arg2: memref<8x16xbf16, #tpu.memory_space<vmem>>, %arg3: memref<1x22x16xbf16, #tpu.memory_space<vmem>>) attributes {dimension_semantics = [#tpu.dimension_semantics<parallel>], iteration_bounds = array<i64: 2>, scalar_prefetch = 0 : i64, scratch_operands = 0 : i64, tpu.core_type = #tpu.core_type<tc>, window_params = [{transform_indices = @transform_0, window_bounds = array<i64: 1, 22, 8>}, {pipeline_mode = #tpu.pipeline_mode<synchronous>, transform_indices = @transform_1, window_bounds = array<i64: 8, 16>}, {transform_indices = @transform_2, window_bounds = array<i64: 1, 22, 16>}]} {
    %c0 = arith.constant 0 : index
    %c0_0 = arith.constant 0 : index
    %c0_1 = arith.constant 0 : index
    %0 = vector.load %arg1[%c0, %c0_0, %c0_1] : memref<1x22x8xbf16, #tpu.memory_space<vmem>>, vector<1x22x8xbf16>
    %1 = vector.shape_cast %0 : vector<1x22x8xbf16> to vector<22x8xbf16>
    %c0_2 = arith.constant 0 : index
    %c0_3 = arith.constant 0 : index
    %2 = vector.load %arg2[%c0_2, %c0_3] : memref<8x16xbf16, #tpu.memory_space<vmem>>, vector<8x16xbf16>
    %cst = arith.constant dense<0.000000e+00> : vector<22x16xf32>
    %3 = tpu.matmul %1, %2, %cst {dimension_numbers = #tpu.dot_dimension_numbers<[1], [0], [0], [1], [0, 0, 1, 1], [], []>} : vector<22x8xbf16>, vector<8x16xbf16>, vector<22x16xf32> -> vector<22x16xf32>
    %4 = arith.truncf %3 : vector<22x16xf32> to vector<22x16xbf16>
    %c0_4 = arith.constant 0 : index
    %c0_5 = arith.constant 0 : index
    %c0_6 = arith.constant 0 : index
    %5 = vector.load %arg3[%c0_4, %c0_5, %c0_6] : memref<1x22x16xbf16, #tpu.memory_space<vmem>>, vector<1x22x16xbf16>
    %6 = vector.shape_cast %5 : vector<1x22x16xbf16> to vector<22x16xbf16>
    %7 = vector.shape_cast %4 : vector<22x16xbf16> to vector<1x22x16xbf16>
    tpu.vector_store %arg3[%c0_4, %c0_5, %c0_6], %7 {strides = array<i32>} : memref<1x22x16xbf16, #tpu.memory_space<vmem>>, vector<1x22x16xbf16>,
    return
  }
  func.func @transform_0(%arg0: i32) -> (i32, i32, i32) {
    %c0_i32 = arith.constant 0 : i32
    %c0_i32_0 = arith.constant 0 : i32
    %c0_i32_1 = arith.constant 0 : i32
    return %arg0, %c0_i32, %c0_i32_0 : i32, i32, i32
  }
  func.func @transform_1(%arg0: i32) -> (i32, i32) {
    %c0_i32 = arith.constant 0 : i32
    %c0_i32_0 = arith.constant 0 : i32
    %c0_i32_1 = arith.constant 0 : i32
    return %c0_i32, %c0_i32_0 : i32, i32
  }
  func.func @transform_2(%arg0: i32) -> (i32, i32, i32) {
    %c0_i32 = arith.constant 0 : i32
    %c0_i32_0 = arith.constant 0 : i32
    %c0_i32_1 = arith.constant 0 : i32
    return %arg0, %c0_i32, %c0_i32_0 : i32, i32, i32
  }
}

module attributes {stable_mosaic.version = 11 : i64} {
  func.func @_conv1d_kernel(%arg0: i32, %arg1: i32, %arg2: memref<1x1x22x12xbf16, #tpu.memory_space<vmem>>, %arg3: memref<22x110xbf16, #tpu.memory_space<vmem>>, %arg4: memref<22x1xf32, #tpu.memory_space<vmem>>, %arg5: memref<22x1xf32, #tpu.memory_space<vmem>>, %arg6: memref<22x1xf32, #tpu.memory_space<vmem>>, %arg7: memref<1x22x8xbf16, #tpu.memory_space<vmem>>) attributes {dimension_semantics = [#tpu.dimension_semantics<parallel>, #tpu.dimension_semantics<parallel>], iteration_bounds = array<i64: 2, 1>, scalar_prefetch = 0 : i64, scratch_operands = 0 : i64, tpu.core_type = #tpu.core_type<tc>, window_params = [{transform_indices = @transform_0, window_bounds = array<i64: 1, 1, 22, 12>}, {pipeline_mode = #tpu.pipeline_mode<synchronous>, transform_indices = @transform_1, window_bounds = array<i64: 22, 110>}, {pipeline_mode = #tpu.pipeline_mode<synchronous>, transform_indices = @transform_2, window_bounds = array<i64: 22, 1>}, {pipeline_mode = #tpu.pipeline_mode<synchronous>, transform_indices = @transform_3, window_bounds = array<i64: 22, 1>}, {pipeline_mode = #tpu.pipeline_mode<synchronous>, transform_indices = @transform_4, window_bounds = array<i64: 22, 1>}, {transform_indices = @transform_5, window_bounds = array<i64: 1, 22, 8>}]} {
    %c0 = arith.constant 0 : index
    %c0_0 = arith.constant 0 : index
    %c0_1 = arith.constant 0 : index
    %c0_2 = arith.constant 0 : index
    %0 = vector.load %arg2[%c0, %c0_0, %c0_1, %c0_2] : memref<1x1x22x12xbf16, #tpu.memory_space<vmem>>, vector<1x1x22x12xbf16>
    %1 = vector.shape_cast %0 : vector<1x1x22x12xbf16> to vector<22x12xbf16>
    %2 = vector.extract_strided_slice %1 {offsets = [0, 0], sizes = [22, 8], strides = [1, 1]} : vector<22x12xbf16> to vector<22x8xbf16>
    %3 = vector.extract_strided_slice %1 {offsets = [0, 1], sizes = [22, 8], strides = [1, 1]} : vector<22x12xbf16> to vector<22x8xbf16>
    %4 = vector.extract_strided_slice %1 {offsets = [0, 2], sizes = [22, 8], strides = [1, 1]} : vector<22x12xbf16> to vector<22x8xbf16>
    %5 = vector.extract_strided_slice %1 {offsets = [0, 3], sizes = [22, 8], strides = [1, 1]} : vector<22x12xbf16> to vector<22x8xbf16>
    %6 = vector.extract_strided_slice %1 {offsets = [0, 4], sizes = [22, 8], strides = [1, 1]} : vector<22x12xbf16> to vector<22x8xbf16>
    %7 = tpu.concatenate %2, %3, %4, %5, %6 in 0 : vector<22x8xbf16>, vector<22x8xbf16>, vector<22x8xbf16>, vector<22x8xbf16>, vector<22x8xbf16> -> vector<110x8xbf16>
    %c0_3 = arith.constant 0 : index
    %c0_4 = arith.constant 0 : index
    %8 = vector.load %arg3[%c0_3, %c0_4] : memref<22x110xbf16, #tpu.memory_space<vmem>>, vector<22x110xbf16>
    %cst = arith.constant dense<0.000000e+00> : vector<22x8xf32>
    %9 = tpu.matmul %8, %7, %cst {dimension_numbers = #tpu.dot_dimension_numbers<[1], [0], [0], [1], [0, 0, 1, 1], [], []>} : vector<22x110xbf16>, vector<110x8xbf16>, vector<22x8xf32> -> vector<22x8xf32>
    %c0_5 = arith.constant 0 : index
    %c0_6 = arith.constant 0 : index
    %10 = vector.load %arg4[%c0_5, %c0_6] : memref<22x1xf32, #tpu.memory_space<vmem>>, vector<22x1xf32>
    %11 = vector.broadcast %10 : vector<22x1xf32> to vector<22x8xf32>
    %12 = arith.addf %9, %11 : vector<22x8xf32>
    %cst_7 = arith.constant 0.000000e+00 : f32
    %13 = vector.broadcast %cst_7 : f32 to vector<22x8xf32>
    %14 = arith.maximumf %12, %13 : vector<22x8xf32>
    %c0_8 = arith.constant 0 : index
    %c0_9 = arith.constant 0 : index
    %15 = vector.load %arg5[%c0_8, %c0_9] : memref<22x1xf32, #tpu.memory_space<vmem>>, vector<22x1xf32>
    %16 = vector.broadcast %15 : vector<22x1xf32> to vector<22x8xf32>
    %17 = arith.mulf %14, %16 : vector<22x8xf32>
    %c0_10 = arith.constant 0 : index
    %c0_11 = arith.constant 0 : index
    %18 = vector.load %arg6[%c0_10, %c0_11] : memref<22x1xf32, #tpu.memory_space<vmem>>, vector<22x1xf32>
    %19 = vector.broadcast %18 : vector<22x1xf32> to vector<22x8xf32>
    %20 = arith.addf %17, %19 : vector<22x8xf32>
    %21 = arith.truncf %20 : vector<22x8xf32> to vector<22x8xbf16>
    %c0_12 = arith.constant 0 : index
    %c0_13 = arith.constant 0 : index
    %c0_14 = arith.constant 0 : index
    %22 = vector.load %arg7[%c0_12, %c0_13, %c0_14] : memref<1x22x8xbf16, #tpu.memory_space<vmem>>, vector<1x22x8xbf16>
    %23 = vector.shape_cast %22 : vector<1x22x8xbf16> to vector<22x8xbf16>
    %24 = vector.shape_cast %21 : vector<22x8xbf16> to vector<1x22x8xbf16>
    tpu.vector_store %arg7[%c0_12, %c0_13, %c0_14], %24 {strides = array<i32>} : memref<1x22x8xbf16, #tpu.memory_space<vmem>>, vector<1x22x8xbf16>,
    return
  }
  func.func @transform_0(%arg0: i32, %arg1: i32) -> (i32, i32, i32, i32) {
    %c0_i32 = arith.constant 0 : i32
    %c0_i32_0 = arith.constant 0 : i32
    %c0_i32_1 = arith.constant 0 : i32
    return %arg0, %arg1, %c0_i32, %c0_i32_0 : i32, i32, i32, i32
  }
  func.func @transform_1(%arg0: i32, %arg1: i32) -> (i32, i32) {
    %c0_i32 = arith.constant 0 : i32
    %c0_i32_0 = arith.constant 0 : i32
    %c0_i32_1 = arith.constant 0 : i32
    return %c0_i32, %c0_i32_0 : i32, i32
  }
  func.func @transform_2(%arg0: i32, %arg1: i32) -> (i32, i32) {
    %c0_i32 = arith.constant 0 : i32
    %c0_i32_0 = arith.constant 0 : i32
    %c0_i32_1 = arith.constant 0 : i32
    return %c0_i32, %c0_i32_0 : i32, i32
  }
  func.func @transform_3(%arg0: i32, %arg1: i32) -> (i32, i32) {
    %c0_i32 = arith.constant 0 : i32
    %c0_i32_0 = arith.constant 0 : i32
    %c0_i32_1 = arith.constant 0 : i32
    return %c0_i32, %c0_i32_0 : i32, i32
  }
  func.func @transform_4(%arg0: i32, %arg1: i32) -> (i32, i32) {
    %c0_i32 = arith.constant 0 : i32
    %c0_i32_0 = arith.constant 0 : i32
    %c0_i32_1 = arith.constant 0 : i32
    return %c0_i32, %c0_i32_0 : i32, i32
  }
  func.func @transform_5(%arg0: i32, %arg1: i32) -> (i32, i32, i32) {
    %c0_i32 = arith.constant 0 : i32
    %c0_i32_0 = arith.constant 0 : i32
    return %arg0, %c0_i32, %arg1 : i32, i32, i32
  }
}

module attributes {stable_mosaic.version = 11 : i64} {
  func.func @_conv1d_kernel(%arg0: i32, %arg1: i32, %arg2: memref<1x1x22x20xbf16, #tpu.memory_space<vmem>>, %arg3: memref<11x110xbf16, #tpu.memory_space<vmem>>, %arg4: memref<11x1xf32, #tpu.memory_space<vmem>>, %arg5: memref<11x1xf32, #tpu.memory_space<vmem>>, %arg6: memref<11x1xf32, #tpu.memory_space<vmem>>, %arg7: memref<1x11x16xbf16, #tpu.memory_space<vmem>>) attributes {dimension_semantics = [#tpu.dimension_semantics<parallel>, #tpu.dimension_semantics<parallel>], iteration_bounds = array<i64: 2, 1>, scalar_prefetch = 0 : i64, scratch_operands = 0 : i64, tpu.core_type = #tpu.core_type<tc>, window_params = [{transform_indices = @transform_0, window_bounds = array<i64: 1, 1, 22, 20>}, {pipeline_mode = #tpu.pipeline_mode<synchronous>, transform_indices = @transform_1, window_bounds = array<i64: 11, 110>}, {pipeline_mode = #tpu.pipeline_mode<synchronous>, transform_indices = @transform_2, window_bounds = array<i64: 11, 1>}, {pipeline_mode = #tpu.pipeline_mode<synchronous>, transform_indices = @transform_3, window_bounds = array<i64: 11, 1>}, {pipeline_mode = #tpu.pipeline_mode<synchronous>, transform_indices = @transform_4, window_bounds = array<i64: 11, 1>}, {transform_indices = @transform_5, window_bounds = array<i64: 1, 11, 16>}]} {
    %c0 = arith.constant 0 : index
    %c0_0 = arith.constant 0 : index
    %c0_1 = arith.constant 0 : index
    %c0_2 = arith.constant 0 : index
    %0 = vector.load %arg2[%c0, %c0_0, %c0_1, %c0_2] : memref<1x1x22x20xbf16, #tpu.memory_space<vmem>>, vector<1x1x22x20xbf16>
    %1 = vector.shape_cast %0 : vector<1x1x22x20xbf16> to vector<22x20xbf16>
    %2 = vector.extract_strided_slice %1 {offsets = [0, 0], sizes = [22, 16], strides = [1, 1]} : vector<22x20xbf16> to vector<22x16xbf16>
    %3 = vector.extract_strided_slice %1 {offsets = [0, 1], sizes = [22, 16], strides = [1, 1]} : vector<22x20xbf16> to vector<22x16xbf16>
    %4 = vector.extract_strided_slice %1 {offsets = [0, 2], sizes = [22, 16], strides = [1, 1]} : vector<22x20xbf16> to vector<22x16xbf16>
    %5 = vector.extract_strided_slice %1 {offsets = [0, 3], sizes = [22, 16], strides = [1, 1]} : vector<22x20xbf16> to vector<22x16xbf16>
    %6 = vector.extract_strided_slice %1 {offsets = [0, 4], sizes = [22, 16], strides = [1, 1]} : vector<22x20xbf16> to vector<22x16xbf16>
    %7 = tpu.concatenate %2, %3, %4, %5, %6 in 0 : vector<22x16xbf16>, vector<22x16xbf16>, vector<22x16xbf16>, vector<22x16xbf16>, vector<22x16xbf16> -> vector<110x16xbf16>
    %c0_3 = arith.constant 0 : index
    %c0_4 = arith.constant 0 : index
    %8 = vector.load %arg3[%c0_3, %c0_4] : memref<11x110xbf16, #tpu.memory_space<vmem>>, vector<11x110xbf16>
    %cst = arith.constant dense<0.000000e+00> : vector<11x16xf32>
    %9 = tpu.matmul %8, %7, %cst {dimension_numbers = #tpu.dot_dimension_numbers<[1], [0], [0], [1], [0, 0, 1, 1], [], []>} : vector<11x110xbf16>, vector<110x16xbf16>, vector<11x16xf32> -> vector<11x16xf32>
    %c0_5 = arith.constant 0 : index
    %c0_6 = arith.constant 0 : index
    %10 = vector.load %arg4[%c0_5, %c0_6] : memref<11x1xf32, #tpu.memory_space<vmem>>, vector<11x1xf32>
    %11 = vector.broadcast %10 : vector<11x1xf32> to vector<11x16xf32>
    %12 = arith.addf %9, %11 : vector<11x16xf32>
    %cst_7 = arith.constant 0.000000e+00 : f32
    %13 = vector.broadcast %cst_7 : f32 to vector<11x16xf32>
    %14 = arith.maximumf %12, %13 : vector<11x16xf32>
    %c0_8 = arith.constant 0 : index
    %c0_9 = arith.constant 0 : index
    %15 = vector.load %arg5[%c0_8, %c0_9] : memref<11x1xf32, #tpu.memory_space<vmem>>, vector<11x1xf32>
    %16 = vector.broadcast %15 : vector<11x1xf32> to vector<11x16xf32>
    %17 = arith.mulf %14, %16 : vector<11x16xf32>
    %c0_10 = arith.constant 0 : index
    %c0_11 = arith.constant 0 : index
    %18 = vector.load %arg6[%c0_10, %c0_11] : memref<11x1xf32, #tpu.memory_space<vmem>>, vector<11x1xf32>
    %19 = vector.broadcast %18 : vector<11x1xf32> to vector<11x16xf32>
    %20 = arith.addf %17, %19 : vector<11x16xf32>
    %21 = arith.truncf %20 : vector<11x16xf32> to vector<11x16xbf16>
    %c0_12 = arith.constant 0 : index
    %c0_13 = arith.constant 0 : index
    %c0_14 = arith.constant 0 : index
    %22 = vector.load %arg7[%c0_12, %c0_13, %c0_14] : memref<1x11x16xbf16, #tpu.memory_space<vmem>>, vector<1x11x16xbf16>
    %23 = vector.shape_cast %22 : vector<1x11x16xbf16> to vector<11x16xbf16>
    %24 = vector.shape_cast %21 : vector<11x16xbf16> to vector<1x11x16xbf16>
    tpu.vector_store %arg7[%c0_12, %c0_13, %c0_14], %24 {strides = array<i32>} : memref<1x11x16xbf16, #tpu.memory_space<vmem>>, vector<1x11x16xbf16>,
    return
  }
  func.func @transform_0(%arg0: i32, %arg1: i32) -> (i32, i32, i32, i32) {
    %c0_i32 = arith.constant 0 : i32
    %c0_i32_0 = arith.constant 0 : i32
    %c0_i32_1 = arith.constant 0 : i32
    return %arg0, %arg1, %c0_i32, %c0_i32_0 : i32, i32, i32, i32
  }
  func.func @transform_1(%arg0: i32, %arg1: i32) -> (i32, i32) {
    %c0_i32 = arith.constant 0 : i32
    %c0_i32_0 = arith.constant 0 : i32
    %c0_i32_1 = arith.constant 0 : i32
    return %c0_i32, %c0_i32_0 : i32, i32
  }
  func.func @transform_2(%arg0: i32, %arg1: i32) -> (i32, i32) {
    %c0_i32 = arith.constant 0 : i32
    %c0_i32_0 = arith.constant 0 : i32
    %c0_i32_1 = arith.constant 0 : i32
    return %c0_i32, %c0_i32_0 : i32, i32
  }
  func.func @transform_3(%arg0: i32, %arg1: i32) -> (i32, i32) {
    %c0_i32 = arith.constant 0 : i32
    %c0_i32_0 = arith.constant 0 : i32
    %c0_i32_1 = arith.constant 0 : i32
    return %c0_i32, %c0_i32_0 : i32, i32
  }
  func.func @transform_4(%arg0: i32, %arg1: i32) -> (i32, i32) {
    %c0_i32 = arith.constant 0 : i32
    %c0_i32_0 = arith.constant 0 : i32
    %c0_i32_1 = arith.constant 0 : i32
    return %c0_i32, %c0_i32_0 : i32, i32
  }
  func.func @transform_5(%arg0: i32, %arg1: i32) -> (i32, i32, i32) {
    %c0_i32 = arith.constant 0 : i32
    %c0_i32_0 = arith.constant 0 : i32
    return %arg0, %c0_i32, %arg1 : i32, i32, i32
  }
}

module attributes {stable_mosaic.version = 11 : i64} {
  func.func @_conv1d_kernel(%arg0: i32, %arg1: i32, %arg2: memref<1x1x33x20xbf16, #tpu.memory_space<vmem>>, %arg3: memref<11x165xbf16, #tpu.memory_space<vmem>>, %arg4: memref<11x1xf32, #tpu.memory_space<vmem>>, %arg5: memref<11x1xf32, #tpu.memory_space<vmem>>, %arg6: memref<11x1xf32, #tpu.memory_space<vmem>>, %arg7: memref<1x11x16xbf16, #tpu.memory_space<vmem>>) attributes {dimension_semantics = [#tpu.dimension_semantics<parallel>, #tpu.dimension_semantics<parallel>], iteration_bounds = array<i64: 2, 1>, scalar_prefetch = 0 : i64, scratch_operands = 0 : i64, tpu.core_type = #tpu.core_type<tc>, window_params = [{transform_indices = @transform_0, window_bounds = array<i64: 1, 1, 33, 20>}, {pipeline_mode = #tpu.pipeline_mode<synchronous>, transform_indices = @transform_1, window_bounds = array<i64: 11, 165>}, {pipeline_mode = #tpu.pipeline_mode<synchronous>, transform_indices = @transform_2, window_bounds = array<i64: 11, 1>}, {pipeline_mode = #tpu.pipeline_mode<synchronous>, transform_indices = @transform_3, window_bounds = array<i64: 11, 1>}, {pipeline_mode = #tpu.pipeline_mode<synchronous>, transform_indices = @transform_4, window_bounds = array<i64: 11, 1>}, {transform_indices = @transform_5, window_bounds = array<i64: 1, 11, 16>}]} {
    %c0 = arith.constant 0 : index
    %c0_0 = arith.constant 0 : index
    %c0_1 = arith.constant 0 : index
    %c0_2 = arith.constant 0 : index
    %0 = vector.load %arg2[%c0, %c0_0, %c0_1, %c0_2] : memref<1x1x33x20xbf16, #tpu.memory_space<vmem>>, vector<1x1x33x20xbf16>
    %1 = vector.shape_cast %0 : vector<1x1x33x20xbf16> to vector<33x20xbf16>
    %2 = vector.extract_strided_slice %1 {offsets = [0, 0], sizes = [33, 16], strides = [1, 1]} : vector<33x20xbf16> to vector<33x16xbf16>
    %3 = vector.extract_strided_slice %1 {offsets = [0, 1], sizes = [33, 16], strides = [1, 1]} : vector<33x20xbf16> to vector<33x16xbf16>
    %4 = vector.extract_strided_slice %1 {offsets = [0, 2], sizes = [33, 16], strides = [1, 1]} : vector<33x20xbf16> to vector<33x16xbf16>
    %5 = vector.extract_strided_slice %1 {offsets = [0, 3], sizes = [33, 16], strides = [1, 1]} : vector<33x20xbf16> to vector<33x16xbf16>
    %6 = vector.extract_strided_slice %1 {offsets = [0, 4], sizes = [33, 16], strides = [1, 1]} : vector<33x20xbf16> to vector<33x16xbf16>
    %7 = tpu.concatenate %2, %3, %4, %5, %6 in 0 : vector<33x16xbf16>, vector<33x16xbf16>, vector<33x16xbf16>, vector<33x16xbf16>, vector<33x16xbf16> -> vector<165x16xbf16>
    %c0_3 = arith.constant 0 : index
    %c0_4 = arith.constant 0 : index
    %8 = vector.load %arg3[%c0_3, %c0_4] : memref<11x165xbf16, #tpu.memory_space<vmem>>, vector<11x165xbf16>
    %cst = arith.constant dense<0.000000e+00> : vector<11x16xf32>
    %9 = tpu.matmul %8, %7, %cst {dimension_numbers = #tpu.dot_dimension_numbers<[1], [0], [0], [1], [0, 0, 1, 1], [], []>} : vector<11x165xbf16>, vector<165x16xbf16>, vector<11x16xf32> -> vector<11x16xf32>
    %c0_5 = arith.constant 0 : index
    %c0_6 = arith.constant 0 : index
    %10 = vector.load %arg4[%c0_5, %c0_6] : memref<11x1xf32, #tpu.memory_space<vmem>>, vector<11x1xf32>
    %11 = vector.broadcast %10 : vector<11x1xf32> to vector<11x16xf32>
    %12 = arith.addf %9, %11 : vector<11x16xf32>
    %cst_7 = arith.constant 0.000000e+00 : f32
    %13 = vector.broadcast %cst_7 : f32 to vector<11x16xf32>
    %14 = arith.maximumf %12, %13 : vector<11x16xf32>
    %c0_8 = arith.constant 0 : index
    %c0_9 = arith.constant 0 : index
    %15 = vector.load %arg5[%c0_8, %c0_9] : memref<11x1xf32, #tpu.memory_space<vmem>>, vector<11x1xf32>
    %16 = vector.broadcast %15 : vector<11x1xf32> to vector<11x16xf32>
    %17 = arith.mulf %14, %16 : vector<11x16xf32>
    %c0_10 = arith.constant 0 : index
    %c0_11 = arith.constant 0 : index
    %18 = vector.load %arg6[%c0_10, %c0_11] : memref<11x1xf32, #tpu.memory_space<vmem>>, vector<11x1xf32>
    %19 = vector.broadcast %18 : vector<11x1xf32> to vector<11x16xf32>
    %20 = arith.addf %17, %19 : vector<11x16xf32>
    %21 = arith.truncf %20 : vector<11x16xf32> to vector<11x16xbf16>
    %c0_12 = arith.constant 0 : index
    %c0_13 = arith.constant 0 : index
    %c0_14 = arith.constant 0 : index
    %22 = vector.load %arg7[%c0_12, %c0_13, %c0_14] : memref<1x11x16xbf16, #tpu.memory_space<vmem>>, vector<1x11x16xbf16>
    %23 = vector.shape_cast %22 : vector<1x11x16xbf16> to vector<11x16xbf16>
    %24 = vector.shape_cast %21 : vector<11x16xbf16> to vector<1x11x16xbf16>
    tpu.vector_store %arg7[%c0_12, %c0_13, %c0_14], %24 {strides = array<i32>} : memref<1x11x16xbf16, #tpu.memory_space<vmem>>, vector<1x11x16xbf16>,
    return
  }
  func.func @transform_0(%arg0: i32, %arg1: i32) -> (i32, i32, i32, i32) {
    %c0_i32 = arith.constant 0 : i32
    %c0_i32_0 = arith.constant 0 : i32
    %c0_i32_1 = arith.constant 0 : i32
    return %arg0, %arg1, %c0_i32, %c0_i32_0 : i32, i32, i32, i32
  }
  func.func @transform_1(%arg0: i32, %arg1: i32) -> (i32, i32) {
    %c0_i32 = arith.constant 0 : i32
    %c0_i32_0 = arith.constant 0 : i32
    %c0_i32_1 = arith.constant 0 : i32
    return %c0_i32, %c0_i32_0 : i32, i32
  }
  func.func @transform_2(%arg0: i32, %arg1: i32) -> (i32, i32) {
    %c0_i32 = arith.constant 0 : i32
    %c0_i32_0 = arith.constant 0 : i32
    %c0_i32_1 = arith.constant 0 : i32
    return %c0_i32, %c0_i32_0 : i32, i32
  }
  func.func @transform_3(%arg0: i32, %arg1: i32) -> (i32, i32) {
    %c0_i32 = arith.constant 0 : i32
    %c0_i32_0 = arith.constant 0 : i32
    %c0_i32_1 = arith.constant 0 : i32
    return %c0_i32, %c0_i32_0 : i32, i32
  }
  func.func @transform_4(%arg0: i32, %arg1: i32) -> (i32, i32) {
    %c0_i32 = arith.constant 0 : i32
    %c0_i32_0 = arith.constant 0 : i32
    %c0_i32_1 = arith.constant 0 : i32
    return %c0_i32, %c0_i32_0 : i32, i32
  }
  func.func @transform_5(%arg0: i32, %arg1: i32) -> (i32, i32, i32) {
    %c0_i32 = arith.constant 0 : i32
    %c0_i32_0 = arith.constant 0 : i32
    return %arg0, %c0_i32, %arg1 : i32, i32, i32
  }
}

module attributes {stable_mosaic.version = 11 : i64} {
  func.func @_conv1d_kernel(%arg0: i32, %arg1: i32, %arg2: memref<1x1x11x20xbf16, #tpu.memory_space<vmem>>, %arg3: memref<11x55xbf16, #tpu.memory_space<vmem>>, %arg4: memref<11x1xf32, #tpu.memory_space<vmem>>, %arg5: memref<11x1xf32, #tpu.memory_space<vmem>>, %arg6: memref<11x1xf32, #tpu.memory_space<vmem>>, %arg7: memref<1x11x16xbf16, #tpu.memory_space<vmem>>) attributes {dimension_semantics = [#tpu.dimension_semantics<parallel>, #tpu.dimension_semantics<parallel>], iteration_bounds = array<i64: 2, 1>, scalar_prefetch = 0 : i64, scratch_operands = 0 : i64, tpu.core_type = #tpu.core_type<tc>, window_params = [{transform_indices = @transform_0, window_bounds = array<i64: 1, 1, 11, 20>}, {pipeline_mode = #tpu.pipeline_mode<synchronous>, transform_indices = @transform_1, window_bounds = array<i64: 11, 55>}, {pipeline_mode = #tpu.pipeline_mode<synchronous>, transform_indices = @transform_2, window_bounds = array<i64: 11, 1>}, {pipeline_mode = #tpu.pipeline_mode<synchronous>, transform_indices = @transform_3, window_bounds = array<i64: 11, 1>}, {pipeline_mode = #tpu.pipeline_mode<synchronous>, transform_indices = @transform_4, window_bounds = array<i64: 11, 1>}, {transform_indices = @transform_5, window_bounds = array<i64: 1, 11, 16>}]} {
    %c0 = arith.constant 0 : index
    %c0_0 = arith.constant 0 : index
    %c0_1 = arith.constant 0 : index
    %c0_2 = arith.constant 0 : index
    %0 = vector.load %arg2[%c0, %c0_0, %c0_1, %c0_2] : memref<1x1x11x20xbf16, #tpu.memory_space<vmem>>, vector<1x1x11x20xbf16>
    %1 = vector.shape_cast %0 : vector<1x1x11x20xbf16> to vector<11x20xbf16>
    %2 = vector.extract_strided_slice %1 {offsets = [0, 0], sizes = [11, 16], strides = [1, 1]} : vector<11x20xbf16> to vector<11x16xbf16>
    %3 = vector.extract_strided_slice %1 {offsets = [0, 1], sizes = [11, 16], strides = [1, 1]} : vector<11x20xbf16> to vector<11x16xbf16>
    %4 = vector.extract_strided_slice %1 {offsets = [0, 2], sizes = [11, 16], strides = [1, 1]} : vector<11x20xbf16> to vector<11x16xbf16>
    %5 = vector.extract_strided_slice %1 {offsets = [0, 3], sizes = [11, 16], strides = [1, 1]} : vector<11x20xbf16> to vector<11x16xbf16>
    %6 = vector.extract_strided_slice %1 {offsets = [0, 4], sizes = [11, 16], strides = [1, 1]} : vector<11x20xbf16> to vector<11x16xbf16>
    %7 = tpu.concatenate %2, %3, %4, %5, %6 in 0 : vector<11x16xbf16>, vector<11x16xbf16>, vector<11x16xbf16>, vector<11x16xbf16>, vector<11x16xbf16> -> vector<55x16xbf16>
    %c0_3 = arith.constant 0 : index
    %c0_4 = arith.constant 0 : index
    %8 = vector.load %arg3[%c0_3, %c0_4] : memref<11x55xbf16, #tpu.memory_space<vmem>>, vector<11x55xbf16>
    %cst = arith.constant dense<0.000000e+00> : vector<11x16xf32>
    %9 = tpu.matmul %8, %7, %cst {dimension_numbers = #tpu.dot_dimension_numbers<[1], [0], [0], [1], [0, 0, 1, 1], [], []>} : vector<11x55xbf16>, vector<55x16xbf16>, vector<11x16xf32> -> vector<11x16xf32>
    %c0_5 = arith.constant 0 : index
    %c0_6 = arith.constant 0 : index
    %10 = vector.load %arg4[%c0_5, %c0_6] : memref<11x1xf32, #tpu.memory_space<vmem>>, vector<11x1xf32>
    %11 = vector.broadcast %10 : vector<11x1xf32> to vector<11x16xf32>
    %12 = arith.addf %9, %11 : vector<11x16xf32>
    %cst_7 = arith.constant 0.000000e+00 : f32
    %13 = vector.broadcast %cst_7 : f32 to vector<11x16xf32>
    %14 = arith.maximumf %12, %13 : vector<11x16xf32>
    %c0_8 = arith.constant 0 : index
    %c0_9 = arith.constant 0 : index
    %15 = vector.load %arg5[%c0_8, %c0_9] : memref<11x1xf32, #tpu.memory_space<vmem>>, vector<11x1xf32>
    %16 = vector.broadcast %15 : vector<11x1xf32> to vector<11x16xf32>
    %17 = arith.mulf %14, %16 : vector<11x16xf32>
    %c0_10 = arith.constant 0 : index
    %c0_11 = arith.constant 0 : index
    %18 = vector.load %arg6[%c0_10, %c0_11] : memref<11x1xf32, #tpu.memory_space<vmem>>, vector<11x1xf32>
    %19 = vector.broadcast %18 : vector<11x1xf32> to vector<11x16xf32>
    %20 = arith.addf %17, %19 : vector<11x16xf32>
    %21 = arith.truncf %20 : vector<11x16xf32> to vector<11x16xbf16>
    %c0_12 = arith.constant 0 : index
    %c0_13 = arith.constant 0 : index
    %c0_14 = arith.constant 0 : index
    %22 = vector.load %arg7[%c0_12, %c0_13, %c0_14] : memref<1x11x16xbf16, #tpu.memory_space<vmem>>, vector<1x11x16xbf16>
    %23 = vector.shape_cast %22 : vector<1x11x16xbf16> to vector<11x16xbf16>
    %24 = vector.shape_cast %21 : vector<11x16xbf16> to vector<1x11x16xbf16>
    tpu.vector_store %arg7[%c0_12, %c0_13, %c0_14], %24 {strides = array<i32>} : memref<1x11x16xbf16, #tpu.memory_space<vmem>>, vector<1x11x16xbf16>,
    return
  }
  func.func @transform_0(%arg0: i32, %arg1: i32) -> (i32, i32, i32, i32) {
    %c0_i32 = arith.constant 0 : i32
    %c0_i32_0 = arith.constant 0 : i32
    %c0_i32_1 = arith.constant 0 : i32
    return %arg0, %arg1, %c0_i32, %c0_i32_0 : i32, i32, i32, i32
  }
  func.func @transform_1(%arg0: i32, %arg1: i32) -> (i32, i32) {
    %c0_i32 = arith.constant 0 : i32
    %c0_i32_0 = arith.constant 0 : i32
    %c0_i32_1 = arith.constant 0 : i32
    return %c0_i32, %c0_i32_0 : i32, i32
  }
  func.func @transform_2(%arg0: i32, %arg1: i32) -> (i32, i32) {
    %c0_i32 = arith.constant 0 : i32
    %c0_i32_0 = arith.constant 0 : i32
    %c0_i32_1 = arith.constant 0 : i32
    return %c0_i32, %c0_i32_0 : i32, i32
  }
  func.func @transform_3(%arg0: i32, %arg1: i32) -> (i32, i32) {
    %c0_i32 = arith.constant 0 : i32
    %c0_i32_0 = arith.constant 0 : i32
    %c0_i32_1 = arith.constant 0 : i32
    return %c0_i32, %c0_i32_0 : i32, i32
  }
  func.func @transform_4(%arg0: i32, %arg1: i32) -> (i32, i32) {
    %c0_i32 = arith.constant 0 : i32
    %c0_i32_0 = arith.constant 0 : i32
    %c0_i32_1 = arith.constant 0 : i32
    return %c0_i32, %c0_i32_0 : i32, i32
  }
  func.func @transform_5(%arg0: i32, %arg1: i32) -> (i32, i32, i32) {
    %c0_i32 = arith.constant 0 : i32
    %c0_i32_0 = arith.constant 0 : i32
    return %arg0, %c0_i32, %arg1 : i32, i32, i32
  }
}

module attributes {stable_mosaic.version = 11 : i64} {
  func.func @_interp_kernel(%arg0: i32, %arg1: memref<1x11x16xbf16, #tpu.memory_space<vmem>>, %arg2: memref<16x32xbf16, #tpu.memory_space<vmem>>, %arg3: memref<1x11x32xbf16, #tpu.memory_space<vmem>>) attributes {dimension_semantics = [#tpu.dimension_semantics<parallel>], iteration_bounds = array<i64: 2>, scalar_prefetch = 0 : i64, scratch_operands = 0 : i64, tpu.core_type = #tpu.core_type<tc>, window_params = [{transform_indices = @transform_0, window_bounds = array<i64: 1, 11, 16>}, {pipeline_mode = #tpu.pipeline_mode<synchronous>, transform_indices = @transform_1, window_bounds = array<i64: 16, 32>}, {transform_indices = @transform_2, window_bounds = array<i64: 1, 11, 32>}]} {
    %c0 = arith.constant 0 : index
    %c0_0 = arith.constant 0 : index
    %c0_1 = arith.constant 0 : index
    %0 = vector.load %arg1[%c0, %c0_0, %c0_1] : memref<1x11x16xbf16, #tpu.memory_space<vmem>>, vector<1x11x16xbf16>
    %1 = vector.shape_cast %0 : vector<1x11x16xbf16> to vector<11x16xbf16>
    %c0_2 = arith.constant 0 : index
    %c0_3 = arith.constant 0 : index
    %2 = vector.load %arg2[%c0_2, %c0_3] : memref<16x32xbf16, #tpu.memory_space<vmem>>, vector<16x32xbf16>
    %cst = arith.constant dense<0.000000e+00> : vector<11x32xf32>
    %3 = tpu.matmul %1, %2, %cst {dimension_numbers = #tpu.dot_dimension_numbers<[1], [0], [0], [1], [0, 0, 1, 1], [], []>} : vector<11x16xbf16>, vector<16x32xbf16>, vector<11x32xf32> -> vector<11x32xf32>
    %4 = arith.truncf %3 : vector<11x32xf32> to vector<11x32xbf16>
    %c0_4 = arith.constant 0 : index
    %c0_5 = arith.constant 0 : index
    %c0_6 = arith.constant 0 : index
    %5 = vector.load %arg3[%c0_4, %c0_5, %c0_6] : memref<1x11x32xbf16, #tpu.memory_space<vmem>>, vector<1x11x32xbf16>
    %6 = vector.shape_cast %5 : vector<1x11x32xbf16> to vector<11x32xbf16>
    %7 = vector.shape_cast %4 : vector<11x32xbf16> to vector<1x11x32xbf16>
    tpu.vector_store %arg3[%c0_4, %c0_5, %c0_6], %7 {strides = array<i32>} : memref<1x11x32xbf16, #tpu.memory_space<vmem>>, vector<1x11x32xbf16>,
    return
  }
  func.func @transform_0(%arg0: i32) -> (i32, i32, i32) {
    %c0_i32 = arith.constant 0 : i32
    %c0_i32_0 = arith.constant 0 : i32
    %c0_i32_1 = arith.constant 0 : i32
    return %arg0, %c0_i32, %c0_i32_0 : i32, i32, i32
  }
  func.func @transform_1(%arg0: i32) -> (i32, i32) {
    %c0_i32 = arith.constant 0 : i32
    %c0_i32_0 = arith.constant 0 : i32
    %c0_i32_1 = arith.constant 0 : i32
    return %c0_i32, %c0_i32_0 : i32, i32
  }
  func.func @transform_2(%arg0: i32) -> (i32, i32, i32) {
    %c0_i32 = arith.constant 0 : i32
    %c0_i32_0 = arith.constant 0 : i32
    %c0_i32_1 = arith.constant 0 : i32
    return %arg0, %c0_i32, %c0_i32_0 : i32, i32, i32
  }
}

module attributes {stable_mosaic.version = 11 : i64} {
  func.func @_conv1d_kernel(%arg0: i32, %arg1: i32, %arg2: memref<1x1x11x36xbf16, #tpu.memory_space<vmem>>, %arg3: memref<5x55xbf16, #tpu.memory_space<vmem>>, %arg4: memref<5x1xf32, #tpu.memory_space<vmem>>, %arg5: memref<5x1xf32, #tpu.memory_space<vmem>>, %arg6: memref<5x1xf32, #tpu.memory_space<vmem>>, %arg7: memref<1x5x32xbf16, #tpu.memory_space<vmem>>) attributes {dimension_semantics = [#tpu.dimension_semantics<parallel>, #tpu.dimension_semantics<parallel>], iteration_bounds = array<i64: 2, 1>, scalar_prefetch = 0 : i64, scratch_operands = 0 : i64, tpu.core_type = #tpu.core_type<tc>, window_params = [{transform_indices = @transform_0, window_bounds = array<i64: 1, 1, 11, 36>}, {pipeline_mode = #tpu.pipeline_mode<synchronous>, transform_indices = @transform_1, window_bounds = array<i64: 5, 55>}, {pipeline_mode = #tpu.pipeline_mode<synchronous>, transform_indices = @transform_2, window_bounds = array<i64: 5, 1>}, {pipeline_mode = #tpu.pipeline_mode<synchronous>, transform_indices = @transform_3, window_bounds = array<i64: 5, 1>}, {pipeline_mode = #tpu.pipeline_mode<synchronous>, transform_indices = @transform_4, window_bounds = array<i64: 5, 1>}, {transform_indices = @transform_5, window_bounds = array<i64: 1, 5, 32>}]} {
    %c0 = arith.constant 0 : index
    %c0_0 = arith.constant 0 : index
    %c0_1 = arith.constant 0 : index
    %c0_2 = arith.constant 0 : index
    %0 = vector.load %arg2[%c0, %c0_0, %c0_1, %c0_2] : memref<1x1x11x36xbf16, #tpu.memory_space<vmem>>, vector<1x1x11x36xbf16>
    %1 = vector.shape_cast %0 : vector<1x1x11x36xbf16> to vector<11x36xbf16>
    %2 = vector.extract_strided_slice %1 {offsets = [0, 0], sizes = [11, 32], strides = [1, 1]} : vector<11x36xbf16> to vector<11x32xbf16>
    %3 = vector.extract_strided_slice %1 {offsets = [0, 1], sizes = [11, 32], strides = [1, 1]} : vector<11x36xbf16> to vector<11x32xbf16>
    %4 = vector.extract_strided_slice %1 {offsets = [0, 2], sizes = [11, 32], strides = [1, 1]} : vector<11x36xbf16> to vector<11x32xbf16>
    %5 = vector.extract_strided_slice %1 {offsets = [0, 3], sizes = [11, 32], strides = [1, 1]} : vector<11x36xbf16> to vector<11x32xbf16>
    %6 = vector.extract_strided_slice %1 {offsets = [0, 4], sizes = [11, 32], strides = [1, 1]} : vector<11x36xbf16> to vector<11x32xbf16>
    %7 = tpu.concatenate %2, %3, %4, %5, %6 in 0 : vector<11x32xbf16>, vector<11x32xbf16>, vector<11x32xbf16>, vector<11x32xbf16>, vector<11x32xbf16> -> vector<55x32xbf16>
    %c0_3 = arith.constant 0 : index
    %c0_4 = arith.constant 0 : index
    %8 = vector.load %arg3[%c0_3, %c0_4] : memref<5x55xbf16, #tpu.memory_space<vmem>>, vector<5x55xbf16>
    %cst = arith.constant dense<0.000000e+00> : vector<5x32xf32>
    %9 = tpu.matmul %8, %7, %cst {dimension_numbers = #tpu.dot_dimension_numbers<[1], [0], [0], [1], [0, 0, 1, 1], [], []>} : vector<5x55xbf16>, vector<55x32xbf16>, vector<5x32xf32> -> vector<5x32xf32>
    %c0_5 = arith.constant 0 : index
    %c0_6 = arith.constant 0 : index
    %10 = vector.load %arg4[%c0_5, %c0_6] : memref<5x1xf32, #tpu.memory_space<vmem>>, vector<5x1xf32>
    %11 = vector.broadcast %10 : vector<5x1xf32> to vector<5x32xf32>
    %12 = arith.addf %9, %11 : vector<5x32xf32>
    %cst_7 = arith.constant 0.000000e+00 : f32
    %13 = vector.broadcast %cst_7 : f32 to vector<5x32xf32>
    %14 = arith.maximumf %12, %13 : vector<5x32xf32>
    %c0_8 = arith.constant 0 : index
    %c0_9 = arith.constant 0 : index
    %15 = vector.load %arg5[%c0_8, %c0_9] : memref<5x1xf32, #tpu.memory_space<vmem>>, vector<5x1xf32>
    %16 = vector.broadcast %15 : vector<5x1xf32> to vector<5x32xf32>
    %17 = arith.mulf %14, %16 : vector<5x32xf32>
    %c0_10 = arith.constant 0 : index
    %c0_11 = arith.constant 0 : index
    %18 = vector.load %arg6[%c0_10, %c0_11] : memref<5x1xf32, #tpu.memory_space<vmem>>, vector<5x1xf32>
    %19 = vector.broadcast %18 : vector<5x1xf32> to vector<5x32xf32>
    %20 = arith.addf %17, %19 : vector<5x32xf32>
    %21 = arith.truncf %20 : vector<5x32xf32> to vector<5x32xbf16>
    %c0_12 = arith.constant 0 : index
    %c0_13 = arith.constant 0 : index
    %c0_14 = arith.constant 0 : index
    %22 = vector.load %arg7[%c0_12, %c0_13, %c0_14] : memref<1x5x32xbf16, #tpu.memory_space<vmem>>, vector<1x5x32xbf16>
    %23 = vector.shape_cast %22 : vector<1x5x32xbf16> to vector<5x32xbf16>
    %24 = vector.shape_cast %21 : vector<5x32xbf16> to vector<1x5x32xbf16>
    tpu.vector_store %arg7[%c0_12, %c0_13, %c0_14], %24 {strides = array<i32>} : memref<1x5x32xbf16, #tpu.memory_space<vmem>>, vector<1x5x32xbf16>,
    return
  }
  func.func @transform_0(%arg0: i32, %arg1: i32) -> (i32, i32, i32, i32) {
    %c0_i32 = arith.constant 0 : i32
    %c0_i32_0 = arith.constant 0 : i32
    %c0_i32_1 = arith.constant 0 : i32
    return %arg0, %arg1, %c0_i32, %c0_i32_0 : i32, i32, i32, i32
  }
  func.func @transform_1(%arg0: i32, %arg1: i32) -> (i32, i32) {
    %c0_i32 = arith.constant 0 : i32
    %c0_i32_0 = arith.constant 0 : i32
    %c0_i32_1 = arith.constant 0 : i32
    return %c0_i32, %c0_i32_0 : i32, i32
  }
  func.func @transform_2(%arg0: i32, %arg1: i32) -> (i32, i32) {
    %c0_i32 = arith.constant 0 : i32
    %c0_i32_0 = arith.constant 0 : i32
    %c0_i32_1 = arith.constant 0 : i32
    return %c0_i32, %c0_i32_0 : i32, i32
  }
  func.func @transform_3(%arg0: i32, %arg1: i32) -> (i32, i32) {
    %c0_i32 = arith.constant 0 : i32
    %c0_i32_0 = arith.constant 0 : i32
    %c0_i32_1 = arith.constant 0 : i32
    return %c0_i32, %c0_i32_0 : i32, i32
  }
  func.func @transform_4(%arg0: i32, %arg1: i32) -> (i32, i32) {
    %c0_i32 = arith.constant 0 : i32
    %c0_i32_0 = arith.constant 0 : i32
    %c0_i32_1 = arith.constant 0 : i32
    return %c0_i32, %c0_i32_0 : i32, i32
  }
  func.func @transform_5(%arg0: i32, %arg1: i32) -> (i32, i32, i32) {
    %c0_i32 = arith.constant 0 : i32
    %c0_i32_0 = arith.constant 0 : i32
    return %arg0, %c0_i32, %arg1 : i32, i32, i32
  }
}

module attributes {stable_mosaic.version = 11 : i64} {
  func.func @_conv1d_kernel(%arg0: i32, %arg1: i32, %arg2: memref<1x1x16x36xbf16, #tpu.memory_space<vmem>>, %arg3: memref<5x80xbf16, #tpu.memory_space<vmem>>, %arg4: memref<5x1xf32, #tpu.memory_space<vmem>>, %arg5: memref<5x1xf32, #tpu.memory_space<vmem>>, %arg6: memref<5x1xf32, #tpu.memory_space<vmem>>, %arg7: memref<1x5x32xbf16, #tpu.memory_space<vmem>>) attributes {dimension_semantics = [#tpu.dimension_semantics<parallel>, #tpu.dimension_semantics<parallel>], iteration_bounds = array<i64: 2, 1>, scalar_prefetch = 0 : i64, scratch_operands = 0 : i64, tpu.core_type = #tpu.core_type<tc>, window_params = [{transform_indices = @transform_0, window_bounds = array<i64: 1, 1, 16, 36>}, {pipeline_mode = #tpu.pipeline_mode<synchronous>, transform_indices = @transform_1, window_bounds = array<i64: 5, 80>}, {pipeline_mode = #tpu.pipeline_mode<synchronous>, transform_indices = @transform_2, window_bounds = array<i64: 5, 1>}, {pipeline_mode = #tpu.pipeline_mode<synchronous>, transform_indices = @transform_3, window_bounds = array<i64: 5, 1>}, {pipeline_mode = #tpu.pipeline_mode<synchronous>, transform_indices = @transform_4, window_bounds = array<i64: 5, 1>}, {transform_indices = @transform_5, window_bounds = array<i64: 1, 5, 32>}]} {
    %c0 = arith.constant 0 : index
    %c0_0 = arith.constant 0 : index
    %c0_1 = arith.constant 0 : index
    %c0_2 = arith.constant 0 : index
    %0 = vector.load %arg2[%c0, %c0_0, %c0_1, %c0_2] : memref<1x1x16x36xbf16, #tpu.memory_space<vmem>>, vector<1x1x16x36xbf16>
    %1 = vector.shape_cast %0 : vector<1x1x16x36xbf16> to vector<16x36xbf16>
    %2 = vector.extract_strided_slice %1 {offsets = [0, 0], sizes = [16, 32], strides = [1, 1]} : vector<16x36xbf16> to vector<16x32xbf16>
    %3 = vector.extract_strided_slice %1 {offsets = [0, 1], sizes = [16, 32], strides = [1, 1]} : vector<16x36xbf16> to vector<16x32xbf16>
    %4 = vector.extract_strided_slice %1 {offsets = [0, 2], sizes = [16, 32], strides = [1, 1]} : vector<16x36xbf16> to vector<16x32xbf16>
    %5 = vector.extract_strided_slice %1 {offsets = [0, 3], sizes = [16, 32], strides = [1, 1]} : vector<16x36xbf16> to vector<16x32xbf16>
    %6 = vector.extract_strided_slice %1 {offsets = [0, 4], sizes = [16, 32], strides = [1, 1]} : vector<16x36xbf16> to vector<16x32xbf16>
    %7 = tpu.concatenate %2, %3, %4, %5, %6 in 0 : vector<16x32xbf16>, vector<16x32xbf16>, vector<16x32xbf16>, vector<16x32xbf16>, vector<16x32xbf16> -> vector<80x32xbf16>
    %c0_3 = arith.constant 0 : index
    %c0_4 = arith.constant 0 : index
    %8 = vector.load %arg3[%c0_3, %c0_4] : memref<5x80xbf16, #tpu.memory_space<vmem>>, vector<5x80xbf16>
    %cst = arith.constant dense<0.000000e+00> : vector<5x32xf32>
    %9 = tpu.matmul %8, %7, %cst {dimension_numbers = #tpu.dot_dimension_numbers<[1], [0], [0], [1], [0, 0, 1, 1], [], []>} : vector<5x80xbf16>, vector<80x32xbf16>, vector<5x32xf32> -> vector<5x32xf32>
    %c0_5 = arith.constant 0 : index
    %c0_6 = arith.constant 0 : index
    %10 = vector.load %arg4[%c0_5, %c0_6] : memref<5x1xf32, #tpu.memory_space<vmem>>, vector<5x1xf32>
    %11 = vector.broadcast %10 : vector<5x1xf32> to vector<5x32xf32>
    %12 = arith.addf %9, %11 : vector<5x32xf32>
    %cst_7 = arith.constant 0.000000e+00 : f32
    %13 = vector.broadcast %cst_7 : f32 to vector<5x32xf32>
    %14 = arith.maximumf %12, %13 : vector<5x32xf32>
    %c0_8 = arith.constant 0 : index
    %c0_9 = arith.constant 0 : index
    %15 = vector.load %arg5[%c0_8, %c0_9] : memref<5x1xf32, #tpu.memory_space<vmem>>, vector<5x1xf32>
    %16 = vector.broadcast %15 : vector<5x1xf32> to vector<5x32xf32>
    %17 = arith.mulf %14, %16 : vector<5x32xf32>
    %c0_10 = arith.constant 0 : index
    %c0_11 = arith.constant 0 : index
    %18 = vector.load %arg6[%c0_10, %c0_11] : memref<5x1xf32, #tpu.memory_space<vmem>>, vector<5x1xf32>
    %19 = vector.broadcast %18 : vector<5x1xf32> to vector<5x32xf32>
    %20 = arith.addf %17, %19 : vector<5x32xf32>
    %21 = arith.truncf %20 : vector<5x32xf32> to vector<5x32xbf16>
    %c0_12 = arith.constant 0 : index
    %c0_13 = arith.constant 0 : index
    %c0_14 = arith.constant 0 : index
    %22 = vector.load %arg7[%c0_12, %c0_13, %c0_14] : memref<1x5x32xbf16, #tpu.memory_space<vmem>>, vector<1x5x32xbf16>
    %23 = vector.shape_cast %22 : vector<1x5x32xbf16> to vector<5x32xbf16>
    %24 = vector.shape_cast %21 : vector<5x32xbf16> to vector<1x5x32xbf16>
    tpu.vector_store %arg7[%c0_12, %c0_13, %c0_14], %24 {strides = array<i32>} : memref<1x5x32xbf16, #tpu.memory_space<vmem>>, vector<1x5x32xbf16>,
    return
  }
  func.func @transform_0(%arg0: i32, %arg1: i32) -> (i32, i32, i32, i32) {
    %c0_i32 = arith.constant 0 : i32
    %c0_i32_0 = arith.constant 0 : i32
    %c0_i32_1 = arith.constant 0 : i32
    return %arg0, %arg1, %c0_i32, %c0_i32_0 : i32, i32, i32, i32
  }
  func.func @transform_1(%arg0: i32, %arg1: i32) -> (i32, i32) {
    %c0_i32 = arith.constant 0 : i32
    %c0_i32_0 = arith.constant 0 : i32
    %c0_i32_1 = arith.constant 0 : i32
    return %c0_i32, %c0_i32_0 : i32, i32
  }
  func.func @transform_2(%arg0: i32, %arg1: i32) -> (i32, i32) {
    %c0_i32 = arith.constant 0 : i32
    %c0_i32_0 = arith.constant 0 : i32
    %c0_i32_1 = arith.constant 0 : i32
    return %c0_i32, %c0_i32_0 : i32, i32
  }
  func.func @transform_3(%arg0: i32, %arg1: i32) -> (i32, i32) {
    %c0_i32 = arith.constant 0 : i32
    %c0_i32_0 = arith.constant 0 : i32
    %c0_i32_1 = arith.constant 0 : i32
    return %c0_i32, %c0_i32_0 : i32, i32
  }
  func.func @transform_4(%arg0: i32, %arg1: i32) -> (i32, i32) {
    %c0_i32 = arith.constant 0 : i32
    %c0_i32_0 = arith.constant 0 : i32
    %c0_i32_1 = arith.constant 0 : i32
    return %c0_i32, %c0_i32_0 : i32, i32
  }
  func.func @transform_5(%arg0: i32, %arg1: i32) -> (i32, i32, i32) {
    %c0_i32 = arith.constant 0 : i32
    %c0_i32_0 = arith.constant 0 : i32
    return %arg0, %c0_i32, %arg1 : i32, i32, i32
  }
}

module attributes {stable_mosaic.version = 11 : i64} {
  func.func @_conv1d_kernel(%arg0: i32, %arg1: i32, %arg2: memref<1x1x5x36xbf16, #tpu.memory_space<vmem>>, %arg3: memref<5x25xbf16, #tpu.memory_space<vmem>>, %arg4: memref<5x1xf32, #tpu.memory_space<vmem>>, %arg5: memref<5x1xf32, #tpu.memory_space<vmem>>, %arg6: memref<5x1xf32, #tpu.memory_space<vmem>>, %arg7: memref<1x5x32xbf16, #tpu.memory_space<vmem>>) attributes {dimension_semantics = [#tpu.dimension_semantics<parallel>, #tpu.dimension_semantics<parallel>], iteration_bounds = array<i64: 2, 1>, scalar_prefetch = 0 : i64, scratch_operands = 0 : i64, tpu.core_type = #tpu.core_type<tc>, window_params = [{transform_indices = @transform_0, window_bounds = array<i64: 1, 1, 5, 36>}, {pipeline_mode = #tpu.pipeline_mode<synchronous>, transform_indices = @transform_1, window_bounds = array<i64: 5, 25>}, {pipeline_mode = #tpu.pipeline_mode<synchronous>, transform_indices = @transform_2, window_bounds = array<i64: 5, 1>}, {pipeline_mode = #tpu.pipeline_mode<synchronous>, transform_indices = @transform_3, window_bounds = array<i64: 5, 1>}, {pipeline_mode = #tpu.pipeline_mode<synchronous>, transform_indices = @transform_4, window_bounds = array<i64: 5, 1>}, {transform_indices = @transform_5, window_bounds = array<i64: 1, 5, 32>}]} {
    %c0 = arith.constant 0 : index
    %c0_0 = arith.constant 0 : index
    %c0_1 = arith.constant 0 : index
    %c0_2 = arith.constant 0 : index
    %0 = vector.load %arg2[%c0, %c0_0, %c0_1, %c0_2] : memref<1x1x5x36xbf16, #tpu.memory_space<vmem>>, vector<1x1x5x36xbf16>
    %1 = vector.shape_cast %0 : vector<1x1x5x36xbf16> to vector<5x36xbf16>
    %2 = vector.extract_strided_slice %1 {offsets = [0, 0], sizes = [5, 32], strides = [1, 1]} : vector<5x36xbf16> to vector<5x32xbf16>
    %3 = vector.extract_strided_slice %1 {offsets = [0, 1], sizes = [5, 32], strides = [1, 1]} : vector<5x36xbf16> to vector<5x32xbf16>
    %4 = vector.extract_strided_slice %1 {offsets = [0, 2], sizes = [5, 32], strides = [1, 1]} : vector<5x36xbf16> to vector<5x32xbf16>
    %5 = vector.extract_strided_slice %1 {offsets = [0, 3], sizes = [5, 32], strides = [1, 1]} : vector<5x36xbf16> to vector<5x32xbf16>
    %6 = vector.extract_strided_slice %1 {offsets = [0, 4], sizes = [5, 32], strides = [1, 1]} : vector<5x36xbf16> to vector<5x32xbf16>
    %7 = tpu.concatenate %2, %3, %4, %5, %6 in 0 : vector<5x32xbf16>, vector<5x32xbf16>, vector<5x32xbf16>, vector<5x32xbf16>, vector<5x32xbf16> -> vector<25x32xbf16>
    %c0_3 = arith.constant 0 : index
    %c0_4 = arith.constant 0 : index
    %8 = vector.load %arg3[%c0_3, %c0_4] : memref<5x25xbf16, #tpu.memory_space<vmem>>, vector<5x25xbf16>
    %cst = arith.constant dense<0.000000e+00> : vector<5x32xf32>
    %9 = tpu.matmul %8, %7, %cst {dimension_numbers = #tpu.dot_dimension_numbers<[1], [0], [0], [1], [0, 0, 1, 1], [], []>} : vector<5x25xbf16>, vector<25x32xbf16>, vector<5x32xf32> -> vector<5x32xf32>
    %c0_5 = arith.constant 0 : index
    %c0_6 = arith.constant 0 : index
    %10 = vector.load %arg4[%c0_5, %c0_6] : memref<5x1xf32, #tpu.memory_space<vmem>>, vector<5x1xf32>
    %11 = vector.broadcast %10 : vector<5x1xf32> to vector<5x32xf32>
    %12 = arith.addf %9, %11 : vector<5x32xf32>
    %cst_7 = arith.constant 0.000000e+00 : f32
    %13 = vector.broadcast %cst_7 : f32 to vector<5x32xf32>
    %14 = arith.maximumf %12, %13 : vector<5x32xf32>
    %c0_8 = arith.constant 0 : index
    %c0_9 = arith.constant 0 : index
    %15 = vector.load %arg5[%c0_8, %c0_9] : memref<5x1xf32, #tpu.memory_space<vmem>>, vector<5x1xf32>
    %16 = vector.broadcast %15 : vector<5x1xf32> to vector<5x32xf32>
    %17 = arith.mulf %14, %16 : vector<5x32xf32>
    %c0_10 = arith.constant 0 : index
    %c0_11 = arith.constant 0 : index
    %18 = vector.load %arg6[%c0_10, %c0_11] : memref<5x1xf32, #tpu.memory_space<vmem>>, vector<5x1xf32>
    %19 = vector.broadcast %18 : vector<5x1xf32> to vector<5x32xf32>
    %20 = arith.addf %17, %19 : vector<5x32xf32>
    %21 = arith.truncf %20 : vector<5x32xf32> to vector<5x32xbf16>
    %c0_12 = arith.constant 0 : index
    %c0_13 = arith.constant 0 : index
    %c0_14 = arith.constant 0 : index
    %22 = vector.load %arg7[%c0_12, %c0_13, %c0_14] : memref<1x5x32xbf16, #tpu.memory_space<vmem>>, vector<1x5x32xbf16>
    %23 = vector.shape_cast %22 : vector<1x5x32xbf16> to vector<5x32xbf16>
    %24 = vector.shape_cast %21 : vector<5x32xbf16> to vector<1x5x32xbf16>
    tpu.vector_store %arg7[%c0_12, %c0_13, %c0_14], %24 {strides = array<i32>} : memref<1x5x32xbf16, #tpu.memory_space<vmem>>, vector<1x5x32xbf16>,
    return
  }
  func.func @transform_0(%arg0: i32, %arg1: i32) -> (i32, i32, i32, i32) {
    %c0_i32 = arith.constant 0 : i32
    %c0_i32_0 = arith.constant 0 : i32
    %c0_i32_1 = arith.constant 0 : i32
    return %arg0, %arg1, %c0_i32, %c0_i32_0 : i32, i32, i32, i32
  }
  func.func @transform_1(%arg0: i32, %arg1: i32) -> (i32, i32) {
    %c0_i32 = arith.constant 0 : i32
    %c0_i32_0 = arith.constant 0 : i32
    %c0_i32_1 = arith.constant 0 : i32
    return %c0_i32, %c0_i32_0 : i32, i32
  }
  func.func @transform_2(%arg0: i32, %arg1: i32) -> (i32, i32) {
    %c0_i32 = arith.constant 0 : i32
    %c0_i32_0 = arith.constant 0 : i32
    %c0_i32_1 = arith.constant 0 : i32
    return %c0_i32, %c0_i32_0 : i32, i32
  }
  func.func @transform_3(%arg0: i32, %arg1: i32) -> (i32, i32) {
    %c0_i32 = arith.constant 0 : i32
    %c0_i32_0 = arith.constant 0 : i32
    %c0_i32_1 = arith.constant 0 : i32
    return %c0_i32, %c0_i32_0 : i32, i32
  }
  func.func @transform_4(%arg0: i32, %arg1: i32) -> (i32, i32) {
    %c0_i32 = arith.constant 0 : i32
    %c0_i32_0 = arith.constant 0 : i32
    %c0_i32_1 = arith.constant 0 : i32
    return %c0_i32, %c0_i32_0 : i32, i32
  }
  func.func @transform_5(%arg0: i32, %arg1: i32) -> (i32, i32, i32) {
    %c0_i32 = arith.constant 0 : i32
    %c0_i32_0 = arith.constant 0 : i32
    return %arg0, %c0_i32, %arg1 : i32, i32, i32
  }
}

module attributes {stable_mosaic.version = 11 : i64} {
  func.func @_conv1d_kernel(%arg0: i32, %arg1: i32, %arg2: memref<1x1x5x32xbf16, #tpu.memory_space<vmem>>, %arg3: memref<3x5xbf16, #tpu.memory_space<vmem>>, %arg4: memref<3x1xf32, #tpu.memory_space<vmem>>, %arg5: memref<3x1xf32, #tpu.memory_space<vmem>>, %arg6: memref<3x1xf32, #tpu.memory_space<vmem>>, %arg7: memref<1x3x32xbf16, #tpu.memory_space<vmem>>) attributes {dimension_semantics = [#tpu.dimension_semantics<parallel>, #tpu.dimension_semantics<parallel>], iteration_bounds = array<i64: 2, 1>, scalar_prefetch = 0 : i64, scratch_operands = 0 : i64, tpu.core_type = #tpu.core_type<tc>, window_params = [{transform_indices = @transform_0, window_bounds = array<i64: 1, 1, 5, 32>}, {pipeline_mode = #tpu.pipeline_mode<synchronous>, transform_indices = @transform_1, window_bounds = array<i64: 3, 5>}, {pipeline_mode = #tpu.pipeline_mode<synchronous>, transform_indices = @transform_2, window_bounds = array<i64: 3, 1>}, {pipeline_mode = #tpu.pipeline_mode<synchronous>, transform_indices = @transform_3, window_bounds = array<i64: 3, 1>}, {pipeline_mode = #tpu.pipeline_mode<synchronous>, transform_indices = @transform_4, window_bounds = array<i64: 3, 1>}, {transform_indices = @transform_5, window_bounds = array<i64: 1, 3, 32>}]} {
    %c0 = arith.constant 0 : index
    %c0_0 = arith.constant 0 : index
    %c0_1 = arith.constant 0 : index
    %c0_2 = arith.constant 0 : index
    %0 = vector.load %arg2[%c0, %c0_0, %c0_1, %c0_2] : memref<1x1x5x32xbf16, #tpu.memory_space<vmem>>, vector<1x1x5x32xbf16>
    %1 = vector.shape_cast %0 : vector<1x1x5x32xbf16> to vector<5x32xbf16>
    %c0_3 = arith.constant 0 : index
    %c0_4 = arith.constant 0 : index
    %2 = vector.load %arg3[%c0_3, %c0_4] : memref<3x5xbf16, #tpu.memory_space<vmem>>, vector<3x5xbf16>
    %cst = arith.constant dense<0.000000e+00> : vector<3x32xf32>
    %3 = tpu.matmul %2, %1, %cst {dimension_numbers = #tpu.dot_dimension_numbers<[1], [0], [0], [1], [0, 0, 1, 1], [], []>} : vector<3x5xbf16>, vector<5x32xbf16>, vector<3x32xf32> -> vector<3x32xf32>
    %c0_5 = arith.constant 0 : index
    %c0_6 = arith.constant 0 : index
    %4 = vector.load %arg4[%c0_5, %c0_6] : memref<3x1xf32, #tpu.memory_space<vmem>>, vector<3x1xf32>
    %5 = vector.broadcast %4 : vector<3x1xf32> to vector<3x32xf32>
    %6 = arith.addf %3, %5 : vector<3x32xf32>
    %c0_7 = arith.constant 0 : index
    %c0_8 = arith.constant 0 : index
    %7 = vector.load %arg5[%c0_7, %c0_8] : memref<3x1xf32, #tpu.memory_space<vmem>>, vector<3x1xf32>
    %8 = vector.broadcast %7 : vector<3x1xf32> to vector<3x32xf32>
    %9 = arith.mulf %6, %8 : vector<3x32xf32>
    %c0_9 = arith.constant 0 : index
    %c0_10 = arith.constant 0 : index
    %10 = vector.load %arg6[%c0_9, %c0_10] : memref<3x1xf32, #tpu.memory_space<vmem>>, vector<3x1xf32>
    %11 = vector.broadcast %10 : vector<3x1xf32> to vector<3x32xf32>
    %12 = arith.addf %9, %11 : vector<3x32xf32>
    %13 = arith.truncf %12 : vector<3x32xf32> to vector<3x32xbf16>
    %c0_11 = arith.constant 0 : index
    %c0_12 = arith.constant 0 : index
    %c0_13 = arith.constant 0 : index
    %14 = vector.load %arg7[%c0_11, %c0_12, %c0_13] : memref<1x3x32xbf16, #tpu.memory_space<vmem>>, vector<1x3x32xbf16>
    %15 = vector.shape_cast %14 : vector<1x3x32xbf16> to vector<3x32xbf16>
    %16 = vector.shape_cast %13 : vector<3x32xbf16> to vector<1x3x32xbf16>
    tpu.vector_store %arg7[%c0_11, %c0_12, %c0_13], %16 {strides = array<i32>} : memref<1x3x32xbf16, #tpu.memory_space<vmem>>, vector<1x3x32xbf16>,
    return
  }
  func.func @transform_0(%arg0: i32, %arg1: i32) -> (i32, i32, i32, i32) {
    %c0_i32 = arith.constant 0 : i32
    %c0_i32_0 = arith.constant 0 : i32
    %c0_i32_1 = arith.constant 0 : i32
    return %arg0, %arg1, %c0_i32, %c0_i32_0 : i32, i32, i32, i32
  }
  func.func @transform_1(%arg0: i32, %arg1: i32) -> (i32, i32) {
    %c0_i32 = arith.constant 0 : i32
    %c0_i32_0 = arith.constant 0 : i32
    %c0_i32_1 = arith.constant 0 : i32
    return %c0_i32, %c0_i32_0 : i32, i32
  }
  func.func @transform_2(%arg0: i32, %arg1: i32) -> (i32, i32) {
    %c0_i32 = arith.constant 0 : i32
    %c0_i32_0 = arith.constant 0 : i32
    %c0_i32_1 = arith.constant 0 : i32
    return %c0_i32, %c0_i32_0 : i32, i32
  }
  func.func @transform_3(%arg0: i32, %arg1: i32) -> (i32, i32) {
    %c0_i32 = arith.constant 0 : i32
    %c0_i32_0 = arith.constant 0 : i32
    %c0_i32_1 = arith.constant 0 : i32
    return %c0_i32, %c0_i32_0 : i32, i32
  }
  func.func @transform_4(%arg0: i32, %arg1: i32) -> (i32, i32) {
    %c0_i32 = arith.constant 0 : i32
    %c0_i32_0 = arith.constant 0 : i32
    %c0_i32_1 = arith.constant 0 : i32
    return %c0_i32, %c0_i32_0 : i32, i32
  }
  func.func @transform_5(%arg0: i32, %arg1: i32) -> (i32, i32, i32) {
    %c0_i32 = arith.constant 0 : i32
    %c0_i32_0 = arith.constant 0 : i32
    return %arg0, %c0_i32, %arg1 : i32, i32, i32
  }
}

module attributes {stable_mosaic.version = 11 : i64} {
  func.func @_pool_kernel(%arg0: i32, %arg1: memref<2x1x3x16xbf16, #tpu.memory_space<vmem>>, %arg2: memref<1x3x16xbf16, #tpu.memory_space<vmem>>) attributes {dimension_semantics = [#tpu.dimension_semantics<parallel>], iteration_bounds = array<i64: 2>, scalar_prefetch = 0 : i64, scratch_operands = 0 : i64, tpu.core_type = #tpu.core_type<tc>, window_params = [{transform_indices = @transform_0, window_bounds = array<i64: 2, 1, 3, 16>}, {transform_indices = @transform_1, window_bounds = array<i64: 1, 3, 16>}]} {
    %c0 = arith.constant 0 : index
    %c0_0 = arith.constant 0 : index
    %c0_1 = arith.constant 0 : index
    %c0_2 = arith.constant 0 : index
    %0 = vector.load %arg1[%c0, %c0_0, %c0_1, %c0_2] : memref<2x1x3x16xbf16, #tpu.memory_space<vmem>>, vector<1x1x3x16xbf16>
    %1 = vector.shape_cast %0 : vector<1x1x3x16xbf16> to vector<3x16xbf16>
    %2 = arith.extf %1 : vector<3x16xbf16> to vector<3x16xf32>
    %c1 = arith.constant 1 : index
    %c0_3 = arith.constant 0 : index
    %c0_4 = arith.constant 0 : index
    %c0_5 = arith.constant 0 : index
    %3 = vector.load %arg1[%c1, %c0_3, %c0_4, %c0_5] : memref<2x1x3x16xbf16, #tpu.memory_space<vmem>>, vector<1x1x3x16xbf16>
    %4 = vector.shape_cast %3 : vector<1x1x3x16xbf16> to vector<3x16xbf16>
    %5 = arith.extf %4 : vector<3x16xbf16> to vector<3x16xf32>
    %6 = arith.addf %2, %5 : vector<3x16xf32>
    %cst = arith.constant 5.000000e-01 : f32
    %7 = vector.broadcast %cst : f32 to vector<3x16xf32>
    %8 = arith.mulf %6, %7 : vector<3x16xf32>
    %9 = arith.truncf %8 : vector<3x16xf32> to vector<3x16xbf16>
    %c0_6 = arith.constant 0 : index
    %c0_7 = arith.constant 0 : index
    %c0_8 = arith.constant 0 : index
    %10 = vector.load %arg2[%c0_6, %c0_7, %c0_8] : memref<1x3x16xbf16, #tpu.memory_space<vmem>>, vector<1x3x16xbf16>
    %11 = vector.shape_cast %10 : vector<1x3x16xbf16> to vector<3x16xbf16>
    %12 = vector.shape_cast %9 : vector<3x16xbf16> to vector<1x3x16xbf16>
    tpu.vector_store %arg2[%c0_6, %c0_7, %c0_8], %12 {strides = array<i32>} : memref<1x3x16xbf16, #tpu.memory_space<vmem>>, vector<1x3x16xbf16>,
    return
  }
  func.func @transform_0(%arg0: i32) -> (i32, i32, i32, i32) {
    %c0_i32 = arith.constant 0 : i32
    %c0_i32_0 = arith.constant 0 : i32
    %c0_i32_1 = arith.constant 0 : i32
    %c0_i32_2 = arith.constant 0 : i32
    return %c0_i32, %arg0, %c0_i32_0, %c0_i32_1 : i32, i32, i32, i32
  }
  func.func @transform_1(%arg0: i32) -> (i32, i32, i32) {
    %c0_i32 = arith.constant 0 : i32
    %c0_i32_0 = arith.constant 0 : i32
    %c0_i32_1 = arith.constant 0 : i32
    return %arg0, %c0_i32, %c0_i32_0 : i32, i32, i32
  }
}

module attributes {stable_mosaic.version = 11 : i64} {
  func.func @_conv1d_kernel(%arg0: i32, %arg1: i32, %arg2: memref<1x1x3x18xbf16, #tpu.memory_space<vmem>>, %arg3: memref<3x9xbf16, #tpu.memory_space<vmem>>, %arg4: memref<3x1xf32, #tpu.memory_space<vmem>>, %arg5: memref<3x1xf32, #tpu.memory_space<vmem>>, %arg6: memref<3x1xf32, #tpu.memory_space<vmem>>, %arg7: memref<1x3x16xbf16, #tpu.memory_space<vmem>>) attributes {dimension_semantics = [#tpu.dimension_semantics<parallel>, #tpu.dimension_semantics<parallel>], iteration_bounds = array<i64: 2, 1>, scalar_prefetch = 0 : i64, scratch_operands = 0 : i64, tpu.core_type = #tpu.core_type<tc>, window_params = [{transform_indices = @transform_0, window_bounds = array<i64: 1, 1, 3, 18>}, {pipeline_mode = #tpu.pipeline_mode<synchronous>, transform_indices = @transform_1, window_bounds = array<i64: 3, 9>}, {pipeline_mode = #tpu.pipeline_mode<synchronous>, transform_indices = @transform_2, window_bounds = array<i64: 3, 1>}, {pipeline_mode = #tpu.pipeline_mode<synchronous>, transform_indices = @transform_3, window_bounds = array<i64: 3, 1>}, {pipeline_mode = #tpu.pipeline_mode<synchronous>, transform_indices = @transform_4, window_bounds = array<i64: 3, 1>}, {transform_indices = @transform_5, window_bounds = array<i64: 1, 3, 16>}]} {
    %c0 = arith.constant 0 : index
    %c0_0 = arith.constant 0 : index
    %c0_1 = arith.constant 0 : index
    %c0_2 = arith.constant 0 : index
    %0 = vector.load %arg2[%c0, %c0_0, %c0_1, %c0_2] : memref<1x1x3x18xbf16, #tpu.memory_space<vmem>>, vector<1x1x3x18xbf16>
    %1 = vector.shape_cast %0 : vector<1x1x3x18xbf16> to vector<3x18xbf16>
    %2 = vector.extract_strided_slice %1 {offsets = [0, 0], sizes = [3, 16], strides = [1, 1]} : vector<3x18xbf16> to vector<3x16xbf16>
    %3 = vector.extract_strided_slice %1 {offsets = [0, 1], sizes = [3, 16], strides = [1, 1]} : vector<3x18xbf16> to vector<3x16xbf16>
    %4 = vector.extract_strided_slice %1 {offsets = [0, 2], sizes = [3, 16], strides = [1, 1]} : vector<3x18xbf16> to vector<3x16xbf16>
    %5 = tpu.concatenate %2, %3, %4 in 0 : vector<3x16xbf16>, vector<3x16xbf16>, vector<3x16xbf16> -> vector<9x16xbf16>
    %c0_3 = arith.constant 0 : index
    %c0_4 = arith.constant 0 : index
    %6 = vector.load %arg3[%c0_3, %c0_4] : memref<3x9xbf16, #tpu.memory_space<vmem>>, vector<3x9xbf16>
    %cst = arith.constant dense<0.000000e+00> : vector<3x16xf32>
    %7 = tpu.matmul %6, %5, %cst {dimension_numbers = #tpu.dot_dimension_numbers<[1], [0], [0], [1], [0, 0, 1, 1], [], []>} : vector<3x9xbf16>, vector<9x16xbf16>, vector<3x16xf32> -> vector<3x16xf32>
    %c0_5 = arith.constant 0 : index
    %c0_6 = arith.constant 0 : index
    %8 = vector.load %arg4[%c0_5, %c0_6] : memref<3x1xf32, #tpu.memory_space<vmem>>, vector<3x1xf32>
    %9 = vector.broadcast %8 : vector<3x1xf32> to vector<3x16xf32>
    %10 = arith.addf %7, %9 : vector<3x16xf32>
    %c0_7 = arith.constant 0 : index
    %c0_8 = arith.constant 0 : index
    %11 = vector.load %arg5[%c0_7, %c0_8] : memref<3x1xf32, #tpu.memory_space<vmem>>, vector<3x1xf32>
    %12 = vector.broadcast %11 : vector<3x1xf32> to vector<3x16xf32>
    %13 = arith.mulf %10, %12 : vector<3x16xf32>
    %c0_9 = arith.constant 0 : index
    %c0_10 = arith.constant 0 : index
    %14 = vector.load %arg6[%c0_9, %c0_10] : memref<3x1xf32, #tpu.memory_space<vmem>>, vector<3x1xf32>
    %15 = vector.broadcast %14 : vector<3x1xf32> to vector<3x16xf32>
    %16 = arith.addf %13, %15 : vector<3x16xf32>
    %17 = arith.truncf %16 : vector<3x16xf32> to vector<3x16xbf16>
    %c0_11 = arith.constant 0 : index
    %c0_12 = arith.constant 0 : index
    %c0_13 = arith.constant 0 : index
    %18 = vector.load %arg7[%c0_11, %c0_12, %c0_13] : memref<1x3x16xbf16, #tpu.memory_space<vmem>>, vector<1x3x16xbf16>
    %19 = vector.shape_cast %18 : vector<1x3x16xbf16> to vector<3x16xbf16>
    %20 = vector.shape_cast %17 : vector<3x16xbf16> to vector<1x3x16xbf16>
    tpu.vector_store %arg7[%c0_11, %c0_12, %c0_13], %20 {strides = array<i32>} : memref<1x3x16xbf16, #tpu.memory_space<vmem>>, vector<1x3x16xbf16>,
    return
  }
  func.func @transform_0(%arg0: i32, %arg1: i32) -> (i32, i32, i32, i32) {
    %c0_i32 = arith.constant 0 : i32
    %c0_i32_0 = arith.constant 0 : i32
    %c0_i32_1 = arith.constant 0 : i32
    return %arg0, %arg1, %c0_i32, %c0_i32_0 : i32, i32, i32, i32
  }
  func.func @transform_1(%arg0: i32, %arg1: i32) -> (i32, i32) {
    %c0_i32 = arith.constant 0 : i32
    %c0_i32_0 = arith.constant 0 : i32
    %c0_i32_1 = arith.constant 0 : i32
    return %c0_i32, %c0_i32_0 : i32, i32
  }
  func.func @transform_2(%arg0: i32, %arg1: i32) -> (i32, i32) {
    %c0_i32 = arith.constant 0 : i32
    %c0_i32_0 = arith.constant 0 : i32
    %c0_i32_1 = arith.constant 0 : i32
    return %c0_i32, %c0_i32_0 : i32, i32
  }
  func.func @transform_3(%arg0: i32, %arg1: i32) -> (i32, i32) {
    %c0_i32 = arith.constant 0 : i32
    %c0_i32_0 = arith.constant 0 : i32
    %c0_i32_1 = arith.constant 0 : i32
    return %c0_i32, %c0_i32_0 : i32, i32
  }
  func.func @transform_4(%arg0: i32, %arg1: i32) -> (i32, i32) {
    %c0_i32 = arith.constant 0 : i32
    %c0_i32_0 = arith.constant 0 : i32
    %c0_i32_1 = arith.constant 0 : i32
    return %c0_i32, %c0_i32_0 : i32, i32
  }
  func.func @transform_5(%arg0: i32, %arg1: i32) -> (i32, i32, i32) {
    %c0_i32 = arith.constant 0 : i32
    %c0_i32_0 = arith.constant 0 : i32
    return %arg0, %c0_i32, %arg1 : i32, i32, i32
  }
}

</mosaic_0001>

<bundles_post_ra>
// kernel: utime_forward.26
= control target key start
LH: loop header
LB: loop body
LE: loop exit
PB: predicated region body
PF: predicated region fallthrough
CT: control target
= control target key end

     0   :  { %s322_s6 = smov 0   ;;  %s324_s7 = smov 0   ;;  %s376_s0 = inlined_call_operand.vmem [shape: bf16[2,2,11,16], index: 0, kind: input, shape index: {}]   ;;  %s377_s1 = inlined_call_operand.vmem [shape: bf16[2,11,16], index: 1, kind: output, shape index: {}]  }
   0x1   :  { %s326_s8 = smov 0  }
   0x2 LB: > { %s247_s9 = sadd.s32 4294967295, %s310_s8   ;;  %s339_s10 = sadd.s32 1, %s310_s8   ;;  %s310_s8 = sphi %s326_s8, %s380_s8   ;;  %s306_s7 = sphi %s324_s7, %s379_s7   ;;  %s302_s6 = sphi %s322_s6, %s378_s6  }
   0x3   : > { %s15_s11 = ssub.s32 %s310_s8, %s339_s10  ;;  %s18_s12 = sadd.s32 1, %s306_s7 }
   0x4   : > { %p16_p0 = scmp.eq.s32.totalorder %s15_s11, 0  ;;  %p25_p1 = scmp.ne.s32.totalorder %s306_s7, %s302_s6 }
   0x5   : > { %p26_p2 = scmp.eq.s32.totalorder %s310_s8, 0  ;;  %p250_p4 = scmp.ge.s32.totalorder %s310_s8, 2 }
   0x6   : > { %s348_s13 = scalar_select %p16_p0, %s306_s7, %s18_s12  }
   0x7   : > { %p27_p3 = por %p26_p2, %p25_p1  ;;  %77 = sbr.rel (%p250_p4) target bundleno = 21 (0x15), region = 16 }
   0xe   : > { %80 = sbr.rel (!%p27_p3) target bundleno = 21 (0x15), region = 20  ;;  %s82_s14 = sand.u32 (%p27_p3), 1, %s306_s7  }
   0xf   : > { %s262_s15 = sshll.u32 (%p27_p3), %s310_s8, 3  ;;  %s251_s16 = sshll.u32 (%p27_p3), %s82_s14, 4 }
  0x10   : > { %s87_s19 = scalar_lea.vmem (%p27_p3), %s376_s0, %s262_s15  ;;  %s84_s20 = scalar_lea.vmem (%p27_p3), [#allocation2], %s251_s16 }
  0x11   : > { %v103_v0 = vld [vmem:[%s87_s19] sm:$0xff] (%p27_p3)   ;;  %v107_v1 = vld [vmem:[%s87_s19 + $0x10] sm:$0xff] (%p27_p3)  }
  0x12   : > { %104 = vst [vmem:[%s84_s20] sm:$0xff] (%p27_p3), %v103_v0   ;;  %108 = vst [vmem:[%s84_s20 + $0x8] sm:$0xff] (%p27_p3), %v107_v1  }
  0x15 PF: > { %p254_p5 = scmp.ge.s32.totalorder %s310_s8, 1  ;;  %p140_p6 = scmp.lt.s32.totalorder %s310_s8, 3 }
  0x17   : > { %p141_p7 = pnand %p254_p5, %p140_p6 }
  0x18   : > { %s147_s21 = sand.u32 (!%p141_p7), 1, %s302_s6   ;;  %p166_p8 = scmp.lt.s32.totalorder (!%p141_p7), %s247_s9, 1  ;;  %vm180_vm0 = vcmask (!%p141_p7), 123904   ;;  %vm181_vm1 = vsmask.f32 (!%p141_p7), 1280  ;;  %vm178_vm2 = vcmask (!%p141_p7), 125952  }
  0x19   : > { %144 = sbr.rel (%p141_p7) target bundleno = 38 (0x26), region = 61  ;;  %s255_s22 = sshll.u32 (!%p141_p7), %s147_s21, 4  ;;  %vm182_vm3 = vmand (!%p141_p7), %vm180_vm0, %vm181_vm1 }
  0x1a   : > { %s149_s23 = scalar_lea.vmem (!%p141_p7), [#allocation2], %s255_s22 }
  0x1b   : > { %v171_v2 = vld [vmem:[%s149_s23] sm:$0xf] (!%p141_p7)  ;;  %v258_v3 = vld [vmem:[%s149_s23 + $0x8] sm:$0xf] (!%p141_p7)  ;;  %v172_v5 = vld [vmem:[%s149_s23 + $0x4] sm:$0x3] (!%p141_p7) }
  0x1c   : > { %v176_v4 = vmax.bf16 (!%p141_p7), %v258_v3, %v171_v2  ;;  %v259_v6 = vld [vmem:[%s149_s23 + $0xc] sm:$0x3] (!%p141_p7) }
  0x1d   : > { %v177_v7 = vmax.bf16 (!%p141_p7), %v259_v6, %v172_v5 }
  0x20   : > { %s382_s9 = smov (!%p166_p8, %s247_s9), 1 }
  0x21   : > { %s263_s24 = sshll.u32 %s382_s9, 3 }
  0x22   : > { %s170_s27 = scalar_lea.vmem %s377_s1, %s263_s24 }
  0x23   : > { %179 = vst.msk [vmem:[%s170_s27] sm:$0xf] %vm178_vm2, %v176_v4  ;;  %v183_v8 = vld [vmem:[%s170_s27 + $0x4] sm:$0x3] }
  0x24   : > { %v184_v9 = vsel %vm182_vm3, %v177_v7, %v183_v8 }
  0x25   : > { %185 = vst [vmem:[%s170_s27 + $0x4] sm:$0x3] %v184_v9 }
  0x26 PF: > { %p8_p9 = scmp.ge.s32.totalorder %s339_s10, 4   ;;  %s378_s6 = smov %s306_s7 }
  0x27   : > { %s379_s7 = smov %s348_s13  ;;  %s380_s8 = smov %s339_s10 }
  0x28   :  { %10 = sbr.rel (!%p8_p9) target bundleno = 2 (0x2), region = 101 }

// kernel: utime_forward.25
= control target key start
LH: loop header
LB: loop body
LE: loop exit
PB: predicated region body
PF: predicated region fallthrough
CT: control target
= control target key end

     0   :  { %s645_s18 = smov 0   ;;  %s647_s19 = smov 0   ;;  %s713_s0 = inlined_call_operand.vmem [shape: bf16[2,1,11,40], index: 0, kind: input, shape index: {}]   ;;  %s714_s1 = inlined_call_operand.vmem [shape: bf16[11,55], index: 1, kind: input, shape index: {}]   ;;  %s715_s2 = inlined_call_operand.vmem [shape: f32[11,1], index: 2, kind: input, shape index: {}]   ;;  %s716_s3 = inlined_call_operand.vmem [shape: f32[11,1], index: 3, kind: input, shape index: {}]   ;;  %s717_s4 = inlined_call_operand.vmem [shape: f32[11,1], index: 4, kind: input, shape index: {}]   ;;  %s718_s5 = inlined_call_operand.vmem [shape: bf16[2,11,32], index: 5, kind: output, shape index: {}]  }
   0x1   :  { %s649_s20 = smov 0  }
   0x2 LB: > { %s27_s21 = sadd.s32 1, %s601_s19  ;;  %p514_p0 = scmp.ge.s32.totalorder %s605_s20, 1  ;;  %s605_s20 = sphi %s649_s20, %s15_s20   ;;  %s601_s19 = sphi %s647_s19, %s720_s19   ;;  %s597_s18 = sphi %s645_s18, %s719_s18  }
   0x3   : > { %p29_p1 = scmp.ge.s32.totalorder %s27_s21, 2  ;;  %p207_p2 = scmp.lt.s32.totalorder %s605_s20, 3 }
   0x5   : > { %s722_s21 = smov (%p29_p1, %s27_s21), 0  ;;  %p208_p3 = pnand %p514_p0, %p207_p2 }
   0x6   : > { %p242_p4 = scmp.lt.s32.totalorder (!%p208_p3), %s597_s18, 1  ;;  %v607_v0 = vmov (!%p208_p3), 0.0   ;;  %s608_s26 = smov (!%p208_p3), 126   ;;  %vm610_vm0 = vmmov (!%p208_p3), 0   ;;  %v613_v11 = vmov (!%p208_p3), 0   ;;  %v311_v12 = vld [vmem:[%s715_s2] sm:$0xff] (!%p208_p3) }
   0x7   : > { %211 = sbr.rel (%p208_p3) target bundleno = 381 (0x17d), region = 40  ;;  %535 = vmatprep.subr.bf16.mxu0 (!%p208_p3), %v607_v0  ;;  %s609_s27 = smov (!%p208_p3), 122   ;;  %543 = vmatprep.mubr.msk.bf16.mxu0 (!%p208_p3), %vm610_vm0, %v607_v0  ;;  %v312_v13 = vld [vmem:[%s715_s2 + $0x8] sm:$0x7] (!%p208_p3)  ;;  %v380_v15 = vld [vmem:[%s716_s3] sm:$0xff] (!%p208_p3)  ;;  %vm291_vm1 = vcmask (!%p208_p3), 1045504  }
   0x8   : > { %s611_s28 = smov (!%p208_p3), 124   ;;  %s612_s29 = smov (!%p208_p3), 120   ;;  %580 = vset.pattern.permute.xlu1 (!%p208_p3), %v613_v11  ;;  %579 = vset.pattern.permute.xlu0 (!%p208_p3), %v613_v11  ;;  %v381_v14 = vld [vmem:[%s716_s3 + $0x8] sm:$0x7] (!%p208_p3)  ;;  %v394_v17 = vld [vmem:[%s717_s4] sm:$0xff] (!%p208_p3)  ;;  %vm300_vm4 = vcmask (!%p208_p3), 1040384  }
   0x9   : > { %v395_v16 = vld [vmem:[%s717_s4 + $0x8] sm:$0x7] (!%p208_p3)  ;;  %vm292_vm2 = vsmask.f32 (!%p208_p3), 5376  ;;  %vm301_vm5 = vsmask.f32 (!%p208_p3), 256 }
   0xa   : > { %vm293_vm3 = vmand (!%p208_p3), %vm291_vm1, %vm292_vm2  ;;  %vm295_vm6 = vcmask (!%p208_p3), 1042432   ;;  %vm332_vm8 = vcmask (!%p208_p3), 1043456   ;;  %v614_v24 = vmov (!%p208_p3), 65535   ;;  %v582_v30 = vld [vmem:[%s714_s1] sm:$0x3f] (!%p208_p3)   ;;  %vm328_vm9 = vcmask (!%p208_p3), 449536  }
   0xb   : > { %vm302_vm7 = vmand (!%p208_p3), %vm300_vm4, %vm301_vm5  ;;  %v333_v25 = vsel (!%p208_p3), %vm295_vm6, 4294967295, %v614_v24  ;;  %vm418_vm10 = vcmask (!%p208_p3), 254976   ;;  %vm419_vm11 = vsmask.f32 (!%p208_p3), 1280  ;;  %vm416_vm12 = vcmask (!%p208_p3), 257024  }
   0xc   : > { %v334_v27 = vsel (!%p208_p3), %vm332_vm8, %v333_v25, 0  ;;  %vm420_vm13 = vmand (!%p208_p3), %vm418_vm10, %vm419_vm11 }
   0xe   : > { %s724_s18 = smov (!%p242_p4, %s597_s18), 1 }
   0xf   : > { %s526_s22 = sshll.u32 %s724_s18, 3 }
  0x10   : > { %s250_s25 = scalar_lea.vmem %s713_s0, %s526_s22 }
  0x11   : > { %v581_v1 = vld [vmem:[%s250_s25] sm:$0x3f]  }
  0x12   : > { %v269_v2 = vshrl.u32 %v581_v1, 16  ;;  %v272_v3 = vshll.u32 %v581_v1, 16  ;;  %v279_v9 = vrot.slane %v581_v1, 5  ;;  %v288_v10 = vrot.slane %v581_v1, 2 }
  0x14   : > { %v271_v4 = vrot.slane %v269_v2, 2  ;;  %v274_v5 = vrot.slane %v272_v3, 3  ;;  %v283_v6 = vrot.slane %v269_v2, 7 }
  0x16   : > { %v275_v7 = vor.u32 %v274_v5, %v271_v4  ;;  %v284_v8 = vor.u32 %v283_v6, %v272_v3 }
  0x18   : > { %276 = vrot.lane.b32.xlu0 %v275_v7, %s608_s26  ;;  %285 = vrot.lane.b32.xlu1 %v284_v8, %s609_s27  ;;  %s258_s26 = scalar_lea.vmem %s718_s5, %s526_s22 }
  0x19   : > { %v421_v50 = vld [vmem:[%s258_s26 + $0x4] sm:$0x3] }
  0x1c   : > { %280 = vrot.lane.b32.xlu0 %v279_v9, %s611_s28  ;;  %289 = vrot.lane.b32.xlu1 %v288_v10, %s612_s29 }
  0x20   : > { %315 = vperm.xlu1 %580, %v311_v12   ;;  %320 = vperm.xlu0 %579, %v312_v13  }
  0x24   : > { %389 = vperm.xlu1 %580, %v381_v14   ;;  %384 = vperm.xlu0 %579, %v380_v15  }
  0x28   : > { %403 = vperm.xlu1 %580, %v395_v16   ;;  %398 = vperm.xlu0 %579, %v394_v17  }
  0x8a   : > { %v277_v18 = vpop.permute.xlu0 %276  ;;  %v286_v19 = vpop.permute.xlu1 %285 }
  0x8b   : > { %v294_v20 = vsel %vm293_vm3, %v581_v1, %v277_v18 }
  0x8c   : > { %536 = vmatpush3.bf16.msra.mxu0 %v294_v20 }
  0x8d   : > { %537 = vmatprep.subr.bf16.mxu0 %v607_v0 }
  0x8e   : > { %v281_v21 = vpop.permute.xlu0 %280  ;;  %v290_v26 = vpop.permute.xlu1 %289 }
  0x8f   : > { %v298_v22 = vsel %vm295_vm6, %v277_v18, %v281_v21  ;;  %v303_v23 = vsel %vm302_vm7, %v281_v21, %v286_v19  ;;  %v335_v29 = vand.u32 %v334_v27, %v290_v26 }
  0x90   : > { %538 = vmatpush3.bf16.msra.mxu0 %v298_v22  ;;  %v307_v28 = vsel %vm291_vm1, %v303_v23, %v290_v26 }
  0x91   : > { %539 = vmatprep.subr.bf16.mxu0 %v607_v0 }
  0x94   : > { %540 = vmatpush3.bf16.msra.mxu0 %v307_v28 }
  0x95   : > { %541 = vmatprep.subr.bf16.mxu0 %v607_v0 }
  0x98   : > { %542 = vmatpush3.bf16.msra.mxu0 %v335_v29 }
  0x9b   : > { %544 = vmatmul.mubr.msk.bf16.vlgmr.msra.gmra.mrb[0].mxu0 %vm328_vm9, %v582_v30 }
  0x9f   : > { %v321_v31 = vpop.permute.xlu0 %320  ;;  %v316_v32 = vpop.permute.xlu1 %315 }
  0xa3   : > { %v385_v33 = vpop.permute.xlu0 %384  ;;  %v390_v37 = vpop.permute.xlu1 %389 }
  0xa7   : > { %v399_v44 = vpop.permute.xlu0 %398  ;;  %v404_v47 = vpop.permute.xlu1 %403 }
 0x16e   : > { %v371_v34 = vpop.f32.mrb[0].mxu0 }
 0x16f   : > { %v372_v35 = vadd.f32 %v371_v34, %v316_v32  ;;  %v545_v36 = vpop.f32.mrb[1].mxu0 }
 0x170   : > { %v374_v38 = vpop.f32.mrb[2].mxu0 }
 0x171   : > { %v378_v39 = vmax.f32 %v372_v35, 0.0  ;;  %v375_v40 = vadd.f32 %v374_v38, %v321_v31  ;;  %v546_v41 = vpop.f32.mrb[3].mxu0 }
 0x173   : > { %v392_v42 = vmul.f32 %v385_v33, %v378_v39  ;;  %v379_v43 = vmax.f32 %v375_v40, 0.0 }
 0x175   : > { %v406_v45 = vadd.f32 %v399_v44, %v392_v42  ;;  %v393_v46 = vmul.f32 %v390_v37, %v379_v43 }
 0x177   : > { %v528_v48 = vpack.c.bf16 %v406_v45, %v406_v45  ;;  %v407_v49 = vadd.f32 %v404_v47, %v393_v46 }
 0x179   : > { %417 = vst.msk [vmem:[%s258_s26] sm:$0xf] %vm416_vm12, %v528_v48  ;;  %v529_v51 = vpack.c.bf16 %v407_v49, %v407_v49 }
 0x17b   : > { %v422_v52 = vsel %vm420_vm13, %v529_v51, %v421_v50 }
 0x17c   : > { %423 = vst [vmem:[%s258_s26 + $0x4] sm:$0x3] %v422_v52 }
 0x17d PF: > { %s15_s20 = sadd.s32 1, %s605_s20   ;;  %s719_s18 = smov %s601_s19 }
 0x17e   : > { %p12_p5 = scmp.ge.s32.totalorder %s15_s20, 4   ;;  %s720_s19 = smov %s722_s21 }
 0x180   :  { %14 = sbr.rel (!%p12_p5) target bundleno = 2 (0x2), region = 70 }

// kernel: utime_forward.24
= control target key start
LH: loop header
LB: loop body
LE: loop exit
PB: predicated region body
PF: predicated region fallthrough
CT: control target
= control target key end

     0   :  { %s611_s18 = smov 0   ;;  %s613_s19 = smov 0   ;;  %s669_s0 = inlined_call_operand.vmem [shape: bf16[2,1,4,40], index: 0, kind: input, shape index: {}]   ;;  %s670_s1 = inlined_call_operand.vmem [shape: bf16[11,20], index: 1, kind: input, shape index: {}]   ;;  %s671_s2 = inlined_call_operand.vmem [shape: f32[11,1], index: 2, kind: input, shape index: {}]   ;;  %s672_s3 = inlined_call_operand.vmem [shape: f32[11,1], index: 3, kind: input, shape index: {}]   ;;  %s673_s4 = inlined_call_operand.vmem [shape: f32[11,1], index: 4, kind: input, shape index: {}]   ;;  %s674_s5 = inlined_call_operand.vmem [shape: bf16[2,11,32], index: 5, kind: output, shape index: {}]  }
   0x1   :  { %s615_s20 = smov 0  }
   0x2 LB: > { %s27_s21 = sadd.s32 1, %s567_s19  ;;  %p489_p0 = scmp.ge.s32.totalorder %s571_s20, 1  ;;  %s571_s20 = sphi %s615_s20, %s15_s20   ;;  %s567_s19 = sphi %s613_s19, %s676_s19   ;;  %s563_s18 = sphi %s611_s18, %s675_s18  }
   0x3   : > { %p29_p1 = scmp.ge.s32.totalorder %s27_s21, 2  ;;  %p205_p2 = scmp.lt.s32.totalorder %s571_s20, 3 }
   0x5   : > { %s678_s21 = smov (%p29_p1, %s27_s21), 0  ;;  %p206_p3 = pnand %p489_p0, %p205_p2 }
   0x6   : > { %p238_p4 = scmp.lt.s32.totalorder (!%p206_p3), %s563_s18, 1  ;;  %v260_v0 = vlaneseq (!%p206_p3)  ;;  %v573_v1 = vmov (!%p206_p3), 1983009808   ;;  %v574_v5 = vmov (!%p206_p3), 0.0   ;;  %vm575_vm0 = vmmov (!%p206_p3), 0   ;;  %s576_s26 = smov (!%p206_p3), 126  }
   0x7   : > { %209 = sbr.rel (%p206_p3) target bundleno = 376 (0x178), region = 40  ;;  %v258_v2 = vunpack.c.l.s4 (!%p206_p3), %v573_v1  ;;  %505 = vmatprep.subr.bf16.mxu0 (!%p206_p3), %v574_v5  ;;  %509 = vmatprep.mubr.msk.bf16.mxu0 (!%p206_p3), %vm575_vm0, %v574_v5  ;;  %v577_v13 = vmov (!%p206_p3), 0   ;;  %s578_s27 = smov (!%p206_p3), 122   ;;  %v295_v14 = vld [vmem:[%s671_s2 + $0x8] sm:$0x7] (!%p206_p3)  ;;  %v294_v15 = vld [vmem:[%s671_s2] sm:$0xff] (!%p206_p3) }
   0x8   : > { %v261_v3 = vshrl.u32 (!%p206_p3), %v260_v0, 7  ;;  %546 = vset.pattern.permute.xlu1 (!%p206_p3), %v577_v13  ;;  %545 = vset.pattern.permute.xlu0 (!%p206_p3), %v577_v13  ;;  %s579_s28 = smov (!%p206_p3), 124   ;;  %s580_s6 = smov (!%p206_p3), 120   ;;  %v361_v16 = vld [vmem:[%s672_s3] sm:$0xff] (!%p206_p3)  ;;  %v362_v17 = vld [vmem:[%s672_s3 + $0x8] sm:$0x7] (!%p206_p3) }
   0x9   : > { %v259_v4 = vunpack.c.0.s8 (!%p206_p3), %v258_v2  ;;  %v375_v18 = vld [vmem:[%s673_s4] sm:$0xff] (!%p206_p3)  ;;  %v376_v19 = vld [vmem:[%s673_s4 + $0x8] sm:$0x7] (!%p206_p3)  ;;  %vm281_vm1 = vcmask (!%p206_p3), 1041408   ;;  %vm285_vm2 = vcmask (!%p206_p3), 1043456   ;;  %vm288_vm3 = vcmask (!%p206_p3), 1045504  }
   0xa   : > { %v548_v28 = vld [vmem:[%s670_s1] sm:$0x3f] (!%p206_p3)   ;;  %vm311_vm4 = vcmask (!%p206_p3), 162816   ;;  %vm399_vm5 = vcmask (!%p206_p3), 254976   ;;  %vm400_vm6 = vsmask.f32 (!%p206_p3), 1280 }
   0xb   : > { %v262_v6 = vsub.s32 (!%p206_p3), %v259_v4, %v261_v3  ;;  %vm397_vm7 = vcmask (!%p206_p3), 257024   ;;  %vm401_vm8 = vmand (!%p206_p3), %vm399_vm5, %vm400_vm6 }
   0xe   : > { %s680_s18 = smov (!%p238_p4, %s563_s18), 1 }
   0xf   : > { %s490_s22 = sshll.u32 %s680_s18, 1  ;;  %s499_s23 = sshll.u32 %s680_s18, 3 }
  0x10   : > { %s244_s25 = scalar_lea.vmem %s669_s0, %s490_s22 }
  0x11   : > { %v254_v7 = vld [vmem:[%s244_s25] sm:$0x3] }
  0x12   : > { %v256_v8 = vcombine.low %v254_v7, %v254_v7  ;;  %v270_v9 = vrot.slane %v254_v7, %v262_v6 }
  0x14   : > { %v263_v10 = vrot.slane %v256_v8, %v262_v6  ;;  %v273_v11 = vcombine.low %v270_v9, %v270_v9 }
  0x16   : > { %271 = vrot.lane.b32.xlu0 %v263_v10, %s576_s26  ;;  %v276_v12 = vcombine.low %v263_v10, %v263_v10  ;;  %s252_s26 = scalar_lea.vmem %s674_s5, %s499_s23 }
  0x17   : > { %v402_v48 = vld [vmem:[%s252_s26 + $0x4] sm:$0x3] }
  0x18   : > { %277 = vrot.lane.b32.xlu1 %v276_v12, %s578_s27 }
  0x1a   : > { %274 = vrot.lane.b32.xlu0 %v273_v11, %s579_s28 }
  0x1c   : > { %279 = vrot.lane.b32.xlu1 %v270_v9, %s580_s6 }
  0x1e   : > { %303 = vperm.xlu0 %545, %v295_v14  }
  0x20   : > { %298 = vperm.xlu1 %546, %v294_v15  }
  0x22   : > { %365 = vperm.xlu0 %545, %v361_v16  }
  0x24   : > { %370 = vperm.xlu1 %546, %v362_v17  }
  0x26   : > { %379 = vperm.xlu0 %545, %v375_v18  }
  0x28   : > { %384 = vperm.xlu1 %546, %v376_v19  }
  0x88   : > { %v272_v20 = vpop.permute.xlu0 %271 }
  0x89   : > { %v284_v22 = vsel %vm281_vm1, %v254_v7, %v272_v20 }
  0x8a   : > { %v278_v21 = vpop.permute.xlu1 %277 }
  0x8c   : > { %v275_v23 = vpop.permute.xlu0 %274 }
  0x8d   : > { %v287_v24 = vsel %vm285_vm2, %v284_v22, %v275_v23 }
  0x8e   : > { %v290_v25 = vsel %vm288_vm3, %v287_v24, %v278_v21  ;;  %v280_v26 = vpop.permute.xlu1 %279 }
  0x8f   : > { %506 = vmatpush3.bf16.msra.mxu0 %v290_v25  ;;  %v316_v27 = vsel %vm281_vm1, %v280_v26, 0 }
  0x90   : > { %507 = vmatprep.subr.bf16.mxu0 %v574_v5 }
  0x93   : > { %508 = vmatpush3.bf16.msra.mxu0 %v316_v27 }
  0x96   : > { %510 = vmatmul.mubr.msk.bf16.vlgmr.msra.gmra.mrb[0].mxu0 %vm311_vm4, %v548_v28 }
  0x9d   : > { %v304_v29 = vpop.permute.xlu0 %303 }
  0x9f   : > { %v299_v30 = vpop.permute.xlu1 %298 }
  0xa1   : > { %v366_v31 = vpop.permute.xlu0 %365 }
  0xa3   : > { %v371_v35 = vpop.permute.xlu1 %370 }
  0xa5   : > { %v380_v42 = vpop.permute.xlu0 %379 }
  0xa7   : > { %v385_v45 = vpop.permute.xlu1 %384 }
 0x169   : > { %v352_v32 = vpop.f32.mrb[0].mxu0 }
 0x16a   : > { %v353_v33 = vadd.f32 %v352_v32, %v299_v30  ;;  %v511_v34 = vpop.f32.mrb[1].mxu0 }
 0x16b   : > { %v355_v36 = vpop.f32.mrb[2].mxu0 }
 0x16c   : > { %v359_v37 = vmax.f32 %v353_v33, 0.0  ;;  %v356_v38 = vadd.f32 %v355_v36, %v304_v29  ;;  %v512_v39 = vpop.f32.mrb[3].mxu0 }
 0x16e   : > { %v373_v40 = vmul.f32 %v366_v31, %v359_v37  ;;  %v360_v41 = vmax.f32 %v356_v38, 0.0 }
 0x170   : > { %v387_v43 = vadd.f32 %v380_v42, %v373_v40  ;;  %v374_v44 = vmul.f32 %v371_v35, %v360_v41 }
 0x172   : > { %v500_v46 = vpack.c.bf16 %v387_v43, %v387_v43  ;;  %v388_v47 = vadd.f32 %v385_v45, %v374_v44 }
 0x174   : > { %398 = vst.msk [vmem:[%s252_s26] sm:$0xf] %vm397_vm7, %v500_v46  ;;  %v501_v49 = vpack.c.bf16 %v388_v47, %v388_v47 }
 0x176   : > { %v403_v50 = vsel %vm401_vm8, %v501_v49, %v402_v48 }
 0x177   : > { %404 = vst [vmem:[%s252_s26 + $0x4] sm:$0x3] %v403_v50 }
 0x178 PF: > { %s15_s20 = sadd.s32 1, %s571_s20   ;;  %s675_s18 = smov %s567_s19 }
 0x179   : > { %p12_p5 = scmp.ge.s32.totalorder %s15_s20, 4   ;;  %s676_s19 = smov %s678_s21 }
 0x17b   :  { %14 = sbr.rel (!%p12_p5) target bundleno = 2 (0x2), region = 70 }

// kernel: utime_forward.28
= control target key start
LH: loop header
LB: loop body
LE: loop exit
PB: predicated region body
PF: predicated region fallthrough
CT: control target
= control target key end

     0   :  { %s710_s18 = smov 0   ;;  %s712_s19 = smov 0   ;;  %s791_s0 = inlined_call_operand.vmem [shape: bf16[2,1,22,24], index: 0, kind: input, shape index: {}]   ;;  %s792_s1 = inlined_call_operand.vmem [shape: bf16[22,110], index: 1, kind: input, shape index: {}]   ;;  %s793_s2 = inlined_call_operand.vmem [shape: f32[22,1], index: 2, kind: input, shape index: {}]   ;;  %s794_s3 = inlined_call_operand.vmem [shape: f32[22,1], index: 3, kind: input, shape index: {}]   ;;  %s795_s4 = inlined_call_operand.vmem [shape: f32[22,1], index: 4, kind: input, shape index: {}]   ;;  %s796_s5 = inlined_call_operand.vmem [shape: bf16[2,22,16], index: 5, kind: output, shape index: {}]  }
   0x1   :  { %s714_s20 = smov 0  }
   0x2 LB: > { %s27_s21 = sadd.s32 1, %s669_s19  ;;  %p566_p0 = scmp.ge.s32.totalorder %s673_s20, 1  ;;  %s673_s20 = sphi %s714_s20, %s15_s20   ;;  %s669_s19 = sphi %s712_s19, %s798_s19   ;;  %s665_s18 = sphi %s710_s18, %s797_s18  }
   0x3   : > { %p29_p1 = scmp.ge.s32.totalorder %s27_s21, 2  ;;  %p207_p2 = scmp.lt.s32.totalorder %s673_s20, 3 }
   0x5   : > { %s800_s21 = smov (%p29_p1, %s27_s21), 0  ;;  %p208_p3 = pnand %p566_p0, %p207_p2 }
   0x6   : > { %p242_p4 = scmp.lt.s32.totalorder (!%p208_p3), %s665_s18, 1  ;;  %vm272_vm0 = vcmask (!%p208_p3), 1042432   ;;  %vm280_vm1 = vcmask (!%p208_p3), 1045504   ;;  %s675_s26 = smov (!%p208_p3), 126   ;;  %vm291_vm2 = vcmask (!%p208_p3), 1040384   ;;  %v649_v15 = vld [vmem:[%s792_s1] sm:$0xff] (!%p208_p3)  }
   0x7   : > { %211 = sbr.rel (%p208_p3) target bundleno = 389 (0x185), region = 40  ;;  %s676_s27 = smov (!%p208_p3), 124   ;;  %vm354_vm3 = vcmask (!%p208_p3), 900096   ;;  %v679_v17 = vmov (!%p208_p3), 0   ;;  %v328_v18 = vld [vmem:[%s793_s2] sm:$0xff] (!%p208_p3)  ;;  %v329_v20 = vld [vmem:[%s793_s2 + $0x8] sm:$0xff] (!%p208_p3) }
   0x8   : > { %s677_s28 = smov (!%p208_p3), 122   ;;  %608 = vmatprep.mubr.msk.bf16.mxu0 (!%p208_p3), %vm354_vm3, %v649_v15  ;;  %s678_s6 = smov (!%p208_p3), 120   ;;  %643 = vset.pattern.permute.xlu1 (!%p208_p3), %v679_v17  ;;  %v330_v19 = vld [vmem:[%s793_s2 + $0x10] sm:$0x3f] (!%p208_p3)  ;;  %v416_v21 = vld [vmem:[%s794_s3] sm:$0xff] (!%p208_p3)  ;;  %v417_v22 = vld [vmem:[%s794_s3 + $0x8] sm:$0xff] (!%p208_p3) }
   0x9   : > { %644 = vset.pattern.permute.xlu0 (!%p208_p3), %v679_v17  ;;  %v418_v23 = vld [vmem:[%s794_s3 + $0x10] sm:$0x3f] (!%p208_p3)  ;;  %v437_v24 = vld [vmem:[%s795_s4] sm:$0xff] (!%p208_p3)  ;;  %v438_v25 = vld [vmem:[%s795_s4 + $0x8] sm:$0xff] (!%p208_p3)  ;;  %vm320_vm4 = vcmask (!%p208_p3), 1043456   ;;  %vm361_vm5 = vcmask (!%p208_p3), 1046528  }
   0xa   : > { %v439_v26 = vld [vmem:[%s795_s4 + $0x10] sm:$0x3f] (!%p208_p3)  ;;  %v650_v41 = vld [vmem:[%s792_s1 + $0x8] ss:$0 sps:$4 sm:$0x77] (!%p208_p3)   ;;  %vm474_vm6 = vcmask (!%p208_p3), 124928  }
   0xb   : > { %vm471_vm7 = vcmask (!%p208_p3), 125952  }
   0xe   : > { %s802_s18 = smov (!%p242_p4, %s665_s18), 1 }
   0xf   : > { %s613_s22 = smul.u32 12, %s802_s18 }
  0x11   : > { %s250_s25 = scalar_lea.vmem %s791_s0, %s613_s22  ;;  %s258_s9 = scalar_lea.vmem %s796_s5, %s613_s22 }
  0x12   : > { %v260_v0 = vld [vmem:[%s250_s25] sm:$0xf]  ;;  %v261_v1 = vld [vmem:[%s250_s25 + $0x4] sm:$0xf]  ;;  %v262_v2 = vld [vmem:[%s250_s25 + $0x8] sm:$0x7] }
  0x13   : > { %v569_v3 = vcombine.low %v260_v0, %v261_v1  ;;  %v570_v4 = vcombine.low %v262_v2, %v262_v2  ;;  %v571_v13 = vcombine.low %v260_v0, %v260_v0  ;;  %v572_v16 = vcombine.low %v261_v1, %v262_v2 }
  0x15   : > { %v273_v5 = vrot.slane %v569_v3, 5  ;;  %v281_v6 = vrot.slane %v569_v3, 2  ;;  %v274_v7 = vrot.slane %v570_v4, 5  ;;  %v282_v8 = vrot.slane %v570_v4, 2  ;;  %594 = vmatprep.subr.bf16.mxu0 %v569_v3 }
  0x16   : > { %595 = vmatpush3.bf16.msra.mxu0 %v569_v3  ;;  %v292_v11 = vrot.slane %v569_v3, 7  ;;  %v293_v12 = vrot.slane %v570_v4, 7 }
  0x17   : > { %276 = vrot.lane.b32.xlu0 %v273_v5, %s675_s26  ;;  %284 = vrot.lane.b32.xlu1 %v281_v6, %s676_s27  ;;  %v275_v9 = vsel %vm272_vm0, %v273_v5, %v274_v7  ;;  %v283_v10 = vsel %vm280_vm1, %v281_v6, %v282_v8 }
  0x18   : > { %v294_v14 = vsel %vm291_vm2, %v292_v11, %v293_v12 }
  0x1b   : > { %278 = vrot.lane.b32.xlu0 %v275_v9, %s675_s26  ;;  %286 = vrot.lane.b32.xlu1 %v283_v10, %s676_s27 }
  0x1f   : > { %295 = vrot.lane.b32.xlu1 %v292_v11, %s677_s28  ;;  %288 = vrot.lane.b32.xlu0 %v282_v8, %s676_s27 }
  0x23   : > { %301 = vrot.lane.b32.xlu1 %v571_v13, %s678_s6  ;;  %297 = vrot.lane.b32.xlu0 %v294_v14, %s677_s28 }
  0x27   : > { %303 = vrot.lane.b32.xlu0 %v572_v16, %s678_s6  ;;  %333 = vperm.xlu1 %643, %v328_v18  }
  0x2b   : > { %343 = vperm.xlu1 %643, %v330_v19   ;;  %338 = vperm.xlu0 %644, %v329_v20  }
  0x2f   : > { %421 = vperm.xlu1 %643, %v416_v21   ;;  %426 = vperm.xlu0 %644, %v417_v22  }
  0x33   : > { %431 = vperm.xlu1 %643, %v418_v23   ;;  %442 = vperm.xlu0 %644, %v437_v24  }
  0x37   : > { %447 = vperm.xlu1 %643, %v438_v25   ;;  %452 = vperm.xlu0 %644, %v439_v26  }
  0x89   : > { %v277_v27 = vpop.permute.xlu0 %276  ;;  %v285_v28 = vpop.permute.xlu1 %284 }
  0x8a   : > { %v308_v29 = vsel %vm272_vm0, %v570_v4, %v277_v27 }
  0x8b   : > { %596 = vmatprep.subr.bf16.mxu0 %v308_v29 }
  0x8c   : > { %597 = vmatpush3.bf16.msra.mxu0 %v308_v29 }
  0x8d   : > { %v279_v30 = vpop.permute.xlu0 %278  ;;  %v287_v31 = vpop.permute.xlu1 %286 }
  0x8e   : > { %v313_v32 = vsel %vm280_vm1, %v279_v30, %v285_v28 }
  0x8f   : > { %598 = vmatprep.subr.bf16.mxu0 %v313_v32 }
  0x90   : > { %599 = vmatpush3.bf16.msra.mxu0 %v313_v32 }
  0x91   : > { %600 = vmatprep.subr.bf16.mxu0 %v287_v31  ;;  %v296_v33 = vpop.permute.xlu1 %295  ;;  %v289_v34 = vpop.permute.xlu0 %288 }
  0x92   : > { %v318_v35 = vsel %vm291_vm2, %v289_v34, %v296_v33 }
  0x94   : > { %601 = vmatpush3.bf16.msra.mxu0 %v287_v31 }
  0x95   : > { %602 = vmatprep.subr.bf16.mxu0 %v318_v35  ;;  %v302_v36 = vpop.permute.xlu1 %301  ;;  %v298_v37 = vpop.permute.xlu0 %297 }
  0x96   : > { %v323_v38 = vsel %vm320_vm4, %v298_v37, %v302_v36 }
  0x98   : > { %603 = vmatpush3.bf16.msra.mxu0 %v318_v35 }
  0x99   : > { %604 = vmatprep.subr.bf16.mxu0 %v323_v38  ;;  %v304_v39 = vpop.permute.xlu0 %303 }
  0x9a   : > { %v363_v40 = vsel %vm361_vm5, %v304_v39, 0 }
  0x9c   : > { %605 = vmatpush3.bf16.msra.mxu0 %v323_v38 }
  0x9d   : > { %612 = vmatprep.subr.msk.bf16.mxu0 %vm361_vm5, %v304_v39 }
  0xa0   : > { %607 = vmatpush3.bf16.msra.mxu0 %v363_v40 }
  0xa3   : > { %609 = vmatmul.mubr.msk.bf16.vlgmr.msra.gmra.mrb[0].mxu0 %vm354_vm3, %v650_v41 }
  0xa6   : > { %v334_v42 = vpop.permute.xlu1 %333 }
  0xaa   : > { %v339_v43 = vpop.permute.xlu0 %338  ;;  %v344_v44 = vpop.permute.xlu1 %343 }
  0xae   : > { %v427_v45 = vpop.permute.xlu0 %426  ;;  %v422_v46 = vpop.permute.xlu1 %421 }
  0xb2   : > { %v443_v47 = vpop.permute.xlu0 %442  ;;  %v432_v53 = vpop.permute.xlu1 %431 }
  0xb6   : > { %v453_v59 = vpop.permute.xlu0 %452  ;;  %v448_v1 = vpop.permute.xlu1 %447 }
 0x176   : > { %v610_v48 = vpop.f32.mrb[0].mxu0 }
 0x177   : > { %v408_v49 = vadd.f32 %v610_v48, %v344_v44  ;;  %v399_v50 = vpop.f32.mrb[1].mxu0 }
 0x178   : > { %v400_v51 = vadd.f32 %v399_v50, %v334_v42  ;;  %v611_v52 = vpop.f32.mrb[2].mxu0 }
 0x179   : > { %v415_v54 = vmax.f32 %v408_v49, 0.0  ;;  %v402_v55 = vpop.f32.mrb[3].mxu0 }
 0x17a   : > { %v413_v56 = vmax.f32 %v400_v51, 0.0  ;;  %v403_v57 = vadd.f32 %v402_v55, %v339_v43 }
 0x17b   : > { %v436_v58 = vmul.f32 %v432_v53, %v415_v54 }
 0x17c   : > { %v434_v60 = vmul.f32 %v422_v46, %v413_v56  ;;  %v414_v61 = vmax.f32 %v403_v57, 0.0 }
 0x17d   : > { %v457_v62 = vadd.f32 %v453_v59, %v436_v58 }
 0x17e   : > { %v455_v63 = vadd.f32 %v443_v47, %v434_v60  ;;  %v435_v0 = vmul.f32 %v427_v45, %v414_v61 }
 0x17f   : > { %v584_v2 = vpack.c.bf16 %v457_v62, %v457_v62 }
 0x180   : > { %v582_v3 = vpack.c.bf16 %v455_v63, %v455_v63  ;;  %v456_v4 = vadd.f32 %v448_v1, %v435_v0 }
 0x181   : > { %475 = vst.msk [vmem:[%s258_s9 + $0x8] sm:$0x7] %vm474_vm6, %v584_v2 }
 0x182   : > { %472 = vst.msk [vmem:[%s258_s9] sm:$0xf] %vm471_vm7, %v582_v3  ;;  %v583_v5 = vpack.c.bf16 %v456_v4, %v456_v4 }
 0x184   : > { %473 = vst.msk [vmem:[%s258_s9 + $0x4] sm:$0xf] %vm471_vm7, %v583_v5 }
 0x185 PF: > { %s15_s20 = sadd.s32 1, %s673_s20   ;;  %s797_s18 = smov %s669_s19 }
 0x186   : > { %p12_p5 = scmp.ge.s32.totalorder %s15_s20, 4   ;;  %s798_s19 = smov %s800_s21 }
 0x188   :  { %14 = sbr.rel (!%p12_p5) target bundleno = 2 (0x2), region = 70 }

// kernel: utime_forward.27
= control target key start
LH: loop header
LB: loop body
LE: loop exit
PB: predicated region body
PF: predicated region fallthrough
CT: control target
= control target key end

     0   :  { %s683_s18 = smov 0   ;;  %s685_s19 = smov 0   ;;  %s757_s0 = inlined_call_operand.vmem [shape: bf16[2,1,11,24], index: 0, kind: input, shape index: {}]   ;;  %s758_s1 = inlined_call_operand.vmem [shape: bf16[22,55], index: 1, kind: input, shape index: {}]   ;;  %s759_s2 = inlined_call_operand.vmem [shape: f32[22,1], index: 2, kind: input, shape index: {}]   ;;  %s760_s3 = inlined_call_operand.vmem [shape: f32[22,1], index: 3, kind: input, shape index: {}]   ;;  %s761_s4 = inlined_call_operand.vmem [shape: f32[22,1], index: 4, kind: input, shape index: {}]   ;;  %s762_s5 = inlined_call_operand.vmem [shape: bf16[2,22,16], index: 5, kind: output, shape index: {}]  }
   0x1   :  { %s687_s20 = smov 0  }
   0x2 LB: > { %s27_s21 = sadd.s32 1, %s641_s19  ;;  %p551_p0 = scmp.ge.s32.totalorder %s645_s20, 1  ;;  %s645_s20 = sphi %s687_s20, %s15_s20   ;;  %s641_s19 = sphi %s685_s19, %s764_s19   ;;  %s637_s18 = sphi %s683_s18, %s763_s18  }
   0x3   : > { %p29_p1 = scmp.ge.s32.totalorder %s27_s21, 2  ;;  %p207_p2 = scmp.lt.s32.totalorder %s645_s20, 3 }
   0x5   : > { %s766_s21 = smov (%p29_p1, %s27_s21), 0  ;;  %p208_p3 = pnand %p551_p0, %p207_p2 }
   0x6   : > { %p242_p4 = scmp.lt.s32.totalorder (!%p208_p3), %s637_s18, 1  ;;  %s647_s26 = smov (!%p208_p3), 126   ;;  %v621_v10 = vld [vmem:[%s758_s1] sm:$0xff] (!%p208_p3)   ;;  %vm338_vm0 = vcmask (!%p208_p3), 449536   ;;  %v651_v11 = vmov (!%p208_p3), 0   ;;  %v313_v12 = vld [vmem:[%s759_s2 + $0x8] sm:$0xff] (!%p208_p3) }
   0x7   : > { %211 = sbr.rel (%p208_p3) target bundleno = 382 (0x17e), region = 40  ;;  %s648_s27 = smov (!%p208_p3), 122   ;;  %583 = vmatprep.mubr.msk.bf16.mxu0 (!%p208_p3), %vm338_vm0, %v621_v10  ;;  %619 = vset.pattern.permute.xlu1 (!%p208_p3), %v651_v11  ;;  %v312_v13 = vld [vmem:[%s759_s2] sm:$0xff] (!%p208_p3)  ;;  %v314_v14 = vld [vmem:[%s759_s2 + $0x10] sm:$0x3f] (!%p208_p3)  ;;  %v402_v16 = vld [vmem:[%s760_s3 + $0x8] sm:$0xff] (!%p208_p3) }
   0x8   : > { %s649_s30 = smov (!%p208_p3), 124   ;;  %s650_s6 = smov (!%p208_p3), 120   ;;  %618 = vset.pattern.permute.xlu0 (!%p208_p3), %v651_v11  ;;  %v401_v15 = vld [vmem:[%s760_s3] sm:$0xff] (!%p208_p3)  ;;  %v403_v17 = vld [vmem:[%s760_s3 + $0x10] sm:$0x3f] (!%p208_p3)  ;;  %v423_v19 = vld [vmem:[%s761_s4 + $0x8] sm:$0xff] (!%p208_p3) }
   0x9   : > { %v422_v18 = vld [vmem:[%s761_s4] sm:$0xff] (!%p208_p3)  ;;  %v424_v20 = vld [vmem:[%s761_s4 + $0x10] sm:$0x3f] (!%p208_p3)  ;;  %vm291_vm1 = vcmask (!%p208_p3), 1045504   ;;  %vm292_vm2 = vsmask.f32 (!%p208_p3), 5376 }
   0xa   : > { %vm293_vm3 = vmand (!%p208_p3), %vm291_vm1, %vm292_vm2  ;;  %vm300_vm4 = vcmask (!%p208_p3), 1040384   ;;  %vm301_vm5 = vsmask.f32 (!%p208_p3), 256  ;;  %vm295_vm6 = vcmask (!%p208_p3), 1042432   ;;  %vm345_vm8 = vcmask (!%p208_p3), 1043456  }
   0xb   : > { %vm302_vm7 = vmand (!%p208_p3), %vm300_vm4, %vm301_vm5  ;;  %v652_v24 = vmov (!%p208_p3), 65535   ;;  %v622_v33 = vld [vmem:[%s758_s1 + $0x8] ss:$0 sps:$4 sm:$0x77] (!%p208_p3)   ;;  %vm459_vm9 = vcmask (!%p208_p3), 124928   ;;  %vm456_vm10 = vcmask (!%p208_p3), 125952  }
   0xc   : > { %v346_v25 = vsel (!%p208_p3), %vm295_vm6, 4294967295, %v652_v24 }
   0xd   : > { %v347_v29 = vsel (!%p208_p3), %vm345_vm8, %v346_v25, 0 }
   0xe   : > { %s768_s18 = smov (!%p242_p4, %s637_s18), 1 }
   0xf   : > { %s565_s22 = sshll.u32 %s768_s18, 3 }
  0x10   : > { %s250_s25 = scalar_lea.vmem %s757_s0, %s565_s22 }
  0x11   : > { %v620_v0 = vld [vmem:[%s250_s25] sm:$0x3f]  }
  0x12   : > { %v269_v1 = vshrl.u32 %v620_v0, 16  ;;  %v272_v2 = vshll.u32 %v620_v0, 16  ;;  %v279_v8 = vrot.slane %v620_v0, 5  ;;  %v288_v9 = vrot.slane %v620_v0, 2 }
  0x14   : > { %v271_v3 = vrot.slane %v269_v1, 2  ;;  %v274_v4 = vrot.slane %v272_v2, 3  ;;  %v283_v5 = vrot.slane %v269_v1, 7 }
  0x16   : > { %v275_v6 = vor.u32 %v274_v4, %v271_v3  ;;  %v284_v7 = vor.u32 %v283_v5, %v272_v2 }
  0x18   : > { %276 = vrot.lane.b32.xlu0 %v275_v6, %s647_s26  ;;  %285 = vrot.lane.b32.xlu1 %v284_v7, %s648_s27 }
  0x1c   : > { %280 = vrot.lane.b32.xlu0 %v279_v8, %s649_s30  ;;  %289 = vrot.lane.b32.xlu1 %v288_v9, %s650_s6  ;;  %s587_s6 = smul.u32 12, %s768_s18 }
  0x1e   : > { %s258_s9 = scalar_lea.vmem %s762_s5, %s587_s6 }
  0x20   : > { %322 = vperm.xlu1 %619, %v313_v12   ;;  %317 = vperm.xlu0 %618, %v312_v13  }
  0x24   : > { %327 = vperm.xlu1 %619, %v314_v14   ;;  %406 = vperm.xlu0 %618, %v401_v15  }
  0x28   : > { %411 = vperm.xlu1 %619, %v402_v16   ;;  %416 = vperm.xlu0 %618, %v403_v17  }
  0x2c   : > { %427 = vperm.xlu1 %619, %v422_v18   ;;  %432 = vperm.xlu0 %618, %v423_v19  }
  0x30   : > { %437 = vperm.xlu1 %619, %v424_v20  }
  0x8a   : > { %v277_v21 = vpop.permute.xlu0 %276  ;;  %v286_v22 = vpop.permute.xlu1 %285 }
  0x8b   : > { %v294_v23 = vsel %vm293_vm3, %v620_v0, %v277_v21 }
  0x8c   : > { %575 = vmatprep.subr.bf16.mxu0 %v294_v23 }
  0x8d   : > { %576 = vmatpush3.bf16.msra.mxu0 %v294_v23 }
  0x8e   : > { %v281_v26 = vpop.permute.xlu0 %280  ;;  %v290_v27 = vpop.permute.xlu1 %289 }
  0x8f   : > { %v303_v28 = vsel %vm302_vm7, %v281_v26, %v286_v22  ;;  %v298_v30 = vsel %vm295_vm6, %v277_v21, %v281_v26  ;;  %v348_v32 = vand.u32 %v347_v29, %v290_v27 }
  0x90   : > { %577 = vmatprep.subr.bf16.mxu0 %v298_v30  ;;  %v307_v31 = vsel %vm291_vm1, %v303_v28, %v290_v27 }
  0x91   : > { %578 = vmatpush3.bf16.msra.mxu0 %v298_v30 }
  0x92   : > { %579 = vmatprep.subr.bf16.mxu0 %v307_v31 }
  0x95   : > { %580 = vmatpush3.bf16.msra.mxu0 %v307_v31 }
  0x96   : > { %581 = vmatprep.subr.bf16.mxu0 %v348_v32 }
  0x99   : > { %582 = vmatpush3.bf16.msra.mxu0 %v348_v32 }
  0x9c   : > { %584 = vmatmul.mubr.msk.bf16.vlgmr.msra.gmra.mrb[0].mxu0 %vm338_vm0, %v622_v33 }
  0x9f   : > { %v323_v34 = vpop.permute.xlu1 %322  ;;  %v318_v36 = vpop.permute.xlu0 %317 }
  0xa3   : > { %v328_v35 = vpop.permute.xlu1 %327  ;;  %v407_v38 = vpop.permute.xlu0 %406 }
  0xa7   : > { %v412_v37 = vpop.permute.xlu1 %411  ;;  %v417_v45 = vpop.permute.xlu0 %416 }
  0xab   : > { %v428_v39 = vpop.permute.xlu1 %427  ;;  %v433_v57 = vpop.permute.xlu0 %432 }
  0xaf   : > { %v438_v51 = vpop.permute.xlu1 %437 }
 0x16f   : > { %v585_v40 = vpop.f32.mrb[0].mxu0 }
 0x170   : > { %v393_v41 = vadd.f32 %v585_v40, %v328_v35  ;;  %v384_v42 = vpop.f32.mrb[1].mxu0 }
 0x171   : > { %v385_v43 = vadd.f32 %v384_v42, %v318_v36  ;;  %v586_v44 = vpop.f32.mrb[2].mxu0 }
 0x172   : > { %v400_v46 = vmax.f32 %v393_v41, 0.0  ;;  %v387_v47 = vpop.f32.mrb[3].mxu0 }
 0x173   : > { %v398_v48 = vmax.f32 %v385_v43, 0.0  ;;  %v388_v49 = vadd.f32 %v387_v47, %v323_v34 }
 0x174   : > { %v421_v50 = vmul.f32 %v417_v45, %v400_v46 }
 0x175   : > { %v419_v52 = vmul.f32 %v407_v38, %v398_v48  ;;  %v399_v53 = vmax.f32 %v388_v49, 0.0 }
 0x176   : > { %v442_v54 = vadd.f32 %v438_v51, %v421_v50 }
 0x177   : > { %v440_v55 = vadd.f32 %v428_v39, %v419_v52  ;;  %v420_v56 = vmul.f32 %v412_v37, %v399_v53 }
 0x178   : > { %v568_v58 = vpack.c.bf16 %v442_v54, %v442_v54 }
 0x179   : > { %v566_v59 = vpack.c.bf16 %v440_v55, %v440_v55  ;;  %v441_v60 = vadd.f32 %v433_v57, %v420_v56 }
 0x17a   : > { %460 = vst.msk [vmem:[%s258_s9 + $0x8] sm:$0x7] %vm459_vm9, %v568_v58 }
 0x17b   : > { %457 = vst.msk [vmem:[%s258_s9] sm:$0xf] %vm456_vm10, %v566_v59  ;;  %v567_v61 = vpack.c.bf16 %v441_v60, %v441_v60 }
 0x17d   : > { %458 = vst.msk [vmem:[%s258_s9 + $0x4] sm:$0xf] %vm456_vm10, %v567_v61 }
 0x17e PF: > { %s15_s20 = sadd.s32 1, %s645_s20   ;;  %s763_s18 = smov %s641_s19 }
 0x17f   : > { %p12_p5 = scmp.ge.s32.totalorder %s15_s20, 4   ;;  %s764_s19 = smov %s766_s21 }
 0x181   :  { %14 = sbr.rel (!%p12_p5) target bundleno = 2 (0x2), region = 70 }

// kernel: utime_forward.29
= control target key start
LH: loop header
LB: loop body
LE: loop exit
PB: predicated region body
PF: predicated region fallthrough
CT: control target
= control target key end

     0   :  { %s329_s6 = smov 0   ;;  %s331_s7 = smov 0   ;;  %s383_s0 = inlined_call_operand.vmem [shape: bf16[2,2,22,8], index: 0, kind: input, shape index: {}]   ;;  %s384_s1 = inlined_call_operand.vmem [shape: bf16[2,22,8], index: 1, kind: output, shape index: {}]  }
   0x1   :  { %s333_s8 = smov 0  }
   0x2 LB: > { %s255_s9 = sadd.s32 4294967295, %s317_s8   ;;  %s346_s10 = sadd.s32 1, %s317_s8   ;;  %s317_s8 = sphi %s333_s8, %s387_s8   ;;  %s313_s7 = sphi %s331_s7, %s386_s7   ;;  %s309_s6 = sphi %s329_s6, %s385_s6  }
   0x3   : > { %s15_s11 = ssub.s32 %s317_s8, %s346_s10  ;;  %s18_s12 = sadd.s32 1, %s313_s7 }
   0x4   : > { %p16_p0 = scmp.eq.s32.totalorder %s15_s11, 0  ;;  %p25_p1 = scmp.ne.s32.totalorder %s313_s7, %s309_s6 }
   0x5   : > { %p26_p2 = scmp.eq.s32.totalorder %s317_s8, 0  ;;  %p258_p4 = scmp.ge.s32.totalorder %s317_s8, 2 }
   0x6   : > { %s355_s13 = scalar_select %p16_p0, %s313_s7, %s18_s12  }
   0x7   : > { %p27_p3 = por %p26_p2, %p25_p1  ;;  %77 = sbr.rel (%p258_p4) target bundleno = 21 (0x15), region = 16 }
   0xe   : > { %80 = sbr.rel (!%p27_p3) target bundleno = 21 (0x15), region = 20  ;;  %s82_s14 = sand.u32 (%p27_p3), 1, %s313_s7  }
   0xf   : > { %s268_s15 = smul.u32 (%p27_p3), 12, %s317_s8 }
  0x10   : > { %s267_s16 = smul.u32 (%p27_p3), 24, %s82_s14 }
  0x11   : > { %s87_s19 = scalar_lea.vmem (%p27_p3), %s383_s0, %s268_s15 }
  0x12   : > { %v103_v0 = vld [vmem:[%s87_s19] sm:$0xff] (%p27_p3)   ;;  %v107_v1 = vld [vmem:[%s87_s19 + $0x8] sm:$0xf] (%p27_p3)  ;;  %v109_v2 = vld [vmem:[%s87_s19 + $0x18] sm:$0xff] (%p27_p3)   ;;  %s84_s20 = scalar_lea.vmem (%p27_p3), [#allocation2], %s267_s16 }
  0x13   : > { %104 = vst [vmem:[%s84_s20] sm:$0xff] (%p27_p3), %v103_v0   ;;  %108 = vst [vmem:[%s84_s20 + $0x8] sm:$0xf] (%p27_p3), %v107_v1  ;;  %v113_v3 = vld [vmem:[%s87_s19 + $0x20] sm:$0xf] (%p27_p3) }
  0x14   : > { %110 = vst [vmem:[%s84_s20 + $0xc] sm:$0xff] (%p27_p3), %v109_v2   ;;  %114 = vst [vmem:[%s84_s20 + $0x14] sm:$0xf] (%p27_p3), %v113_v3 }
  0x15 PF: > { %p260_p5 = scmp.ge.s32.totalorder %s317_s8, 1  ;;  %p148_p6 = scmp.lt.s32.totalorder %s317_s8, 3 }
  0x17   : > { %p149_p7 = pnand %p260_p5, %p148_p6 }
  0x18   : > { %s155_s21 = sand.u32 (!%p149_p7), 1, %s309_s6   ;;  %p174_p8 = scmp.lt.s32.totalorder (!%p149_p7), %s255_s9, 1  ;;  %vm189_vm0 = vcmask (!%p149_p7), 60416   ;;  %vm192_vm1 = vcmask (!%p149_p7), 59392  }
  0x19   : > { %152 = sbr.rel (%p149_p7) target bundleno = 38 (0x26), region = 61 }
  0x1a   : > { %s269_s22 = smul.u32 (!%p149_p7), 24, %s155_s21 }
  0x1c   : > { %s157_s24 = scalar_lea.vmem (!%p149_p7), [#allocation2], %s269_s22 }
  0x1d   : > { %v179_v4 = vld [vmem:[%s157_s24] sm:$0xf] (!%p149_p7)  ;;  %v262_v5 = vld [vmem:[%s157_s24 + $0xc] sm:$0xf] (!%p149_p7)  ;;  %v180_v7 = vld [vmem:[%s157_s24 + $0x4] sm:$0xf] (!%p149_p7) }
  0x1e   : > { %v186_v6 = vmax.bf16 (!%p149_p7), %v262_v5, %v179_v4  ;;  %v263_v8 = vld [vmem:[%s157_s24 + $0x10] sm:$0xf] (!%p149_p7)  ;;  %v181_v9 = vld [vmem:[%s157_s24 + $0x8] sm:$0x7] (!%p149_p7)  ;;  %v264_v11 = vld [vmem:[%s157_s24 + $0x14] sm:$0x7] (!%p149_p7) }
  0x1f   : > { %v187_v10 = vmax.bf16 (!%p149_p7), %v263_v8, %v180_v7  ;;  %v188_v12 = vmax.bf16 (!%p149_p7), %v264_v11, %v181_v9 }
  0x20   : > { %s389_s9 = smov (!%p174_p8, %s255_s9), 1 }
  0x21   : > { %s270_s23 = smul.u32 12, %s389_s9 }
  0x23   : > { %s178_s27 = scalar_lea.vmem %s384_s1, %s270_s23 }
  0x24   : > { %190 = vst.msk [vmem:[%s178_s27] sm:$0xf] %vm189_vm0, %v186_v6  ;;  %191 = vst.msk [vmem:[%s178_s27 + $0x4] sm:$0xf] %vm189_vm0, %v187_v10 }
  0x25   : > { %193 = vst.msk [vmem:[%s178_s27 + $0x8] sm:$0x7] %vm192_vm1, %v188_v12 }
  0x26 PF: > { %p8_p9 = scmp.ge.s32.totalorder %s346_s10, 4   ;;  %s385_s6 = smov %s313_s7 }
  0x27   : > { %s386_s7 = smov %s355_s13  ;;  %s387_s8 = smov %s346_s10 }
  0x28   :  { %10 = sbr.rel (!%p8_p9) target bundleno = 2 (0x2), region = 101 }

// kernel: utime_forward.30
= control target key start
LH: loop header
LB: loop body
LE: loop exit
PB: predicated region body
PF: predicated region fallthrough
CT: control target
= control target key end

     0   :  { %s849_s18 = smov 0   ;;  %s851_s19 = smov 0   ;;  %s995_s0 = inlined_call_operand.vmem [shape: bf16[2,1,22,16], index: 0, kind: input, shape index: {}]   ;;  %s996_s1 = inlined_call_operand.vmem [shape: bf16[45,110], index: 1, kind: input, shape index: {}]   ;;  %s997_s2 = inlined_call_operand.vmem [shape: f32[45,1], index: 2, kind: input, shape index: {}]   ;;  %s998_s3 = inlined_call_operand.vmem [shape: f32[45,1], index: 3, kind: input, shape index: {}]   ;;  %s999_s4 = inlined_call_operand.vmem [shape: f32[45,1], index: 4, kind: input, shape index: {}]   ;;  %s1000_s5 = inlined_call_operand.vmem [shape: bf16[2,45,8], index: 5, kind: output, shape index: {}]  }
   0x1   :  { %s853_s20 = smov 0  }
   0x2 LB: > { %s27_s21 = sadd.s32 1, %s806_s19  ;;  %p669_p0 = scmp.ge.s32.totalorder %s810_s20, 1  ;;  %s810_s20 = sphi %s853_s20, %s15_s20   ;;  %s806_s19 = sphi %s851_s19, %s1002_s19   ;;  %s802_s18 = sphi %s849_s18, %s1001_s18  }
   0x3   : > { %p29_p1 = scmp.ge.s32.totalorder %s27_s21, 2  ;;  %p207_p2 = scmp.lt.s32.totalorder %s810_s20, 3 }
   0x5   : > { %s1004_s21 = smov (%p29_p1, %s27_s21), 0  ;;  %p208_p3 = pnand %p669_p0, %p207_p2 }
   0x6   : > { %p242_p4 = scmp.lt.s32.totalorder (!%p208_p3), %s802_s18, 1  ;;  %v812_v0 = vmov (!%p208_p3), 0.0   ;;  %vm272_vm0 = vcmask (!%p208_p3), 1042432   ;;  %vm280_vm1 = vcmask (!%p208_p3), 1045504   ;;  %s813_s26 = smov (!%p208_p3), 126   ;;  %vm291_vm2 = vcmask (!%p208_p3), 1040384  }
   0x7   : > { %211 = sbr.rel (%p208_p3) target bundleno = 396 (0x18c), region = 40  ;;  %706 = vmatprep.subr.bf16.mxu0 (!%p208_p3), %v812_v0  ;;  %732 = vmatprep.subr.bf16.mxu1 (!%p208_p3), %v812_v0  ;;  %s814_s27 = smov (!%p208_p3), 124   ;;  %vm816_vm3 = vmmov (!%p208_p3), 0   ;;  %v336_v17 = vld [vmem:[%s997_s2 + $0x28] sm:$0x1f] (!%p208_p3)  ;;  %v818_v18 = vmov (!%p208_p3), 0  }
   0x8   : > { %s815_s28 = smov (!%p208_p3), 122   ;;  %720 = vmatprep.mubr.msk.bf16.mxu0 (!%p208_p3), %vm816_vm3, %v812_v0  ;;  %724 = vmatprep.mubr.msk.bf16.mxu1 (!%p208_p3), %vm816_vm3, %v812_v0  ;;  %s817_s29 = smov (!%p208_p3), 120   ;;  %v331_v19 = vld [vmem:[%s997_s2] sm:$0xff] (!%p208_p3)  ;;  %v332_v20 = vld [vmem:[%s997_s2 + $0x8] sm:$0xff] (!%p208_p3)  ;;  %v334_v21 = vld [vmem:[%s997_s2 + $0x18] sm:$0xff] (!%p208_p3)  ;;  %vm320_vm4 = vcmask (!%p208_p3), 1043456  }
   0x9   : > { %779 = vset.pattern.permute.xlu1 (!%p208_p3), %v818_v18  ;;  %780 = vset.pattern.permute.xlu0 (!%p208_p3), %v818_v18  ;;  %v333_v22 = vld [vmem:[%s997_s2 + $0x10] sm:$0xff] (!%p208_p3)  ;;  %v464_v23 = vld [vmem:[%s998_s3 + $0x28] sm:$0x1f] (!%p208_p3)  ;;  %v335_v24 = vld [vmem:[%s997_s2 + $0x20] sm:$0xff] (!%p208_p3)  ;;  %vm392_vm5 = vcmask (!%p208_p3), 1046528   ;;  %vm382_vm6 = vcmask (!%p208_p3), 900096  }
   0xa   : > { %v460_v25 = vld [vmem:[%s998_s3 + $0x8] sm:$0xff] (!%p208_p3)  ;;  %v459_v26 = vld [vmem:[%s998_s3] sm:$0xff] (!%p208_p3)  ;;  %v462_v27 = vld [vmem:[%s998_s3 + $0x18] sm:$0xff] (!%p208_p3)  ;;  %vm567_vm7 = vcmask (!%p208_p3), 60416   ;;  %vm573_vm8 = vcmask (!%p208_p3), 59392  }
   0xb   : > { %v461_v28 = vld [vmem:[%s998_s3 + $0x10] sm:$0xff] (!%p208_p3)  ;;  %v506_v29 = vld [vmem:[%s999_s4 + $0x28] sm:$0x1f] (!%p208_p3)  ;;  %v463_v30 = vld [vmem:[%s998_s3 + $0x20] sm:$0xff] (!%p208_p3)  ;;  %vm574_vm9 = vsmask.f32 (!%p208_p3), 2304 }
   0xc   : > { %v502_v31 = vld [vmem:[%s999_s4 + $0x8] sm:$0xff] (!%p208_p3)  ;;  %v501_v32 = vld [vmem:[%s999_s4] sm:$0xff] (!%p208_p3)  ;;  %v504_v33 = vld [vmem:[%s999_s4 + $0x18] sm:$0xff] (!%p208_p3) }
   0xd   : > { %v503_v34 = vld [vmem:[%s999_s4 + $0x10] sm:$0xff] (!%p208_p3)  ;;  %v505_v35 = vld [vmem:[%s999_s4 + $0x20] sm:$0xff] (!%p208_p3)  ;;  %v786_v51 = vld [vmem:[%s996_s1 + $0x8] sm:$0xff] (!%p208_p3)  }
   0xe   : > { %s1006_s18 = smov (!%p242_p4, %s802_s18), 1  ;;  %v785_v50 = vld [vmem:[%s996_s1] sm:$0xff]   ;;  %v787_v52 = vld [vmem:[%s996_s1 + $0x10] sm:$0x7f]   ;;  %vm575_vm10 = vmand %vm573_vm8, %vm574_vm9 }
   0xf   : > { %s746_s22 = smul.u32 12, %s1006_s18 }
  0x10   : > { %s747_s30 = smul.u32 24, %s1006_s18 }
  0x11   : > { %s250_s25 = scalar_lea.vmem %s995_s0, %s746_s22 }
  0x12   : > { %v260_v1 = vld [vmem:[%s250_s25] sm:$0xf]  ;;  %v261_v2 = vld [vmem:[%s250_s25 + $0x4] sm:$0xf]  ;;  %v262_v3 = vld [vmem:[%s250_s25 + $0x8] sm:$0x7]  ;;  %s972_s8 = scalar_lea.vmem %s1000_s5, %s747_s30 }
  0x13   : > { %v672_v4 = vcombine.low %v260_v1, %v261_v2  ;;  %v875_v5 = vcombine.low %v262_v3, %v262_v3  ;;  %v674_v14 = vcombine.low %v260_v1, %v260_v1  ;;  %v675_v16 = vcombine.low %v261_v2, %v262_v3 }
  0x15   : > { %v273_v6 = vrot.slane %v672_v4, 5  ;;  %v281_v7 = vrot.slane %v672_v4, 2  ;;  %v274_v8 = vrot.slane %v875_v5, 5  ;;  %v282_v9 = vrot.slane %v875_v5, 2  ;;  %707 = vmatpush3.bf16.msra.mxu0 %v672_v4  ;;  %739 = vmatpush3.bf16.msra.mxu1 %v672_v4 }
  0x16   : > { %708 = vmatprep.subr.bf16.mxu0 %v812_v0  ;;  %733 = vmatprep.subr.bf16.mxu1 %v812_v0  ;;  %v292_v12 = vrot.slane %v672_v4, 7  ;;  %v293_v13 = vrot.slane %v875_v5, 7 }
  0x17   : > { %276 = vrot.lane.b32.xlu0 %v273_v6, %s813_s26  ;;  %284 = vrot.lane.b32.xlu1 %v281_v7, %s814_s27  ;;  %v275_v10 = vsel %vm272_vm0, %v273_v6, %v274_v8  ;;  %v283_v11 = vsel %vm280_vm1, %v281_v7, %v282_v9 }
  0x18   : > { %v294_v15 = vsel %vm291_vm2, %v292_v12, %v293_v13 }
  0x1b   : > { %278 = vrot.lane.b32.xlu0 %v275_v10, %s813_s26  ;;  %286 = vrot.lane.b32.xlu1 %v283_v11, %s814_s27 }
  0x1f   : > { %295 = vrot.lane.b32.xlu1 %v292_v12, %s815_s28  ;;  %288 = vrot.lane.b32.xlu0 %v282_v9, %s814_s27 }
  0x23   : > { %301 = vrot.lane.b32.xlu1 %v674_v14, %s817_s29  ;;  %297 = vrot.lane.b32.xlu0 %v294_v15, %s815_s28 }
  0x27   : > { %303 = vrot.lane.b32.xlu0 %v675_v16, %s817_s29  ;;  %364 = vperm.xlu1 %779, %v336_v17  }
  0x2b   : > { %339 = vperm.xlu0 %780, %v331_v19   ;;  %344 = vperm.xlu1 %779, %v332_v20  }
  0x2f   : > { %354 = vperm.xlu0 %780, %v334_v21   ;;  %349 = vperm.xlu1 %779, %v333_v22  }
  0x33   : > { %492 = vperm.xlu0 %780, %v464_v23   ;;  %359 = vperm.xlu1 %779, %v335_v24  }
  0x37   : > { %472 = vperm.xlu0 %780, %v460_v25   ;;  %467 = vperm.xlu1 %779, %v459_v26  }
  0x3b   : > { %482 = vperm.xlu0 %780, %v462_v27   ;;  %477 = vperm.xlu1 %779, %v461_v28  }
  0x3f   : > { %534 = vperm.xlu0 %780, %v506_v29   ;;  %487 = vperm.xlu1 %779, %v463_v30  }
  0x43   : > { %514 = vperm.xlu0 %780, %v502_v31   ;;  %509 = vperm.xlu1 %779, %v501_v32  }
  0x47   : > { %524 = vperm.xlu0 %780, %v504_v33   ;;  %519 = vperm.xlu1 %779, %v503_v34  }
  0x4b   : > { %529 = vperm.xlu1 %779, %v505_v35  }
  0x89   : > { %v277_v36 = vpop.permute.xlu0 %276  ;;  %v285_v37 = vpop.permute.xlu1 %284 }
  0x8a   : > { %v308_v38 = vsel %vm272_vm0, %v875_v5, %v277_v36 }
  0x8b   : > { %709 = vmatpush3.bf16.msra.mxu0 %v308_v38  ;;  %740 = vmatpush3.bf16.msra.mxu1 %v308_v38 }
  0x8c   : > { %710 = vmatprep.subr.bf16.mxu0 %v812_v0  ;;  %734 = vmatprep.subr.bf16.mxu1 %v812_v0 }
  0x8d   : > { %v279_v39 = vpop.permute.xlu0 %278  ;;  %v287_v40 = vpop.permute.xlu1 %286 }
  0x8e   : > { %v313_v41 = vsel %vm280_vm1, %v279_v39, %v285_v37 }
  0x8f   : > { %711 = vmatpush3.bf16.msra.mxu0 %v313_v41  ;;  %741 = vmatpush3.bf16.msra.mxu1 %v313_v41 }
  0x90   : > { %712 = vmatprep.subr.bf16.mxu0 %v812_v0  ;;  %735 = vmatprep.subr.bf16.mxu1 %v812_v0 }
  0x91   : > { %v296_v42 = vpop.permute.xlu1 %295  ;;  %v289_v43 = vpop.permute.xlu0 %288 }
  0x92   : > { %v318_v44 = vsel %vm291_vm2, %v289_v43, %v296_v42 }
  0x93   : > { %713 = vmatpush3.bf16.msra.mxu0 %v287_v40  ;;  %742 = vmatpush3.bf16.msra.mxu1 %v287_v40 }
  0x94   : > { %714 = vmatprep.subr.bf16.mxu0 %v812_v0  ;;  %736 = vmatprep.subr.bf16.mxu1 %v812_v0 }
  0x95   : > { %v302_v45 = vpop.permute.xlu1 %301  ;;  %v298_v46 = vpop.permute.xlu0 %297 }
  0x96   : > { %v323_v47 = vsel %vm320_vm4, %v298_v46, %v302_v45 }
  0x97   : > { %715 = vmatpush3.bf16.msra.mxu0 %v318_v44  ;;  %743 = vmatpush3.bf16.msra.mxu1 %v318_v44 }
  0x98   : > { %716 = vmatprep.subr.bf16.mxu0 %v812_v0  ;;  %737 = vmatprep.subr.bf16.mxu1 %v812_v0 }
  0x99   : > { %v304_v48 = vpop.permute.xlu0 %303 }
  0x9a   : > { %v394_v49 = vsel %vm392_vm5, %v304_v48, 0  ;;  %v576_v48 = vld [vmem:[%s972_s8 + $0x14] sm:$0x7] }
  0x9b   : > { %717 = vmatpush3.bf16.msra.mxu0 %v323_v47  ;;  %744 = vmatpush3.bf16.msra.mxu1 %v323_v47 }
  0x9c   : > { %718 = vmatprep.subr.bf16.mxu0 %v812_v0  ;;  %738 = vmatprep.subr.bf16.mxu1 %v812_v0 }
  0x9f   : > { %719 = vmatpush3.bf16.msra.mxu0 %v394_v49  ;;  %745 = vmatpush3.bf16.msra.mxu1 %v394_v49 }
  0xa2   : > { %721 = vmatmul.mubr.msk.bf16.vlgmr.msra.gmra.mrb[0].mxu0 %vm382_vm6, %v785_v50  ;;  %725 = vmatmul.mubr.msk.bf16.vlgmr.msra.gmra.mrb[0].mxu1 %vm382_vm6, %v786_v51 }
  0xa3   : > { %728 = vmatprep.mubr.msk.bf16.mxu1 %vm816_vm3, %v812_v0 }
  0xa6   : > { %v365_v53 = vpop.permute.xlu1 %364 }
  0xaa   : > { %729 = vmatmul.mubr.msk.bf16.gmra.mrb[4].mxu1 %vm382_vm6, %v787_v52  ;;  %v345_v54 = vpop.permute.xlu1 %344  ;;  %v340_v55 = vpop.permute.xlu0 %339 }
  0xae   : > { %v350_v56 = vpop.permute.xlu1 %349  ;;  %v355_v57 = vpop.permute.xlu0 %354 }
  0xb2   : > { %v360_v58 = vpop.permute.xlu1 %359  ;;  %v493_v59 = vpop.permute.xlu0 %492 }
  0xb6   : > { %v468_v60 = vpop.permute.xlu1 %467  ;;  %v473_v61 = vpop.permute.xlu0 %472 }
  0xba   : > { %v478_v62 = vpop.permute.xlu1 %477  ;;  %v483_v63 = vpop.permute.xlu0 %482 }
  0xbe   : > { %v488_v1 = vpop.permute.xlu1 %487  ;;  %v535_v2 = vpop.permute.xlu0 %534 }
  0xc2   : > { %v510_v3 = vpop.permute.xlu1 %509  ;;  %v515_v0 = vpop.permute.xlu0 %514 }
  0xc6   : > { %v520_v22 = vpop.permute.xlu1 %519  ;;  %v525_v27 = vpop.permute.xlu0 %524 }
  0xca   : > { %v530_v43 = vpop.permute.xlu1 %529 }
 0x175   : > { %v430_v4 = vpop.f32.mrb[0].mxu0  ;;  %v438_v5 = vpop.f32.mrb[0].mxu1 }
 0x176   : > { %v431_v6 = vadd.f32 %v430_v4, %v340_v55  ;;  %v439_v7 = vadd.f32 %v438_v5, %v350_v56  ;;  %v722_v8 = vpop.f32.mrb[1].mxu0  ;;  %v726_v9 = vpop.f32.mrb[1].mxu1 }
 0x177   : > { %v433_v10 = vpop.f32.mrb[2].mxu0  ;;  %v441_v11 = vpop.f32.mrb[2].mxu1 }
 0x178   : > { %v453_v12 = vmax.f32 %v431_v6, 0.0  ;;  %v455_v13 = vmax.f32 %v439_v7, 0.0  ;;  %v434_v14 = vadd.f32 %v433_v10, %v345_v54  ;;  %v442_v15 = vadd.f32 %v441_v11, %v355_v57  ;;  %v727_v16 = vpop.f32.mrb[3].mxu1  ;;  %v723_v17 = vpop.f32.mrb[3].mxu0 }
 0x17a   : > { %v495_v18 = vmul.f32 %v468_v60, %v453_v12  ;;  %v497_v19 = vmul.f32 %v478_v62, %v455_v13  ;;  %v454_v20 = vmax.f32 %v434_v14, 0.0  ;;  %v456_v21 = vmax.f32 %v442_v15, 0.0 }
 0x17c   : > { %v537_v23 = vadd.f32 %v510_v3, %v495_v18  ;;  %v539_v24 = vadd.f32 %v520_v22, %v497_v19  ;;  %v496_v25 = vmul.f32 %v473_v61, %v454_v20  ;;  %v498_v26 = vmul.f32 %v483_v63, %v456_v21 }
 0x17d   : > { %v446_v28 = vpop.f32.mrb[4].mxu1 }
 0x17e   : > { %v690_v29 = vpack.c.bf16 %v537_v23, %v537_v23  ;;  %v692_v30 = vpack.c.bf16 %v539_v24, %v539_v24  ;;  %v538_v31 = vadd.f32 %v515_v0, %v496_v25  ;;  %v540_v32 = vadd.f32 %v525_v27, %v498_v26  ;;  %v730_v33 = vpop.f32.mrb[5].mxu1 }
 0x17f   : > { %v447_v34 = vadd.f32 %v446_v28, %v360_v58  ;;  %v449_v35 = vpop.f32.mrb[6].mxu1 }
 0x180   : > { %568 = vst.msk [vmem:[%s972_s8] sm:$0xf] %vm567_vm7, %v690_v29  ;;  %570 = vst.msk [vmem:[%s972_s8 + $0x8] sm:$0xf] %vm567_vm7, %v692_v30  ;;  %v691_v36 = vpack.c.bf16 %v538_v31, %v538_v31  ;;  %v693_v37 = vpack.c.bf16 %v540_v32, %v540_v32  ;;  %v450_v38 = vadd.f32 %v449_v35, %v365_v53  ;;  %v731_v39 = vpop.f32.mrb[7].mxu1 }
 0x181   : > { %v457_v40 = vmax.f32 %v447_v34, 0.0 }
 0x182   : > { %569 = vst.msk [vmem:[%s972_s8 + $0x4] sm:$0xf] %vm567_vm7, %v691_v36  ;;  %571 = vst.msk [vmem:[%s972_s8 + $0xc] sm:$0xf] %vm567_vm7, %v693_v37  ;;  %v458_v41 = vmax.f32 %v450_v38, 0.0 }
 0x183   : > { %v499_v42 = vmul.f32 %v488_v1, %v457_v40 }
 0x184   : > { %v500_v44 = vmul.f32 %v493_v59, %v458_v41 }
 0x185   : > { %v541_v45 = vadd.f32 %v530_v43, %v499_v42 }
 0x186   : > { %v542_v46 = vadd.f32 %v535_v2, %v500_v44 }
 0x187   : > { %v694_v47 = vpack.c.bf16 %v541_v45, %v541_v45 }
 0x188   : > { %v695_v49 = vpack.c.bf16 %v542_v46, %v542_v46 }
 0x189   : > { %572 = vst.msk [vmem:[%s972_s8 + $0x10] sm:$0xf] %vm567_vm7, %v694_v47 }
 0x18a   : > { %v577_v50 = vsel %vm575_vm10, %v695_v49, %v576_v48 }
 0x18b   : > { %578 = vst [vmem:[%s972_s8 + $0x14] sm:$0x7] %v577_v50 }
 0x18c PF: > { %s15_s20 = sadd.s32 1, %s810_s20   ;;  %s1001_s18 = smov %s806_s19 }
 0x18d   : > { %p12_p5 = scmp.ge.s32.totalorder %s15_s20, 4   ;;  %s1002_s19 = smov %s1004_s21 }
 0x18f   :  { %14 = sbr.rel (!%p12_p5) target bundleno = 2 (0x2), region = 70 }

// kernel: utime_forward.31
= control target key start
LH: loop header
LB: loop body
LE: loop exit
PB: predicated region body
PF: predicated region fallthrough
CT: control target
= control target key end

     0   :  { %s914_s18 = smov 0   ;;  %s916_s19 = smov 0   ;;  %s1111_s0 = inlined_call_operand.vmem [shape: bf16[2,1,45,16], index: 0, kind: input, shape index: {}]   ;;  %s1112_s1 = inlined_call_operand.vmem [shape: bf16[45,225], index: 1, kind: input, shape index: {}]   ;;  %s1113_s2 = inlined_call_operand.vmem [shape: f32[45,1], index: 2, kind: input, shape index: {}]   ;;  %s1114_s3 = inlined_call_operand.vmem [shape: f32[45,1], index: 3, kind: input, shape index: {}]   ;;  %s1115_s4 = inlined_call_operand.vmem [shape: f32[45,1], index: 4, kind: input, shape index: {}]   ;;  %s1116_s5 = inlined_call_operand.vmem [shape: bf16[2,45,8], index: 5, kind: output, shape index: {}]  }
   0x1   :  { %s918_s20 = smov 0  }
   0x2 LB: > { %s27_s21 = sadd.s32 1, %s873_s19  ;;  %p752_p0 = scmp.ge.s32.totalorder %s877_s20, 1  ;;  %s877_s20 = sphi %s918_s20, %s15_s20   ;;  %s873_s19 = sphi %s916_s19, %s1118_s19   ;;  %s869_s18 = sphi %s914_s18, %s1117_s18  }
   0x3   : > { %p29_p1 = scmp.ge.s32.totalorder %s27_s21, 2  ;;  %p207_p2 = scmp.lt.s32.totalorder %s877_s20, 3 }
   0x5   : > { %s1120_s21 = smov (%p29_p1, %s27_s21), 0  ;;  %p208_p3 = pnand %p752_p0, %p207_p2 }
   0x6   : > { %p242_p4 = scmp.lt.s32.totalorder (!%p208_p3), %s869_s18, 1  ;;  %v879_v0 = vmov (!%p208_p3), 0   ;;  %vm284_vm0 = vsmask.f32 (!%p208_p3), 6400  ;;  %s880_s26 = smov (!%p208_p3), 126   ;;  %vm322_vm1 = vcmask (!%p208_p3), 1044480  }
   0x7   : > { %211 = sbr.rel (%p208_p3) target bundleno = 426 (0x1aa), region = 40  ;;  %479 = vmatprep.subr.bf16.mxu0 (!%p208_p3), %v879_v0  ;;  %781 = vmatprep.subr.bf16.mxu1 (!%p208_p3), %v879_v0  ;;  %s881_s27 = smov (!%p208_p3), 124   ;;  %vm339_vm2 = vsmask.f32 (!%p208_p3), 3328  ;;  %vm362_vm3 = vcmask (!%p208_p3), 1041408   ;;  %vm463_vm4 = vcmask (!%p208_p3), 793600  }
   0x8   : > { %842 = vset.pattern.permute.xlu1 (!%p208_p3), %v879_v0  ;;  %841 = vset.pattern.permute.xlu0 (!%p208_p3), %v879_v0  ;;  %s882_s28 = smov (!%p208_p3), 122   ;;  %s883_s29 = smov (!%p208_p3), 120   ;;  %v848_v42 = vld [vmem:[%s1112_s1 + $0x4] ss:$8 sps:$4 sm:$0xff] (!%p208_p3)   ;;  %v851_v43 = vld [vmem:[%s1112_s1 + $0x14] ss:$8 sps:$4 sm:$0xff] (!%p208_p3)  }
   0x9   : > { %764 = vmatprep.mubr.msk.bf16.mxu0 (!%p208_p3), %vm463_vm4, %v848_v42  ;;  %765 = vmatprep.mubr.msk.bf16.mxu1 (!%p208_p3), %vm463_vm4, %v851_v43  ;;  %v400_v44 = vld [vmem:[%s1113_s2] sm:$0xff] (!%p208_p3)  ;;  %v405_v45 = vld [vmem:[%s1113_s2 + $0x28] sm:$0x1f] (!%p208_p3)  ;;  %v402_v47 = vld [vmem:[%s1113_s2 + $0x10] sm:$0xff] (!%p208_p3)  ;;  %vm378_vm5 = vcmask (!%p208_p3), 1046528   ;;  %vm386_vm7 = vcmask (!%p208_p3), 1043456  }
   0xa   : > { %v401_v46 = vld [vmem:[%s1113_s2 + $0x8] sm:$0xff] (!%p208_p3)  ;;  %v403_v48 = vld [vmem:[%s1113_s2 + $0x18] sm:$0xff] (!%p208_p3)  ;;  %v404_v49 = vld [vmem:[%s1113_s2 + $0x20] sm:$0xff] (!%p208_p3)  ;;  %vm473_vm9 = vcmask (!%p208_p3), 1040384   ;;  %vm650_vm10 = vcmask (!%p208_p3), 60416   ;;  %vm656_vm11 = vcmask (!%p208_p3), 59392  }
   0xb   : > { %v547_v50 = vld [vmem:[%s1114_s3 + $0x28] sm:$0x1f] (!%p208_p3)  ;;  %v542_v51 = vld [vmem:[%s1114_s3] sm:$0xff] (!%p208_p3)  ;;  %v544_v53 = vld [vmem:[%s1114_s3 + $0x10] sm:$0xff] (!%p208_p3)  ;;  %vm657_vm12 = vsmask.f32 (!%p208_p3), 2304 }
   0xc   : > { %v543_v52 = vld [vmem:[%s1114_s3 + $0x8] sm:$0xff] (!%p208_p3)  ;;  %v545_v54 = vld [vmem:[%s1114_s3 + $0x18] sm:$0xff] (!%p208_p3)  ;;  %v546_v55 = vld [vmem:[%s1114_s3 + $0x20] sm:$0xff] (!%p208_p3) }
   0xd   : > { %v589_v56 = vld [vmem:[%s1115_s4 + $0x28] sm:$0x1f] (!%p208_p3)  ;;  %v584_v57 = vld [vmem:[%s1115_s4] sm:$0xff] (!%p208_p3)  ;;  %v586_v59 = vld [vmem:[%s1115_s4 + $0x10] sm:$0xff] (!%p208_p3) }
   0xe   : > { %s1122_s18 = smov (!%p242_p4, %s869_s18), 1  ;;  %v585_v58 = vld [vmem:[%s1115_s4 + $0x8] sm:$0xff]  ;;  %v587_v60 = vld [vmem:[%s1115_s4 + $0x18] sm:$0xff]  ;;  %v588_v61 = vld [vmem:[%s1115_s4 + $0x20] sm:$0xff] }
   0xf   : > { %s811_s22 = smul.u32 24, %s1122_s18  ;;  %vm379_vm6 = vmand %vm378_vm5, %vm284_vm0 }
  0x10   : > { %vm387_vm8 = vmand %vm386_vm7, %vm339_vm2 }
  0x11   : > { %s250_s25 = scalar_lea.vmem %s1111_s0, %s811_s22  ;;  %s1088_s15 = scalar_lea.vmem %s1116_s5, %s811_s22  ;;  %vm658_vm13 = vmand %vm656_vm11, %vm657_vm12 }
  0x12   : > { %v944_v1 = vld [vmem:[%s250_s25] sm:$0xff]   ;;  %v946_v2 = vld [vmem:[%s250_s25 + $0x8] sm:$0xff]   ;;  %v954_v7 = vld [vmem:[%s250_s25 + $0x10] sm:$0x7f]  }
  0x13   : > { %v286_v3 = vshrl.u32 %v944_v1, 16  ;;  %v289_v4 = vshll.u32 %v944_v1, 16  ;;  %480 = vmatpush1.bf16.msra.mxu0 %v944_v1  ;;  %796 = vmatpush1.bf16.msra.mxu1 %v944_v1  ;;  %v294_v5 = vshrl.u32 %v946_v2, 16  ;;  %v297_v6 = vshll.u32 %v946_v2, 16 }
  0x14   : > { %481 = vmatprep.subr.bf16.mxu0 %v879_v0  ;;  %782 = vmatprep.subr.bf16.mxu1 %v879_v0  ;;  %v303_v12 = vshrl.u32 %v954_v7, 16  ;;  %v306_v13 = vshll.u32 %v954_v7, 16  ;;  %v323_v21 = vrot.slane %v944_v1, 3  ;;  %v324_v22 = vrot.slane %v946_v2, 3 }
  0x15   : > { %v288_v8 = vrot.slane %v286_v3, 1  ;;  %v291_v9 = vrot.slane %v289_v4, 2  ;;  %v296_v10 = vrot.slane %v294_v5, 1  ;;  %v299_v11 = vrot.slane %v297_v6, 2 }
  0x16   : > { %v305_v16 = vrot.slane %v303_v12, 1  ;;  %v308_v17 = vrot.slane %v306_v13, 2  ;;  %v326_v23 = vrot.slane %v954_v7, 3  ;;  %v325_v24 = vsel %vm322_vm1, %v323_v21, %v324_v22 }
  0x17   : > { %v292_v14 = vor.u32 %v291_v9, %v288_v8  ;;  %482 = vmatpush1.bf16.msra.mxu0 %v946_v2  ;;  %797 = vmatpush1.bf16.msra.mxu1 %v946_v2  ;;  %v300_v15 = vor.u32 %v299_v11, %v296_v10  ;;  %v340_v25 = vrot.slane %v286_v3, 4  ;;  %v341_v26 = vrot.slane %v289_v4, 5 }
  0x18   : > { %483 = vmatprep.subr.bf16.mxu0 %v879_v0  ;;  %783 = vmatprep.subr.bf16.mxu1 %v879_v0  ;;  %v309_v19 = vor.u32 %v308_v17, %v305_v16  ;;  %v343_v27 = vrot.slane %v294_v5, 4  ;;  %v327_v28 = vsel %vm322_vm1, %v324_v22, %v326_v23  ;;  %v344_v29 = vrot.slane %v297_v6, 5  ;;  %v849_v22 = vld [vmem:[%s1112_s1 + $0x10] ss:$8 sps:$4 sm:$0xff]  }
  0x19   : > { %311 = vrot.lane.b32.xlu0 %v292_v14, %s880_s26  ;;  %v301_v18 = vsel %vm284_vm0, %v292_v14, %v300_v15  ;;  %v347_v30 = vrot.slane %v303_v12, 4  ;;  %v348_v31 = vrot.slane %v306_v13, 5  ;;  %v342_v32 = vor.u32 %v341_v26, %v340_v25 }
  0x1a   : > { %v310_v20 = vsel %vm284_vm0, %v300_v15, %v309_v19  ;;  %v345_v33 = vor.u32 %v344_v29, %v343_v27  ;;  %v363_v37 = vrot.slane %v944_v1, 6  ;;  %v364_v38 = vrot.slane %v946_v2, 6 }
  0x1b   : > { %315 = vrot.lane.b32.xlu1 %v310_v20, %s880_s26  ;;  %v349_v34 = vor.u32 %v348_v31, %v347_v30  ;;  %v366_v39 = vrot.slane %v954_v7, 6 }
  0x1c   : > { %v346_v35 = vsel %vm339_vm2, %v342_v32, %v345_v33  ;;  %v365_v40 = vsel %vm362_vm3, %v363_v37, %v364_v38 }
  0x1d   : > { %313 = vrot.lane.b32.xlu0 %v301_v18, %s880_s26  ;;  %v350_v36 = vsel %vm339_vm2, %v345_v33, %v349_v34  ;;  %v367_v41 = vsel %vm362_vm3, %v364_v38, %v366_v39  ;;  %v475_v18 = vsel %vm473_vm9, 65535, %v879_v0 }
  0x1f   : > { %317 = vrot.lane.b32.xlu1 %v309_v19, %s880_s26 }
  0x21   : > { %328 = vrot.lane.b32.xlu0 %v323_v21, %s881_s27  ;;  %v846_v21 = vld [vmem:[%s1112_s1] ss:$8 sps:$4 sm:$0xff]  }
  0x23   : > { %330 = vrot.lane.b32.xlu1 %v325_v24, %s881_s27 }
  0x25   : > { %332 = vrot.lane.b32.xlu0 %v327_v28, %s881_s27 }
  0x27   : > { %334 = vrot.lane.b32.xlu1 %v326_v23, %s881_s27  ;;  %v852_v23 = vld [vmem:[%s1112_s1 + $0x24] ss:$8 sps:$4 sm:$0x7f]  }
  0x29   : > { %351 = vrot.lane.b32.xlu0 %v342_v32, %s882_s28 }
  0x2b   : > { %353 = vrot.lane.b32.xlu1 %v346_v35, %s882_s28 }
  0x2d   : > { %355 = vrot.lane.b32.xlu0 %v350_v36, %s882_s28 }
  0x2f   : > { %357 = vrot.lane.b32.xlu1 %v349_v34, %s882_s28 }
  0x31   : > { %368 = vrot.lane.b32.xlu0 %v363_v37, %s883_s29 }
  0x33   : > { %370 = vrot.lane.b32.xlu1 %v365_v40, %s883_s29 }
  0x35   : > { %372 = vrot.lane.b32.xlu0 %v367_v41, %s883_s29 }
  0x37   : > { %374 = vrot.lane.b32.xlu1 %v366_v39, %s883_s29 }
  0x39   : > { %433 = vperm.xlu0 %841, %v405_v45  }
  0x3b   : > { %408 = vperm.xlu1 %842, %v400_v44  }
  0x3d   : > { %418 = vperm.xlu0 %841, %v402_v47  }
  0x3f   : > { %413 = vperm.xlu1 %842, %v401_v46  }
  0x41   : > { %428 = vperm.xlu0 %841, %v404_v49  }
  0x43   : > { %423 = vperm.xlu1 %842, %v403_v48  }
  0x45   : > { %550 = vperm.xlu0 %841, %v542_v51  }
  0x47   : > { %575 = vperm.xlu1 %842, %v547_v50  }
  0x49   : > { %560 = vperm.xlu0 %841, %v544_v53  }
  0x4b   : > { %555 = vperm.xlu1 %842, %v543_v52  }
  0x4d   : > { %570 = vperm.xlu0 %841, %v546_v55  }
  0x4f   : > { %565 = vperm.xlu1 %842, %v545_v54  }
  0x51   : > { %592 = vperm.xlu0 %841, %v584_v57  }
  0x53   : > { %617 = vperm.xlu1 %842, %v589_v56  }
  0x55   : > { %602 = vperm.xlu0 %841, %v586_v59  }
  0x57   : > { %597 = vperm.xlu1 %842, %v585_v58  }
  0x59   : > { %612 = vperm.xlu0 %841, %v588_v61  }
  0x5b   : > { %607 = vperm.xlu1 %842, %v587_v60  }
  0x8b   : > { %v312_v62 = vpop.permute.xlu0 %311 }
  0x8c   : > { %v380_v63 = vsel %vm379_vm6, %v954_v7, %v312_v62 }
  0x8d   : > { %484 = vmatpush1.bf16.msra.mxu0 %v380_v63  ;;  %798 = vmatpush1.bf16.msra.mxu1 %v380_v63  ;;  %v316_v2 = vpop.permute.xlu1 %315 }
  0x8e   : > { %485 = vmatprep.subr.bf16.mxu0 %v879_v0  ;;  %784 = vmatprep.subr.bf16.mxu1 %v879_v0 }
  0x8f   : > { %v314_v1 = vpop.permute.xlu0 %313 }
  0x91   : > { %486 = vmatpush1.bf16.msra.mxu0 %v314_v1  ;;  %799 = vmatpush1.bf16.msra.mxu1 %v314_v1  ;;  %v318_v3 = vpop.permute.xlu1 %317 }
  0x92   : > { %487 = vmatprep.subr.bf16.mxu0 %v879_v0  ;;  %785 = vmatprep.subr.bf16.mxu1 %v879_v0 }
  0x93   : > { %v329_v4 = vpop.permute.xlu0 %328 }
  0x94   : > { %v384_v5 = vsel %vm322_vm1, %v318_v3, %v329_v4 }
  0x95   : > { %488 = vmatpush1.bf16.msra.mxu0 %v316_v2  ;;  %800 = vmatpush1.bf16.msra.mxu1 %v316_v2  ;;  %v331_v7 = vpop.permute.xlu1 %330 }
  0x96   : > { %489 = vmatprep.subr.bf16.mxu0 %v879_v0  ;;  %786 = vmatprep.subr.bf16.mxu1 %v879_v0 }
  0x97   : > { %v333_v6 = vpop.permute.xlu0 %332 }
  0x99   : > { %490 = vmatpush1.bf16.msra.mxu0 %v384_v5  ;;  %801 = vmatpush1.bf16.msra.mxu1 %v384_v5  ;;  %v335_v8 = vpop.permute.xlu1 %334 }
  0x9a   : > { %491 = vmatprep.subr.bf16.mxu0 %v879_v0  ;;  %787 = vmatprep.subr.bf16.mxu1 %v879_v0 }
  0x9b   : > { %v352_v9 = vpop.permute.xlu0 %351 }
  0x9c   : > { %v388_v10 = vsel %vm387_vm8, %v335_v8, %v352_v9 }
  0x9d   : > { %492 = vmatpush1.bf16.msra.mxu0 %v331_v7  ;;  %802 = vmatpush1.bf16.msra.mxu1 %v331_v7  ;;  %v354_v12 = vpop.permute.xlu1 %353 }
  0x9e   : > { %493 = vmatprep.subr.bf16.mxu0 %v879_v0  ;;  %788 = vmatprep.subr.bf16.mxu1 %v879_v0 }
  0x9f   : > { %v356_v11 = vpop.permute.xlu0 %355 }
  0xa1   : > { %494 = vmatpush1.bf16.msra.mxu0 %v333_v6  ;;  %803 = vmatpush1.bf16.msra.mxu1 %v333_v6  ;;  %v358_v13 = vpop.permute.xlu1 %357 }
  0xa2   : > { %495 = vmatprep.subr.bf16.mxu0 %v879_v0  ;;  %789 = vmatprep.subr.bf16.mxu1 %v879_v0 }
  0xa3   : > { %v369_v14 = vpop.permute.xlu0 %368 }
  0xa4   : > { %v392_v15 = vsel %vm362_vm3, %v358_v13, %v369_v14 }
  0xa5   : > { %496 = vmatpush1.bf16.msra.mxu0 %v388_v10  ;;  %804 = vmatpush1.bf16.msra.mxu1 %v388_v10  ;;  %v371_v16 = vpop.permute.xlu1 %370 }
  0xa6   : > { %497 = vmatprep.subr.bf16.mxu0 %v879_v0  ;;  %790 = vmatprep.subr.bf16.mxu1 %v879_v0 }
  0xa7   : > { %v373_v17 = vpop.permute.xlu0 %372 }
  0xa9   : > { %498 = vmatpush1.bf16.msra.mxu0 %v354_v12  ;;  %805 = vmatpush1.bf16.msra.mxu1 %v354_v12  ;;  %v375_v19 = vpop.permute.xlu1 %374 }
  0xaa   : > { %499 = vmatprep.subr.bf16.mxu0 %v879_v0  ;;  %791 = vmatprep.subr.bf16.mxu1 %v879_v0  ;;  %v477_v20 = vand.u32 %v475_v18, %v375_v19 }
  0xad   : > { %500 = vmatpush1.bf16.msra.mxu0 %v356_v11  ;;  %806 = vmatpush1.bf16.msra.mxu1 %v356_v11 }
  0xae   : > { %501 = vmatprep.subr.bf16.mxu0 %v879_v0  ;;  %792 = vmatprep.subr.bf16.mxu1 %v879_v0 }
  0xb1   : > { %502 = vmatpush1.bf16.msra.mxu0 %v392_v15  ;;  %807 = vmatpush1.bf16.msra.mxu1 %v392_v15 }
  0xb2   : > { %503 = vmatprep.subr.bf16.mxu0 %v879_v0  ;;  %793 = vmatprep.subr.bf16.mxu1 %v879_v0 }
  0xb5   : > { %504 = vmatpush1.bf16.msra.mxu0 %v371_v16  ;;  %808 = vmatpush1.bf16.msra.mxu1 %v371_v16 }
  0xb6   : > { %505 = vmatprep.subr.bf16.mxu0 %v879_v0  ;;  %794 = vmatprep.subr.bf16.mxu1 %v879_v0 }
  0xb8   : > { %v434_v25 = vpop.permute.xlu0 %433 }
  0xb9   : > { %506 = vmatpush1.bf16.msra.mxu0 %v373_v17  ;;  %809 = vmatpush1.bf16.msra.mxu1 %v373_v17 }
  0xba   : > { %507 = vmatprep.subr.bf16.mxu0 %v879_v0  ;;  %795 = vmatprep.subr.bf16.mxu1 %v879_v0  ;;  %v854_v0 = vld [vmem:[%s1112_s1 + $0x20] ss:$8 sps:$4 sm:$0x7f]   ;;  %v409_v24 = vpop.permute.xlu1 %408 }
  0xbc   : > { %v419_v27 = vpop.permute.xlu0 %418 }
  0xbd   : > { %508 = vmatpush1.bf16.msra.mxu0 %v477_v20  ;;  %810 = vmatpush1.bf16.msra.mxu1 %v477_v20  ;;  %v659_v20 = vld [vmem:[%s1088_s15 + $0x14] sm:$0x7] }
  0xbe   : > { %v414_v26 = vpop.permute.xlu1 %413 }
  0xc0   : > { %512 = vmatmul.mubr.bf16.vlgmr.msra.gmra.mrb[0].mxu0 %v846_v21  ;;  %520 = vmatmul.mubr.bf16.vlgmr.msra.gmra.mrb[0].mxu1 %v849_v22  ;;  %v429_v29 = vpop.permute.xlu0 %428 }
  0xc1   : > { %766 = vmatprep.mubr.msk.bf16.mxu1 %vm463_vm4, %v852_v23 }
  0xc2   : > { %v424_v28 = vpop.permute.xlu1 %423 }
  0xc4   : > { %v551_v31 = vpop.permute.xlu0 %550 }
  0xc6   : > { %v576_v30 = vpop.permute.xlu1 %575 }
  0xc8   : > { %528 = vmatmul.mubr.bf16.gmra.mrb[4].mxu1 %v854_v0  ;;  %v561_v33 = vpop.permute.xlu0 %560 }
  0xca   : > { %v556_v32 = vpop.permute.xlu1 %555 }
  0xcc   : > { %v571_v35 = vpop.permute.xlu0 %570 }
  0xce   : > { %v566_v34 = vpop.permute.xlu1 %565 }
  0xd0   : > { %v593_v37 = vpop.permute.xlu0 %592 }
  0xd2   : > { %v618_v36 = vpop.permute.xlu1 %617 }
  0xd4   : > { %v603_v57 = vpop.permute.xlu0 %602 }
  0xd6   : > { %v598_v38 = vpop.permute.xlu1 %597 }
  0xd8   : > { %v613_v15 = vpop.permute.xlu0 %612 }
  0xda   : > { %v608_v62 = vpop.permute.xlu1 %607 }
 0x193   : > { %v513_v39 = vpop.f32.mrb[0].mxu0  ;;  %v521_v40 = vpop.f32.mrb[0].mxu1 }
 0x194   : > { %v514_v41 = vadd.f32 %v513_v39, %v409_v24  ;;  %v522_v42 = vadd.f32 %v521_v40, %v419_v27  ;;  %v515_v43 = vpop.f32.mrb[1].mxu0  ;;  %v523_v44 = vpop.f32.mrb[1].mxu1 }
 0x195   : > { %v516_v45 = vpop.f32.mrb[2].mxu0  ;;  %v524_v46 = vpop.f32.mrb[2].mxu1 }
 0x196   : > { %v536_v47 = vmax.f32 %v514_v41, 0.0  ;;  %v538_v48 = vmax.f32 %v522_v42, 0.0  ;;  %v517_v49 = vadd.f32 %v516_v45, %v414_v26  ;;  %v525_v50 = vadd.f32 %v524_v46, %v424_v28  ;;  %v526_v51 = vpop.f32.mrb[3].mxu1  ;;  %v518_v52 = vpop.f32.mrb[3].mxu0 }
 0x198   : > { %v578_v53 = vmul.f32 %v551_v31, %v536_v47  ;;  %v580_v54 = vmul.f32 %v561_v33, %v538_v48  ;;  %v537_v55 = vmax.f32 %v517_v49, 0.0  ;;  %v539_v56 = vmax.f32 %v525_v50, 0.0 }
 0x19a   : > { %v620_v58 = vadd.f32 %v593_v37, %v578_v53  ;;  %v622_v59 = vadd.f32 %v603_v57, %v580_v54  ;;  %v579_v60 = vmul.f32 %v556_v32, %v537_v55  ;;  %v581_v61 = vmul.f32 %v566_v34, %v539_v56 }
 0x19b   : > { %v529_v63 = vpop.f32.mrb[4].mxu1 }
 0x19c   : > { %v775_v1 = vpack.c.bf16 %v620_v58, %v620_v58  ;;  %v777_v2 = vpack.c.bf16 %v622_v59, %v622_v59  ;;  %v621_v3 = vadd.f32 %v598_v38, %v579_v60  ;;  %v623_v4 = vadd.f32 %v608_v62, %v581_v61  ;;  %v531_v5 = vpop.f32.mrb[5].mxu1 }
 0x19d   : > { %v530_v6 = vadd.f32 %v529_v63, %v429_v29  ;;  %v532_v7 = vpop.f32.mrb[6].mxu1 }
 0x19e   : > { %651 = vst.msk [vmem:[%s1088_s15] sm:$0xf] %vm650_vm10, %v775_v1  ;;  %653 = vst.msk [vmem:[%s1088_s15 + $0x8] sm:$0xf] %vm650_vm10, %v777_v2  ;;  %v776_v8 = vpack.c.bf16 %v621_v3, %v621_v3  ;;  %v778_v9 = vpack.c.bf16 %v623_v4, %v623_v4  ;;  %v533_v10 = vadd.f32 %v532_v7, %v434_v25  ;;  %v534_v11 = vpop.f32.mrb[7].mxu1 }
 0x19f   : > { %v540_v12 = vmax.f32 %v530_v6, 0.0 }
 0x1a0   : > { %652 = vst.msk [vmem:[%s1088_s15 + $0x4] sm:$0xf] %vm650_vm10, %v776_v8  ;;  %654 = vst.msk [vmem:[%s1088_s15 + $0xc] sm:$0xf] %vm650_vm10, %v778_v9  ;;  %v541_v13 = vmax.f32 %v533_v10, 0.0 }
 0x1a1   : > { %v582_v14 = vmul.f32 %v571_v35, %v540_v12 }
 0x1a2   : > { %v583_v16 = vmul.f32 %v576_v30, %v541_v13 }
 0x1a3   : > { %v624_v17 = vadd.f32 %v613_v15, %v582_v14 }
 0x1a4   : > { %v625_v18 = vadd.f32 %v618_v36, %v583_v16 }
 0x1a5   : > { %v779_v19 = vpack.c.bf16 %v624_v17, %v624_v17 }
 0x1a6   : > { %v780_v21 = vpack.c.bf16 %v625_v18, %v625_v18 }
 0x1a7   : > { %655 = vst.msk [vmem:[%s1088_s15 + $0x10] sm:$0xf] %vm650_vm10, %v779_v19 }
 0x1a8   : > { %v660_v22 = vsel %vm658_vm13, %v780_v21, %v659_v20 }
 0x1a9   : > { %661 = vst [vmem:[%s1088_s15 + $0x14] sm:$0x7] %v660_v22 }
 0x1aa PF: > { %s15_s20 = sadd.s32 1, %s877_s20   ;;  %s1117_s18 = smov %s873_s19 }
 0x1ab   : > { %p12_p5 = scmp.ge.s32.totalorder %s15_s20, 4   ;;  %s1118_s19 = smov %s1120_s21 }
 0x1ad   :  { %14 = sbr.rel (!%p12_p5) target bundleno = 2 (0x2), region = 70 }

// kernel: utime_forward.32
= control target key start
LH: loop header
LB: loop body
LE: loop exit
PB: predicated region body
PF: predicated region fallthrough
CT: control target
= control target key end

     0   :  { %s372_s6 = smov 0   ;;  %s374_s7 = smov 0   ;;  %s433_s0 = inlined_call_operand.vmem [shape: bf16[2,2,45,4], index: 0, kind: input, shape index: {}]   ;;  %s434_s1 = inlined_call_operand.vmem [shape: bf16[2,45,4], index: 1, kind: output, shape index: {}]  }
   0x1   :  { %s376_s8 = smov 0  }
   0x2 LB: > { %s295_s9 = sadd.s32 4294967295, %s360_s8   ;;  %s389_s10 = sadd.s32 1, %s360_s8   ;;  %s360_s8 = sphi %s376_s8, %s437_s8   ;;  %s356_s7 = sphi %s374_s7, %s436_s7   ;;  %s352_s6 = sphi %s372_s6, %s435_s6  }
   0x3   : > { %s15_s11 = ssub.s32 %s360_s8, %s389_s10  ;;  %s18_s12 = sadd.s32 1, %s356_s7 }
   0x4   : > { %p16_p0 = scmp.eq.s32.totalorder %s15_s11, 0  ;;  %p25_p1 = scmp.ne.s32.totalorder %s356_s7, %s352_s6 }
   0x5   : > { %p26_p2 = scmp.eq.s32.totalorder %s360_s8, 0  ;;  %p298_p4 = scmp.ge.s32.totalorder %s360_s8, 2 }
   0x6   : > { %s398_s13 = scalar_select %p16_p0, %s356_s7, %s18_s12  }
   0x7   : > { %p27_p3 = por %p26_p2, %p25_p1  ;;  %77 = sbr.rel (%p298_p4) target bundleno = 22 (0x16), region = 16 }
   0xe   : > { %80 = sbr.rel (!%p27_p3) target bundleno = 22 (0x16), region = 20  ;;  %s82_s14 = sand.u32 (%p27_p3), 1, %s356_s7  }
   0xf   : > { %s311_s15 = smul.u32 (%p27_p3), 24, %s360_s8 }
  0x10   : > { %s310_s16 = smul.u32 (%p27_p3), 48, %s82_s14 }
  0x11   : > { %s87_s19 = scalar_lea.vmem (%p27_p3), %s433_s0, %s311_s15 }
  0x12   : > { %v103_v0 = vld [vmem:[%s87_s19] sm:$0xff] (%p27_p3)   ;;  %v107_v1 = vld [vmem:[%s87_s19 + $0x8] sm:$0xff] (%p27_p3)   ;;  %v111_v2 = vld [vmem:[%s87_s19 + $0x10] sm:$0xff] (%p27_p3)   ;;  %s84_s20 = scalar_lea.vmem (%p27_p3), [#allocation2], %s310_s16 }
  0x13   : > { %104 = vst [vmem:[%s84_s20] sm:$0xff] (%p27_p3), %v103_v0   ;;  %108 = vst [vmem:[%s84_s20 + $0x8] sm:$0xff] (%p27_p3), %v107_v1   ;;  %v115_v3 = vld [vmem:[%s87_s19 + $0x30] sm:$0xff] (%p27_p3)   ;;  %v119_v4 = vld [vmem:[%s87_s19 + $0x38] sm:$0xff] (%p27_p3)  }
  0x14   : > { %112 = vst [vmem:[%s84_s20 + $0x10] sm:$0xff] (%p27_p3), %v111_v2   ;;  %v123_v5 = vld [vmem:[%s87_s19 + $0x40] sm:$0xff] (%p27_p3)   ;;  %116 = vst [vmem:[%s84_s20 + $0x18] sm:$0xff] (%p27_p3), %v115_v3  }
  0x15   : > { %120 = vst [vmem:[%s84_s20 + $0x20] sm:$0xff] %v119_v4   ;;  %124 = vst [vmem:[%s84_s20 + $0x28] sm:$0xff] %v123_v5  }
  0x16 PF: > { %p300_p5 = scmp.ge.s32.totalorder %s360_s8, 1  ;;  %p172_p6 = scmp.lt.s32.totalorder %s360_s8, 3 }
  0x18   : > { %p173_p7 = pnand %p300_p5, %p172_p6 }
  0x19   : > { %s179_s21 = sand.u32 (!%p173_p7), 1, %s352_s6   ;;  %p198_p8 = scmp.lt.s32.totalorder (!%p173_p7), %s295_s9, 1  ;;  %vm222_vm0 = vcmask (!%p173_p7), 27648   ;;  %vm229_vm1 = vsmask.f32 (!%p173_p7), 2304  ;;  %vm228_vm2 = vcmask (!%p173_p7), 26624  }
  0x1a   : > { %176 = sbr.rel (%p173_p7) target bundleno = 40 (0x28), region = 61  ;;  %vm230_vm3 = vmand (!%p173_p7), %vm228_vm2, %vm229_vm1 }
  0x1b   : > { %s312_s22 = smul.u32 (!%p173_p7), 48, %s179_s21 }
  0x1d   : > { %s181_s24 = scalar_lea.vmem (!%p173_p7), [#allocation2], %s312_s22 }
  0x1e   : > { %v203_v6 = vld [vmem:[%s181_s24] sm:$0xf] (!%p173_p7)  ;;  %v302_v7 = vld [vmem:[%s181_s24 + $0x18] sm:$0xf] (!%p173_p7)  ;;  %v204_v9 = vld [vmem:[%s181_s24 + $0x4] sm:$0xf] (!%p173_p7) }
  0x1f   : > { %v216_v8 = vmax.bf16 (!%p173_p7), %v302_v7, %v203_v6  ;;  %v303_v10 = vld [vmem:[%s181_s24 + $0x1c] sm:$0xf] (!%p173_p7)  ;;  %v205_v11 = vld [vmem:[%s181_s24 + $0x8] sm:$0xf] (!%p173_p7)  ;;  %v304_v13 = vld [vmem:[%s181_s24 + $0x20] sm:$0xf] (!%p173_p7) }
  0x20   : > { %v217_v12 = vmax.bf16 (!%p173_p7), %v303_v10, %v204_v9  ;;  %v206_v14 = vld [vmem:[%s181_s24 + $0xc] sm:$0xf] (!%p173_p7)  ;;  %v305_v15 = vld [vmem:[%s181_s24 + $0x24] sm:$0xf] (!%p173_p7)  ;;  %v218_v16 = vmax.bf16 (!%p173_p7), %v304_v13, %v205_v11  ;;  %v207_v18 = vld [vmem:[%s181_s24 + $0x10] sm:$0xf] (!%p173_p7) }
  0x21   : > { %s439_s9 = smov (!%p198_p8, %s295_s9), 1  ;;  %v219_v17 = vmax.bf16 %v305_v15, %v206_v14  ;;  %v306_v19 = vld [vmem:[%s181_s24 + $0x28] sm:$0xf]  ;;  %v208_v20 = vld [vmem:[%s181_s24 + $0x14] sm:$0x7] }
  0x22   : > { %s313_s23 = smul.u32 24, %s439_s9  ;;  %v220_v21 = vmax.bf16 %v306_v19, %v207_v18  ;;  %v307_v22 = vld [vmem:[%s181_s24 + $0x2c] sm:$0x7] }
  0x23   : > { %v221_v24 = vmax.bf16 %v307_v22, %v208_v20 }
  0x24   : > { %s202_s27 = scalar_lea.vmem %s434_s1, %s313_s23 }
  0x25   : > { %223 = vst.msk [vmem:[%s202_s27] sm:$0xf] %vm222_vm0, %v216_v8  ;;  %224 = vst.msk [vmem:[%s202_s27 + $0x4] sm:$0xf] %vm222_vm0, %v217_v12  ;;  %v231_v23 = vld [vmem:[%s202_s27 + $0x14] sm:$0x7] }
  0x26   : > { %225 = vst.msk [vmem:[%s202_s27 + $0x8] sm:$0xf] %vm222_vm0, %v218_v16  ;;  %226 = vst.msk [vmem:[%s202_s27 + $0xc] sm:$0xf] %vm222_vm0, %v219_v17  ;;  %v232_v25 = vsel %vm230_vm3, %v221_v24, %v231_v23 }
  0x27   : > { %227 = vst.msk [vmem:[%s202_s27 + $0x10] sm:$0xf] %vm222_vm0, %v220_v21  ;;  %233 = vst [vmem:[%s202_s27 + $0x14] sm:$0x7] %v232_v25 }
  0x28 PF: > { %p8_p9 = scmp.ge.s32.totalorder %s389_s10, 4   ;;  %s435_s6 = smov %s356_s7 }
  0x29   : > { %s436_s7 = smov %s398_s13  ;;  %s437_s8 = smov %s389_s10 }
  0x2a   :  { %10 = sbr.rel (!%p8_p9) target bundleno = 2 (0x2), region = 101 }

// kernel: utime_forward.33
= control target key start
LH: loop header
LB: loop body
LE: loop exit
PB: predicated region body
PF: predicated region fallthrough
CT: control target
= control target key end

     0   :  { %s415_s9 = smov 0   ;;  %s440_s0 = inlined_call_operand.vmem [shape: bf16[2,45,4], index: 0, kind: input, shape index: {}]   ;;  %s441_s1 = inlined_call_operand.vmem [shape: bf16[4,8], index: 1, kind: input, shape index: {}]   ;;  %s442_s2 = inlined_call_operand.vmem [shape: bf16[2,45,8], index: 2, kind: output, shape index: {}]  }
   0x1 LB: > { %s329_s10 = sadd.s32 4294967295, %s396_s9   ;;  %p333_p0 = scmp.ge.s32.totalorder %s396_s9, 1  ;;  %s396_s9 = sphi %s415_s9, %s12_s9  }
   0x2   : > { %p112_p1 = scmp.lt.s32.totalorder %s396_s9, 3 }
   0x4   : > { %p113_p2 = pnand %p333_p0, %p112_p1 }
   0x5   : > { %v151_v0 = vld [vmem:[%s441_s1] sm:$0x3] (!%p113_p2)  ;;  %vm177_vm0 = vcmask (!%p113_p2), 1041408   ;;  %p134_p3 = scmp.lt.s32.totalorder (!%p113_p2), %s329_s10, 1  ;;  %v398_v1 = vmov (!%p113_p2), 0.0   ;;  %vm399_vm1 = vmmov (!%p113_p2), 0  }
   0x6   : > { %116 = sbr.rel (%p113_p2) target bundleno = 244 (0xf4), region = 28  ;;  %374 = vmatprep.subr.bf16.mxu1 (!%p113_p2), %v398_v1  ;;  %v179_v2 = vsel (!%p113_p2), %vm177_vm0, %v151_v0, 0  ;;  %366 = vmatprep.mubr.msk.bf16.mxu1 (!%p113_p2), %vm399_vm1, %v398_v1  ;;  %vm167_vm2 = vcmask (!%p113_p2), 31744   ;;  %vm262_vm3 = vcmask (!%p113_p2), 60416   ;;  %vm268_vm4 = vcmask (!%p113_p2), 59392  }
   0x7   : > { %375 = vmatpush3.bf16.msra.mxu1 (!%p113_p2), %v179_v2  ;;  %360 = vmatprep.subr.bf16.mxu0 (!%p113_p2), %v398_v1  ;;  %vm269_vm5 = vsmask.f32 (!%p113_p2), 2304 }
   0x8   : > { %361 = vmatpush3.bf16.msra.mxu0 (!%p113_p2), %v179_v2  ;;  %362 = vmatprep.mubr.msk.bf16.mxu0 (!%p113_p2), %vm399_vm1, %v398_v1  ;;  %vm270_vm6 = vmand (!%p113_p2), %vm268_vm4, %vm269_vm5 }
   0xd   : > { %s444_s10 = smov (!%p134_p3, %s329_s10), 1 }
   0xe   : > { %s376_s13 = smul.u32 24, %s444_s10 }
  0x10   : > { %s138_s16 = scalar_lea.vmem %s440_s0, %s376_s13  ;;  %s143_s19 = scalar_lea.vmem %s442_s2, %s376_s13 }
  0x11   : > { %v387_v3 = vld [vmem:[%s138_s16 + $0x8] sm:$0xff]   ;;  %v388_v4 = vld [vmem:[%s138_s16] sm:$0xff]   ;;  %v389_v5 = vld [vmem:[%s138_s16 + $0x10] sm:$0x7f]  }
  0x12   : > { %367 = vmatmul.mubr.msk.bf16.vlgmr.msra.gmra.mrb[0].mxu1 %vm167_vm2, %v387_v3  ;;  %363 = vmatmul.mubr.msk.bf16.vlgmr.msra.gmra.mrb[0].mxu0 %vm167_vm2, %v388_v4  ;;  %v271_v22 = vld [vmem:[%s143_s19 + $0x14] sm:$0x7] }
  0x13   : > { %370 = vmatprep.mubr.msk.bf16.mxu1 %vm399_vm1, %v398_v1 }
  0x1a   : > { %371 = vmatmul.mubr.msk.bf16.gmra.mrb[4].mxu1 %vm167_vm2, %v389_v5 }
  0xe5   : > { %v223_v6 = vpop.f32.mrb[0].mxu1  ;;  %v215_v9 = vpop.f32.mrb[0].mxu0 }
  0xe6   : > { %v352_v7 = vpack.c.bf16 %v223_v6, %v223_v6  ;;  %v368_v8 = vpop.f32.mrb[1].mxu1  ;;  %v350_v11 = vpack.c.bf16 %v215_v9, %v215_v9  ;;  %v364_v12 = vpop.f32.mrb[1].mxu0 }
  0xe7   : > { %v226_v10 = vpop.f32.mrb[2].mxu1  ;;  %v218_v15 = vpop.f32.mrb[2].mxu0 }
  0xe8   : > { %265 = vst.msk [vmem:[%s143_s19 + $0x8] sm:$0xf] %vm262_vm3, %v352_v7  ;;  %v353_v13 = vpack.c.bf16 %v226_v10, %v226_v10  ;;  %v369_v14 = vpop.f32.mrb[3].mxu1  ;;  %263 = vst.msk [vmem:[%s143_s19] sm:$0xf] %vm262_vm3, %v350_v11  ;;  %v351_v16 = vpack.c.bf16 %v218_v15, %v218_v15  ;;  %v365_v17 = vpop.f32.mrb[3].mxu0 }
  0xea   : > { %266 = vst.msk [vmem:[%s143_s19 + $0xc] sm:$0xf] %vm262_vm3, %v353_v13  ;;  %264 = vst.msk [vmem:[%s143_s19 + $0x4] sm:$0xf] %vm262_vm3, %v351_v16 }
  0xed   : > { %v231_v18 = vpop.f32.mrb[4].mxu1 }
  0xee   : > { %v354_v19 = vpack.c.bf16 %v231_v18, %v231_v18  ;;  %v372_v20 = vpop.f32.mrb[5].mxu1 }
  0xef   : > { %v234_v21 = vpop.f32.mrb[6].mxu1 }
  0xf0   : > { %267 = vst.msk [vmem:[%s143_s19 + $0x10] sm:$0xf] %vm262_vm3, %v354_v19  ;;  %v355_v23 = vpack.c.bf16 %v234_v21, %v234_v21  ;;  %v373_v24 = vpop.f32.mrb[7].mxu1 }
  0xf2   : > { %v272_v25 = vsel %vm270_vm6, %v355_v23, %v271_v22 }
  0xf3   : > { %273 = vst [vmem:[%s143_s19 + $0x14] sm:$0x7] %v272_v25 }
  0xf4 PF: > { %s12_s9 = sadd.s32 1, %s396_s9  }
  0xf5   : > { %p9_p4 = scmp.ge.s32.totalorder %s12_s9, 4  }
  0xf7   :  { %11 = sbr.rel (!%p9_p4) target bundleno = 1 (0x1), region = 58 }

// kernel: utime_forward.34
= control target key start
LH: loop header
LB: loop body
LE: loop exit
PB: predicated region body
PF: predicated region fallthrough
CT: control target
= control target key end

     0   :  { %s794_s18 = smov 0   ;;  %s796_s19 = smov 0   ;;  %s941_s0 = inlined_call_operand.vmem [shape: bf16[2,1,45,12], index: 0, kind: input, shape index: {}]   ;;  %s942_s1 = inlined_call_operand.vmem [shape: bf16[22,225], index: 1, kind: input, shape index: {}]   ;;  %s943_s2 = inlined_call_operand.vmem [shape: f32[22,1], index: 2, kind: input, shape index: {}]   ;;  %s944_s3 = inlined_call_operand.vmem [shape: f32[22,1], index: 3, kind: input, shape index: {}]   ;;  %s945_s4 = inlined_call_operand.vmem [shape: f32[22,1], index: 4, kind: input, shape index: {}]   ;;  %s946_s5 = inlined_call_operand.vmem [shape: bf16[2,22,8], index: 5, kind: output, shape index: {}]  }
   0x1   :  { %s798_s20 = smov 0  }
   0x2 LB: > { %s27_s21 = sadd.s32 1, %s753_s19  ;;  %p644_p0 = scmp.ge.s32.totalorder %s757_s20, 1  ;;  %s757_s20 = sphi %s798_s20, %s15_s20   ;;  %s753_s19 = sphi %s796_s19, %s948_s19   ;;  %s749_s18 = sphi %s794_s18, %s947_s18  }
   0x3   : > { %p29_p1 = scmp.ge.s32.totalorder %s27_s21, 2  ;;  %p207_p2 = scmp.lt.s32.totalorder %s757_s20, 3 }
   0x5   : > { %s950_s21 = smov (%p29_p1, %s27_s21), 0  ;;  %p208_p3 = pnand %p644_p0, %p207_p2 }
   0x6   : > { %p242_p4 = scmp.lt.s32.totalorder (!%p208_p3), %s749_s18, 1  ;;  %v759_v0 = vmov (!%p208_p3), 0   ;;  %vm284_vm0 = vsmask.f32 (!%p208_p3), 6400  ;;  %s760_s26 = smov (!%p208_p3), 127   ;;  %vm322_vm1 = vcmask (!%p208_p3), 1044480  }
   0x7   : > { %211 = sbr.rel (%p208_p3) target bundleno = 417 (0x1a1), region = 40  ;;  %443 = vmatprep.subr.bf16.mxu0 (!%p208_p3), %v759_v0  ;;  %664 = vmatprep.subr.bf16.mxu1 (!%p208_p3), %v759_v0  ;;  %s761_s27 = smov (!%p208_p3), 126   ;;  %vm339_vm2 = vsmask.f32 (!%p208_p3), 3328  ;;  %vm362_vm3 = vcmask (!%p208_p3), 1041408   ;;  %vm430_vm4 = vcmask (!%p208_p3), 793600  }
   0x8   : > { %726 = vset.pattern.permute.xlu1 (!%p208_p3), %v759_v0  ;;  %725 = vset.pattern.permute.xlu0 (!%p208_p3), %v759_v0  ;;  %s762_s28 = smov (!%p208_p3), 125   ;;  %s763_s29 = smov (!%p208_p3), 124   ;;  %v859_v42 = vld [vmem:[%s942_s1 + $0x10] sm:$0x77] (!%p208_p3)  ;;  %v732_v43 = vld [vmem:[%s942_s1 + $0x4] ss:$8 sps:$4 sm:$0xff] (!%p208_p3)  }
   0x9   : > { %v653_v44 = vcombine.high (!%p208_p3), %v859_v42, %v859_v42  ;;  %654 = vmatprep.mubr.msk.bf16.mxu0 (!%p208_p3), %vm430_vm4, %v732_v43  ;;  %v398_v45 = vld [vmem:[%s943_s2 + $0x8] sm:$0xff] (!%p208_p3)  ;;  %v397_v46 = vld [vmem:[%s943_s2] sm:$0xff] (!%p208_p3)  ;;  %v399_v47 = vld [vmem:[%s943_s2 + $0x10] sm:$0x3f] (!%p208_p3)  ;;  %vm378_vm5 = vcmask (!%p208_p3), 1046528   ;;  %vm386_vm7 = vcmask (!%p208_p3), 1043456  }
   0xa   : > { %v494_v48 = vld [vmem:[%s944_s3] sm:$0xff] (!%p208_p3)  ;;  %v495_v49 = vld [vmem:[%s944_s3 + $0x8] sm:$0xff] (!%p208_p3)  ;;  %v496_v50 = vld [vmem:[%s944_s3 + $0x10] sm:$0x3f] (!%p208_p3)  ;;  %vm437_vm9 = vcmask (!%p208_p3), 1040384   ;;  %vm549_vm10 = vcmask (!%p208_p3), 60416  }
   0xb   : > { %655 = vmatprep.mubr.msk.bf16.mxu1 (!%p208_p3), %vm430_vm4, %v653_v44  ;;  %v515_v51 = vld [vmem:[%s945_s4] sm:$0xff] (!%p208_p3)  ;;  %v516_v52 = vld [vmem:[%s945_s4 + $0x8] sm:$0xff] (!%p208_p3)  ;;  %v517_v53 = vld [vmem:[%s945_s4 + $0x10] sm:$0x3f] (!%p208_p3)  ;;  %vm552_vm11 = vcmask (!%p208_p3), 59392  }
   0xc   : > { %vm379_vm6 = vmand (!%p208_p3), %vm378_vm5, %vm284_vm0 }
   0xd   : > { %vm387_vm8 = vmand (!%p208_p3), %vm386_vm7, %vm339_vm2 }
   0xe   : > { %s952_s18 = smov (!%p242_p4, %s749_s18), 1 }
   0xf   : > { %s694_s22 = smul.u32 24, %s952_s18 }
  0x10   : > { %s695_s8 = smul.u32 12, %s952_s18 }
  0x11   : > { %s250_s25 = scalar_lea.vmem %s941_s0, %s694_s22 }
  0x12   : > { %v822_v1 = vld [vmem:[%s250_s25] sm:$0xff]   ;;  %v824_v2 = vld [vmem:[%s250_s25 + $0x8] sm:$0xff]   ;;  %v832_v7 = vld [vmem:[%s250_s25 + $0x10] sm:$0x7f]   ;;  %s258_s11 = scalar_lea.vmem %s946_s5, %s695_s8 }
  0x13   : > { %v286_v3 = vshrl.u32 %v822_v1, 16  ;;  %v289_v4 = vshll.u32 %v822_v1, 16  ;;  %444 = vmatpush1.bf16.msra.mxu0 %v822_v1  ;;  %679 = vmatpush1.bf16.msra.mxu1 %v822_v1  ;;  %v294_v5 = vshrl.u32 %v824_v2, 16  ;;  %v297_v6 = vshll.u32 %v824_v2, 16 }
  0x14   : > { %445 = vmatprep.subr.bf16.mxu0 %v759_v0  ;;  %665 = vmatprep.subr.bf16.mxu1 %v759_v0  ;;  %v303_v12 = vshrl.u32 %v832_v7, 16  ;;  %v306_v13 = vshll.u32 %v832_v7, 16  ;;  %v323_v21 = vrot.slane %v822_v1, 3  ;;  %v324_v22 = vrot.slane %v824_v2, 3 }
  0x15   : > { %v288_v8 = vrot.slane %v286_v3, 1  ;;  %v291_v9 = vrot.slane %v289_v4, 2  ;;  %v296_v10 = vrot.slane %v294_v5, 1  ;;  %v299_v11 = vrot.slane %v297_v6, 2 }
  0x16   : > { %v305_v16 = vrot.slane %v303_v12, 1  ;;  %v308_v17 = vrot.slane %v306_v13, 2  ;;  %v326_v23 = vrot.slane %v832_v7, 3  ;;  %v325_v24 = vsel %vm322_vm1, %v323_v21, %v324_v22 }
  0x17   : > { %v292_v14 = vor.u32 %v291_v9, %v288_v8  ;;  %446 = vmatpush1.bf16.msra.mxu0 %v824_v2  ;;  %680 = vmatpush1.bf16.msra.mxu1 %v824_v2  ;;  %v300_v15 = vor.u32 %v299_v11, %v296_v10  ;;  %v340_v25 = vrot.slane %v286_v3, 4  ;;  %v341_v26 = vrot.slane %v289_v4, 5 }
  0x18   : > { %447 = vmatprep.subr.bf16.mxu0 %v759_v0  ;;  %666 = vmatprep.subr.bf16.mxu1 %v759_v0  ;;  %v309_v19 = vor.u32 %v308_v17, %v305_v16  ;;  %v343_v27 = vrot.slane %v294_v5, 4  ;;  %v327_v28 = vsel %vm322_vm1, %v324_v22, %v326_v23  ;;  %v344_v29 = vrot.slane %v297_v6, 5 }
  0x19   : > { %311 = vrot.lane.b32.xlu0 %v292_v14, %s760_s26  ;;  %v301_v18 = vsel %vm284_vm0, %v292_v14, %v300_v15  ;;  %v347_v30 = vrot.slane %v303_v12, 4  ;;  %v348_v31 = vrot.slane %v306_v13, 5  ;;  %v342_v32 = vor.u32 %v341_v26, %v340_v25  ;;  %v730_v13 = vld [vmem:[%s942_s1] ss:$8 sps:$4 sm:$0xff]  }
  0x1a   : > { %v310_v20 = vsel %vm284_vm0, %v300_v15, %v309_v19  ;;  %v345_v33 = vor.u32 %v344_v29, %v343_v27  ;;  %v363_v37 = vrot.slane %v822_v1, 6  ;;  %v364_v38 = vrot.slane %v824_v2, 6 }
  0x1b   : > { %315 = vrot.lane.b32.xlu1 %v310_v20, %s760_s26  ;;  %v349_v34 = vor.u32 %v348_v31, %v347_v30  ;;  %v366_v39 = vrot.slane %v832_v7, 6  ;;  %v439_v10 = vsel %vm437_vm9, 65535, %v759_v0  ;;  %v652_v14 = vcombine.low %v859_v42, %v859_v42 }
  0x1c   : > { %v346_v35 = vsel %vm339_vm2, %v342_v32, %v345_v33  ;;  %v365_v40 = vsel %vm362_vm3, %v363_v37, %v364_v38 }
  0x1d   : > { %313 = vrot.lane.b32.xlu0 %v301_v18, %s760_s26  ;;  %v350_v36 = vsel %vm339_vm2, %v345_v33, %v349_v34  ;;  %v367_v41 = vsel %vm362_vm3, %v364_v38, %v366_v39 }
  0x1f   : > { %317 = vrot.lane.b32.xlu1 %v309_v19, %s760_s26 }
  0x21   : > { %328 = vrot.lane.b32.xlu0 %v323_v21, %s761_s27 }
  0x23   : > { %330 = vrot.lane.b32.xlu1 %v325_v24, %s761_s27 }
  0x25   : > { %332 = vrot.lane.b32.xlu0 %v327_v28, %s761_s27 }
  0x27   : > { %334 = vrot.lane.b32.xlu1 %v326_v23, %s761_s27 }
  0x29   : > { %351 = vrot.lane.b32.xlu0 %v342_v32, %s762_s28 }
  0x2b   : > { %353 = vrot.lane.b32.xlu1 %v346_v35, %s762_s28 }
  0x2d   : > { %355 = vrot.lane.b32.xlu0 %v350_v36, %s762_s28 }
  0x2f   : > { %357 = vrot.lane.b32.xlu1 %v349_v34, %s762_s28 }
  0x31   : > { %368 = vrot.lane.b32.xlu0 %v363_v37, %s763_s29 }
  0x33   : > { %370 = vrot.lane.b32.xlu1 %v365_v40, %s763_s29 }
  0x35   : > { %372 = vrot.lane.b32.xlu0 %v367_v41, %s763_s29 }
  0x37   : > { %374 = vrot.lane.b32.xlu1 %v366_v39, %s763_s29 }
  0x39   : > { %402 = vperm.xlu0 %725, %v397_v46  }
  0x3b   : > { %407 = vperm.xlu1 %726, %v398_v45  }
  0x3d   : > { %499 = vperm.xlu0 %725, %v494_v48  }
  0x3f   : > { %412 = vperm.xlu1 %726, %v399_v47  }
  0x41   : > { %509 = vperm.xlu0 %725, %v496_v50  }
  0x43   : > { %504 = vperm.xlu1 %726, %v495_v49  }
  0x45   : > { %525 = vperm.xlu0 %725, %v516_v52  }
  0x47   : > { %520 = vperm.xlu1 %726, %v515_v51  }
  0x4b   : > { %530 = vperm.xlu1 %726, %v517_v53  }
  0x8b   : > { %v312_v54 = vpop.permute.xlu0 %311 }
  0x8c   : > { %v380_v55 = vsel %vm379_vm6, %v832_v7, %v312_v54 }
  0x8d   : > { %448 = vmatpush1.bf16.msra.mxu0 %v380_v55  ;;  %681 = vmatpush1.bf16.msra.mxu1 %v380_v55  ;;  %v316_v57 = vpop.permute.xlu1 %315 }
  0x8e   : > { %449 = vmatprep.subr.bf16.mxu0 %v759_v0  ;;  %667 = vmatprep.subr.bf16.mxu1 %v759_v0 }
  0x8f   : > { %v314_v56 = vpop.permute.xlu0 %313 }
  0x91   : > { %450 = vmatpush1.bf16.msra.mxu0 %v314_v56  ;;  %682 = vmatpush1.bf16.msra.mxu1 %v314_v56  ;;  %v318_v58 = vpop.permute.xlu1 %317 }
  0x92   : > { %451 = vmatprep.subr.bf16.mxu0 %v759_v0  ;;  %668 = vmatprep.subr.bf16.mxu1 %v759_v0 }
  0x93   : > { %v329_v59 = vpop.permute.xlu0 %328 }
  0x94   : > { %v384_v60 = vsel %vm322_vm1, %v318_v58, %v329_v59 }
  0x95   : > { %452 = vmatpush1.bf16.msra.mxu0 %v316_v57  ;;  %683 = vmatpush1.bf16.msra.mxu1 %v316_v57  ;;  %v331_v62 = vpop.permute.xlu1 %330 }
  0x96   : > { %453 = vmatprep.subr.bf16.mxu0 %v759_v0  ;;  %669 = vmatprep.subr.bf16.mxu1 %v759_v0 }
  0x97   : > { %v333_v61 = vpop.permute.xlu0 %332 }
  0x99   : > { %454 = vmatpush1.bf16.msra.mxu0 %v384_v60  ;;  %684 = vmatpush1.bf16.msra.mxu1 %v384_v60  ;;  %v335_v63 = vpop.permute.xlu1 %334 }
  0x9a   : > { %455 = vmatprep.subr.bf16.mxu0 %v759_v0  ;;  %670 = vmatprep.subr.bf16.mxu1 %v759_v0 }
  0x9b   : > { %v352_v1 = vpop.permute.xlu0 %351 }
  0x9c   : > { %v388_v2 = vsel %vm387_vm8, %v335_v63, %v352_v1 }
  0x9d   : > { %456 = vmatpush1.bf16.msra.mxu0 %v331_v62  ;;  %685 = vmatpush1.bf16.msra.mxu1 %v331_v62  ;;  %v354_v4 = vpop.permute.xlu1 %353 }
  0x9e   : > { %457 = vmatprep.subr.bf16.mxu0 %v759_v0  ;;  %671 = vmatprep.subr.bf16.mxu1 %v759_v0 }
  0x9f   : > { %v356_v3 = vpop.permute.xlu0 %355 }
  0xa1   : > { %458 = vmatpush1.bf16.msra.mxu0 %v333_v61  ;;  %686 = vmatpush1.bf16.msra.mxu1 %v333_v61  ;;  %v358_v5 = vpop.permute.xlu1 %357 }
  0xa2   : > { %459 = vmatprep.subr.bf16.mxu0 %v759_v0  ;;  %672 = vmatprep.subr.bf16.mxu1 %v759_v0 }
  0xa3   : > { %v369_v6 = vpop.permute.xlu0 %368 }
  0xa4   : > { %v392_v7 = vsel %vm362_vm3, %v358_v5, %v369_v6 }
  0xa5   : > { %460 = vmatpush1.bf16.msra.mxu0 %v388_v2  ;;  %687 = vmatpush1.bf16.msra.mxu1 %v388_v2  ;;  %v371_v8 = vpop.permute.xlu1 %370 }
  0xa6   : > { %461 = vmatprep.subr.bf16.mxu0 %v759_v0  ;;  %673 = vmatprep.subr.bf16.mxu1 %v759_v0 }
  0xa7   : > { %v373_v9 = vpop.permute.xlu0 %372 }
  0xa9   : > { %462 = vmatpush1.bf16.msra.mxu0 %v354_v4  ;;  %688 = vmatpush1.bf16.msra.mxu1 %v354_v4  ;;  %v375_v11 = vpop.permute.xlu1 %374 }
  0xaa   : > { %463 = vmatprep.subr.bf16.mxu0 %v759_v0  ;;  %674 = vmatprep.subr.bf16.mxu1 %v759_v0  ;;  %v441_v12 = vand.u32 %v439_v10, %v375_v11 }
  0xad   : > { %464 = vmatpush1.bf16.msra.mxu0 %v356_v3  ;;  %689 = vmatpush1.bf16.msra.mxu1 %v356_v3 }
  0xae   : > { %465 = vmatprep.subr.bf16.mxu0 %v759_v0  ;;  %675 = vmatprep.subr.bf16.mxu1 %v759_v0 }
  0xb1   : > { %466 = vmatpush1.bf16.msra.mxu0 %v392_v7  ;;  %690 = vmatpush1.bf16.msra.mxu1 %v392_v7 }
  0xb2   : > { %467 = vmatprep.subr.bf16.mxu0 %v759_v0  ;;  %676 = vmatprep.subr.bf16.mxu1 %v759_v0 }
  0xb5   : > { %468 = vmatpush1.bf16.msra.mxu0 %v371_v8  ;;  %691 = vmatpush1.bf16.msra.mxu1 %v371_v8 }
  0xb6   : > { %469 = vmatprep.subr.bf16.mxu0 %v759_v0  ;;  %677 = vmatprep.subr.bf16.mxu1 %v759_v0 }
  0xb8   : > { %v403_v17 = vpop.permute.xlu0 %402 }
  0xb9   : > { %470 = vmatpush1.bf16.msra.mxu0 %v373_v9  ;;  %692 = vmatpush1.bf16.msra.mxu1 %v373_v9 }
  0xba   : > { %471 = vmatprep.subr.bf16.mxu0 %v759_v0  ;;  %678 = vmatprep.subr.bf16.mxu1 %v759_v0  ;;  %v408_v15 = vpop.permute.xlu1 %407 }
  0xbc   : > { %v500_v19 = vpop.permute.xlu0 %499 }
  0xbd   : > { %472 = vmatpush1.bf16.msra.mxu0 %v441_v12  ;;  %693 = vmatpush1.bf16.msra.mxu1 %v441_v12 }
  0xbe   : > { %v413_v16 = vpop.permute.xlu1 %412 }
  0xc0   : > { %476 = vmatmul.mubr.bf16.vlgmr.msra.gmra.mrb[0].mxu0 %v730_v13  ;;  %484 = vmatmul.mubr.bf16.vlgmr.msra.gmra.mrb[0].mxu1 %v652_v14  ;;  %v510_v21 = vpop.permute.xlu0 %509 }
  0xc2   : > { %v505_v18 = vpop.permute.xlu1 %504 }
  0xc4   : > { %v526_v41 = vpop.permute.xlu0 %525 }
  0xc6   : > { %v521_v20 = vpop.permute.xlu1 %520 }
  0xca   : > { %v531_v37 = vpop.permute.xlu1 %530 }
 0x193   : > { %v477_v0 = vpop.f32.mrb[0].mxu0  ;;  %v485_v22 = vpop.f32.mrb[0].mxu1 }
 0x194   : > { %v478_v23 = vadd.f32 %v477_v0, %v403_v17  ;;  %v486_v24 = vadd.f32 %v485_v22, %v413_v16  ;;  %v479_v25 = vpop.f32.mrb[1].mxu0  ;;  %v487_v26 = vpop.f32.mrb[1].mxu1 }
 0x195   : > { %v480_v27 = vpop.f32.mrb[2].mxu0  ;;  %v488_v28 = vpop.f32.mrb[2].mxu1 }
 0x196   : > { %v491_v29 = vmax.f32 %v478_v23, 0.0  ;;  %v493_v30 = vmax.f32 %v486_v24, 0.0  ;;  %v481_v31 = vadd.f32 %v480_v27, %v408_v15  ;;  %v482_v32 = vpop.f32.mrb[3].mxu0  ;;  %v489_v33 = vpop.f32.mrb[3].mxu1 }
 0x198   : > { %v512_v34 = vmul.f32 %v500_v19, %v491_v29  ;;  %v514_v35 = vmul.f32 %v510_v21, %v493_v30  ;;  %v492_v36 = vmax.f32 %v481_v31, 0.0 }
 0x19a   : > { %v533_v38 = vadd.f32 %v521_v20, %v512_v34  ;;  %v535_v39 = vadd.f32 %v531_v37, %v514_v35  ;;  %v513_v40 = vmul.f32 %v505_v18, %v492_v36 }
 0x19c   : > { %v661_v42 = vpack.c.bf16 %v533_v38, %v533_v38  ;;  %v663_v43 = vpack.c.bf16 %v535_v39, %v535_v39  ;;  %v534_v44 = vadd.f32 %v526_v41, %v513_v40 }
 0x19e   : > { %550 = vst.msk [vmem:[%s258_s11] sm:$0xf] %vm549_vm10, %v661_v42  ;;  %v662_v45 = vpack.c.bf16 %v534_v44, %v534_v44 }
 0x19f   : > { %553 = vst.msk [vmem:[%s258_s11 + $0x8] sm:$0x7] %vm552_vm11, %v663_v43 }
 0x1a0   : > { %551 = vst.msk [vmem:[%s258_s11 + $0x4] sm:$0xf] %vm549_vm10, %v662_v45 }
 0x1a1 PF: > { %s15_s20 = sadd.s32 1, %s757_s20   ;;  %s947_s18 = smov %s753_s19 }
 0x1a2   : > { %p12_p5 = scmp.ge.s32.totalorder %s15_s20, 4   ;;  %s948_s19 = smov %s950_s21 }
 0x1a4   :  { %14 = sbr.rel (!%p12_p5) target bundleno = 2 (0x2), region = 70 }

// kernel: utime_forward.37
= control target key start
LH: loop header
LB: loop body
LE: loop exit
PB: predicated region body
PF: predicated region fallthrough
CT: control target
= control target key end

     0   :  { %s352_s9 = smov 0   ;;  %s372_s0 = inlined_call_operand.vmem [shape: bf16[2,22,8], index: 0, kind: input, shape index: {}]   ;;  %s373_s1 = inlined_call_operand.vmem [shape: bf16[8,16], index: 1, kind: input, shape index: {}]   ;;  %s374_s2 = inlined_call_operand.vmem [shape: bf16[2,22,16], index: 2, kind: output, shape index: {}]  }
   0x1 LB: > { %s289_s10 = sadd.s32 4294967295, %s335_s9   ;;  %p293_p0 = scmp.ge.s32.totalorder %s335_s9, 1  ;;  %s335_s9 = sphi %s352_s9, %s12_s9  }
   0x2   : > { %p112_p1 = scmp.lt.s32.totalorder %s335_s9, 3 }
   0x4   : > { %p113_p2 = pnand %p293_p0, %p112_p1 }
   0x5   : > { %v148_v0 = vld [vmem:[%s373_s1] sm:$0xf] (!%p113_p2)  ;;  %vm164_vm0 = vcmask (!%p113_p2), 1043456   ;;  %p134_p3 = scmp.lt.s32.totalorder (!%p113_p2), %s289_s10, 1  ;;  %vm157_vm1 = vcmask (!%p113_p2), 64512   ;;  %vm232_vm2 = vcmask (!%p113_p2), 124928  }
   0x6   : > { %116 = sbr.rel (%p113_p2) target bundleno = 237 (0xed), region = 28  ;;  %317 = vmatprep.subr.msk.bf16.mxu0 (!%p113_p2), %vm164_vm0, %v148_v0  ;;  %v166_v1 = vsel (!%p113_p2), %vm164_vm0, %v148_v0, 0  ;;  %vm229_vm3 = vcmask (!%p113_p2), 125952  }
   0x7   : > { %312 = vmatpush3.bf16.msra.mxu0 (!%p113_p2), %v166_v1 }
   0xd   : > { %s376_s10 = smov (!%p134_p3, %s289_s10), 1 }
   0xe   : > { %s318_s13 = smul.u32 12, %s376_s10 }
  0x10   : > { %s138_s16 = scalar_lea.vmem %s372_s0, %s318_s13  ;;  %s143_s19 = scalar_lea.vmem %s374_s2, %s318_s13 }
  0x11   : > { %v327_v2 = vld [vmem:[%s138_s16] sm:$0xff]   ;;  %v328_v3 = vld [vmem:[%s138_s16 + $0x8] ss:$0 sps:$4 sm:$0x77]  }
  0x12   : > { %313 = vmatprep.mubr.msk.bf16.mxu0 %vm157_vm1, %v327_v2 }
  0x13   : > { %314 = vmatmul.mubr.msk.bf16.vlgmr.msra.gmra.mrb[0].mxu0 %vm157_vm1, %v328_v3 }
  0xe6   : > { %v315_v4 = vpop.f32.mrb[0].mxu0 }
  0xe7   : > { %v307_v5 = vpack.c.bf16 %v315_v4, %v315_v4  ;;  %v202_v6 = vpop.f32.mrb[1].mxu0 }
  0xe8   : > { %v305_v7 = vpack.c.bf16 %v202_v6, %v202_v6  ;;  %v316_v8 = vpop.f32.mrb[2].mxu0 }
  0xe9   : > { %233 = vst.msk [vmem:[%s143_s19 + $0x8] sm:$0x7] %vm232_vm2, %v307_v5  ;;  %v205_v9 = vpop.f32.mrb[3].mxu0 }
  0xea   : > { %230 = vst.msk [vmem:[%s143_s19] sm:$0xf] %vm229_vm3, %v305_v7  ;;  %v306_v10 = vpack.c.bf16 %v205_v9, %v205_v9 }
  0xec   : > { %231 = vst.msk [vmem:[%s143_s19 + $0x4] sm:$0xf] %vm229_vm3, %v306_v10 }
  0xed PF: > { %s12_s9 = sadd.s32 1, %s335_s9  }
  0xee   : > { %p9_p4 = scmp.ge.s32.totalorder %s12_s9, 4  }
  0xf0   :  { %11 = sbr.rel (!%p9_p4) target bundleno = 1 (0x1), region = 58 }

// kernel: utime_forward.35
= control target key start
LH: loop header
LB: loop body
LE: loop exit
PB: predicated region body
PF: predicated region fallthrough
CT: control target
= control target key end

     0   :  { %s944_s18 = smov 0   ;;  %s946_s19 = smov 0   ;;  %s1094_s0 = inlined_call_operand.vmem [shape: bf16[2,1,67,12], index: 0, kind: input, shape index: {}]   ;;  %s1095_s1 = inlined_call_operand.vmem [shape: bf16[22,335], index: 1, kind: input, shape index: {}]   ;;  %s1096_s2 = inlined_call_operand.vmem [shape: f32[22,1], index: 2, kind: input, shape index: {}]   ;;  %s1097_s3 = inlined_call_operand.vmem [shape: f32[22,1], index: 3, kind: input, shape index: {}]   ;;  %s1098_s4 = inlined_call_operand.vmem [shape: f32[22,1], index: 4, kind: input, shape index: {}]   ;;  %s1099_s5 = inlined_call_operand.vmem [shape: bf16[2,22,8], index: 5, kind: output, shape index: {}]  }
   0x1   :  { %s948_s20 = smov 0  }
   0x2 LB: > { %s27_s21 = sadd.s32 1, %s902_s19  ;;  %p765_p0 = scmp.ge.s32.totalorder %s906_s20, 1  ;;  %s906_s20 = sphi %s948_s20, %s15_s20   ;;  %s902_s19 = sphi %s946_s19, %s1101_s19   ;;  %s898_s18 = sphi %s944_s18, %s1100_s18  }
   0x3   : > { %p29_p1 = scmp.ge.s32.totalorder %s27_s21, 2  ;;  %p207_p2 = scmp.lt.s32.totalorder %s906_s20, 3 }
   0x5   : > { %s1103_s21 = smov (%p29_p1, %s27_s21), 0  ;;  %p208_p3 = pnand %p765_p0, %p207_p2 }
   0x6   : > { %p242_p4 = scmp.lt.s32.totalorder (!%p208_p3), %s898_s18, 1  ;;  %vm356_vm0 = vcmask (!%p208_p3), 1042432   ;;  %vm297_vm1 = vsmask.f32 (!%p208_p3), 1280  ;;  %s908_s26 = smov (!%p208_p3), 126   ;;  %vm414_vm3 = vcmask (!%p208_p3), 1045504  }
   0x7   : > { %211 = sbr.rel (%p208_p3) target bundleno = 414 (0x19e), region = 40  ;;  %s909_s27 = smov (!%p208_p3), 127   ;;  %vm380_vm2 = vsmask.f32 (!%p208_p3), 4352  ;;  %v879_v62 = vld [vmem:[%s1095_s1 + $0x4] ss:$12 sps:$4 sm:$0xff] (!%p208_p3)  }
   0x8   : > { %s910_s28 = smov (!%p208_p3), 125   ;;  %s911_s29 = smov (!%p208_p3), 124   ;;  %548 = vmatprep.mubr.bf16.mxu0 (!%p208_p3), %v879_v62  ;;  %vm502_vm4 = vcmask (!%p208_p3), 646144   ;;  %vm445_vm5 = vcmask (!%p208_p3), 1044480   ;;  %vm437_vm7 = vcmask (!%p208_p3), 1041408   ;;  %vm509_vm9 = vcmask (!%p208_p3), 1046528  }
   0x9   : > { %vm446_vm6 = vmand (!%p208_p3), %vm445_vm5, %vm380_vm2  ;;  %vm510_vm10 = vcmask (!%p208_p3), 1047552   ;;  %vm670_vm11 = vcmask (!%p208_p3), 60416   ;;  %vm673_vm12 = vcmask (!%p208_p3), 59392  }
   0xa   : > { %vm438_vm8 = vmand (!%p208_p3), %vm437_vm7, %vm297_vm1 }
   0xe   : > { %s1105_s18 = smov (!%p242_p4, %s898_s18), 1 }
   0xf   : > { %s838_s22 = smul.u32 36, %s1105_s18 }
  0x10   : > { %s839_s12 = smul.u32 12, %s1105_s18 }
  0x11   : > { %s250_s25 = scalar_lea.vmem %s1094_s0, %s838_s22 }
  0x12   : > { %v968_v0 = vld [vmem:[%s250_s25 + $0x18] sm:$0xff]   ;;  %v970_v1 = vld [vmem:[%s250_s25 + $0x20] ss:$0 sps:$4 sm:$0x33]   ;;  %v978_v7 = vld [vmem:[%s250_s25 + $0x8] sm:$0xff]   ;;  %s258_s15 = scalar_lea.vmem %s1099_s5, %s839_s12 }
  0x13   : > { %v325_v2 = vshrl.u32 %v968_v0, 16  ;;  %v328_v3 = vshll.u32 %v968_v0, 16  ;;  %v334_v4 = vshrl.u32 %v970_v1, 16  ;;  %v337_v5 = vshll.u32 %v970_v1, 16  ;;  %v976_v6 = vld [vmem:[%s250_s25] sm:$0xff]   ;;  %v980_v8 = vld [vmem:[%s250_s25 + $0x10] sm:$0xff]  }
  0x14   : > { %v357_v13 = vrot.slane %v976_v6, 5  ;;  %v358_v14 = vrot.slane %v978_v7, 5  ;;  %v360_v15 = vrot.slane %v980_v8, 5  ;;  %v362_v20 = vrot.slane %v968_v0, 5 }
  0x15   : > { %v327_v9 = vrot.slane %v325_v2, 6  ;;  %v330_v10 = vrot.slane %v328_v3, 7  ;;  %v336_v11 = vrot.slane %v334_v4, 6  ;;  %v339_v12 = vrot.slane %v337_v5, 7 }
  0x16   : > { %v359_v18 = vsel %vm356_vm0, %v357_v13, %v358_v14  ;;  %v299_v21 = vshrl.u32 %v976_v6, 16  ;;  %v302_v22 = vshll.u32 %v976_v6, 16  ;;  %v361_v23 = vsel %vm356_vm0, %v358_v14, %v360_v15 }
  0x17   : > { %v985_v16 = vor.u32 %v330_v10, %v327_v9  ;;  %v340_v17 = vor.u32 %v339_v12, %v336_v11  ;;  %368 = vrot.lane.b32.xlu1 %v359_v18, %s908_s26  ;;  %v364_v24 = vrot.slane %v970_v1, 5  ;;  %v307_v25 = vshrl.u32 %v978_v7, 16  ;;  %v880_v9 = vld [vmem:[%s1095_s1 + $0x8] ss:$12 sps:$4 sm:$0xff]   ;;  %v615_v18 = vld [vmem:[%s1097_s3] sm:$0xff] }
  0x18   : > { %v310_v26 = vshll.u32 %v978_v7, 16  ;;  %v381_v27 = vrot.slane %v299_v21, 3  ;;  %v382_v28 = vrot.slane %v302_v22, 4  ;;  %v301_v29 = vrot.slane %v299_v21, 6  ;;  %834 = vmatprep.mubr.msk.bf16.mxu1 %vm502_vm4, %v880_v9  ;;  %v636_v21 = vld [vmem:[%s1098_s4] sm:$0xff] }
  0x19   : > { %v341_v19 = vsel %vm297_vm1, %v985_v16, %v340_v17  ;;  %v304_v30 = vrot.slane %v302_v22, 7  ;;  %v365_v31 = vsel %vm356_vm0, %v362_v20, %v364_v24  ;;  %v309_v32 = vrot.slane %v307_v25, 6  ;;  %v461_v17 = vld [vmem:[%s1096_s2 + $0x10] sm:$0x3f]  ;;  %v637_v22 = vld [vmem:[%s1098_s4 + $0x8] sm:$0xff] }
  0x1a   : > { %350 = vrot.lane.b32.xlu0 %v341_v19, %s909_s27  ;;  %v312_v33 = vrot.slane %v310_v26, 7  ;;  %v363_v34 = vsel %vm356_vm0, %v360_v15, %v362_v20  ;;  %v384_v35 = vrot.slane %v307_v25, 3  ;;  %v385_v36 = vrot.slane %v310_v26, 4  ;;  %v460_v15 = vld [vmem:[%s1096_s2 + $0x8] sm:$0xff]  ;;  %v617_v20 = vld [vmem:[%s1097_s3 + $0x10] sm:$0x3f] }
  0x1b   : > { %370 = vrot.lane.b32.xlu1 %v361_v23, %s908_s26  ;;  %v383_v37 = vor.u32 %v382_v28, %v381_v27  ;;  %v305_v38 = vor.u32 %v304_v30, %v301_v29  ;;  %v392_v39 = vrot.slane %v325_v2, 3  ;;  %v393_v41 = vrot.slane %v328_v3, 4  ;;  %v616_v19 = vld [vmem:[%s1097_s3 + $0x8] sm:$0xff]  ;;  %v638_v23 = vld [vmem:[%s1098_s4 + $0x10] sm:$0x3f] }
  0x1c   : > { %v313_v40 = vor.u32 %v312_v33, %v309_v32  ;;  %v316_v42 = vshrl.u32 %v980_v8, 16  ;;  %v319_v43 = vshll.u32 %v980_v8, 16  ;;  %v386_v44 = vor.u32 %v385_v36, %v384_v35 }
  0x1d   : > { %v396_v45 = vrot.slane %v334_v4, 3  ;;  %v397_v46 = vrot.slane %v337_v5, 4  ;;  %v394_v48 = vor.u32 %v393_v41, %v392_v39  ;;  %v415_v55 = vrot.slane %v976_v6, 2 }
  0x1e   : > { %366 = vrot.lane.b32.xlu0 %v357_v13, %s908_s26  ;;  %v314_v47 = vsel %vm297_vm1, %v305_v38, %v313_v40  ;;  %v318_v49 = vrot.slane %v316_v42, 6  ;;  %v321_v50 = vrot.slane %v319_v43, 7  ;;  %v387_v51 = vsel %vm380_vm2, %v383_v37, %v386_v44 }
  0x1f   : > { %374 = vrot.lane.b32.xlu1 %v365_v31, %s908_s26  ;;  %v398_v52 = vor.u32 %v397_v46, %v396_v45  ;;  %v388_v53 = vrot.slane %v316_v42, 3  ;;  %v389_v54 = vrot.slane %v319_v43, 4  ;;  %v416_v61 = vrot.slane %v978_v7, 2  ;;  %v877_v45 = vld [vmem:[%s1095_s1] ss:$12 sps:$4 sm:$0xff]  }
  0x20   : > { %v322_v56 = vor.u32 %v321_v50, %v318_v49  ;;  %v418_v2 = vrot.slane %v980_v8, 2  ;;  %v422_v5 = vrot.slane %v970_v1, 2  ;;  %v420_v11 = vrot.slane %v968_v0, 2  ;;  %v882_v50 = vld [vmem:[%s1095_s1 + $0x20] ss:$0 sps:$4 sm:$0x77]  }
  0x21   : > { %v399_v57 = vsel %vm380_vm2, %v394_v48, %v398_v52  ;;  %v390_v58 = vor.u32 %v389_v54, %v388_v53  ;;  %v417_v3 = vsel %vm414_vm3, %v415_v55, %v416_v61  ;;  %v912_v14 = vmov 0  }
  0x22   : > { %372 = vrot.lane.b32.xlu0 %v363_v34, %s908_s26  ;;  %v323_v59 = vsel %vm297_vm1, %v313_v40, %v322_v56  ;;  %v419_v4 = vsel %vm414_vm3, %v416_v61, %v418_v2  ;;  %v332_v10 = vsel %vm297_vm1, %v322_v56, %v985_v16  ;;  %v423_v12 = vsel %vm414_vm3, %v420_v11, %v422_v5  ;;  %v459_v16 = vld [vmem:[%s1096_s2] sm:$0xff] }
  0x23   : > { %342 = vrot.lane.b32.xlu1 %v305_v38, %s909_s27  ;;  %v391_v60 = vsel %vm380_vm2, %v386_v44, %v390_v58  ;;  %v395_v63 = vsel %vm380_vm2, %v390_v58, %v394_v48  ;;  %v421_v13 = vsel %vm414_vm3, %v418_v2, %v420_v11  ;;  %870 = vset.pattern.permute.xlu0 %v912_v14  ;;  %v913_v40 = vmov 65535  }
  0x24   : > { %871 = vset.pattern.permute.xlu1 %v912_v14  ;;  %v511_v41 = vsel %vm509_vm9, 4294967295, %v913_v40 }
  0x25   : > { %v512_v44 = vsel %vm510_vm10, %v511_v41, 0 }
  0x26   : > { %400 = vrot.lane.b32.xlu0 %v383_v37, %s910_s28 }
  0x27   : > { %344 = vrot.lane.b32.xlu1 %v314_v47, %s909_s27 }
  0x2a   : > { %402 = vrot.lane.b32.xlu0 %v387_v51, %s910_s28 }
  0x2b   : > { %424 = vrot.lane.b32.xlu1 %v415_v55, %s911_s29 }
  0x2e   : > { %408 = vrot.lane.b32.xlu0 %v399_v57, %s910_s28 }
  0x2f   : > { %346 = vrot.lane.b32.xlu1 %v323_v59, %s909_s27 }
  0x32   : > { %404 = vrot.lane.b32.xlu0 %v391_v60, %s910_s28 }
  0x33   : > { %406 = vrot.lane.b32.xlu1 %v395_v63, %s910_s28 }
  0x36   : > { %426 = vrot.lane.b32.xlu0 %v417_v3, %s911_s29 }
  0x37   : > { %428 = vrot.lane.b32.xlu1 %v419_v4, %s911_s29 }
  0x3a   : > { %348 = vrot.lane.b32.xlu0 %v332_v10, %s909_s27 }
  0x3b   : > { %432 = vrot.lane.b32.xlu1 %v423_v12, %s911_s29 }
  0x3e   : > { %430 = vrot.lane.b32.xlu0 %v421_v13, %s911_s29 }
  0x3f   : > { %469 = vperm.xlu1 %871, %v460_v15  }
  0x42   : > { %464 = vperm.xlu0 %870, %v459_v16  }
  0x43   : > { %474 = vperm.xlu1 %871, %v461_v17  }
  0x46   : > { %620 = vperm.xlu0 %870, %v615_v18  }
  0x47   : > { %625 = vperm.xlu1 %871, %v616_v19  }
  0x4a   : > { %630 = vperm.xlu0 %870, %v617_v20  }
  0x4b   : > { %641 = vperm.xlu1 %871, %v636_v21  }
  0x4e   : > { %646 = vperm.xlu0 %870, %v637_v22  }
  0x4f   : > { %651 = vperm.xlu1 %871, %v638_v23  }
  0x89   : > { %v369_v24 = vpop.permute.xlu1 %368 }
  0x8c   : > { %v351_v25 = vpop.permute.xlu0 %350 }
  0x8d   : > { %v371_v26 = vpop.permute.xlu1 %370 }
  0x90   : > { %v367_v27 = vpop.permute.xlu0 %366 }
  0x91   : > { %v443_v28 = vsel %vm356_vm0, %v351_v25, %v367_v27  ;;  %v375_v29 = vpop.permute.xlu1 %374 }
  0x92   : > { %789 = vmatprep.subr.bf16.mxu0 %v443_v28 }
  0x93   : > { %790 = vmatpush3.bf16.msra.mxu0 %v976_v6 }
  0x94   : > { %v373_v30 = vpop.permute.xlu0 %372  ;;  %791 = vmatprep.subr.bf16.mxu0 %v369_v24 }
  0x95   : > { %v343_v31 = vpop.permute.xlu1 %342 }
  0x96   : > { %v439_v37 = vsel %vm438_vm8, %v970_v1, %v343_v31  ;;  %v457_v1 = vld [vmem:[%s1095_s1 + $0x18] sm:$0x77] }
  0x97   : > { %792 = vmatpush3.bf16.msra.mxu0 %v978_v7  ;;  %v777_v47 = vcombine.high %v457_v1, %v457_v1  ;;  %v776_v51 = vcombine.low %v457_v1, %v457_v1 }
  0x98   : > { %793 = vmatprep.subr.bf16.mxu0 %v371_v26  ;;  %v401_v32 = vpop.permute.xlu0 %400 }
  0x99   : > { %v345_v33 = vpop.permute.xlu1 %344  ;;  %v447_v6 = vsel %vm446_vm6, %v375_v29, %v401_v32 }
  0x9b   : > { %794 = vmatpush3.bf16.msra.mxu0 %v980_v8 }
  0x9c   : > { %795 = vmatprep.subr.bf16.mxu0 %v373_v30  ;;  %v403_v34 = vpop.permute.xlu0 %402 }
  0x9d   : > { %v425_v35 = vpop.permute.xlu1 %424 }
  0x9f   : > { %796 = vmatpush3.bf16.msra.mxu0 %v968_v0 }
  0xa0   : > { %797 = vmatprep.subr.bf16.mxu0 %v447_v6  ;;  %v409_v7 = vpop.permute.xlu0 %408 }
  0xa1   : > { %v451_v36 = vsel %vm414_vm3, %v409_v7, %v425_v35  ;;  %v347_v8 = vpop.permute.xlu1 %346 }
  0xa2   : > { %824 = vmatprep.subr.bf16.mxu1 %v451_v36 }
  0xa3   : > { %798 = vmatpush3.bf16.msra.mxu0 %v439_v37  ;;  %825 = vmatpush3.bf16.msra.mxu1 %v451_v36 }
  0xa4   : > { %v405_v38 = vpop.permute.xlu0 %404  ;;  %799 = vmatprep.subr.bf16.mxu0 %v403_v34 }
  0xa5   : > { %v407_v39 = vpop.permute.xlu1 %406 }
  0xa7   : > { %800 = vmatpush3.bf16.msra.mxu0 %v345_v33 }
  0xa8   : > { %v427_v0 = vpop.permute.xlu0 %426  ;;  %801 = vmatprep.subr.bf16.mxu0 %v405_v38 }
  0xa9   : > { %826 = vmatprep.subr.bf16.mxu1 %v427_v0  ;;  %v429_v42 = vpop.permute.xlu1 %428 }
  0xaa   : > { %827 = vmatpush3.bf16.msra.mxu1 %v427_v0 }
  0xab   : > { %802 = vmatpush3.bf16.msra.mxu0 %v347_v8  ;;  %828 = vmatprep.subr.bf16.mxu1 %v429_v42 }
  0xac   : > { %v349_v43 = vpop.permute.xlu0 %348  ;;  %803 = vmatprep.subr.bf16.mxu0 %v407_v39 }
  0xad   : > { %v433_v46 = vpop.permute.xlu1 %432 }
  0xae   : > { %829 = vmatpush3.bf16.msra.mxu1 %v429_v42  ;;  %v514_v49 = vand.u32 %v512_v44, %v433_v46 }
  0xaf   : > { %804 = vmatpush3.bf16.msra.mxu0 %v349_v43 }
  0xb0   : > { %v431_v48 = vpop.permute.xlu0 %430 }
  0xb1   : > { %830 = vmatprep.subr.bf16.mxu1 %v431_v48 }
  0xb2   : > { %549 = vmatmul.mubr.bf16.vlgmr.msra.gmra.mrb[0].mxu0 %v877_v45  ;;  %831 = vmatpush3.bf16.msra.mxu1 %v431_v48 }
  0xb3   : > { %832 = vmatprep.subr.bf16.mxu1 %v514_v49  ;;  %556 = vmatprep.mubr.bf16.mxu0 %v777_v47 }
  0xb6   : > { %833 = vmatpush3.bf16.msra.mxu1 %v514_v49 }
  0xb9   : > { %835 = vmatmul.mubr.msk.bf16.vlgmr.msra.gmra.mrb[0].mxu1 %vm502_vm4, %v882_v50 }
  0xba   : > { %557 = vmatmul.mubr.bf16.gmra.mrb[4].mxu0 %v776_v51 }
  0xbe   : > { %v470_v52 = vpop.permute.xlu1 %469 }
  0xc1   : > { %v465_v53 = vpop.permute.xlu0 %464 }
  0xc2   : > { %v475_v54 = vpop.permute.xlu1 %474 }
  0xc5   : > { %v621_v56 = vpop.permute.xlu0 %620 }
  0xc6   : > { %v626_v62 = vpop.permute.xlu1 %625 }
  0xc9   : > { %v631_v63 = vpop.permute.xlu0 %630 }
  0xca   : > { %v642_v20 = vpop.permute.xlu1 %641 }
  0xcd   : > { %v647_v26 = vpop.permute.xlu0 %646 }
  0xce   : > { %v652_v31 = vpop.permute.xlu1 %651 }
 0x185   : > { %v805_v55 = vpop.f32.mrb[0].mxu0 }
 0x186   : > { %v806_v57 = vpop.f32.mrb[1].mxu0 }
 0x187   : > { %v807_v58 = vadd.f32 %v806_v57, %v805_v55  ;;  %v808_v59 = vpop.f32.mrb[2].mxu0 }
 0x188   : > { %v809_v60 = vpop.f32.mrb[3].mxu0 }
 0x189   : > { %v810_v61 = vadd.f32 %v809_v60, %v808_v59  ;;  %v551_v3 = vadd.f32 %v807_v58, %v465_v53 }
 0x18b   : > { %v554_v12 = vadd.f32 %v810_v61, %v470_v52 }
 0x18c   : > { %v836_v2 = vpop.f32.mrb[0].mxu1 }
 0x18d   : > { %v811_v4 = vpop.f32.mrb[4].mxu0  ;;  %v598_v5 = vpop.f32.mrb[1].mxu1 }
 0x18e   : > { %v599_v9 = vadd.f32 %v598_v5, %v551_v3  ;;  %v812_v10 = vpop.f32.mrb[5].mxu0  ;;  %v837_v11 = vpop.f32.mrb[2].mxu1 }
 0x18f   : > { %v813_v13 = vadd.f32 %v812_v10, %v811_v4  ;;  %v814_v14 = vpop.f32.mrb[6].mxu0  ;;  %v601_v15 = vpop.f32.mrb[3].mxu1 }
 0x190   : > { %v612_v16 = vmax.f32 %v599_v9, 0.0  ;;  %v602_v17 = vadd.f32 %v601_v15, %v554_v12  ;;  %v815_v18 = vpop.f32.mrb[7].mxu0 }
 0x191   : > { %v559_v19 = vadd.f32 %v813_v13, %v475_v54 }
 0x192   : > { %v633_v21 = vmul.f32 %v621_v56, %v612_v16  ;;  %v613_v22 = vmax.f32 %v602_v17, 0.0 }
 0x193   : > { %v607_v23 = vadd.f32 %v836_v2, %v559_v19 }
 0x194   : > { %v654_v24 = vadd.f32 %v642_v20, %v633_v21  ;;  %v634_v25 = vmul.f32 %v626_v62, %v613_v22 }
 0x195   : > { %v614_v27 = vmax.f32 %v607_v23, 0.0 }
 0x196   : > { %v786_v28 = vpack.c.bf16 %v654_v24, %v654_v24  ;;  %v655_v29 = vadd.f32 %v647_v26, %v634_v25 }
 0x197   : > { %v635_v30 = vmul.f32 %v631_v63, %v614_v27 }
 0x198   : > { %671 = vst.msk [vmem:[%s258_s15] sm:$0xf] %vm670_vm11, %v786_v28  ;;  %v787_v32 = vpack.c.bf16 %v655_v29, %v655_v29 }
 0x199   : > { %v656_v33 = vadd.f32 %v652_v31, %v635_v30 }
 0x19a   : > { %672 = vst.msk [vmem:[%s258_s15 + $0x4] sm:$0xf] %vm670_vm11, %v787_v32 }
 0x19b   : > { %v788_v34 = vpack.c.bf16 %v656_v33, %v656_v33 }
 0x19d   : > { %674 = vst.msk [vmem:[%s258_s15 + $0x8] sm:$0x7] %vm673_vm12, %v788_v34 }
 0x19e PF: > { %s15_s20 = sadd.s32 1, %s906_s20   ;;  %s1100_s18 = smov %s902_s19 }
 0x19f   : > { %p12_p5 = scmp.ge.s32.totalorder %s15_s20, 4   ;;  %s1101_s19 = smov %s1103_s21 }
 0x1a1   :  { %14 = sbr.rel (!%p12_p5) target bundleno = 2 (0x2), region = 70 }

// kernel: utime_forward.36
= control target key start
LH: loop header
LB: loop body
LE: loop exit
PB: predicated region body
PF: predicated region fallthrough
CT: control target
= control target key end

     0   :  { %s710_s18 = smov 0   ;;  %s712_s19 = smov 0   ;;  %s791_s0 = inlined_call_operand.vmem [shape: bf16[2,1,22,12], index: 0, kind: input, shape index: {}]   ;;  %s792_s1 = inlined_call_operand.vmem [shape: bf16[22,110], index: 1, kind: input, shape index: {}]   ;;  %s793_s2 = inlined_call_operand.vmem [shape: f32[22,1], index: 2, kind: input, shape index: {}]   ;;  %s794_s3 = inlined_call_operand.vmem [shape: f32[22,1], index: 3, kind: input, shape index: {}]   ;;  %s795_s4 = inlined_call_operand.vmem [shape: f32[22,1], index: 4, kind: input, shape index: {}]   ;;  %s796_s5 = inlined_call_operand.vmem [shape: bf16[2,22,8], index: 5, kind: output, shape index: {}]  }
   0x1   :  { %s714_s20 = smov 0  }
   0x2 LB: > { %s27_s21 = sadd.s32 1, %s669_s19  ;;  %p566_p0 = scmp.ge.s32.totalorder %s673_s20, 1  ;;  %s673_s20 = sphi %s714_s20, %s15_s20   ;;  %s669_s19 = sphi %s712_s19, %s798_s19   ;;  %s665_s18 = sphi %s710_s18, %s797_s18  }
   0x3   : > { %p29_p1 = scmp.ge.s32.totalorder %s27_s21, 2  ;;  %p207_p2 = scmp.lt.s32.totalorder %s673_s20, 3 }
   0x5   : > { %s800_s21 = smov (%p29_p1, %s27_s21), 0  ;;  %p208_p3 = pnand %p566_p0, %p207_p2 }
   0x6   : > { %p242_p4 = scmp.lt.s32.totalorder (!%p208_p3), %s665_s18, 1  ;;  %vm272_vm0 = vcmask (!%p208_p3), 1042432   ;;  %vm280_vm1 = vcmask (!%p208_p3), 1045504   ;;  %s675_s26 = smov (!%p208_p3), 127   ;;  %vm291_vm2 = vcmask (!%p208_p3), 1040384   ;;  %v649_v15 = vld [vmem:[%s792_s1] sm:$0xff] (!%p208_p3)  }
   0x7   : > { %211 = sbr.rel (%p208_p3) target bundleno = 389 (0x185), region = 40  ;;  %s676_s27 = smov (!%p208_p3), 126   ;;  %vm354_vm3 = vcmask (!%p208_p3), 900096   ;;  %v679_v17 = vmov (!%p208_p3), 0   ;;  %v328_v18 = vld [vmem:[%s793_s2] sm:$0xff] (!%p208_p3)  ;;  %v329_v20 = vld [vmem:[%s793_s2 + $0x8] sm:$0xff] (!%p208_p3) }
   0x8   : > { %s677_s28 = smov (!%p208_p3), 125   ;;  %608 = vmatprep.mubr.msk.bf16.mxu0 (!%p208_p3), %vm354_vm3, %v649_v15  ;;  %s678_s6 = smov (!%p208_p3), 124   ;;  %643 = vset.pattern.permute.xlu1 (!%p208_p3), %v679_v17  ;;  %v330_v19 = vld [vmem:[%s793_s2 + $0x10] sm:$0x3f] (!%p208_p3)  ;;  %v416_v21 = vld [vmem:[%s794_s3] sm:$0xff] (!%p208_p3)  ;;  %v417_v22 = vld [vmem:[%s794_s3 + $0x8] sm:$0xff] (!%p208_p3) }
   0x9   : > { %644 = vset.pattern.permute.xlu0 (!%p208_p3), %v679_v17  ;;  %v418_v23 = vld [vmem:[%s794_s3 + $0x10] sm:$0x3f] (!%p208_p3)  ;;  %v437_v24 = vld [vmem:[%s795_s4] sm:$0xff] (!%p208_p3)  ;;  %v438_v25 = vld [vmem:[%s795_s4 + $0x8] sm:$0xff] (!%p208_p3)  ;;  %vm320_vm4 = vcmask (!%p208_p3), 1043456   ;;  %vm361_vm5 = vcmask (!%p208_p3), 1046528  }
   0xa   : > { %v439_v26 = vld [vmem:[%s795_s4 + $0x10] sm:$0x3f] (!%p208_p3)  ;;  %v650_v41 = vld [vmem:[%s792_s1 + $0x8] ss:$0 sps:$4 sm:$0x77] (!%p208_p3)   ;;  %vm474_vm6 = vcmask (!%p208_p3), 59392  }
   0xb   : > { %vm471_vm7 = vcmask (!%p208_p3), 60416  }
   0xe   : > { %s802_s18 = smov (!%p242_p4, %s665_s18), 1 }
   0xf   : > { %s613_s22 = smul.u32 12, %s802_s18 }
  0x11   : > { %s250_s25 = scalar_lea.vmem %s791_s0, %s613_s22  ;;  %s258_s9 = scalar_lea.vmem %s796_s5, %s613_s22 }
  0x12   : > { %v260_v0 = vld [vmem:[%s250_s25] sm:$0xf]  ;;  %v261_v1 = vld [vmem:[%s250_s25 + $0x4] sm:$0xf]  ;;  %v262_v2 = vld [vmem:[%s250_s25 + $0x8] sm:$0x7] }
  0x13   : > { %v569_v3 = vcombine.low %v260_v0, %v261_v1  ;;  %v570_v4 = vcombine.low %v262_v2, %v262_v2  ;;  %v571_v13 = vcombine.low %v260_v0, %v260_v0  ;;  %v572_v16 = vcombine.low %v261_v1, %v262_v2 }
  0x15   : > { %v273_v5 = vrot.slane %v569_v3, 5  ;;  %v281_v6 = vrot.slane %v569_v3, 2  ;;  %v274_v7 = vrot.slane %v570_v4, 5  ;;  %v282_v8 = vrot.slane %v570_v4, 2  ;;  %594 = vmatprep.subr.bf16.mxu0 %v569_v3 }
  0x16   : > { %595 = vmatpush3.bf16.msra.mxu0 %v569_v3  ;;  %v292_v11 = vrot.slane %v569_v3, 7  ;;  %v293_v12 = vrot.slane %v570_v4, 7 }
  0x17   : > { %276 = vrot.lane.b32.xlu0 %v273_v5, %s675_s26  ;;  %284 = vrot.lane.b32.xlu1 %v281_v6, %s676_s27  ;;  %v275_v9 = vsel %vm272_vm0, %v273_v5, %v274_v7  ;;  %v283_v10 = vsel %vm280_vm1, %v281_v6, %v282_v8 }
  0x18   : > { %v294_v14 = vsel %vm291_vm2, %v292_v11, %v293_v12 }
  0x1b   : > { %278 = vrot.lane.b32.xlu0 %v275_v9, %s675_s26  ;;  %286 = vrot.lane.b32.xlu1 %v283_v10, %s676_s27 }
  0x1f   : > { %295 = vrot.lane.b32.xlu1 %v292_v11, %s677_s28  ;;  %288 = vrot.lane.b32.xlu0 %v282_v8, %s676_s27 }
  0x23   : > { %301 = vrot.lane.b32.xlu1 %v571_v13, %s678_s6  ;;  %297 = vrot.lane.b32.xlu0 %v294_v14, %s677_s28 }
  0x27   : > { %303 = vrot.lane.b32.xlu0 %v572_v16, %s678_s6  ;;  %333 = vperm.xlu1 %643, %v328_v18  }
  0x2b   : > { %343 = vperm.xlu1 %643, %v330_v19   ;;  %338 = vperm.xlu0 %644, %v329_v20  }
  0x2f   : > { %421 = vperm.xlu1 %643, %v416_v21   ;;  %426 = vperm.xlu0 %644, %v417_v22  }
  0x33   : > { %431 = vperm.xlu1 %643, %v418_v23   ;;  %442 = vperm.xlu0 %644, %v437_v24  }
  0x37   : > { %447 = vperm.xlu1 %643, %v438_v25   ;;  %452 = vperm.xlu0 %644, %v439_v26  }
  0x89   : > { %v277_v27 = vpop.permute.xlu0 %276  ;;  %v285_v28 = vpop.permute.xlu1 %284 }
  0x8a   : > { %v308_v29 = vsel %vm272_vm0, %v570_v4, %v277_v27 }
  0x8b   : > { %596 = vmatprep.subr.bf16.mxu0 %v308_v29 }
  0x8c   : > { %597 = vmatpush3.bf16.msra.mxu0 %v308_v29 }
  0x8d   : > { %v279_v30 = vpop.permute.xlu0 %278  ;;  %v287_v31 = vpop.permute.xlu1 %286 }
  0x8e   : > { %v313_v32 = vsel %vm280_vm1, %v279_v30, %v285_v28 }
  0x8f   : > { %598 = vmatprep.subr.bf16.mxu0 %v313_v32 }
  0x90   : > { %599 = vmatpush3.bf16.msra.mxu0 %v313_v32 }
  0x91   : > { %600 = vmatprep.subr.bf16.mxu0 %v287_v31  ;;  %v296_v33 = vpop.permute.xlu1 %295  ;;  %v289_v34 = vpop.permute.xlu0 %288 }
  0x92   : > { %v318_v35 = vsel %vm291_vm2, %v289_v34, %v296_v33 }
  0x94   : > { %601 = vmatpush3.bf16.msra.mxu0 %v287_v31 }
  0x95   : > { %602 = vmatprep.subr.bf16.mxu0 %v318_v35  ;;  %v302_v36 = vpop.permute.xlu1 %301  ;;  %v298_v37 = vpop.permute.xlu0 %297 }
  0x96   : > { %v323_v38 = vsel %vm320_vm4, %v298_v37, %v302_v36 }
  0x98   : > { %603 = vmatpush3.bf16.msra.mxu0 %v318_v35 }
  0x99   : > { %604 = vmatprep.subr.bf16.mxu0 %v323_v38  ;;  %v304_v39 = vpop.permute.xlu0 %303 }
  0x9a   : > { %v363_v40 = vsel %vm361_vm5, %v304_v39, 0 }
  0x9c   : > { %605 = vmatpush3.bf16.msra.mxu0 %v323_v38 }
  0x9d   : > { %612 = vmatprep.subr.msk.bf16.mxu0 %vm361_vm5, %v304_v39 }
  0xa0   : > { %607 = vmatpush3.bf16.msra.mxu0 %v363_v40 }
  0xa3   : > { %609 = vmatmul.mubr.msk.bf16.vlgmr.msra.gmra.mrb[0].mxu0 %vm354_vm3, %v650_v41 }
  0xa6   : > { %v334_v42 = vpop.permute.xlu1 %333 }
  0xaa   : > { %v339_v43 = vpop.permute.xlu0 %338  ;;  %v344_v44 = vpop.permute.xlu1 %343 }
  0xae   : > { %v427_v45 = vpop.permute.xlu0 %426  ;;  %v422_v46 = vpop.permute.xlu1 %421 }
  0xb2   : > { %v443_v47 = vpop.permute.xlu0 %442  ;;  %v432_v53 = vpop.permute.xlu1 %431 }
  0xb6   : > { %v453_v59 = vpop.permute.xlu0 %452  ;;  %v448_v1 = vpop.permute.xlu1 %447 }
 0x176   : > { %v610_v48 = vpop.f32.mrb[0].mxu0 }
 0x177   : > { %v408_v49 = vadd.f32 %v610_v48, %v344_v44  ;;  %v399_v50 = vpop.f32.mrb[1].mxu0 }
 0x178   : > { %v400_v51 = vadd.f32 %v399_v50, %v334_v42  ;;  %v611_v52 = vpop.f32.mrb[2].mxu0 }
 0x179   : > { %v415_v54 = vmax.f32 %v408_v49, 0.0  ;;  %v402_v55 = vpop.f32.mrb[3].mxu0 }
 0x17a   : > { %v413_v56 = vmax.f32 %v400_v51, 0.0  ;;  %v403_v57 = vadd.f32 %v402_v55, %v339_v43 }
 0x17b   : > { %v436_v58 = vmul.f32 %v432_v53, %v415_v54 }
 0x17c   : > { %v434_v60 = vmul.f32 %v422_v46, %v413_v56  ;;  %v414_v61 = vmax.f32 %v403_v57, 0.0 }
 0x17d   : > { %v457_v62 = vadd.f32 %v453_v59, %v436_v58 }
 0x17e   : > { %v455_v63 = vadd.f32 %v443_v47, %v434_v60  ;;  %v435_v0 = vmul.f32 %v427_v45, %v414_v61 }
 0x17f   : > { %v584_v2 = vpack.c.bf16 %v457_v62, %v457_v62 }
 0x180   : > { %v582_v3 = vpack.c.bf16 %v455_v63, %v455_v63  ;;  %v456_v4 = vadd.f32 %v448_v1, %v435_v0 }
 0x181   : > { %475 = vst.msk [vmem:[%s258_s9 + $0x8] sm:$0x7] %vm474_vm6, %v584_v2 }
 0x182   : > { %472 = vst.msk [vmem:[%s258_s9] sm:$0xf] %vm471_vm7, %v582_v3  ;;  %v583_v5 = vpack.c.bf16 %v456_v4, %v456_v4 }
 0x184   : > { %473 = vst.msk [vmem:[%s258_s9 + $0x4] sm:$0xf] %vm471_vm7, %v583_v5 }
 0x185 PF: > { %s15_s20 = sadd.s32 1, %s673_s20   ;;  %s797_s18 = smov %s669_s19 }
 0x186   : > { %p12_p5 = scmp.ge.s32.totalorder %s15_s20, 4   ;;  %s798_s19 = smov %s800_s21 }
 0x188   :  { %14 = sbr.rel (!%p12_p5) target bundleno = 2 (0x2), region = 70 }

// kernel: utime_forward.38
= control target key start
LH: loop header
LB: loop body
LE: loop exit
PB: predicated region body
PF: predicated region fallthrough
CT: control target
= control target key end

     0   :  { %s672_s18 = smov 0   ;;  %s674_s19 = smov 0   ;;  %s744_s0 = inlined_call_operand.vmem [shape: bf16[2,1,22,20], index: 0, kind: input, shape index: {}]   ;;  %s745_s1 = inlined_call_operand.vmem [shape: bf16[11,110], index: 1, kind: input, shape index: {}]   ;;  %s746_s2 = inlined_call_operand.vmem [shape: f32[11,1], index: 2, kind: input, shape index: {}]   ;;  %s747_s3 = inlined_call_operand.vmem [shape: f32[11,1], index: 3, kind: input, shape index: {}]   ;;  %s748_s4 = inlined_call_operand.vmem [shape: f32[11,1], index: 4, kind: input, shape index: {}]   ;;  %s749_s5 = inlined_call_operand.vmem [shape: bf16[2,11,16], index: 5, kind: output, shape index: {}]  }
   0x1   :  { %s676_s20 = smov 0  }
   0x2 LB: > { %s27_s21 = sadd.s32 1, %s629_s19  ;;  %p529_p0 = scmp.ge.s32.totalorder %s633_s20, 1  ;;  %s633_s20 = sphi %s676_s20, %s15_s20   ;;  %s629_s19 = sphi %s674_s19, %s751_s19   ;;  %s625_s18 = sphi %s672_s18, %s750_s18  }
   0x3   : > { %p29_p1 = scmp.ge.s32.totalorder %s27_s21, 2  ;;  %p207_p2 = scmp.lt.s32.totalorder %s633_s20, 3 }
   0x5   : > { %s753_s21 = smov (%p29_p1, %s27_s21), 0  ;;  %p208_p3 = pnand %p529_p0, %p207_p2 }
   0x6   : > { %p242_p4 = scmp.lt.s32.totalorder (!%p208_p3), %s625_s18, 1  ;;  %v635_v0 = vmov (!%p208_p3), 0.0   ;;  %vm272_vm0 = vcmask (!%p208_p3), 1042432   ;;  %vm280_vm1 = vcmask (!%p208_p3), 1045504   ;;  %s636_s26 = smov (!%p208_p3), 127   ;;  %vm291_vm2 = vcmask (!%p208_p3), 1040384  }
   0x7   : > { %211 = sbr.rel (%p208_p3) target bundleno = 388 (0x184), region = 40  ;;  %554 = vmatprep.subr.bf16.mxu0 (!%p208_p3), %v635_v0  ;;  %s637_s27 = smov (!%p208_p3), 126   ;;  %vm639_vm3 = vmmov (!%p208_p3), 0   ;;  %v641_v17 = vmov (!%p208_p3), 0   ;;  %v328_v18 = vld [vmem:[%s746_s2 + $0x8] sm:$0x7] (!%p208_p3) }
   0x8   : > { %s638_s28 = smov (!%p208_p3), 125   ;;  %568 = vmatprep.mubr.msk.bf16.mxu0 (!%p208_p3), %vm639_vm3, %v635_v0  ;;  %s640_s29 = smov (!%p208_p3), 124   ;;  %604 = vset.pattern.permute.xlu1 (!%p208_p3), %v641_v17  ;;  %v396_v19 = vld [vmem:[%s747_s3 + $0x8] sm:$0x7] (!%p208_p3)  ;;  %v327_v20 = vld [vmem:[%s746_s2] sm:$0xff] (!%p208_p3)  ;;  %vm320_vm4 = vcmask (!%p208_p3), 1043456  }
   0x9   : > { %605 = vset.pattern.permute.xlu0 (!%p208_p3), %v641_v17  ;;  %v395_v21 = vld [vmem:[%s747_s3] sm:$0xff] (!%p208_p3)  ;;  %v410_v22 = vld [vmem:[%s748_s4 + $0x8] sm:$0x7] (!%p208_p3)  ;;  %vm348_vm5 = vcmask (!%p208_p3), 1046528   ;;  %vm344_vm6 = vcmask (!%p208_p3), 900096   ;;  %vm433_vm7 = vcmask (!%p208_p3), 123904  }
   0xa   : > { %v409_v23 = vld [vmem:[%s748_s4] sm:$0xff] (!%p208_p3)  ;;  %vm434_vm8 = vsmask.f32 (!%p208_p3), 1280  ;;  %vm431_vm9 = vcmask (!%p208_p3), 125952  }
   0xb   : > { %v610_v38 = vld [vmem:[%s745_s1] sm:$0x3f] (!%p208_p3)   ;;  %vm435_vm10 = vmand (!%p208_p3), %vm433_vm7, %vm434_vm8 }
   0xe   : > { %s755_s18 = smov (!%p242_p4, %s625_s18), 1 }
   0xf   : > { %s572_s22 = smul.u32 12, %s755_s18  ;;  %s543_s23 = sshll.u32 %s755_s18, 3 }
  0x11   : > { %s250_s25 = scalar_lea.vmem %s744_s0, %s572_s22 }
  0x12   : > { %v260_v1 = vld [vmem:[%s250_s25] sm:$0xf]  ;;  %v261_v2 = vld [vmem:[%s250_s25 + $0x4] sm:$0xf]  ;;  %v262_v3 = vld [vmem:[%s250_s25 + $0x8] sm:$0x7] }
  0x13   : > { %v533_v4 = vcombine.low %v260_v1, %v261_v2  ;;  %v534_v5 = vcombine.low %v262_v3, %v262_v3  ;;  %v535_v14 = vcombine.low %v260_v1, %v260_v1  ;;  %v536_v16 = vcombine.low %v261_v2, %v262_v3 }
  0x15   : > { %v273_v6 = vrot.slane %v533_v4, 5  ;;  %v281_v7 = vrot.slane %v533_v4, 2  ;;  %v274_v8 = vrot.slane %v534_v5, 5  ;;  %v282_v9 = vrot.slane %v534_v5, 2  ;;  %555 = vmatpush3.bf16.msra.mxu0 %v533_v4 }
  0x16   : > { %556 = vmatprep.subr.bf16.mxu0 %v635_v0  ;;  %v292_v12 = vrot.slane %v533_v4, 7  ;;  %v293_v13 = vrot.slane %v534_v5, 7 }
  0x17   : > { %276 = vrot.lane.b32.xlu0 %v273_v6, %s636_s26  ;;  %284 = vrot.lane.b32.xlu1 %v281_v7, %s637_s27  ;;  %v275_v10 = vsel %vm272_vm0, %v273_v6, %v274_v8  ;;  %v283_v11 = vsel %vm280_vm1, %v281_v7, %v282_v9 }
  0x18   : > { %v294_v15 = vsel %vm291_vm2, %v292_v12, %v293_v13 }
  0x1b   : > { %278 = vrot.lane.b32.xlu0 %v275_v10, %s636_s26  ;;  %286 = vrot.lane.b32.xlu1 %v283_v11, %s637_s27  ;;  %s258_s26 = scalar_lea.vmem %s749_s5, %s543_s23 }
  0x1c   : > { %v436_v58 = vld [vmem:[%s258_s26 + $0x4] sm:$0x3] }
  0x1f   : > { %295 = vrot.lane.b32.xlu1 %v292_v12, %s638_s28  ;;  %288 = vrot.lane.b32.xlu0 %v282_v9, %s637_s27 }
  0x23   : > { %301 = vrot.lane.b32.xlu1 %v535_v14, %s640_s29  ;;  %297 = vrot.lane.b32.xlu0 %v294_v15, %s638_s28 }
  0x27   : > { %303 = vrot.lane.b32.xlu0 %v536_v16, %s640_s29  ;;  %336 = vperm.xlu1 %604, %v328_v18  }
  0x2b   : > { %404 = vperm.xlu1 %604, %v396_v19   ;;  %331 = vperm.xlu0 %605, %v327_v20  }
  0x2f   : > { %399 = vperm.xlu1 %604, %v395_v21   ;;  %418 = vperm.xlu0 %605, %v410_v22  }
  0x33   : > { %413 = vperm.xlu1 %604, %v409_v23  }
  0x89   : > { %v277_v24 = vpop.permute.xlu0 %276  ;;  %v285_v25 = vpop.permute.xlu1 %284 }
  0x8a   : > { %v308_v26 = vsel %vm272_vm0, %v534_v5, %v277_v24 }
  0x8b   : > { %557 = vmatpush3.bf16.msra.mxu0 %v308_v26 }
  0x8c   : > { %558 = vmatprep.subr.bf16.mxu0 %v635_v0 }
  0x8d   : > { %v279_v27 = vpop.permute.xlu0 %278  ;;  %v287_v28 = vpop.permute.xlu1 %286 }
  0x8e   : > { %v313_v29 = vsel %vm280_vm1, %v279_v27, %v285_v25 }
  0x8f   : > { %559 = vmatpush3.bf16.msra.mxu0 %v313_v29 }
  0x90   : > { %560 = vmatprep.subr.bf16.mxu0 %v635_v0 }
  0x91   : > { %v296_v30 = vpop.permute.xlu1 %295  ;;  %v289_v31 = vpop.permute.xlu0 %288 }
  0x92   : > { %v318_v32 = vsel %vm291_vm2, %v289_v31, %v296_v30 }
  0x93   : > { %561 = vmatpush3.bf16.msra.mxu0 %v287_v28 }
  0x94   : > { %562 = vmatprep.subr.bf16.mxu0 %v635_v0 }
  0x95   : > { %v302_v33 = vpop.permute.xlu1 %301  ;;  %v298_v34 = vpop.permute.xlu0 %297 }
  0x96   : > { %v323_v35 = vsel %vm320_vm4, %v298_v34, %v302_v33 }
  0x97   : > { %563 = vmatpush3.bf16.msra.mxu0 %v318_v32 }
  0x98   : > { %564 = vmatprep.subr.bf16.mxu0 %v635_v0 }
  0x99   : > { %v304_v36 = vpop.permute.xlu0 %303 }
  0x9a   : > { %v350_v37 = vsel %vm348_vm5, %v304_v36, 0 }
  0x9b   : > { %565 = vmatpush3.bf16.msra.mxu0 %v323_v35 }
  0x9c   : > { %566 = vmatprep.subr.bf16.mxu0 %v635_v0 }
  0x9f   : > { %567 = vmatpush3.bf16.msra.mxu0 %v350_v37 }
  0xa2   : > { %569 = vmatmul.mubr.msk.bf16.vlgmr.msra.gmra.mrb[0].mxu0 %vm344_vm6, %v610_v38 }
  0xa6   : > { %v337_v39 = vpop.permute.xlu1 %336 }
  0xaa   : > { %v405_v40 = vpop.permute.xlu1 %404  ;;  %v332_v41 = vpop.permute.xlu0 %331 }
  0xae   : > { %v400_v42 = vpop.permute.xlu1 %399  ;;  %v419_v55 = vpop.permute.xlu0 %418 }
  0xb2   : > { %v414_v52 = vpop.permute.xlu1 %413 }
 0x175   : > { %v386_v43 = vpop.f32.mrb[0].mxu0 }
 0x176   : > { %v387_v44 = vadd.f32 %v386_v43, %v332_v41  ;;  %v570_v45 = vpop.f32.mrb[1].mxu0 }
 0x177   : > { %v389_v46 = vpop.f32.mrb[2].mxu0 }
 0x178   : > { %v393_v47 = vmax.f32 %v387_v44, 0.0  ;;  %v390_v48 = vadd.f32 %v389_v46, %v337_v39  ;;  %v571_v49 = vpop.f32.mrb[3].mxu0 }
 0x17a   : > { %v407_v50 = vmul.f32 %v400_v42, %v393_v47  ;;  %v394_v51 = vmax.f32 %v390_v48, 0.0 }
 0x17c   : > { %v421_v53 = vadd.f32 %v414_v52, %v407_v50  ;;  %v408_v54 = vmul.f32 %v405_v40, %v394_v51 }
 0x17e   : > { %v544_v56 = vpack.c.bf16 %v421_v53, %v421_v53  ;;  %v422_v57 = vadd.f32 %v419_v55, %v408_v54 }
 0x180   : > { %432 = vst.msk [vmem:[%s258_s26] sm:$0xf] %vm431_vm9, %v544_v56  ;;  %v545_v59 = vpack.c.bf16 %v422_v57, %v422_v57 }
 0x182   : > { %v437_v60 = vsel %vm435_vm10, %v545_v59, %v436_v58 }
 0x183   : > { %438 = vst [vmem:[%s258_s26 + $0x4] sm:$0x3] %v437_v60 }
 0x184 PF: > { %s15_s20 = sadd.s32 1, %s633_s20   ;;  %s750_s18 = smov %s629_s19 }
 0x185   : > { %p12_p5 = scmp.ge.s32.totalorder %s15_s20, 4   ;;  %s751_s19 = smov %s753_s21 }
 0x187   :  { %14 = sbr.rel (!%p12_p5) target bundleno = 2 (0x2), region = 70 }

// kernel: utime_forward.39
= control target key start
LH: loop header
LB: loop body
LE: loop exit
PB: predicated region body
PF: predicated region fallthrough
CT: control target
= control target key end

     0   :  { %s693_s18 = smov 0   ;;  %s695_s19 = smov 0   ;;  %s789_s0 = inlined_call_operand.vmem [shape: bf16[2,1,33,20], index: 0, kind: input, shape index: {}]   ;;  %s790_s1 = inlined_call_operand.vmem [shape: bf16[11,165], index: 1, kind: input, shape index: {}]   ;;  %s791_s2 = inlined_call_operand.vmem [shape: f32[11,1], index: 2, kind: input, shape index: {}]   ;;  %s792_s3 = inlined_call_operand.vmem [shape: f32[11,1], index: 3, kind: input, shape index: {}]   ;;  %s793_s4 = inlined_call_operand.vmem [shape: f32[11,1], index: 4, kind: input, shape index: {}]   ;;  %s794_s5 = inlined_call_operand.vmem [shape: bf16[2,11,16], index: 5, kind: output, shape index: {}]  }
   0x1   :  { %s697_s20 = smov 0  }
   0x2 LB: > { %s27_s21 = sadd.s32 1, %s651_s19  ;;  %p577_p0 = scmp.ge.s32.totalorder %s655_s20, 1  ;;  %s655_s20 = sphi %s697_s20, %s15_s20   ;;  %s651_s19 = sphi %s695_s19, %s796_s19   ;;  %s647_s18 = sphi %s693_s18, %s795_s18  }
   0x3   : > { %p29_p1 = scmp.ge.s32.totalorder %s27_s21, 2  ;;  %p207_p2 = scmp.lt.s32.totalorder %s655_s20, 3 }
   0x5   : > { %s798_s21 = smov (%p29_p1, %s27_s21), 0  ;;  %p208_p3 = pnand %p577_p0, %p207_p2 }
   0x6   : > { %p242_p4 = scmp.lt.s32.totalorder (!%p208_p3), %s647_s18, 1  ;;  %v657_v0 = vmov (!%p208_p3), 0   ;;  %vm281_vm0 = vsmask.f32 (!%p208_p3), 256  ;;  %s658_s26 = smov (!%p208_p3), 127   ;;  %vm309_vm1 = vcmask (!%p208_p3), 1040384  }
   0x7   : > { %211 = sbr.rel (%p208_p3) target bundleno = 402 (0x192), region = 40  ;;  %401 = vmatprep.subr.bf16.mxu0 (!%p208_p3), %v657_v0  ;;  %626 = vset.pattern.permute.xlu1 (!%p208_p3), %v657_v0  ;;  %s659_s27 = smov (!%p208_p3), 126   ;;  %vm323_vm2 = vsmask.f32 (!%p208_p3), 1280  ;;  %vm341_vm3 = vcmask (!%p208_p3), 1041408   ;;  %vm391_vm4 = vcmask (!%p208_p3), 302080   ;;  %vm354_vm5 = vmand (!%p208_p3), %vm309_vm1, %vm281_vm0 }
   0x8   : > { %625 = vset.pattern.permute.xlu0 (!%p208_p3), %v657_v0  ;;  %s660_s28 = smov (!%p208_p3), 125   ;;  %s661_s29 = smov (!%p208_p3), 124   ;;  %v632_v34 = vld [vmem:[%s790_s1 + $0x4] ss:$8 sps:$4 sm:$0x3f] (!%p208_p3)   ;;  %vm361_vm6 = vmand (!%p208_p3), %vm341_vm3, %vm323_vm2  ;;  %vm395_vm7 = vcmask (!%p208_p3), 1042432  }
   0x9   : > { %586 = vmatprep.mubr.msk.bf16.mxu0 (!%p208_p3), %vm391_vm4, %v632_v34  ;;  %v370_v35 = vld [vmem:[%s791_s2] sm:$0xff] (!%p208_p3)  ;;  %v371_v36 = vld [vmem:[%s791_s2 + $0x8] sm:$0x7] (!%p208_p3)  ;;  %v662_v55 = vmov (!%p208_p3), 65535   ;;  %vm482_vm8 = vcmask (!%p208_p3), 123904   ;;  %vm480_vm9 = vcmask (!%p208_p3), 125952  }
   0xa   : > { %v445_v37 = vld [vmem:[%s792_s3 + $0x8] sm:$0x7] (!%p208_p3)  ;;  %v444_v38 = vld [vmem:[%s792_s3] sm:$0xff] (!%p208_p3)  ;;  %v396_v56 = vsel (!%p208_p3), %vm341_vm3, 4294967295, %v662_v55  ;;  %vm483_vm10 = vmand (!%p208_p3), %vm482_vm8, %vm323_vm2 }
   0xb   : > { %v459_v39 = vld [vmem:[%s793_s4 + $0x8] sm:$0x7] (!%p208_p3)  ;;  %v458_v40 = vld [vmem:[%s793_s4] sm:$0xff] (!%p208_p3)  ;;  %v397_v58 = vsel (!%p208_p3), %vm395_vm7, %v396_v56, 0 }
   0xc   : > { %v630_v61 = vld [vmem:[%s790_s1] ss:$8 sps:$4 sm:$0x3f] (!%p208_p3)  }
   0xe   : > { %s800_s18 = smov (!%p242_p4, %s647_s18), 1 }
   0xf   : > { %s594_s22 = smul.u32 20, %s800_s18 }
  0x11   : > { %s250_s25 = scalar_lea.vmem %s789_s0, %s594_s22 }
  0x12   : > { %v627_v1 = vld [vmem:[%s250_s25 + $0x8] sm:$0xff]   ;;  %v720_v2 = vld [vmem:[%s250_s25 + $0x10] ss:$0 sps:$4 sm:$0x11]   ;;  %v629_v3 = vld [vmem:[%s250_s25] sm:$0xff]   ;;  %s591_s25 = sshll.u32 %s800_s18, 3 }
  0x13   : > { %v290_v4 = vshrl.u32 %v627_v1, 16  ;;  %v298_v5 = vshll.u32 %v720_v2, 16  ;;  %v293_v6 = vshll.u32 %v627_v1, 16  ;;  %v283_v7 = vshrl.u32 %v629_v3, 16  ;;  %402 = vmatpush1.bf16.msra.mxu0 %v629_v3 }
  0x14   : > { %v286_v8 = vshll.u32 %v629_v3, 16  ;;  %403 = vmatprep.subr.bf16.mxu0 %v657_v0  ;;  %v310_v14 = vrot.slane %v629_v3, 7  ;;  %v313_v15 = vrot.slane %v720_v2, 7  ;;  %v311_v20 = vrot.slane %v627_v1, 7 }
  0x15   : > { %v292_v9 = vrot.slane %v290_v4, 7  ;;  %v285_v10 = vrot.slane %v283_v7, 7  ;;  %v327_v16 = vrot.slane %v290_v4, 6  ;;  %v328_v17 = vrot.slane %v293_v6, 7 }
  0x16   : > { %v325_v18 = vrot.slane %v286_v8, 7  ;;  %v324_v21 = vrot.slane %v283_v7, 6  ;;  %v314_v22 = vsel %vm309_vm1, %v311_v20, %v313_v15  ;;  %v312_v24 = vsel %vm309_vm1, %v310_v14, %v311_v20 }
  0x17   : > { %v300_v11 = vsel %vm281_vm0, %v292_v9, %v298_v5  ;;  %v295_v12 = vor.u32 %v293_v6, %v292_v9  ;;  %v288_v13 = vor.u32 %v286_v8, %v285_v10  ;;  %404 = vmatpush1.bf16.msra.mxu0 %v627_v1  ;;  %v329_v23 = vor.u32 %v328_v17, %v327_v16 }
  0x18   : > { %305 = vrot.lane.b32.xlu1 %v300_v11, %s658_s26  ;;  %405 = vmatprep.subr.bf16.mxu0 %v657_v0  ;;  %v326_v25 = vor.u32 %v325_v18, %v324_v21  ;;  %v331_v27 = vrot.slane %v298_v5, 7  ;;  %v342_v28 = vrot.slane %v629_v3, 6  ;;  %v345_v29 = vrot.slane %v720_v2, 6 }
  0x19   : > { %301 = vrot.lane.b32.xlu0 %v288_v13, %s658_s26  ;;  %v296_v19 = vsel %vm281_vm0, %v285_v10, %v295_v12  ;;  %v343_v31 = vrot.slane %v627_v1, 6 }
  0x1a   : > { %v330_v26 = vsel %vm323_vm2, %v326_v25, %v329_v23  ;;  %v332_v30 = vsel %vm323_vm2, %v329_v23, %v331_v27 }
  0x1b   : > { %v346_v32 = vsel %vm341_vm3, %v343_v31, %v345_v29  ;;  %v344_v33 = vsel %vm341_vm3, %v342_v28, %v343_v31 }
  0x1c   : > { %315 = vrot.lane.b32.xlu1 %v310_v14, %s659_s27 }
  0x1d   : > { %303 = vrot.lane.b32.xlu0 %v296_v19, %s658_s26 }
  0x20   : > { %319 = vrot.lane.b32.xlu1 %v314_v22, %s659_s27 }
  0x21   : > { %317 = vrot.lane.b32.xlu0 %v312_v24, %s659_s27 }
  0x24   : > { %335 = vrot.lane.b32.xlu1 %v330_v26, %s660_s28 }
  0x25   : > { %333 = vrot.lane.b32.xlu0 %v326_v25, %s660_s28 }
  0x28   : > { %347 = vrot.lane.b32.xlu1 %v342_v28, %s661_s29 }
  0x29   : > { %337 = vrot.lane.b32.xlu0 %v332_v30, %s660_s28  ;;  %s258_s28 = scalar_lea.vmem %s794_s5, %s591_s25 }
  0x2a   : > { %v484_v17 = vld [vmem:[%s258_s28 + $0x4] sm:$0x3] }
  0x2c   : > { %351 = vrot.lane.b32.xlu1 %v346_v32, %s661_s29 }
  0x2d   : > { %349 = vrot.lane.b32.xlu0 %v344_v33, %s661_s29 }
  0x30   : > { %374 = vperm.xlu1 %626, %v370_v35  }
  0x31   : > { %379 = vperm.xlu0 %625, %v371_v36  }
  0x34   : > { %453 = vperm.xlu1 %626, %v445_v37  }
  0x35   : > { %448 = vperm.xlu0 %625, %v444_v38  }
  0x38   : > { %467 = vperm.xlu1 %626, %v459_v39  }
  0x39   : > { %462 = vperm.xlu0 %625, %v458_v40  }
  0x8a   : > { %v306_v41 = vpop.permute.xlu1 %305 }
  0x8b   : > { %v302_v42 = vpop.permute.xlu0 %301 }
  0x8c   : > { %v355_v43 = vsel %vm354_vm5, %v720_v2, %v302_v42 }
  0x8d   : > { %406 = vmatpush1.bf16.msra.mxu0 %v355_v43 }
  0x8e   : > { %407 = vmatprep.subr.bf16.mxu0 %v657_v0  ;;  %v316_v44 = vpop.permute.xlu1 %315 }
  0x8f   : > { %v304_v45 = vpop.permute.xlu0 %303  ;;  %v359_v48 = vsel %vm309_vm1, %v306_v41, %v316_v44 }
  0x91   : > { %408 = vmatpush1.bf16.msra.mxu0 %v304_v45 }
  0x92   : > { %409 = vmatprep.subr.bf16.mxu0 %v657_v0  ;;  %v320_v47 = vpop.permute.xlu1 %319 }
  0x93   : > { %v318_v46 = vpop.permute.xlu0 %317 }
  0x95   : > { %410 = vmatpush1.bf16.msra.mxu0 %v359_v48 }
  0x96   : > { %411 = vmatprep.subr.bf16.mxu0 %v657_v0  ;;  %v336_v50 = vpop.permute.xlu1 %335 }
  0x97   : > { %v334_v49 = vpop.permute.xlu0 %333 }
  0x98   : > { %v362_v51 = vsel %vm361_vm6, %v320_v47, %v334_v49 }
  0x99   : > { %412 = vmatpush1.bf16.msra.mxu0 %v318_v46 }
  0x9a   : > { %413 = vmatprep.subr.bf16.mxu0 %v657_v0  ;;  %v348_v52 = vpop.permute.xlu1 %347 }
  0x9b   : > { %v338_v53 = vpop.permute.xlu0 %337 }
  0x9c   : > { %v366_v54 = vsel %vm341_vm3, %v338_v53, %v348_v52 }
  0x9d   : > { %414 = vmatpush1.bf16.msra.mxu0 %v362_v51 }
  0x9e   : > { %415 = vmatprep.subr.bf16.mxu0 %v657_v0  ;;  %v352_v59 = vpop.permute.xlu1 %351 }
  0x9f   : > { %v350_v57 = vpop.permute.xlu0 %349  ;;  %v399_v60 = vand.u32 %v397_v58, %v352_v59 }
  0xa1   : > { %416 = vmatpush1.bf16.msra.mxu0 %v336_v50 }
  0xa2   : > { %417 = vmatprep.subr.bf16.mxu0 %v657_v0 }
  0xa5   : > { %418 = vmatpush1.bf16.msra.mxu0 %v366_v54 }
  0xa6   : > { %419 = vmatprep.subr.bf16.mxu0 %v657_v0 }
  0xa9   : > { %420 = vmatpush1.bf16.msra.mxu0 %v350_v57 }
  0xaa   : > { %421 = vmatprep.subr.bf16.mxu0 %v657_v0 }
  0xad   : > { %422 = vmatpush1.bf16.msra.mxu0 %v399_v60 }
  0xaf   : > { %v375_v63 = vpop.permute.xlu1 %374 }
  0xb0   : > { %434 = vmatmul.mubr.bf16.vlgmr.msra.gmra.mrb[0].mxu0 %v630_v61  ;;  %v380_v62 = vpop.permute.xlu0 %379 }
  0xb3   : > { %v454_v5 = vpop.permute.xlu1 %453 }
  0xb4   : > { %v449_v1 = vpop.permute.xlu0 %448 }
  0xb7   : > { %v468_v14 = vpop.permute.xlu1 %467 }
  0xb8   : > { %v463_v11 = vpop.permute.xlu0 %462 }
 0x183   : > { %v435_v2 = vpop.f32.mrb[0].mxu0 }
 0x184   : > { %v436_v3 = vadd.f32 %v435_v2, %v375_v63  ;;  %v437_v4 = vpop.f32.mrb[1].mxu0 }
 0x185   : > { %v438_v6 = vpop.f32.mrb[2].mxu0 }
 0x186   : > { %v442_v7 = vmax.f32 %v436_v3, 0.0  ;;  %v439_v8 = vadd.f32 %v438_v6, %v380_v62  ;;  %v440_v9 = vpop.f32.mrb[3].mxu0 }
 0x188   : > { %v456_v10 = vmul.f32 %v449_v1, %v442_v7  ;;  %v443_v0 = vmax.f32 %v439_v8, 0.0 }
 0x18a   : > { %v470_v12 = vadd.f32 %v463_v11, %v456_v10  ;;  %v457_v13 = vmul.f32 %v454_v5, %v443_v0 }
 0x18c   : > { %v592_v15 = vpack.c.bf16 %v470_v12, %v470_v12  ;;  %v471_v16 = vadd.f32 %v468_v14, %v457_v13 }
 0x18e   : > { %481 = vst.msk [vmem:[%s258_s28] sm:$0xf] %vm480_vm9, %v592_v15  ;;  %v593_v18 = vpack.c.bf16 %v471_v16, %v471_v16 }
 0x190   : > { %v485_v19 = vsel %vm483_vm10, %v593_v18, %v484_v17 }
 0x191   : > { %486 = vst [vmem:[%s258_s28 + $0x4] sm:$0x3] %v485_v19 }
 0x192 PF: > { %s15_s20 = sadd.s32 1, %s655_s20   ;;  %s795_s18 = smov %s651_s19 }
 0x193   : > { %p12_p5 = scmp.ge.s32.totalorder %s15_s20, 4   ;;  %s796_s19 = smov %s798_s21 }
 0x195   :  { %14 = sbr.rel (!%p12_p5) target bundleno = 2 (0x2), region = 70 }

// kernel: utime_forward.40
= control target key start
LH: loop header
LB: loop body
LE: loop exit
PB: predicated region body
PF: predicated region fallthrough
CT: control target
= control target key end

     0   :  { %s645_s18 = smov 0   ;;  %s647_s19 = smov 0   ;;  %s713_s0 = inlined_call_operand.vmem [shape: bf16[2,1,11,20], index: 0, kind: input, shape index: {}]   ;;  %s714_s1 = inlined_call_operand.vmem [shape: bf16[11,55], index: 1, kind: input, shape index: {}]   ;;  %s715_s2 = inlined_call_operand.vmem [shape: f32[11,1], index: 2, kind: input, shape index: {}]   ;;  %s716_s3 = inlined_call_operand.vmem [shape: f32[11,1], index: 3, kind: input, shape index: {}]   ;;  %s717_s4 = inlined_call_operand.vmem [shape: f32[11,1], index: 4, kind: input, shape index: {}]   ;;  %s718_s5 = inlined_call_operand.vmem [shape: bf16[2,11,16], index: 5, kind: output, shape index: {}]  }
   0x1   :  { %s649_s20 = smov 0  }
   0x2 LB: > { %s27_s21 = sadd.s32 1, %s601_s19  ;;  %p514_p0 = scmp.ge.s32.totalorder %s605_s20, 1  ;;  %s605_s20 = sphi %s649_s20, %s15_s20   ;;  %s601_s19 = sphi %s647_s19, %s720_s19   ;;  %s597_s18 = sphi %s645_s18, %s719_s18  }
   0x3   : > { %p29_p1 = scmp.ge.s32.totalorder %s27_s21, 2  ;;  %p207_p2 = scmp.lt.s32.totalorder %s605_s20, 3 }
   0x5   : > { %s722_s21 = smov (%p29_p1, %s27_s21), 0  ;;  %p208_p3 = pnand %p514_p0, %p207_p2 }
   0x6   : > { %p242_p4 = scmp.lt.s32.totalorder (!%p208_p3), %s597_s18, 1  ;;  %v607_v0 = vmov (!%p208_p3), 0.0   ;;  %s608_s26 = smov (!%p208_p3), 127   ;;  %vm610_vm0 = vmmov (!%p208_p3), 0   ;;  %v613_v11 = vmov (!%p208_p3), 0   ;;  %v311_v12 = vld [vmem:[%s715_s2] sm:$0xff] (!%p208_p3) }
   0x7   : > { %211 = sbr.rel (%p208_p3) target bundleno = 381 (0x17d), region = 40  ;;  %535 = vmatprep.subr.bf16.mxu0 (!%p208_p3), %v607_v0  ;;  %s609_s27 = smov (!%p208_p3), 125   ;;  %543 = vmatprep.mubr.msk.bf16.mxu0 (!%p208_p3), %vm610_vm0, %v607_v0  ;;  %v312_v13 = vld [vmem:[%s715_s2 + $0x8] sm:$0x7] (!%p208_p3)  ;;  %v380_v15 = vld [vmem:[%s716_s3] sm:$0xff] (!%p208_p3)  ;;  %vm291_vm1 = vcmask (!%p208_p3), 1045504  }
   0x8   : > { %s611_s28 = smov (!%p208_p3), 126   ;;  %s612_s29 = smov (!%p208_p3), 124   ;;  %580 = vset.pattern.permute.xlu1 (!%p208_p3), %v613_v11  ;;  %579 = vset.pattern.permute.xlu0 (!%p208_p3), %v613_v11  ;;  %v381_v14 = vld [vmem:[%s716_s3 + $0x8] sm:$0x7] (!%p208_p3)  ;;  %v394_v17 = vld [vmem:[%s717_s4] sm:$0xff] (!%p208_p3)  ;;  %vm300_vm4 = vcmask (!%p208_p3), 1040384  }
   0x9   : > { %v395_v16 = vld [vmem:[%s717_s4 + $0x8] sm:$0x7] (!%p208_p3)  ;;  %vm292_vm2 = vsmask.f32 (!%p208_p3), 5376  ;;  %vm301_vm5 = vsmask.f32 (!%p208_p3), 256 }
   0xa   : > { %vm293_vm3 = vmand (!%p208_p3), %vm291_vm1, %vm292_vm2  ;;  %vm295_vm6 = vcmask (!%p208_p3), 1042432   ;;  %vm332_vm8 = vcmask (!%p208_p3), 1043456   ;;  %v614_v24 = vmov (!%p208_p3), 65535   ;;  %v582_v30 = vld [vmem:[%s714_s1] sm:$0x3f] (!%p208_p3)   ;;  %vm328_vm9 = vcmask (!%p208_p3), 449536  }
   0xb   : > { %vm302_vm7 = vmand (!%p208_p3), %vm300_vm4, %vm301_vm5  ;;  %v333_v25 = vsel (!%p208_p3), %vm295_vm6, 4294967295, %v614_v24  ;;  %vm418_vm10 = vcmask (!%p208_p3), 123904   ;;  %vm419_vm11 = vsmask.f32 (!%p208_p3), 1280  ;;  %vm416_vm12 = vcmask (!%p208_p3), 125952  }
   0xc   : > { %v334_v27 = vsel (!%p208_p3), %vm332_vm8, %v333_v25, 0  ;;  %vm420_vm13 = vmand (!%p208_p3), %vm418_vm10, %vm419_vm11 }
   0xe   : > { %s724_s18 = smov (!%p242_p4, %s597_s18), 1 }
   0xf   : > { %s526_s22 = sshll.u32 %s724_s18, 3 }
  0x10   : > { %s250_s25 = scalar_lea.vmem %s713_s0, %s526_s22 }
  0x11   : > { %v581_v1 = vld [vmem:[%s250_s25] sm:$0x3f]  }
  0x12   : > { %v269_v2 = vshrl.u32 %v581_v1, 16  ;;  %v272_v3 = vshll.u32 %v581_v1, 16  ;;  %v279_v9 = vrot.slane %v581_v1, 5  ;;  %v288_v10 = vrot.slane %v581_v1, 2 }
  0x14   : > { %v271_v4 = vrot.slane %v269_v2, 2  ;;  %v274_v5 = vrot.slane %v272_v3, 3  ;;  %v283_v6 = vrot.slane %v269_v2, 7 }
  0x16   : > { %v275_v7 = vor.u32 %v274_v5, %v271_v4  ;;  %v284_v8 = vor.u32 %v283_v6, %v272_v3 }
  0x18   : > { %276 = vrot.lane.b32.xlu0 %v275_v7, %s608_s26  ;;  %285 = vrot.lane.b32.xlu1 %v284_v8, %s609_s27  ;;  %s258_s26 = scalar_lea.vmem %s718_s5, %s526_s22 }
  0x19   : > { %v421_v50 = vld [vmem:[%s258_s26 + $0x4] sm:$0x3] }
  0x1c   : > { %280 = vrot.lane.b32.xlu0 %v279_v9, %s611_s28  ;;  %289 = vrot.lane.b32.xlu1 %v288_v10, %s612_s29 }
  0x20   : > { %315 = vperm.xlu1 %580, %v311_v12   ;;  %320 = vperm.xlu0 %579, %v312_v13  }
  0x24   : > { %389 = vperm.xlu1 %580, %v381_v14   ;;  %384 = vperm.xlu0 %579, %v380_v15  }
  0x28   : > { %403 = vperm.xlu1 %580, %v395_v16   ;;  %398 = vperm.xlu0 %579, %v394_v17  }
  0x8a   : > { %v277_v18 = vpop.permute.xlu0 %276  ;;  %v286_v19 = vpop.permute.xlu1 %285 }
  0x8b   : > { %v294_v20 = vsel %vm293_vm3, %v581_v1, %v277_v18 }
  0x8c   : > { %536 = vmatpush3.bf16.msra.mxu0 %v294_v20 }
  0x8d   : > { %537 = vmatprep.subr.bf16.mxu0 %v607_v0 }
  0x8e   : > { %v281_v21 = vpop.permute.xlu0 %280  ;;  %v290_v26 = vpop.permute.xlu1 %289 }
  0x8f   : > { %v298_v22 = vsel %vm295_vm6, %v277_v18, %v281_v21  ;;  %v303_v23 = vsel %vm302_vm7, %v281_v21, %v286_v19  ;;  %v335_v29 = vand.u32 %v334_v27, %v290_v26 }
  0x90   : > { %538 = vmatpush3.bf16.msra.mxu0 %v298_v22  ;;  %v307_v28 = vsel %vm291_vm1, %v303_v23, %v290_v26 }
  0x91   : > { %539 = vmatprep.subr.bf16.mxu0 %v607_v0 }
  0x94   : > { %540 = vmatpush3.bf16.msra.mxu0 %v307_v28 }
  0x95   : > { %541 = vmatprep.subr.bf16.mxu0 %v607_v0 }
  0x98   : > { %542 = vmatpush3.bf16.msra.mxu0 %v335_v29 }
  0x9b   : > { %544 = vmatmul.mubr.msk.bf16.vlgmr.msra.gmra.mrb[0].mxu0 %vm328_vm9, %v582_v30 }
  0x9f   : > { %v321_v31 = vpop.permute.xlu0 %320  ;;  %v316_v32 = vpop.permute.xlu1 %315 }
  0xa3   : > { %v385_v33 = vpop.permute.xlu0 %384  ;;  %v390_v37 = vpop.permute.xlu1 %389 }
  0xa7   : > { %v399_v44 = vpop.permute.xlu0 %398  ;;  %v404_v47 = vpop.permute.xlu1 %403 }
 0x16e   : > { %v371_v34 = vpop.f32.mrb[0].mxu0 }
 0x16f   : > { %v372_v35 = vadd.f32 %v371_v34, %v316_v32  ;;  %v545_v36 = vpop.f32.mrb[1].mxu0 }
 0x170   : > { %v374_v38 = vpop.f32.mrb[2].mxu0 }
 0x171   : > { %v378_v39 = vmax.f32 %v372_v35, 0.0  ;;  %v375_v40 = vadd.f32 %v374_v38, %v321_v31  ;;  %v546_v41 = vpop.f32.mrb[3].mxu0 }
 0x173   : > { %v392_v42 = vmul.f32 %v385_v33, %v378_v39  ;;  %v379_v43 = vmax.f32 %v375_v40, 0.0 }
 0x175   : > { %v406_v45 = vadd.f32 %v399_v44, %v392_v42  ;;  %v393_v46 = vmul.f32 %v390_v37, %v379_v43 }
 0x177   : > { %v528_v48 = vpack.c.bf16 %v406_v45, %v406_v45  ;;  %v407_v49 = vadd.f32 %v404_v47, %v393_v46 }
 0x179   : > { %417 = vst.msk [vmem:[%s258_s26] sm:$0xf] %vm416_vm12, %v528_v48  ;;  %v529_v51 = vpack.c.bf16 %v407_v49, %v407_v49 }
 0x17b   : > { %v422_v52 = vsel %vm420_vm13, %v529_v51, %v421_v50 }
 0x17c   : > { %423 = vst [vmem:[%s258_s26 + $0x4] sm:$0x3] %v422_v52 }
 0x17d PF: > { %s15_s20 = sadd.s32 1, %s605_s20   ;;  %s719_s18 = smov %s601_s19 }
 0x17e   : > { %p12_p5 = scmp.ge.s32.totalorder %s15_s20, 4   ;;  %s720_s19 = smov %s722_s21 }
 0x180   :  { %14 = sbr.rel (!%p12_p5) target bundleno = 2 (0x2), region = 70 }

// kernel: utime_forward.41
= control target key start
LH: loop header
LB: loop body
LE: loop exit
PB: predicated region body
PF: predicated region fallthrough
CT: control target
= control target key end

     0   :  { %s341_s9 = smov 0   ;;  %s361_s0 = inlined_call_operand.vmem [shape: bf16[2,11,16], index: 0, kind: input, shape index: {}]   ;;  %s362_s1 = inlined_call_operand.vmem [shape: bf16[16,32], index: 1, kind: input, shape index: {}]   ;;  %s363_s2 = inlined_call_operand.vmem [shape: bf16[2,11,32], index: 2, kind: output, shape index: {}]  }
   0x1 LB: > { %s276_s10 = sadd.s32 4294967295, %s322_s9   ;;  %p280_p0 = scmp.ge.s32.totalorder %s322_s9, 1  ;;  %s322_s9 = sphi %s341_s9, %s12_s9  }
   0x2   : > { %p112_p1 = scmp.lt.s32.totalorder %s322_s9, 3 }
   0x4   : > { %p113_p2 = pnand %p280_p0, %p112_p1 }
   0x5   : > { %v314_v0 = vld [vmem:[%s362_s1] sm:$0xff] (!%p113_p2)   ;;  %v324_v1 = vmov (!%p113_p2), 0.0   ;;  %p134_p3 = scmp.lt.s32.totalorder (!%p113_p2), %s276_s10, 1  ;;  %vm325_vm0 = vmmov (!%p113_p2), 0   ;;  %vm160_vm1 = vcmask (!%p113_p2), 130048   ;;  %vm215_vm2 = vcmask (!%p113_p2), 254976  }
   0x6   : > { %116 = sbr.rel (%p113_p2) target bundleno = 235 (0xeb), region = 28  ;;  %298 = vmatprep.subr.bf16.mxu0 (!%p113_p2), %v324_v1  ;;  %300 = vmatprep.mubr.msk.bf16.mxu0 (!%p113_p2), %vm325_vm0, %v324_v1  ;;  %vm216_vm3 = vsmask.f32 (!%p113_p2), 1280  ;;  %vm213_vm4 = vcmask (!%p113_p2), 257024  }
   0x7   : > { %299 = vmatpush3.bf16.msra.mxu0 (!%p113_p2), %v314_v0  ;;  %vm217_vm5 = vmand (!%p113_p2), %vm215_vm2, %vm216_vm3 }
   0xd   : > { %s365_s10 = smov (!%p134_p3, %s276_s10), 1 }
   0xe   : > { %s292_s13 = sshll.u32 %s365_s10, 3 }
   0xf   : > { %s138_s16 = scalar_lea.vmem %s361_s0, %s292_s13  ;;  %s143_s19 = scalar_lea.vmem %s363_s2, %s292_s13 }
  0x10   : > { %v315_v2 = vld [vmem:[%s138_s16] sm:$0x3f]  }
  0x11   : > { %301 = vmatmul.mubr.msk.bf16.vlgmr.msra.gmra.mrb[0].mxu0 %vm160_vm1, %v315_v2  ;;  %v218_v7 = vld [vmem:[%s143_s19 + $0x4] sm:$0x3] }
  0xe4   : > { %v198_v3 = vpop.f32.mrb[0].mxu0 }
  0xe5   : > { %v294_v4 = vpack.c.bf16 %v198_v3, %v198_v3  ;;  %v302_v5 = vpop.f32.mrb[1].mxu0 }
  0xe6   : > { %v201_v6 = vpop.f32.mrb[2].mxu0 }
  0xe7   : > { %214 = vst.msk [vmem:[%s143_s19] sm:$0xf] %vm213_vm4, %v294_v4  ;;  %v295_v8 = vpack.c.bf16 %v201_v6, %v201_v6  ;;  %v303_v9 = vpop.f32.mrb[3].mxu0 }
  0xe9   : > { %v219_v10 = vsel %vm217_vm5, %v295_v8, %v218_v7 }
  0xea   : > { %220 = vst [vmem:[%s143_s19 + $0x4] sm:$0x3] %v219_v10 }
  0xeb PF: > { %s12_s9 = sadd.s32 1, %s322_s9  }
  0xec   : > { %p9_p4 = scmp.ge.s32.totalorder %s12_s9, 4  }
  0xee   :  { %11 = sbr.rel (!%p9_p4) target bundleno = 1 (0x1), region = 58 }

// kernel: utime_forward.42
= control target key start
LH: loop header
LB: loop body
LE: loop exit
PB: predicated region body
PF: predicated region fallthrough
CT: control target
= control target key end

     0   :  { %s592_s18 = smov 0   ;;  %s594_s19 = smov 0   ;;  %s643_s0 = inlined_call_operand.vmem [shape: bf16[2,1,11,36], index: 0, kind: input, shape index: {}]   ;;  %s644_s1 = inlined_call_operand.vmem [shape: bf16[5,55], index: 1, kind: input, shape index: {}]   ;;  %s645_s2 = inlined_call_operand.vmem [shape: f32[5,1], index: 2, kind: input, shape index: {}]   ;;  %s646_s3 = inlined_call_operand.vmem [shape: f32[5,1], index: 3, kind: input, shape index: {}]   ;;  %s647_s4 = inlined_call_operand.vmem [shape: f32[5,1], index: 4, kind: input, shape index: {}]   ;;  %s648_s5 = inlined_call_operand.vmem [shape: bf16[2,5,32], index: 5, kind: output, shape index: {}]  }
   0x1   :  { %s596_s20 = smov 0  }
   0x2 LB: > { %s27_s21 = sadd.s32 1, %s548_s19  ;;  %p469_p0 = scmp.ge.s32.totalorder %s552_s20, 1  ;;  %s552_s20 = sphi %s596_s20, %s15_s20   ;;  %s548_s19 = sphi %s594_s19, %s650_s19   ;;  %s544_s18 = sphi %s592_s18, %s649_s18  }
   0x3   : > { %p29_p1 = scmp.ge.s32.totalorder %s27_s21, 2  ;;  %p207_p2 = scmp.lt.s32.totalorder %s552_s20, 3 }
   0x5   : > { %s652_s21 = smov (%p29_p1, %s27_s21), 0  ;;  %p208_p3 = pnand %p469_p0, %p207_p2 }
   0x6   : > { %p241_p4 = scmp.lt.s32.totalorder (!%p208_p3), %s544_s18, 1  ;;  %v554_v0 = vmov (!%p208_p3), 0.0   ;;  %s555_s26 = smov (!%p208_p3), 127   ;;  %vm557_vm0 = vmmov (!%p208_p3), 0   ;;  %v560_v11 = vmov (!%p208_p3), 0   ;;  %vm289_vm1 = vcmask (!%p208_p3), 1045504  }
   0x7   : > { %211 = sbr.rel (%p208_p3) target bundleno = 379 (0x17b), region = 40  ;;  %483 = vmatprep.subr.bf16.mxu0 (!%p208_p3), %v554_v0  ;;  %s556_s27 = smov (!%p208_p3), 125   ;;  %491 = vmatprep.mubr.msk.bf16.mxu0 (!%p208_p3), %vm557_vm0, %v554_v0  ;;  %v364_v12 = vld [vmem:[%s646_s3] sm:$0x1f] (!%p208_p3)  ;;  %vm290_vm2 = vsmask.f32 (!%p208_p3), 5376 }
   0x8   : > { %s558_s28 = smov (!%p208_p3), 126   ;;  %s559_s29 = smov (!%p208_p3), 124   ;;  %528 = vset.pattern.permute.xlu1 (!%p208_p3), %v560_v11  ;;  %527 = vset.pattern.permute.xlu0 (!%p208_p3), %v560_v11  ;;  %v308_v13 = vld [vmem:[%s645_s2] sm:$0x1f] (!%p208_p3)  ;;  %vm291_vm3 = vmand (!%p208_p3), %vm289_vm1, %vm290_vm2  ;;  %vm298_vm4 = vcmask (!%p208_p3), 1040384   ;;  %vm293_vm6 = vcmask (!%p208_p3), 1042432  }
   0x9   : > { %v371_v14 = vld [vmem:[%s647_s4] sm:$0x1f] (!%p208_p3)  ;;  %vm299_vm5 = vsmask.f32 (!%p208_p3), 256  ;;  %vm318_vm8 = vcmask (!%p208_p3), 1043456   ;;  %v561_v21 = vmov (!%p208_p3), 65535  }
   0xa   : > { %vm300_vm7 = vmand (!%p208_p3), %vm298_vm4, %vm299_vm5  ;;  %v319_v22 = vsel (!%p208_p3), %vm293_vm6, 4294967295, %v561_v21  ;;  %v307_v27 = vld [vmem:[%s644_s1] sm:$0x7] (!%p208_p3)  ;;  %vm314_vm9 = vcmask (!%p208_p3), 449536   ;;  %vm379_vm10 = vcmask (!%p208_p3), 256000  }
   0xb   : > { %v320_v24 = vsel (!%p208_p3), %vm318_vm8, %v319_v22, 0  ;;  %vm380_vm11 = vsmask.f32 (!%p208_p3), 2304 }
   0xc   : > { %vm381_vm12 = vmand (!%p208_p3), %vm379_vm10, %vm380_vm11 }
   0xe   : > { %s654_s18 = smov (!%p241_p4, %s544_s18), 1 }
   0xf   : > { %s477_s22 = sshll.u32 %s654_s18, 3  ;;  %s472_s13 = sshll.u32 %s654_s18, 2 }
  0x10   : > { %s249_s25 = scalar_lea.vmem %s643_s0, %s477_s22  ;;  %s256_s16 = scalar_lea.vmem %s648_s5, %s472_s13 }
  0x11   : > { %v529_v1 = vld [vmem:[%s249_s25] sm:$0x3f]  }
  0x12   : > { %v267_v2 = vshrl.u32 %v529_v1, 16  ;;  %v270_v3 = vshll.u32 %v529_v1, 16  ;;  %v277_v9 = vrot.slane %v529_v1, 5  ;;  %v286_v10 = vrot.slane %v529_v1, 2  ;;  %v382_v39 = vld [vmem:[%s256_s16] sm:$0x7] }
  0x14   : > { %v269_v4 = vrot.slane %v267_v2, 2  ;;  %v272_v5 = vrot.slane %v270_v3, 3  ;;  %v281_v6 = vrot.slane %v267_v2, 7 }
  0x16   : > { %v273_v7 = vor.u32 %v272_v5, %v269_v4  ;;  %v282_v8 = vor.u32 %v281_v6, %v270_v3 }
  0x18   : > { %274 = vrot.lane.b32.xlu0 %v273_v7, %s555_s26  ;;  %283 = vrot.lane.b32.xlu1 %v282_v8, %s556_s27 }
  0x1c   : > { %278 = vrot.lane.b32.xlu0 %v277_v9, %s558_s28  ;;  %287 = vrot.lane.b32.xlu1 %v286_v10, %s559_s29 }
  0x20   : > { %367 = vperm.xlu1 %528, %v364_v12   ;;  %311 = vperm.xlu0 %527, %v308_v13  }
  0x24   : > { %374 = vperm.xlu1 %528, %v371_v14  }
  0x8a   : > { %v275_v15 = vpop.permute.xlu0 %274  ;;  %v284_v16 = vpop.permute.xlu1 %283 }
  0x8b   : > { %v292_v17 = vsel %vm291_vm3, %v529_v1, %v275_v15 }
  0x8c   : > { %484 = vmatpush3.bf16.msra.mxu0 %v292_v17 }
  0x8d   : > { %485 = vmatprep.subr.bf16.mxu0 %v554_v0 }
  0x8e   : > { %v279_v18 = vpop.permute.xlu0 %278  ;;  %v288_v23 = vpop.permute.xlu1 %287 }
  0x8f   : > { %v296_v19 = vsel %vm293_vm6, %v275_v15, %v279_v18  ;;  %v301_v20 = vsel %vm300_vm7, %v279_v18, %v284_v16  ;;  %v321_v26 = vand.u32 %v320_v24, %v288_v23 }
  0x90   : > { %486 = vmatpush3.bf16.msra.mxu0 %v296_v19  ;;  %v305_v25 = vsel %vm289_vm1, %v301_v20, %v288_v23 }
  0x91   : > { %487 = vmatprep.subr.bf16.mxu0 %v554_v0 }
  0x94   : > { %488 = vmatpush3.bf16.msra.mxu0 %v305_v25 }
  0x95   : > { %489 = vmatprep.subr.bf16.mxu0 %v554_v0 }
  0x98   : > { %490 = vmatpush3.bf16.msra.mxu0 %v321_v26 }
  0x9b   : > { %492 = vmatmul.mubr.msk.bf16.vlgmr.msra.gmra.mrb[0].mxu0 %vm314_vm9, %v307_v27 }
  0x9f   : > { %v312_v28 = vpop.permute.xlu0 %311  ;;  %v368_v29 = vpop.permute.xlu1 %367 }
  0xa3   : > { %v375_v37 = vpop.permute.xlu1 %374 }
 0x16e   : > { %v357_v30 = vpop.f32.mrb[0].mxu0 }
 0x16f   : > { %v358_v31 = vadd.f32 %v357_v30, %v312_v28  ;;  %v493_v32 = vpop.f32.mrb[1].mxu0 }
 0x170   : > { %v360_v33 = vpop.f32.mrb[2].mxu0 }
 0x171   : > { %v363_v34 = vmax.f32 %v358_v31, 0.0  ;;  %v494_v35 = vpop.f32.mrb[3].mxu0 }
 0x173   : > { %v370_v36 = vmul.f32 %v368_v29, %v363_v34 }
 0x175   : > { %v377_v38 = vadd.f32 %v375_v37, %v370_v36 }
 0x177   : > { %v378_v40 = vpack.c.bf16 %v377_v38, %v377_v38 }
 0x179   : > { %v383_v41 = vsel %vm381_vm12, %v378_v40, %v382_v39 }
 0x17a   : > { %384 = vst [vmem:[%s256_s16] sm:$0x7] %v383_v41 }
 0x17b PF: > { %s15_s20 = sadd.s32 1, %s552_s20   ;;  %s649_s18 = smov %s548_s19 }
 0x17c   : > { %p12_p5 = scmp.ge.s32.totalorder %s15_s20, 4   ;;  %s650_s19 = smov %s652_s21 }
 0x17e   :  { %14 = sbr.rel (!%p12_p5) target bundleno = 2 (0x2), region = 70 }

// kernel: utime_forward.43
= control target key start
LH: loop header
LB: loop body
LE: loop exit
PB: predicated region body
PF: predicated region fallthrough
CT: control target
= control target key end

     0   :  { %s559_s18 = smov 0   ;;  %s561_s19 = smov 0   ;;  %s608_s0 = inlined_call_operand.vmem [shape: bf16[2,1,16,36], index: 0, kind: input, shape index: {}]   ;;  %s609_s1 = inlined_call_operand.vmem [shape: bf16[5,80], index: 1, kind: input, shape index: {}]   ;;  %s610_s2 = inlined_call_operand.vmem [shape: f32[5,1], index: 2, kind: input, shape index: {}]   ;;  %s611_s3 = inlined_call_operand.vmem [shape: f32[5,1], index: 3, kind: input, shape index: {}]   ;;  %s612_s4 = inlined_call_operand.vmem [shape: f32[5,1], index: 4, kind: input, shape index: {}]   ;;  %s613_s5 = inlined_call_operand.vmem [shape: bf16[2,5,32], index: 5, kind: output, shape index: {}]  }
   0x1   :  { %s563_s20 = smov 0  }
   0x2 LB: > { %s27_s21 = sadd.s32 1, %s516_s19  ;;  %p435_p0 = scmp.ge.s32.totalorder %s520_s20, 1  ;;  %s520_s20 = sphi %s563_s20, %s15_s20   ;;  %s516_s19 = sphi %s561_s19, %s615_s19   ;;  %s512_s18 = sphi %s559_s18, %s614_s18  }
   0x3   : > { %p29_p1 = scmp.ge.s32.totalorder %s27_s21, 2  ;;  %p207_p2 = scmp.lt.s32.totalorder %s520_s20, 3 }
   0x5   : > { %s617_s21 = smov (%p29_p1, %s27_s21), 0  ;;  %p208_p3 = pnand %p435_p0, %p207_p2 }
   0x6   : > { %p241_p4 = scmp.lt.s32.totalorder (!%p208_p3), %s512_s18, 1  ;;  %v522_v0 = vmov (!%p208_p3), 0.0   ;;  %s523_s26 = smov (!%p208_p3), 127   ;;  %vm525_vm0 = vmmov (!%p208_p3), 0   ;;  %v526_v2 = vmov (!%p208_p3), 0   ;;  %vm285_vm1 = vcmask (!%p208_p3), 654336  }
   0x7   : > { %211 = sbr.rel (%p208_p3) target bundleno = 372 (0x174), region = 40  ;;  %450 = vmatprep.subr.bf16.mxu0 (!%p208_p3), %v522_v0  ;;  %s524_s27 = smov (!%p208_p3), 125   ;;  %460 = vmatprep.mubr.msk.bf16.mxu0 (!%p208_p3), %vm525_vm0, %v522_v0  ;;  %v330_v3 = vld [vmem:[%s611_s3] sm:$0x1f] (!%p208_p3)  ;;  %vm345_vm2 = vcmask (!%p208_p3), 256000  }
   0x8   : > { %496 = vset.pattern.permute.xlu1 (!%p208_p3), %v526_v2  ;;  %495 = vset.pattern.permute.xlu0 (!%p208_p3), %v526_v2  ;;  %s527_s28 = smov (!%p208_p3), 126   ;;  %s528_s29 = smov (!%p208_p3), 124   ;;  %v279_v4 = vld [vmem:[%s610_s2] sm:$0x1f] (!%p208_p3)  ;;  %vm346_vm3 = vsmask.f32 (!%p208_p3), 2304 }
   0x9   : > { %v337_v5 = vld [vmem:[%s612_s4] sm:$0x1f] (!%p208_p3)  ;;  %vm347_vm4 = vmand (!%p208_p3), %vm345_vm2, %vm346_vm3 }
   0xa   : > { %v278_v10 = vld [vmem:[%s609_s1] sm:$0x7] (!%p208_p3) }
   0xe   : > { %s619_s18 = smov (!%p241_p4, %s512_s18), 1 }
   0xf   : > { %s443_s22 = sshll.u32 %s619_s18, 3  ;;  %s438_s13 = sshll.u32 %s619_s18, 2 }
  0x10   : > { %s249_s25 = scalar_lea.vmem %s608_s0, %s443_s22  ;;  %s256_s16 = scalar_lea.vmem %s613_s5, %s438_s13 }
  0x11   : > { %v497_v1 = vld [vmem:[%s249_s25] sm:$0xff]  }
  0x12   : > { %266 = vrot.lane.b32.xlu0 %v497_v1, %s523_s26  ;;  %272 = vrot.lane.b32.xlu1 %v497_v1, %s524_s27  ;;  %v348_v22 = vld [vmem:[%s256_s16] sm:$0x7] }
  0x13   : > { %451 = vmatpush3.bf16.msra.mxu0 %v497_v1 }
  0x14   : > { %452 = vmatprep.subr.bf16.mxu0 %v522_v0 }
  0x16   : > { %269 = vrot.lane.b32.xlu0 %v497_v1, %s527_s28  ;;  %275 = vrot.lane.b32.xlu1 %v497_v1, %s528_s29 }
  0x1a   : > { %333 = vperm.xlu1 %496, %v330_v3   ;;  %282 = vperm.xlu0 %495, %v279_v4  }
  0x1e   : > { %340 = vperm.xlu1 %496, %v337_v5  }
  0x84   : > { %v267_v6 = vpop.permute.xlu0 %266  ;;  %v273_v8 = vpop.permute.xlu1 %272 }
  0x85   : > { %453 = vmatpush3.bf16.msra.mxu0 %v267_v6 }
  0x86   : > { %454 = vmatprep.subr.bf16.mxu0 %v522_v0 }
  0x88   : > { %v270_v7 = vpop.permute.xlu0 %269  ;;  %v276_v9 = vpop.permute.xlu1 %275 }
  0x89   : > { %455 = vmatpush3.bf16.msra.mxu0 %v270_v7 }
  0x8a   : > { %456 = vmatprep.subr.bf16.mxu0 %v522_v0 }
  0x8d   : > { %457 = vmatpush3.bf16.msra.mxu0 %v273_v8 }
  0x8e   : > { %458 = vmatprep.subr.bf16.mxu0 %v522_v0 }
  0x91   : > { %459 = vmatpush3.bf16.msra.mxu0 %v276_v9 }
  0x94   : > { %461 = vmatmul.mubr.msk.bf16.vlgmr.msra.gmra.mrb[0].mxu0 %vm285_vm1, %v278_v10 }
  0x99   : > { %v283_v11 = vpop.permute.xlu0 %282  ;;  %v334_v12 = vpop.permute.xlu1 %333 }
  0x9d   : > { %v341_v20 = vpop.permute.xlu1 %340 }
 0x167   : > { %v323_v13 = vpop.f32.mrb[0].mxu0 }
 0x168   : > { %v324_v14 = vadd.f32 %v323_v13, %v283_v11  ;;  %v462_v15 = vpop.f32.mrb[1].mxu0 }
 0x169   : > { %v326_v16 = vpop.f32.mrb[2].mxu0 }
 0x16a   : > { %v329_v17 = vmax.f32 %v324_v14, 0.0  ;;  %v463_v18 = vpop.f32.mrb[3].mxu0 }
 0x16c   : > { %v336_v19 = vmul.f32 %v334_v12, %v329_v17 }
 0x16e   : > { %v343_v21 = vadd.f32 %v341_v20, %v336_v19 }
 0x170   : > { %v344_v23 = vpack.c.bf16 %v343_v21, %v343_v21 }
 0x172   : > { %v349_v24 = vsel %vm347_vm4, %v344_v23, %v348_v22 }
 0x173   : > { %350 = vst [vmem:[%s256_s16] sm:$0x7] %v349_v24 }
 0x174 PF: > { %s15_s20 = sadd.s32 1, %s520_s20   ;;  %s614_s18 = smov %s516_s19 }
 0x175   : > { %p12_p5 = scmp.ge.s32.totalorder %s15_s20, 4   ;;  %s615_s19 = smov %s617_s21 }
 0x177   :  { %14 = sbr.rel (!%p12_p5) target bundleno = 2 (0x2), region = 70 }

// kernel: utime_forward.44
= control target key start
LH: loop header
LB: loop body
LE: loop exit
PB: predicated region body
PF: predicated region fallthrough
CT: control target
= control target key end

     0   :  { %s567_s18 = smov 0   ;;  %s569_s19 = smov 0   ;;  %s621_s0 = inlined_call_operand.vmem [shape: bf16[2,1,5,36], index: 0, kind: input, shape index: {}]   ;;  %s622_s1 = inlined_call_operand.vmem [shape: bf16[5,25], index: 1, kind: input, shape index: {}]   ;;  %s623_s2 = inlined_call_operand.vmem [shape: f32[5,1], index: 2, kind: input, shape index: {}]   ;;  %s624_s3 = inlined_call_operand.vmem [shape: f32[5,1], index: 3, kind: input, shape index: {}]   ;;  %s625_s4 = inlined_call_operand.vmem [shape: f32[5,1], index: 4, kind: input, shape index: {}]   ;;  %s626_s5 = inlined_call_operand.vmem [shape: bf16[2,5,32], index: 5, kind: output, shape index: {}]  }
   0x1   :  { %s571_s20 = smov 0  }
   0x2 LB: > { %s27_s21 = sadd.s32 1, %s523_s19  ;;  %p452_p0 = scmp.ge.s32.totalorder %s527_s20, 1  ;;  %s527_s20 = sphi %s571_s20, %s15_s20   ;;  %s523_s19 = sphi %s569_s19, %s628_s19   ;;  %s519_s18 = sphi %s567_s18, %s627_s18  }
   0x3   : > { %p29_p1 = scmp.ge.s32.totalorder %s27_s21, 2  ;;  %p205_p2 = scmp.lt.s32.totalorder %s527_s20, 3 }
   0x5   : > { %s630_s21 = smov (%p29_p1, %s27_s21), 0  ;;  %p206_p3 = pnand %p452_p0, %p205_p2 }
   0x6   : > { %p237_p4 = scmp.lt.s32.totalorder (!%p206_p3), %s519_s18, 1  ;;  %v529_v0 = vmov (!%p206_p3), 0.0   ;;  %s530_s26 = smov (!%p206_p3), 126   ;;  %vm531_vm0 = vmmov (!%p206_p3), 0   ;;  %v533_v11 = vmov (!%p206_p3), 0   ;;  %vm280_vm1 = vcmask (!%p206_p3), 1042432  }
   0x7   : > { %209 = sbr.rel (%p206_p3) target bundleno = 375 (0x177), region = 40  ;;  %462 = vmatprep.subr.bf16.mxu0 (!%p206_p3), %v529_v0  ;;  %466 = vmatprep.mubr.msk.bf16.mxu0 (!%p206_p3), %vm531_vm0, %v529_v0  ;;  %s532_s27 = smov (!%p206_p3), 125   ;;  %v298_v13 = vld [vmem:[%s623_s2] sm:$0x1f] (!%p206_p3)  ;;  %vm281_vm2 = vsmask.f32 (!%p206_p3), 2304 }
   0x8   : > { %503 = vset.pattern.permute.xlu0 (!%p206_p3), %v533_v11  ;;  %502 = vset.pattern.permute.xlu1 (!%p206_p3), %v533_v11  ;;  %s534_s28 = smov (!%p206_p3), 127   ;;  %s535_s6 = smov (!%p206_p3), 124   ;;  %v354_v14 = vld [vmem:[%s624_s3] sm:$0x1f] (!%p206_p3)  ;;  %vm289_vm3 = vcmask (!%p206_p3), 1047552   ;;  %vm308_vm5 = vcmask (!%p206_p3), 1043456   ;;  %vm282_vm6 = vmand (!%p206_p3), %vm280_vm1, %vm281_vm2 }
   0x9   : > { %v361_v15 = vld [vmem:[%s625_s4] sm:$0x1f] (!%p206_p3)  ;;  %vm290_vm4 = vsmask.f32 (!%p206_p3), 7424  ;;  %vm284_vm7 = vcmask (!%p206_p3), 1044480   ;;  %v536_v19 = vmov (!%p206_p3), 65535  }
   0xa   : > { %vm291_vm8 = vmand (!%p206_p3), %vm289_vm3, %vm290_vm4  ;;  %v309_v20 = vsel (!%p206_p3), %vm308_vm5, 4294967295, %v536_v19  ;;  %vm293_vm9 = vcmask (!%p206_p3), 1041408   ;;  %v297_v29 = vld [vmem:[%s622_s1] sm:$0x7] (!%p206_p3)  ;;  %vm304_vm10 = vcmask (!%p206_p3), 203776   ;;  %vm369_vm11 = vcmask (!%p206_p3), 256000  }
   0xb   : > { %v310_v25 = vsel (!%p206_p3), %vm284_vm7, %v309_v20, 0  ;;  %vm370_vm12 = vmand (!%p206_p3), %vm369_vm11, %vm281_vm2 }
   0xe   : > { %s632_s18 = smov (!%p237_p4, %s519_s18), 1 }
   0xf   : > { %s453_s22 = sshll.u32 %s632_s18, 2 }
  0x10   : > { %s243_s25 = scalar_lea.vmem %s621_s0, %s453_s22  ;;  %s250_s15 = scalar_lea.vmem %s626_s5, %s453_s22 }
  0x11   : > { %v252_v1 = vld [vmem:[%s243_s25] sm:$0x7] }
  0x12   : > { %v455_v2 = vcombine.low %v252_v1, %v252_v1  ;;  %v371_v41 = vld [vmem:[%s250_s15] sm:$0x7] }
  0x14   : > { %v267_v3 = vrot.slane %v455_v2, 3  ;;  %v260_v4 = vshll.u32 %v455_v2, 16  ;;  %v257_v5 = vshrl.u32 %v455_v2, 16  ;;  %v277_v12 = vrot.slane %v455_v2, 6 }
  0x16   : > { %268 = vrot.lane.b32.xlu0 %v267_v3, %s530_s26  ;;  %v270_v6 = vrot.slane %v260_v4, 1  ;;  %v262_v7 = vrot.slane %v260_v4, 6  ;;  %v259_v8 = vrot.slane %v257_v5, 5 }
  0x18   : > { %272 = vrot.lane.b32.xlu1 %v270_v6, %s532_s27  ;;  %v271_v9 = vor.u32 %v270_v6, %v257_v5  ;;  %v263_v10 = vor.u32 %v262_v7, %v259_v8 }
  0x1a   : > { %264 = vrot.lane.b32.xlu0 %v263_v10, %s534_s28 }
  0x1c   : > { %274 = vrot.lane.b32.xlu1 %v271_v9, %s532_s27 }
  0x1e   : > { %278 = vrot.lane.b32.xlu0 %v277_v12, %s535_s6 }
  0x20   : > { %301 = vperm.xlu1 %502, %v298_v13  }
  0x22   : > { %357 = vperm.xlu0 %503, %v354_v14  }
  0x24   : > { %364 = vperm.xlu1 %502, %v361_v15  }
  0x88   : > { %v269_v16 = vpop.permute.xlu0 %268 }
  0x8a   : > { %v273_v17 = vpop.permute.xlu1 %272 }
  0x8c   : > { %v265_v18 = vpop.permute.xlu0 %264 }
  0x8d   : > { %v283_v21 = vsel %vm282_vm6, %v252_v1, %v265_v18 }
  0x8e   : > { %v275_v22 = vpop.permute.xlu1 %274  ;;  %v287_v23 = vsel %vm284_vm7, %v283_v21, %v269_v16 }
  0x8f   : > { %v292_v24 = vsel %vm291_vm8, %v287_v23, %v273_v17 }
  0x90   : > { %463 = vmatpush3.bf16.msra.mxu0 %v292_v24  ;;  %v279_v26 = vpop.permute.xlu0 %278 }
  0x91   : > { %v296_v27 = vsel %vm293_vm9, %v275_v22, %v279_v26  ;;  %464 = vmatprep.subr.bf16.mxu0 %v529_v0 }
  0x92   : > { %v311_v28 = vand.u32 %v310_v25, %v296_v27 }
  0x94   : > { %465 = vmatpush3.bf16.msra.mxu0 %v311_v28 }
  0x97   : > { %467 = vmatmul.mubr.msk.bf16.vlgmr.msra.gmra.mrb[0].mxu0 %vm304_vm10, %v297_v29 }
  0x9f   : > { %v302_v30 = vpop.permute.xlu1 %301 }
  0xa1   : > { %v358_v35 = vpop.permute.xlu0 %357 }
  0xa3   : > { %v365_v39 = vpop.permute.xlu1 %364 }
 0x16a   : > { %v347_v31 = vpop.f32.mrb[0].mxu0 }
 0x16b   : > { %v348_v32 = vadd.f32 %v347_v31, %v302_v30  ;;  %v468_v33 = vpop.f32.mrb[1].mxu0 }
 0x16c   : > { %v350_v34 = vpop.f32.mrb[2].mxu0 }
 0x16d   : > { %v353_v36 = vmax.f32 %v348_v32, 0.0  ;;  %v469_v37 = vpop.f32.mrb[3].mxu0 }
 0x16f   : > { %v360_v38 = vmul.f32 %v358_v35, %v353_v36 }
 0x171   : > { %v367_v40 = vadd.f32 %v365_v39, %v360_v38 }
 0x173   : > { %v368_v42 = vpack.c.bf16 %v367_v40, %v367_v40 }
 0x175   : > { %v372_v43 = vsel %vm370_vm12, %v368_v42, %v371_v41 }
 0x176   : > { %373 = vst [vmem:[%s250_s15] sm:$0x7] %v372_v43 }
 0x177 PF: > { %s15_s20 = sadd.s32 1, %s527_s20   ;;  %s627_s18 = smov %s523_s19 }
 0x178   : > { %p12_p5 = scmp.ge.s32.totalorder %s15_s20, 4   ;;  %s628_s19 = smov %s630_s21 }
 0x17a   :  { %14 = sbr.rel (!%p12_p5) target bundleno = 2 (0x2), region = 70 }

// kernel: utime_forward.45
= control target key start
LH: loop header
LB: loop body
LE: loop exit
PB: predicated region body
PF: predicated region fallthrough
CT: control target
= control target key end

     0   :  { %s512_s18 = smov 0   ;;  %s514_s19 = smov 0   ;;  %s561_s0 = inlined_call_operand.vmem [shape: bf16[2,1,5,32], index: 0, kind: input, shape index: {}]   ;;  %s562_s1 = inlined_call_operand.vmem [shape: bf16[3,5], index: 1, kind: input, shape index: {}]   ;;  %s563_s2 = inlined_call_operand.vmem [shape: f32[3,1], index: 2, kind: input, shape index: {}]   ;;  %s564_s3 = inlined_call_operand.vmem [shape: f32[3,1], index: 3, kind: input, shape index: {}]   ;;  %s565_s4 = inlined_call_operand.vmem [shape: f32[3,1], index: 4, kind: input, shape index: {}]   ;;  %s566_s5 = inlined_call_operand.vmem [shape: bf16[2,3,32], index: 5, kind: output, shape index: {}]  }
   0x1   :  { %s516_s20 = smov 0  }
   0x2 LB: > { %s27_s21 = sadd.s32 1, %s472_s19  ;;  %p410_p0 = scmp.ge.s32.totalorder %s476_s20, 1  ;;  %s476_s20 = sphi %s516_s20, %s15_s20   ;;  %s472_s19 = sphi %s514_s19, %s568_s19   ;;  %s468_s18 = sphi %s512_s18, %s567_s18  }
   0x3   : > { %p29_p1 = scmp.ge.s32.totalorder %s27_s21, 2  ;;  %p205_p2 = scmp.lt.s32.totalorder %s476_s20, 3 }
   0x5   : > { %s570_s21 = smov (%p29_p1, %s27_s21), 0  ;;  %p206_p3 = pnand %p410_p0, %p205_p2 }
   0x6   : > { %p237_p4 = scmp.lt.s32.totalorder (!%p206_p3), %s468_s18, 1  ;;  %vm264_vm0 = vcmask (!%p206_p3), 1041408   ;;  %v478_v0 = vmov (!%p206_p3), 0.0   ;;  %vm265_vm1 = vcmask (!%p206_p3), 1042432   ;;  %v479_v1 = vmov (!%p206_p3), 65535  }
   0x7   : > { %209 = sbr.rel (%p206_p3) target bundleno = 245 (0xf5), region = 40  ;;  %418 = vmatprep.subr.bf16.mxu0 (!%p206_p3), %v478_v0  ;;  %v266_v2 = vsel (!%p206_p3), %vm264_vm0, 4294967295, %v479_v1  ;;  %vm480_vm2 = vmmov (!%p206_p3), 0   ;;  %v481_v3 = vmov (!%p206_p3), 0   ;;  %v254_v4 = vld [vmem:[%s563_s2] sm:$0x7] (!%p206_p3) }
   0x8   : > { %420 = vmatprep.mubr.msk.bf16.mxu0 (!%p206_p3), %vm480_vm2, %v478_v0  ;;  %452 = vset.pattern.permute.xlu0 (!%p206_p3), %v481_v3  ;;  %v318_v5 = vld [vmem:[%s565_s4] sm:$0x7] (!%p206_p3)  ;;  %v267_v6 = vsel (!%p206_p3), %vm265_vm1, %v266_v2, 0  ;;  %vm260_vm3 = vcmask (!%p206_p3), 39936   ;;  %vm326_vm4 = vcmask (!%p206_p3), 254976  }
   0x9   : > { %257 = vperm.xlu0 (!%p206_p3), %452, %v254_v4   ;;  %453 = vset.pattern.permute.xlu1 (!%p206_p3), %v481_v3  ;;  %v311_v7 = vld [vmem:[%s564_s3] sm:$0x7] (!%p206_p3)  ;;  %vm327_vm5 = vsmask.f32 (!%p206_p3), 1280 }
   0xa   : > { %321 = vperm.xlu1 (!%p206_p3), %453, %v318_v5   ;;  %v253_v10 = vld [vmem:[%s562_s1] sm:$0x3] (!%p206_p3)  ;;  %vm328_vm6 = vmand (!%p206_p3), %vm326_vm4, %vm327_vm5 }
   0xd   : > { %314 = vperm.xlu0 (!%p206_p3), %452, %v311_v7  }
   0xe   : > { %s572_s18 = smov (!%p237_p4, %s468_s18), 1 }
   0xf   : > { %s411_s26 = sshll.u32 %s572_s18, 2  ;;  %s412_s9 = sshll.u32 %s572_s18, 1 }
  0x10   : > { %s243_s6 = scalar_lea.vmem %s561_s0, %s411_s26  ;;  %s250_s12 = scalar_lea.vmem %s566_s5, %s412_s9 }
  0x11   : > { %v252_v8 = vld [vmem:[%s243_s6] sm:$0x7] }
  0x12   : > { %v269_v9 = vand.u32 %v267_v6, %v252_v8  ;;  %v329_v21 = vld [vmem:[%s250_s12] sm:$0x3] }
  0x14   : > { %419 = vmatpush3.bf16.msra.mxu0 %v269_v9 }
  0x17   : > { %421 = vmatmul.mubr.msk.bf16.vlgmr.msra.gmra.mrb[0].mxu0 %vm260_vm3, %v253_v10 }
  0x88   : > { %v258_v11 = vpop.permute.xlu0 %257 }
  0x89   : > { %v322_v15 = vpop.permute.xlu1 %321 }
  0x8c   : > { %v315_v16 = vpop.permute.xlu0 %314 }
  0xea   : > { %v305_v12 = vpop.f32.mrb[0].mxu0 }
  0xeb   : > { %v306_v13 = vadd.f32 %v305_v12, %v258_v11  ;;  %v422_v14 = vpop.f32.mrb[1].mxu0 }
  0xec   : > { %v308_v17 = vpop.f32.mrb[2].mxu0 }
  0xed   : > { %v423_v18 = vpop.f32.mrb[3].mxu0  ;;  %v317_v19 = vmul.f32 %v315_v16, %v306_v13 }
  0xef   : > { %v324_v20 = vadd.f32 %v322_v15, %v317_v19 }
  0xf1   : > { %v325_v22 = vpack.c.bf16 %v324_v20, %v324_v20 }
  0xf3   : > { %v330_v23 = vsel %vm328_vm6, %v325_v22, %v329_v21 }
  0xf4   : > { %331 = vst [vmem:[%s250_s12] sm:$0x3] %v330_v23 }
  0xf5 PF: > { %s15_s20 = sadd.s32 1, %s476_s20   ;;  %s567_s18 = smov %s472_s19 }
  0xf6   : > { %p12_p5 = scmp.ge.s32.totalorder %s15_s20, 4   ;;  %s568_s19 = smov %s570_s21 }
  0xf8   :  { %14 = sbr.rel (!%p12_p5) target bundleno = 2 (0x2), region = 70 }

// kernel: utime_forward.46
= control target key start
LH: loop header
LB: loop body
LE: loop exit
PB: predicated region body
PF: predicated region fallthrough
CT: control target
= control target key end

     0   :  { %s295_s6 = smov 0   ;;  %s297_s7 = smov 0   ;;  %s349_s0 = inlined_call_operand.vmem [shape: bf16[2,2,3,16], index: 0, kind: input, shape index: {}]   ;;  %s350_s1 = inlined_call_operand.vmem [shape: bf16[2,3,16], index: 1, kind: output, shape index: {}]  }
   0x1   :  { %s299_s8 = smov 0  }
   0x2 LB: > { %s225_s9 = sadd.s32 4294967295, %s283_s8   ;;  %s312_s10 = sadd.s32 1, %s283_s8   ;;  %s283_s8 = sphi %s299_s8, %s353_s8   ;;  %s279_s7 = sphi %s297_s7, %s352_s7   ;;  %s275_s6 = sphi %s295_s6, %s351_s6  }
   0x3   : > { %s15_s11 = ssub.s32 %s283_s8, %s312_s10  ;;  %s18_s12 = sadd.s32 1, %s279_s7 }
   0x4   : > { %p16_p0 = scmp.eq.s32.totalorder %s15_s11, 0  ;;  %p25_p1 = scmp.ne.s32.totalorder %s279_s7, %s275_s6 }
   0x5   : > { %p26_p2 = scmp.eq.s32.totalorder %s283_s8, 0  ;;  %p228_p4 = scmp.ge.s32.totalorder %s283_s8, 2 }
   0x6   : > { %s321_s13 = scalar_select %p16_p0, %s279_s7, %s18_s12  }
   0x7   : > { %p27_p3 = por %p26_p2, %p25_p1  ;;  %77 = sbr.rel (%p228_p4) target bundleno = 21 (0x15), region = 16 }
   0xe   : > { %80 = sbr.rel (!%p27_p3) target bundleno = 21 (0x15), region = 20  ;;  %s82_s14 = sand.u32 (%p27_p3), 1, %s279_s7  }
   0xf   : > { %s230_s15 = sshll.u32 (%p27_p3), %s283_s8, 1  ;;  %s229_s16 = sshll.u32 (%p27_p3), %s82_s14, 2 }
  0x10   : > { %s86_s19 = scalar_lea.vmem (%p27_p3), %s349_s0, %s230_s15  ;;  %s84_s20 = scalar_lea.vmem (%p27_p3), [#allocation2], %s229_s16 }
  0x11   : > { %v102_v0 = vld [vmem:[%s86_s19] sm:$0x3] (%p27_p3)  ;;  %v104_v1 = vld [vmem:[%s86_s19 + $0x4] sm:$0x3] (%p27_p3) }
  0x12   : > { %103 = vst [vmem:[%s84_s20] sm:$0x3] (%p27_p3), %v102_v0  ;;  %105 = vst [vmem:[%s84_s20 + $0x2] sm:$0x3] (%p27_p3), %v104_v1 }
  0x15 PF: > { %p231_p5 = scmp.ge.s32.totalorder %s283_s8, 1  ;;  %p123_p6 = scmp.lt.s32.totalorder %s283_s8, 3 }
  0x17   : > { %p124_p7 = pnand %p231_p5, %p123_p6 }
  0x18   : > { %s130_s21 = sand.u32 (!%p124_p7), 1, %s275_s6   ;;  %p148_p8 = scmp.lt.s32.totalorder (!%p124_p7), %s225_s9, 1  ;;  %vm160_vm0 = vcmask (!%p124_p7), 123904   ;;  %vm161_vm1 = vsmask.f32 (!%p124_p7), 1280 }
  0x19   : > { %127 = sbr.rel (%p124_p7) target bundleno = 38 (0x26), region = 54  ;;  %s232_s22 = sshll.u32 (!%p124_p7), %s130_s21, 2  ;;  %vm162_vm2 = vmand (!%p124_p7), %vm160_vm0, %vm161_vm1 }
  0x1a   : > { %s132_s23 = scalar_lea.vmem (!%p124_p7), [#allocation2], %s232_s22 }
  0x1b   : > { %v152_v2 = vld [vmem:[%s132_s23] sm:$0x3] (!%p124_p7)  ;;  %v234_v3 = vld [vmem:[%s132_s23 + $0x2] sm:$0x3] (!%p124_p7) }
  0x1c   : > { %v153_v4 = vunpack.c.l.bf16 (!%p124_p7), %v152_v2  ;;  %v156_v5 = vunpack.c.l.bf16 (!%p124_p7), %v234_v3 }
  0x1e   : > { %v157_v6 = vadd.f32 (!%p124_p7), %v156_v5, %v153_v4 }
  0x20   : > { %s355_s9 = smov (!%p148_p8, %s225_s9), 1  ;;  %v158_v7 = vmul.f32 0.5, %v157_v6 }
  0x21   : > { %s233_s24 = sshll.u32 %s355_s9, 1 }
  0x22   : > { %s151_s27 = scalar_lea.vmem %s350_s1, %s233_s24  ;;  %v159_v9 = vpack.c.bf16 %v158_v7, %v158_v7 }
  0x23   : > { %v163_v8 = vld [vmem:[%s151_s27] sm:$0x3] }
  0x24   : > { %v164_v10 = vsel %vm162_vm2, %v159_v9, %v163_v8 }
  0x25   : > { %165 = vst [vmem:[%s151_s27] sm:$0x3] %v164_v10 }
  0x26 PF: > { %p8_p9 = scmp.ge.s32.totalorder %s312_s10, 4   ;;  %s351_s6 = smov %s279_s7 }
  0x27   : > { %s352_s7 = smov %s321_s13  ;;  %s353_s8 = smov %s312_s10 }
  0x28   :  { %10 = sbr.rel (!%p8_p9) target bundleno = 2 (0x2), region = 94 }

// kernel: utime_forward.47
= control target key start
LH: loop header
LB: loop body
LE: loop exit
PB: predicated region body
PF: predicated region fallthrough
CT: control target
= control target key end

     0   :  { %s546_s18 = smov 0   ;;  %s548_s19 = smov 0   ;;  %s600_s0 = inlined_call_operand.vmem [shape: bf16[2,1,3,18], index: 0, kind: input, shape index: {}]   ;;  %s601_s1 = inlined_call_operand.vmem [shape: bf16[3,9], index: 1, kind: input, shape index: {}]   ;;  %s602_s2 = inlined_call_operand.vmem [shape: f32[3,1], index: 2, kind: input, shape index: {}]   ;;  %s603_s3 = inlined_call_operand.vmem [shape: f32[3,1], index: 3, kind: input, shape index: {}]   ;;  %s604_s4 = inlined_call_operand.vmem [shape: f32[3,1], index: 4, kind: input, shape index: {}]   ;;  %s605_s5 = inlined_call_operand.vmem [shape: bf16[2,3,16], index: 5, kind: output, shape index: {}]  }
   0x1   :  { %s550_s20 = smov 0  }
   0x2 LB: > { %s27_s21 = sadd.s32 1, %s503_s19  ;;  %p438_p0 = scmp.ge.s32.totalorder %s507_s20, 1  ;;  %s507_s20 = sphi %s550_s20, %s15_s20   ;;  %s503_s19 = sphi %s548_s19, %s607_s19   ;;  %s499_s18 = sphi %s546_s18, %s606_s18  }
   0x3   : > { %p29_p1 = scmp.ge.s32.totalorder %s27_s21, 2  ;;  %p205_p2 = scmp.lt.s32.totalorder %s507_s20, 3 }
   0x5   : > { %s609_s21 = smov (%p29_p1, %s27_s21), 0  ;;  %p206_p3 = pnand %p438_p0, %p205_p2 }
   0x6   : > { %p237_p4 = scmp.lt.s32.totalorder (!%p206_p3), %s499_s18, 1  ;;  %v257_v0 = vlaneseq (!%p206_p3)  ;;  %v509_v1 = vmov (!%p206_p3), 1983009808   ;;  %v510_v8 = vmov (!%p206_p3), 0.0   ;;  %vm511_vm0 = vmmov (!%p206_p3), 0   ;;  %s513_s28 = smov (!%p206_p3), 127  }
   0x7   : > { %209 = sbr.rel (%p206_p3) target bundleno = 373 (0x175), region = 40  ;;  %v255_v2 = vunpack.c.l.s4 (!%p206_p3), %v509_v1  ;;  %446 = vmatprep.subr.bf16.mxu0 (!%p206_p3), %v510_v8  ;;  %448 = vmatprep.mubr.msk.bf16.mxu0 (!%p206_p3), %vm511_vm0, %v510_v8  ;;  %v284_v13 = vld [vmem:[%s602_s2] sm:$0x7] (!%p206_p3)  ;;  %v512_v15 = vmov (!%p206_p3), 0   ;;  %s514_s6 = smov (!%p206_p3), 126   ;;  %vm294_vm1 = vcmask (!%p206_p3), 1043456  }
   0x8   : > { %v258_v3 = vshrl.u32 (!%p206_p3), %v257_v0, 7  ;;  %483 = vset.pattern.permute.xlu1 (!%p206_p3), %v512_v15  ;;  %484 = vset.pattern.permute.xlu0 (!%p206_p3), %v512_v15  ;;  %v340_v17 = vld [vmem:[%s603_s3] sm:$0x7] (!%p206_p3)  ;;  %vm275_vm2 = vcmask (!%p206_p3), 1041408   ;;  %vm276_vm3 = vsmask.f32 (!%p206_p3), 1280 }
   0x9   : > { %v256_v4 = vunpack.c.0.s8 (!%p206_p3), %v255_v2  ;;  %287 = vperm.xlu1 (!%p206_p3), %483, %v284_v13   ;;  %v347_v18 = vld [vmem:[%s604_s4] sm:$0x7] (!%p206_p3)  ;;  %vm295_vm4 = vcmask (!%p206_p3), 1044480   ;;  %v515_v20 = vmov (!%p206_p3), 65535   ;;  %vm277_vm5 = vmand (!%p206_p3), %vm275_vm2, %vm276_vm3  ;;  %vm279_vm6 = vcmask (!%p206_p3), 1042432  }
   0xa   : > { %v296_v21 = vsel (!%p206_p3), %vm294_vm1, 4294967295, %v515_v20  ;;  %v283_v27 = vld [vmem:[%s601_s1] sm:$0x3] (!%p206_p3)  ;;  %vm290_vm7 = vcmask (!%p206_p3), 72704   ;;  %vm355_vm8 = vcmask (!%p206_p3), 123904  }
   0xb   : > { %v259_v5 = vsub.s32 (!%p206_p3), %v256_v4, %v258_v3  ;;  %v297_v22 = vsel (!%p206_p3), %vm295_vm4, %v296_v21, 0  ;;  %vm356_vm9 = vmand (!%p206_p3), %vm355_vm8, %vm276_vm3 }
   0xd   : > { %343 = vperm.xlu1 (!%p206_p3), %483, %v340_v17  }
   0xe   : > { %s611_s18 = smov (!%p237_p4, %s499_s18), 1 }
   0xf   : > { %s439_s22 = sshll.u32 %s611_s18, 1 }
  0x10   : > { %s243_s25 = scalar_lea.vmem %s600_s0, %s439_s22  ;;  %s250_s13 = scalar_lea.vmem %s605_s5, %s439_s22 }
  0x11   : > { %v252_v6 = vld [vmem:[%s243_s25] sm:$0x3] }
  0x12   : > { %v260_v7 = vrot.slane %v252_v6, %v259_v5  ;;  %v357_v38 = vld [vmem:[%s250_s13] sm:$0x3] }
  0x14   : > { %v262_v9 = vshrl.u32 %v260_v7, 16  ;;  %v265_v10 = vshll.u32 %v260_v7, 16  ;;  %v272_v16 = vrot.slane %v260_v7, 5 }
  0x16   : > { %v264_v11 = vrot.slane %v262_v9, 6  ;;  %v267_v12 = vrot.slane %v265_v10, 7 }
  0x18   : > { %v268_v14 = vor.u32 %v267_v12, %v264_v11 }
  0x1a   : > { %269 = vrot.lane.b32.xlu0 %v268_v14, %s513_s28 }
  0x1e   : > { %273 = vrot.lane.b32.xlu0 %v272_v16, %s514_s6 }
  0x22   : > { %350 = vperm.xlu0 %484, %v347_v18  }
  0x88   : > { %v288_v28 = vpop.permute.xlu1 %287 }
  0x8c   : > { %v270_v19 = vpop.permute.xlu0 %269  ;;  %v344_v30 = vpop.permute.xlu1 %343 }
  0x8d   : > { %v278_v23 = vsel %vm277_vm5, %v252_v6, %v270_v19 }
  0x90   : > { %v274_v24 = vpop.permute.xlu0 %273 }
  0x91   : > { %v282_v25 = vsel %vm279_vm6, %v278_v23, %v274_v24 }
  0x92   : > { %v298_v26 = vand.u32 %v297_v22, %v282_v25 }
  0x94   : > { %447 = vmatpush3.bf16.msra.mxu0 %v298_v26 }
  0x97   : > { %449 = vmatmul.mubr.msk.bf16.vlgmr.msra.gmra.mrb[0].mxu0 %vm290_vm7, %v283_v27 }
  0xa1   : > { %v351_v34 = vpop.permute.xlu0 %350 }
 0x16a   : > { %v334_v29 = vpop.f32.mrb[0].mxu0 }
 0x16b   : > { %v335_v31 = vadd.f32 %v334_v29, %v288_v28  ;;  %v450_v32 = vpop.f32.mrb[1].mxu0 }
 0x16c   : > { %v337_v33 = vpop.f32.mrb[2].mxu0 }
 0x16d   : > { %v451_v35 = vpop.f32.mrb[3].mxu0  ;;  %v346_v36 = vmul.f32 %v344_v30, %v335_v31 }
 0x16f   : > { %v353_v37 = vadd.f32 %v351_v34, %v346_v36 }
 0x171   : > { %v354_v39 = vpack.c.bf16 %v353_v37, %v353_v37 }
 0x173   : > { %v358_v40 = vsel %vm356_vm9, %v354_v39, %v357_v38 }
 0x174   : > { %359 = vst [vmem:[%s250_s13] sm:$0x3] %v358_v40 }
 0x175 PF: > { %s15_s20 = sadd.s32 1, %s507_s20   ;;  %s606_s18 = smov %s503_s19 }
 0x176   : > { %p12_p5 = scmp.ge.s32.totalorder %s15_s20, 4   ;;  %s607_s19 = smov %s609_s21 }
 0x178   :  { %14 = sbr.rel (!%p12_p5) target bundleno = 2 (0x2), region = 70 }

</bundles_post_ra>
